<compile_context>
chip_gen: v7x
topology: tpu7x:2x2x1
jax: 0.10.0
libtpu: 0.0.40
codegen_flags: <defaults>
</compile_context>

<pallas_src>
import numpy as np

import jax
import jax.numpy as jnp
from jax import lax
from jax.experimental import pallas as pl
from jax.experimental.pallas import tpu as pltpu


# ----------------------------- static geometry -------------------------------
TB = 8                                   # batch tile (grid axis, "parallel")

# conv1: 32x32x3 -> 28x28x6 (input H padded 32->36 so we compute 32 output rows)
H1_IN, W1_IN, C1_IN, C1_OUT = 36, 32, 3, 6
OH1, OW1 = 32, 28                        # 32 computed rows (28 valid), 28 valid cols
LANE1 = W1_IN * C1_IN                    # 96   (input row, (w, c) flattened in lanes)
K1 = 5 * LANE1                           # 480
N1 = OW1 * C1_OUT                        # 168  = [even 84 | odd 84]

# conv2: 14x14x6 -> 10x10x16 (input H padded 14->20 so we compute 16 output rows)
H2_IN, W2_IN, C2_IN, C2_OUT = 20, 14, 6, 16
OH2, OW2 = 16, 10                        # 16 computed rows (10 valid)
LANE2 = W2_IN * C2_IN                    # 84
K2 = 5 * LANE2                           # 420
N2 = OW2 * C2_OUT                        # 160  = [even 80 | odd 80]


# ------------------------------- Pallas kernel --------------------------------
def _net_kernel(x_ref, w1_ref, b1_ref, w2_ref, b2_ref,
                wf1_ref, bf1_ref, wf2_ref, bf2_ref, wf3_ref, bf3_ref,
                o_ref,
                cols1, hp1, x2, cols2, hp2, p2s):
    """One batch tile of the full forward pass, entirely VMEM-resident."""
    tb = x_ref.shape[0] // H1_IN

    # ---------------- conv1 + ReLU (banded matmul, in-VMEM row-im2col) ----------------
    for di in range(5):
        for b in range(tb):
            cols1[b * OH1:(b + 1) * OH1, di * LANE1:(di + 1) * LANE1] = \
                x_ref[b * H1_IN + di: b * H1_IN + di + OH1, :]
    y1 = jnp.dot(cols1[...], w1_ref[...], preferred_element_type=jnp.float32)
    y1 = jnp.maximum(y1 + b1_ref[...], 0.0)                      # (tb*32, 168)

    # ---------------- maxpool 2x2 #1 ----------------
    half1 = N1 // 2
    wmax1 = jnp.maximum(y1[:, :half1], y1[:, half1:])            # width-pool via lane blocks
    hp1[...] = wmax1
    p1 = jnp.maximum(hp1[pl.ds(0, tb * OH1 // 2, 2), :],         # height-pool via stride-2 rows
                     hp1[pl.ds(1, tb * OH1 // 2, 2), :])         # (tb*16, 84), rows (b, i)

    # ---------------- stage conv2 input (zero-pad extra rows) ----------------
    x2[...] = jnp.zeros(x2.shape, x2.dtype)
    for b in range(tb):
        x2[b * H2_IN: b * H2_IN + 14, :] = p1[b * 16: b * 16 + 14, :]

    # ---------------- conv2 + ReLU ----------------
    for di in range(5):
        for b in range(tb):
            cols2[b * OH2:(b + 1) * OH2, di * LANE2:(di + 1) * LANE2] = \
                x2[b * H2_IN + di: b * H2_IN + di + OH2, :]
    y2 = jnp.dot(cols2[...], w2_ref[...], preferred_element_type=jnp.float32)
    y2 = jnp.maximum(y2 + b2_ref[...], 0.0)                      # (tb*16, 160)

    # ---------------- maxpool 2x2 #2 ----------------
    half2 = N2 // 2
    wmax2 = jnp.maximum(y2[:, :half2], y2[:, half2:])            # (tb*16, 80)
    hp2[...] = wmax2
    p2 = jnp.maximum(hp2[pl.ds(0, tb * OH2 // 2, 2), :],
                     hp2[pl.ds(1, tb * OH2 // 2, 2), :])         # (tb*8, 80), rows (b, i)
    p2s[...] = p2

    # ---------------- fc1 (NCHW flatten folded into the weight) + ReLU ----------------
    acc = jnp.broadcast_to(bf1_ref[...], (tb, 120)).astype(jnp.float32)
    for h in range(5):
        xrow = p2s[pl.ds(h, tb, 8), :]                           # (tb, 80): rows h, h+8, ...
        acc = acc + jnp.dot(xrow, wf1_ref[h], preferred_element_type=jnp.float32)
    z = jnp.maximum(acc, 0.0)

    # ---------------- fc2 + ReLU, fc3 ----------------
    z = jnp.maximum(jnp.dot(z, wf2_ref[...], preferred_element_type=jnp.float32)
                    + bf2_ref[...], 0.0)
    o_ref[...] = jnp.dot(z, wf3_ref[...], preferred_element_type=jnp.float32) + bf3_ref[...]


# --------------------------- host-side weight prep ---------------------------
def _conv_band_matrix(w_oihw, in_w, out_w):
    """Banded matrix B so that (row-im2col @ B) computes a valid 5x5 conv for a whole
    output row.  Kernel-side row layout: lane = di*(in_w*cin) + w*cin + c.
    Output columns are ordered [even output cols | odd output cols] (each (j', co)),
    so the 2x2 width-pool becomes a single lane-block max inside the kernel."""
    cout, cin, kh, kw = w_oihw.shape
    half = out_w // 2
    k_dim = kh * in_w * cin
    n_dim = out_w * cout
    di, dj, ci, co, jh, par = np.meshgrid(
        np.arange(kh), np.arange(kw), np.arange(cin), np.arange(cout),
        np.arange(half), np.arange(2), indexing="ij")
    j = 2 * jh + par                         # output column
    wi = j + dj                              # input column used
    rows = (di * in_w + wi) * cin + ci
    cols = par * (half * cout) + jh * cout + co
    vals = w_oihw[co, ci, di, dj]
    band = jnp.zeros((k_dim, n_dim), jnp.float32)
    return band.at[rows.reshape(-1), cols.reshape(-1)].set(vals.reshape(-1))


def _prep_params(params):
    wf1 = jnp.transpose(params["fc1_w"].reshape(120, 16, 5, 5), (2, 3, 1, 0))
    return dict(
        w1=_conv_band_matrix(params["conv1_w"], W1_IN, OW1),          # (480, 168)
        b1=jnp.tile(params["conv1_b"], OW1).reshape(1, N1),
        w2=_conv_band_matrix(params["conv2_w"], W2_IN, OW2),          # (420, 160)
        b2=jnp.tile(params["conv2_b"], OW2).reshape(1, N2),
        wf1=wf1.reshape(5, 80, 120),                                  # (h, w*16+c, out)
        bf1=params["fc1_b"].reshape(1, 120),
        wf2=params["fc2_w"].T, bf2=params["fc2_b"].reshape(1, 84),
        wf3=params["fc3_w"].T, bf3=params["fc3_b"].reshape(1, 10),
    )


# --------------------------------- forward -----------------------------------
def net_forward(params, x_nchw):
    p = _prep_params(params)

    x = jnp.transpose(x_nchw.astype(jnp.float32), (0, 2, 3, 1))       # NHWC (B, 32, 32, 3)
    batch = x.shape[0]
    bp = ((batch + TB - 1) // TB) * TB
    x = jnp.pad(x, ((0, bp - batch), (0, H1_IN - 32), (0, 0), (0, 0)))  # batch pad + H 32->36
    x2d = x.reshape(bp * H1_IN, LANE1)                                # rows=(b,h), lanes=(w,c)

    grid = (bp // TB,)
    flops = 2 * bp * (OH1 * K1 * N1 + OH2 * K2 * N2 + 5 * 80 * 120 + 120 * 84 + 84 * 10)
    param_bytes = 4 * (K1 * N1 + K2 * N2 + 5 * 80 * 120 + 120 * 84 + 84 * 10
                       + N1 + N2 + 120 + 84 + 10)
    bytes_accessed = x2d.size * 4 + param_bytes + bp * 10 * 4

    out = pl.pallas_call(
        _net_kernel,
        out_shape=jax.ShapeDtypeStruct((bp, 10), jnp.float32),
        grid_spec=pltpu.PrefetchScalarGridSpec(
            num_scalar_prefetch=0,
            grid=grid,
            in_specs=[
                pl.BlockSpec((TB * H1_IN, LANE1), lambda i: (i, 0)),   # x (batch-tiled)
                pl.BlockSpec((K1, N1), lambda i: (0, 0)),              # conv1 band
                pl.BlockSpec((1, N1), lambda i: (0, 0)),
                pl.BlockSpec((K2, N2), lambda i: (0, 0)),              # conv2 band
                pl.BlockSpec((1, N2), lambda i: (0, 0)),
                pl.BlockSpec((5, 80, 120), lambda i: (0, 0, 0)),       # fc1 (flatten folded in)
                pl.BlockSpec((1, 120), lambda i: (0, 0)),
                pl.BlockSpec((120, 84), lambda i: (0, 0)),             # fc2
                pl.BlockSpec((1, 84), lambda i: (0, 0)),
                pl.BlockSpec((84, 10), lambda i: (0, 0)),              # fc3
                pl.BlockSpec((1, 10), lambda i: (0, 0)),
            ],
            out_specs=pl.BlockSpec((TB, 10), lambda i: (i, 0)),
            scratch_shapes=[
                pltpu.VMEM((TB * OH1, K1), jnp.float32),               # cols1 (256, 480)
                pltpu.VMEM((TB * OH1, N1 // 2), jnp.float32),          # hp1   (256, 84)
                pltpu.VMEM((TB * H2_IN, LANE2), jnp.float32),          # x2    (160, 84)
                pltpu.VMEM((TB * OH2, K2), jnp.float32),               # cols2 (128, 420)
                pltpu.VMEM((TB * OH2, N2 // 2), jnp.float32),          # hp2   (128, 80)
                pltpu.VMEM((TB * OH2 // 2, N2 // 2), jnp.float32),     # p2s   (64, 80)
            ],
        ),
        compiler_params=pltpu.CompilerParams(dimension_semantics=("parallel",)),
        cost_estimate=pl.CostEstimate(flops=flops, transcendentals=0,
                                      bytes_accessed=bytes_accessed),
    )(x2d, p["w1"], p["b1"], p["w2"], p["b2"],
      p["wf1"], p["bf1"], p["wf2"], p["bf2"], p["wf3"], p["bf3"])
    return out[:batch]


# ------------------------------ params & reference ----------------------------
def init_params(key):
    """Deterministic PyTorch-style (uniform +/- 1/sqrt(fan_in)) init."""
    ks = jax.random.split(key, 10)

    def u(k, shape, fan_in):
        bound = 1.0 / jnp.sqrt(jnp.float32(fan_in))
        return jax.random.uniform(k, shape, jnp.float32, -bound, bound)

    return {
        "conv1_w": u(ks[0], (6, 3, 5, 5), 3 * 25),
        "conv1_b": u(ks[1], (6,), 3 * 25),
        "conv2_w": u(ks[2], (16, 6, 5, 5), 6 * 25),
        "conv2_b": u(ks[3], (16,), 6 * 25),
        "fc1_w": u(ks[4], (120, 400), 400),
        "fc1_b": u(ks[5], (120,), 400),
        "fc2_w": u(ks[6], (84, 120), 120),
        "fc2_b": u(ks[7], (84,), 120),
        "fc3_w": u(ks[8], (10, 84), 84),
        "fc3_b": u(ks[9], (10,), 84),
    }


def net_reference(params, x):
    """Pure-JAX/XLA reference (matches the PyTorch Net.forward)."""
    y = lax.conv(x.astype(jnp.float32), params["conv1_w"], (1, 1), "VALID")
    y = jnp.maximum(y + params["conv1_b"][None, :, None, None], 0.0)
    y = y.reshape(y.shape[0], 6, 14, 2, 14, 2).max(axis=(3, 5))
    y = lax.conv(y, params["conv2_w"], (1, 1), "VALID")
    y = jnp.maximum(y + params["conv2_b"][None, :, None, None], 0.0)
    y = y.reshape(y.shape[0], 16, 5, 2, 5, 2).max(axis=(3, 5))
    y = y.reshape(y.shape[0], -1)                                     # NCHW flatten
    y = jnp.maximum(y @ params["fc1_w"].T + params["fc1_b"], 0.0)
    y = jnp.maximum(y @ params["fc2_w"].T + params["fc2_b"], 0.0)
    return y @ params["fc3_w"].T + params["fc3_b"]


if __name__ == "__main__":
    key = jax.random.PRNGKey(0)
    k_params, k_x = jax.random.split(key)
    params = init_params(k_params)
    # 16*5*5 flatten implies 32x32 spatial input (CIFAR-10 style).
    x = jax.random.normal(k_x, (2, 3, 32, 32), jnp.float32)

    out = jax.jit(net_forward)(params, x)
    out = jax.block_until_ready(out)
    assert out.shape == (2, 10) and out.dtype == jnp.float32

    ref = net_reference(params, x)
    max_err = float(jnp.max(jnp.abs(out - ref)))
    assert jnp.allclose(out, ref, atol=5e-2, rtol=5e-2), max_err

    print("KERNEL_OK")
</pallas_src>

<mosaic_0001>
module attributes {stable_mosaic.version = 11 : i64} {
  func.func @_net_kernel(%arg0: i32, %arg1: memref<288x96xf32, #tpu.memory_space<vmem>>, %arg2: memref<480x168xf32, #tpu.memory_space<vmem>>, %arg3: memref<1x168xf32, #tpu.memory_space<vmem>>, %arg4: memref<420x160xf32, #tpu.memory_space<vmem>>, %arg5: memref<1x160xf32, #tpu.memory_space<vmem>>, %arg6: memref<5x80x120xf32, #tpu.memory_space<vmem>>, %arg7: memref<1x120xf32, #tpu.memory_space<vmem>>, %arg8: memref<120x84xf32, #tpu.memory_space<vmem>>, %arg9: memref<1x84xf32, #tpu.memory_space<vmem>>, %arg10: memref<84x10xf32, #tpu.memory_space<vmem>>, %arg11: memref<1x10xf32, #tpu.memory_space<vmem>>, %arg12: memref<8x10xf32, #tpu.memory_space<vmem>>, %arg13: memref<256x480xf32, #tpu.memory_space<vmem>>, %arg14: memref<256x84xf32, #tpu.memory_space<vmem>>, %arg15: memref<160x84xf32, #tpu.memory_space<vmem>>, %arg16: memref<128x420xf32, #tpu.memory_space<vmem>>, %arg17: memref<128x80xf32, #tpu.memory_space<vmem>>, %arg18: memref<64x80xf32, #tpu.memory_space<vmem>>) attributes {dimension_semantics = [#tpu.dimension_semantics<parallel>], iteration_bounds = array<i64: 1>, scalar_prefetch = 0 : i64, scratch_operands = 6 : i64, tpu.core_type = #tpu.core_type<tc>, window_params = [{transform_indices = @transform_0, window_bounds = array<i64: 288, 96>}, {pipeline_mode = #tpu.pipeline_mode<synchronous>, transform_indices = @transform_1, window_bounds = array<i64: 480, 168>}, {pipeline_mode = #tpu.pipeline_mode<synchronous>, transform_indices = @transform_2, window_bounds = array<i64: 1, 168>}, {pipeline_mode = #tpu.pipeline_mode<synchronous>, transform_indices = @transform_3, window_bounds = array<i64: 420, 160>}, {pipeline_mode = #tpu.pipeline_mode<synchronous>, transform_indices = @transform_4, window_bounds = array<i64: 1, 160>}, {pipeline_mode = #tpu.pipeline_mode<synchronous>, transform_indices = @transform_5, window_bounds = array<i64: 5, 80, 120>}, {pipeline_mode = #tpu.pipeline_mode<synchronous>, transform_indices = @transform_6, window_bounds = array<i64: 1, 120>}, {pipeline_mode = #tpu.pipeline_mode<synchronous>, transform_indices = @transform_7, window_bounds = array<i64: 120, 84>}, {pipeline_mode = #tpu.pipeline_mode<synchronous>, transform_indices = @transform_8, window_bounds = array<i64: 1, 84>}, {pipeline_mode = #tpu.pipeline_mode<synchronous>, transform_indices = @transform_9, window_bounds = array<i64: 84, 10>}, {pipeline_mode = #tpu.pipeline_mode<synchronous>, transform_indices = @transform_10, window_bounds = array<i64: 1, 10>}, {transform_indices = @transform_11, window_bounds = array<i64: 8, 10>}]} {
    %c0 = arith.constant 0 : index
    %c0_0 = arith.constant 0 : index
    %0 = vector.load %arg1[%c0, %c0_0] : memref<288x96xf32, #tpu.memory_space<vmem>>, vector<32x96xf32>
    %c0_1 = arith.constant 0 : index
    %c0_2 = arith.constant 0 : index
    %1 = vector.load %arg13[%c0_1, %c0_2] : memref<256x480xf32, #tpu.memory_space<vmem>>, vector<32x96xf32>
    tpu.vector_store %arg13[%c0_1, %c0_2], %0 {strides = array<i32>} : memref<256x480xf32, #tpu.memory_space<vmem>>, vector<32x96xf32>,
    %c36 = arith.constant 36 : index
    %c0_3 = arith.constant 0 : index
    %2 = vector.load %arg1[%c36, %c0_3] : memref<288x96xf32, #tpu.memory_space<vmem>>, vector<32x96xf32>
    %c32 = arith.constant 32 : index
    %c0_4 = arith.constant 0 : index
    %3 = vector.load %arg13[%c32, %c0_4] : memref<256x480xf32, #tpu.memory_space<vmem>>, vector<32x96xf32>
    tpu.vector_store %arg13[%c32, %c0_4], %2 {strides = array<i32>} : memref<256x480xf32, #tpu.memory_space<vmem>>, vector<32x96xf32>,
    %c72 = arith.constant 72 : index
    %c0_5 = arith.constant 0 : index
    %4 = vector.load %arg1[%c72, %c0_5] : memref<288x96xf32, #tpu.memory_space<vmem>>, vector<32x96xf32>
    %c64 = arith.constant 64 : index
    %c0_6 = arith.constant 0 : index
    %5 = vector.load %arg13[%c64, %c0_6] : memref<256x480xf32, #tpu.memory_space<vmem>>, vector<32x96xf32>
    tpu.vector_store %arg13[%c64, %c0_6], %4 {strides = array<i32>} : memref<256x480xf32, #tpu.memory_space<vmem>>, vector<32x96xf32>,
    %c108 = arith.constant 108 : index
    %c0_7 = arith.constant 0 : index
    %6 = vector.load %arg1[%c108, %c0_7] : memref<288x96xf32, #tpu.memory_space<vmem>>, vector<32x96xf32>
    %c96 = arith.constant 96 : index
    %c0_8 = arith.constant 0 : index
    %7 = vector.load %arg13[%c96, %c0_8] : memref<256x480xf32, #tpu.memory_space<vmem>>, vector<32x96xf32>
    tpu.vector_store %arg13[%c96, %c0_8], %6 {strides = array<i32>} : memref<256x480xf32, #tpu.memory_space<vmem>>, vector<32x96xf32>,
    %c144 = arith.constant 144 : index
    %c0_9 = arith.constant 0 : index
    %8 = vector.load %arg1[%c144, %c0_9] : memref<288x96xf32, #tpu.memory_space<vmem>>, vector<32x96xf32>
    %c128 = arith.constant 128 : index
    %c0_10 = arith.constant 0 : index
    %9 = vector.load %arg13[%c128, %c0_10] : memref<256x480xf32, #tpu.memory_space<vmem>>, vector<32x96xf32>
    tpu.vector_store %arg13[%c128, %c0_10], %8 {strides = array<i32>} : memref<256x480xf32, #tpu.memory_space<vmem>>, vector<32x96xf32>,
    %c180 = arith.constant 180 : index
    %c0_11 = arith.constant 0 : index
    %10 = vector.load %arg1[%c180, %c0_11] : memref<288x96xf32, #tpu.memory_space<vmem>>, vector<32x96xf32>
    %c160 = arith.constant 160 : index
    %c0_12 = arith.constant 0 : index
    %11 = vector.load %arg13[%c160, %c0_12] : memref<256x480xf32, #tpu.memory_space<vmem>>, vector<32x96xf32>
    tpu.vector_store %arg13[%c160, %c0_12], %10 {strides = array<i32>} : memref<256x480xf32, #tpu.memory_space<vmem>>, vector<32x96xf32>,
    %c216 = arith.constant 216 : index
    %c0_13 = arith.constant 0 : index
    %12 = vector.load %arg1[%c216, %c0_13] : memref<288x96xf32, #tpu.memory_space<vmem>>, vector<32x96xf32>
    %c192 = arith.constant 192 : index
    %c0_14 = arith.constant 0 : index
    %13 = vector.load %arg13[%c192, %c0_14] : memref<256x480xf32, #tpu.memory_space<vmem>>, vector<32x96xf32>
    tpu.vector_store %arg13[%c192, %c0_14], %12 {strides = array<i32>} : memref<256x480xf32, #tpu.memory_space<vmem>>, vector<32x96xf32>,
    %c252 = arith.constant 252 : index
    %c0_15 = arith.constant 0 : index
    %14 = vector.load %arg1[%c252, %c0_15] : memref<288x96xf32, #tpu.memory_space<vmem>>, vector<32x96xf32>
    %c224 = arith.constant 224 : index
    %c0_16 = arith.constant 0 : index
    %15 = vector.load %arg13[%c224, %c0_16] : memref<256x480xf32, #tpu.memory_space<vmem>>, vector<32x96xf32>
    tpu.vector_store %arg13[%c224, %c0_16], %14 {strides = array<i32>} : memref<256x480xf32, #tpu.memory_space<vmem>>, vector<32x96xf32>,
    %c1 = arith.constant 1 : index
    %c0_17 = arith.constant 0 : index
    %16 = vector.load %arg1[%c1, %c0_17] : memref<288x96xf32, #tpu.memory_space<vmem>>, vector<32x96xf32>
    %c0_18 = arith.constant 0 : index
    %c96_19 = arith.constant 96 : index
    %17 = vector.load %arg13[%c0_18, %c96_19] : memref<256x480xf32, #tpu.memory_space<vmem>>, vector<32x96xf32>
    tpu.vector_store %arg13[%c0_18, %c96_19], %16 {strides = array<i32>} : memref<256x480xf32, #tpu.memory_space<vmem>>, vector<32x96xf32>,
    %c37 = arith.constant 37 : index
    %c0_20 = arith.constant 0 : index
    %18 = vector.load %arg1[%c37, %c0_20] : memref<288x96xf32, #tpu.memory_space<vmem>>, vector<32x96xf32>
    %c32_21 = arith.constant 32 : index
    %c96_22 = arith.constant 96 : index
    %19 = vector.load %arg13[%c32_21, %c96_22] : memref<256x480xf32, #tpu.memory_space<vmem>>, vector<32x96xf32>
    tpu.vector_store %arg13[%c32_21, %c96_22], %18 {strides = array<i32>} : memref<256x480xf32, #tpu.memory_space<vmem>>, vector<32x96xf32>,
    %c73 = arith.constant 73 : index
    %c0_23 = arith.constant 0 : index
    %20 = vector.load %arg1[%c73, %c0_23] : memref<288x96xf32, #tpu.memory_space<vmem>>, vector<32x96xf32>
    %c64_24 = arith.constant 64 : index
    %c96_25 = arith.constant 96 : index
    %21 = vector.load %arg13[%c64_24, %c96_25] : memref<256x480xf32, #tpu.memory_space<vmem>>, vector<32x96xf32>
    tpu.vector_store %arg13[%c64_24, %c96_25], %20 {strides = array<i32>} : memref<256x480xf32, #tpu.memory_space<vmem>>, vector<32x96xf32>,
    %c109 = arith.constant 109 : index
    %c0_26 = arith.constant 0 : index
    %22 = vector.load %arg1[%c109, %c0_26] : memref<288x96xf32, #tpu.memory_space<vmem>>, vector<32x96xf32>
    %c96_27 = arith.constant 96 : index
    %c96_28 = arith.constant 96 : index
    %23 = vector.load %arg13[%c96_27, %c96_28] : memref<256x480xf32, #tpu.memory_space<vmem>>, vector<32x96xf32>
    tpu.vector_store %arg13[%c96_27, %c96_28], %22 {strides = array<i32>} : memref<256x480xf32, #tpu.memory_space<vmem>>, vector<32x96xf32>,
    %c145 = arith.constant 145 : index
    %c0_29 = arith.constant 0 : index
    %24 = vector.load %arg1[%c145, %c0_29] : memref<288x96xf32, #tpu.memory_space<vmem>>, vector<32x96xf32>
    %c128_30 = arith.constant 128 : index
    %c96_31 = arith.constant 96 : index
    %25 = vector.load %arg13[%c128_30, %c96_31] : memref<256x480xf32, #tpu.memory_space<vmem>>, vector<32x96xf32>
    tpu.vector_store %arg13[%c128_30, %c96_31], %24 {strides = array<i32>} : memref<256x480xf32, #tpu.memory_space<vmem>>, vector<32x96xf32>,
    %c181 = arith.constant 181 : index
    %c0_32 = arith.constant 0 : index
    %26 = vector.load %arg1[%c181, %c0_32] : memref<288x96xf32, #tpu.memory_space<vmem>>, vector<32x96xf32>
    %c160_33 = arith.constant 160 : index
    %c96_34 = arith.constant 96 : index
    %27 = vector.load %arg13[%c160_33, %c96_34] : memref<256x480xf32, #tpu.memory_space<vmem>>, vector<32x96xf32>
    tpu.vector_store %arg13[%c160_33, %c96_34], %26 {strides = array<i32>} : memref<256x480xf32, #tpu.memory_space<vmem>>, vector<32x96xf32>,
    %c217 = arith.constant 217 : index
    %c0_35 = arith.constant 0 : index
    %28 = vector.load %arg1[%c217, %c0_35] : memref<288x96xf32, #tpu.memory_space<vmem>>, vector<32x96xf32>
    %c192_36 = arith.constant 192 : index
    %c96_37 = arith.constant 96 : index
    %29 = vector.load %arg13[%c192_36, %c96_37] : memref<256x480xf32, #tpu.memory_space<vmem>>, vector<32x96xf32>
    tpu.vector_store %arg13[%c192_36, %c96_37], %28 {strides = array<i32>} : memref<256x480xf32, #tpu.memory_space<vmem>>, vector<32x96xf32>,
    %c253 = arith.constant 253 : index
    %c0_38 = arith.constant 0 : index
    %30 = vector.load %arg1[%c253, %c0_38] : memref<288x96xf32, #tpu.memory_space<vmem>>, vector<32x96xf32>
    %c224_39 = arith.constant 224 : index
    %c96_40 = arith.constant 96 : index
    %31 = vector.load %arg13[%c224_39, %c96_40] : memref<256x480xf32, #tpu.memory_space<vmem>>, vector<32x96xf32>
    tpu.vector_store %arg13[%c224_39, %c96_40], %30 {strides = array<i32>} : memref<256x480xf32, #tpu.memory_space<vmem>>, vector<32x96xf32>,
    %c2 = arith.constant 2 : index
    %c0_41 = arith.constant 0 : index
    %32 = vector.load %arg1[%c2, %c0_41] : memref<288x96xf32, #tpu.memory_space<vmem>>, vector<32x96xf32>
    %c0_42 = arith.constant 0 : index
    %c192_43 = arith.constant 192 : index
    %33 = vector.load %arg13[%c0_42, %c192_43] : memref<256x480xf32, #tpu.memory_space<vmem>>, vector<32x96xf32>
    tpu.vector_store %arg13[%c0_42, %c192_43], %32 {strides = array<i32>} : memref<256x480xf32, #tpu.memory_space<vmem>>, vector<32x96xf32>,
    %c38 = arith.constant 38 : index
    %c0_44 = arith.constant 0 : index
    %34 = vector.load %arg1[%c38, %c0_44] : memref<288x96xf32, #tpu.memory_space<vmem>>, vector<32x96xf32>
    %c32_45 = arith.constant 32 : index
    %c192_46 = arith.constant 192 : index
    %35 = vector.load %arg13[%c32_45, %c192_46] : memref<256x480xf32, #tpu.memory_space<vmem>>, vector<32x96xf32>
    tpu.vector_store %arg13[%c32_45, %c192_46], %34 {strides = array<i32>} : memref<256x480xf32, #tpu.memory_space<vmem>>, vector<32x96xf32>,
    %c74 = arith.constant 74 : index
    %c0_47 = arith.constant 0 : index
    %36 = vector.load %arg1[%c74, %c0_47] : memref<288x96xf32, #tpu.memory_space<vmem>>, vector<32x96xf32>
    %c64_48 = arith.constant 64 : index
    %c192_49 = arith.constant 192 : index
    %37 = vector.load %arg13[%c64_48, %c192_49] : memref<256x480xf32, #tpu.memory_space<vmem>>, vector<32x96xf32>
    tpu.vector_store %arg13[%c64_48, %c192_49], %36 {strides = array<i32>} : memref<256x480xf32, #tpu.memory_space<vmem>>, vector<32x96xf32>,
    %c110 = arith.constant 110 : index
    %c0_50 = arith.constant 0 : index
    %38 = vector.load %arg1[%c110, %c0_50] : memref<288x96xf32, #tpu.memory_space<vmem>>, vector<32x96xf32>
    %c96_51 = arith.constant 96 : index
    %c192_52 = arith.constant 192 : index
    %39 = vector.load %arg13[%c96_51, %c192_52] : memref<256x480xf32, #tpu.memory_space<vmem>>, vector<32x96xf32>
    tpu.vector_store %arg13[%c96_51, %c192_52], %38 {strides = array<i32>} : memref<256x480xf32, #tpu.memory_space<vmem>>, vector<32x96xf32>,
    %c146 = arith.constant 146 : index
    %c0_53 = arith.constant 0 : index
    %40 = vector.load %arg1[%c146, %c0_53] : memref<288x96xf32, #tpu.memory_space<vmem>>, vector<32x96xf32>
    %c128_54 = arith.constant 128 : index
    %c192_55 = arith.constant 192 : index
    %41 = vector.load %arg13[%c128_54, %c192_55] : memref<256x480xf32, #tpu.memory_space<vmem>>, vector<32x96xf32>
    tpu.vector_store %arg13[%c128_54, %c192_55], %40 {strides = array<i32>} : memref<256x480xf32, #tpu.memory_space<vmem>>, vector<32x96xf32>,
    %c182 = arith.constant 182 : index
    %c0_56 = arith.constant 0 : index
    %42 = vector.load %arg1[%c182, %c0_56] : memref<288x96xf32, #tpu.memory_space<vmem>>, vector<32x96xf32>
    %c160_57 = arith.constant 160 : index
    %c192_58 = arith.constant 192 : index
    %43 = vector.load %arg13[%c160_57, %c192_58] : memref<256x480xf32, #tpu.memory_space<vmem>>, vector<32x96xf32>
    tpu.vector_store %arg13[%c160_57, %c192_58], %42 {strides = array<i32>} : memref<256x480xf32, #tpu.memory_space<vmem>>, vector<32x96xf32>,
    %c218 = arith.constant 218 : index
    %c0_59 = arith.constant 0 : index
    %44 = vector.load %arg1[%c218, %c0_59] : memref<288x96xf32, #tpu.memory_space<vmem>>, vector<32x96xf32>
    %c192_60 = arith.constant 192 : index
    %c192_61 = arith.constant 192 : index
    %45 = vector.load %arg13[%c192_60, %c192_61] : memref<256x480xf32, #tpu.memory_space<vmem>>, vector<32x96xf32>
    tpu.vector_store %arg13[%c192_60, %c192_61], %44 {strides = array<i32>} : memref<256x480xf32, #tpu.memory_space<vmem>>, vector<32x96xf32>,
    %c254 = arith.constant 254 : index
    %c0_62 = arith.constant 0 : index
    %46 = vector.load %arg1[%c254, %c0_62] : memref<288x96xf32, #tpu.memory_space<vmem>>, vector<32x96xf32>
    %c224_63 = arith.constant 224 : index
    %c192_64 = arith.constant 192 : index
    %47 = vector.load %arg13[%c224_63, %c192_64] : memref<256x480xf32, #tpu.memory_space<vmem>>, vector<32x96xf32>
    tpu.vector_store %arg13[%c224_63, %c192_64], %46 {strides = array<i32>} : memref<256x480xf32, #tpu.memory_space<vmem>>, vector<32x96xf32>,
    %c3 = arith.constant 3 : index
    %c0_65 = arith.constant 0 : index
    %48 = vector.load %arg1[%c3, %c0_65] : memref<288x96xf32, #tpu.memory_space<vmem>>, vector<32x96xf32>
    %c0_66 = arith.constant 0 : index
    %c288 = arith.constant 288 : index
    %49 = vector.load %arg13[%c0_66, %c288] : memref<256x480xf32, #tpu.memory_space<vmem>>, vector<32x96xf32>
    tpu.vector_store %arg13[%c0_66, %c288], %48 {strides = array<i32>} : memref<256x480xf32, #tpu.memory_space<vmem>>, vector<32x96xf32>,
    %c39 = arith.constant 39 : index
    %c0_67 = arith.constant 0 : index
    %50 = vector.load %arg1[%c39, %c0_67] : memref<288x96xf32, #tpu.memory_space<vmem>>, vector<32x96xf32>
    %c32_68 = arith.constant 32 : index
    %c288_69 = arith.constant 288 : index
    %51 = vector.load %arg13[%c32_68, %c288_69] : memref<256x480xf32, #tpu.memory_space<vmem>>, vector<32x96xf32>
    tpu.vector_store %arg13[%c32_68, %c288_69], %50 {strides = array<i32>} : memref<256x480xf32, #tpu.memory_space<vmem>>, vector<32x96xf32>,
    %c75 = arith.constant 75 : index
    %c0_70 = arith.constant 0 : index
    %52 = vector.load %arg1[%c75, %c0_70] : memref<288x96xf32, #tpu.memory_space<vmem>>, vector<32x96xf32>
    %c64_71 = arith.constant 64 : index
    %c288_72 = arith.constant 288 : index
    %53 = vector.load %arg13[%c64_71, %c288_72] : memref<256x480xf32, #tpu.memory_space<vmem>>, vector<32x96xf32>
    tpu.vector_store %arg13[%c64_71, %c288_72], %52 {strides = array<i32>} : memref<256x480xf32, #tpu.memory_space<vmem>>, vector<32x96xf32>,
    %c111 = arith.constant 111 : index
    %c0_73 = arith.constant 0 : index
    %54 = vector.load %arg1[%c111, %c0_73] : memref<288x96xf32, #tpu.memory_space<vmem>>, vector<32x96xf32>
    %c96_74 = arith.constant 96 : index
    %c288_75 = arith.constant 288 : index
    %55 = vector.load %arg13[%c96_74, %c288_75] : memref<256x480xf32, #tpu.memory_space<vmem>>, vector<32x96xf32>
    tpu.vector_store %arg13[%c96_74, %c288_75], %54 {strides = array<i32>} : memref<256x480xf32, #tpu.memory_space<vmem>>, vector<32x96xf32>,
    %c147 = arith.constant 147 : index
    %c0_76 = arith.constant 0 : index
    %56 = vector.load %arg1[%c147, %c0_76] : memref<288x96xf32, #tpu.memory_space<vmem>>, vector<32x96xf32>
    %c128_77 = arith.constant 128 : index
    %c288_78 = arith.constant 288 : index
    %57 = vector.load %arg13[%c128_77, %c288_78] : memref<256x480xf32, #tpu.memory_space<vmem>>, vector<32x96xf32>
    tpu.vector_store %arg13[%c128_77, %c288_78], %56 {strides = array<i32>} : memref<256x480xf32, #tpu.memory_space<vmem>>, vector<32x96xf32>,
    %c183 = arith.constant 183 : index
    %c0_79 = arith.constant 0 : index
    %58 = vector.load %arg1[%c183, %c0_79] : memref<288x96xf32, #tpu.memory_space<vmem>>, vector<32x96xf32>
    %c160_80 = arith.constant 160 : index
    %c288_81 = arith.constant 288 : index
    %59 = vector.load %arg13[%c160_80, %c288_81] : memref<256x480xf32, #tpu.memory_space<vmem>>, vector<32x96xf32>
    tpu.vector_store %arg13[%c160_80, %c288_81], %58 {strides = array<i32>} : memref<256x480xf32, #tpu.memory_space<vmem>>, vector<32x96xf32>,
    %c219 = arith.constant 219 : index
    %c0_82 = arith.constant 0 : index
    %60 = vector.load %arg1[%c219, %c0_82] : memref<288x96xf32, #tpu.memory_space<vmem>>, vector<32x96xf32>
    %c192_83 = arith.constant 192 : index
    %c288_84 = arith.constant 288 : index
    %61 = vector.load %arg13[%c192_83, %c288_84] : memref<256x480xf32, #tpu.memory_space<vmem>>, vector<32x96xf32>
    tpu.vector_store %arg13[%c192_83, %c288_84], %60 {strides = array<i32>} : memref<256x480xf32, #tpu.memory_space<vmem>>, vector<32x96xf32>,
    %c255 = arith.constant 255 : index
    %c0_85 = arith.constant 0 : index
    %62 = vector.load %arg1[%c255, %c0_85] : memref<288x96xf32, #tpu.memory_space<vmem>>, vector<32x96xf32>
    %c224_86 = arith.constant 224 : index
    %c288_87 = arith.constant 288 : index
    %63 = vector.load %arg13[%c224_86, %c288_87] : memref<256x480xf32, #tpu.memory_space<vmem>>, vector<32x96xf32>
    tpu.vector_store %arg13[%c224_86, %c288_87], %62 {strides = array<i32>} : memref<256x480xf32, #tpu.memory_space<vmem>>, vector<32x96xf32>,
    %c4 = arith.constant 4 : index
    %c0_88 = arith.constant 0 : index
    %64 = vector.load %arg1[%c4, %c0_88] : memref<288x96xf32, #tpu.memory_space<vmem>>, vector<32x96xf32>
    %c0_89 = arith.constant 0 : index
    %c384 = arith.constant 384 : index
    %65 = vector.load %arg13[%c0_89, %c384] : memref<256x480xf32, #tpu.memory_space<vmem>>, vector<32x96xf32>
    tpu.vector_store %arg13[%c0_89, %c384], %64 {strides = array<i32>} : memref<256x480xf32, #tpu.memory_space<vmem>>, vector<32x96xf32>,
    %c40 = arith.constant 40 : index
    %c0_90 = arith.constant 0 : index
    %66 = vector.load %arg1[%c40, %c0_90] : memref<288x96xf32, #tpu.memory_space<vmem>>, vector<32x96xf32>
    %c32_91 = arith.constant 32 : index
    %c384_92 = arith.constant 384 : index
    %67 = vector.load %arg13[%c32_91, %c384_92] : memref<256x480xf32, #tpu.memory_space<vmem>>, vector<32x96xf32>
    tpu.vector_store %arg13[%c32_91, %c384_92], %66 {strides = array<i32>} : memref<256x480xf32, #tpu.memory_space<vmem>>, vector<32x96xf32>,
    %c76 = arith.constant 76 : index
    %c0_93 = arith.constant 0 : index
    %68 = vector.load %arg1[%c76, %c0_93] : memref<288x96xf32, #tpu.memory_space<vmem>>, vector<32x96xf32>
    %c64_94 = arith.constant 64 : index
    %c384_95 = arith.constant 384 : index
    %69 = vector.load %arg13[%c64_94, %c384_95] : memref<256x480xf32, #tpu.memory_space<vmem>>, vector<32x96xf32>
    tpu.vector_store %arg13[%c64_94, %c384_95], %68 {strides = array<i32>} : memref<256x480xf32, #tpu.memory_space<vmem>>, vector<32x96xf32>,
    %c112 = arith.constant 112 : index
    %c0_96 = arith.constant 0 : index
    %70 = vector.load %arg1[%c112, %c0_96] : memref<288x96xf32, #tpu.memory_space<vmem>>, vector<32x96xf32>
    %c96_97 = arith.constant 96 : index
    %c384_98 = arith.constant 384 : index
    %71 = vector.load %arg13[%c96_97, %c384_98] : memref<256x480xf32, #tpu.memory_space<vmem>>, vector<32x96xf32>
    tpu.vector_store %arg13[%c96_97, %c384_98], %70 {strides = array<i32>} : memref<256x480xf32, #tpu.memory_space<vmem>>, vector<32x96xf32>,
    %c148 = arith.constant 148 : index
    %c0_99 = arith.constant 0 : index
    %72 = vector.load %arg1[%c148, %c0_99] : memref<288x96xf32, #tpu.memory_space<vmem>>, vector<32x96xf32>
    %c128_100 = arith.constant 128 : index
    %c384_101 = arith.constant 384 : index
    %73 = vector.load %arg13[%c128_100, %c384_101] : memref<256x480xf32, #tpu.memory_space<vmem>>, vector<32x96xf32>
    tpu.vector_store %arg13[%c128_100, %c384_101], %72 {strides = array<i32>} : memref<256x480xf32, #tpu.memory_space<vmem>>, vector<32x96xf32>,
    %c184 = arith.constant 184 : index
    %c0_102 = arith.constant 0 : index
    %74 = vector.load %arg1[%c184, %c0_102] : memref<288x96xf32, #tpu.memory_space<vmem>>, vector<32x96xf32>
    %c160_103 = arith.constant 160 : index
    %c384_104 = arith.constant 384 : index
    %75 = vector.load %arg13[%c160_103, %c384_104] : memref<256x480xf32, #tpu.memory_space<vmem>>, vector<32x96xf32>
    tpu.vector_store %arg13[%c160_103, %c384_104], %74 {strides = array<i32>} : memref<256x480xf32, #tpu.memory_space<vmem>>, vector<32x96xf32>,
    %c220 = arith.constant 220 : index
    %c0_105 = arith.constant 0 : index
    %76 = vector.load %arg1[%c220, %c0_105] : memref<288x96xf32, #tpu.memory_space<vmem>>, vector<32x96xf32>
    %c192_106 = arith.constant 192 : index
    %c384_107 = arith.constant 384 : index
    %77 = vector.load %arg13[%c192_106, %c384_107] : memref<256x480xf32, #tpu.memory_space<vmem>>, vector<32x96xf32>
    tpu.vector_store %arg13[%c192_106, %c384_107], %76 {strides = array<i32>} : memref<256x480xf32, #tpu.memory_space<vmem>>, vector<32x96xf32>,
    %c256 = arith.constant 256 : index
    %c0_108 = arith.constant 0 : index
    %78 = vector.load %arg1[%c256, %c0_108] : memref<288x96xf32, #tpu.memory_space<vmem>>, vector<32x96xf32>
    %c224_109 = arith.constant 224 : index
    %c384_110 = arith.constant 384 : index
    %79 = vector.load %arg13[%c224_109, %c384_110] : memref<256x480xf32, #tpu.memory_space<vmem>>, vector<32x96xf32>
    tpu.vector_store %arg13[%c224_109, %c384_110], %78 {strides = array<i32>} : memref<256x480xf32, #tpu.memory_space<vmem>>, vector<32x96xf32>,
    %c0_111 = arith.constant 0 : index
    %c0_112 = arith.constant 0 : index
    %80 = vector.load %arg13[%c0_111, %c0_112] : memref<256x480xf32, #tpu.memory_space<vmem>>, vector<256x480xf32>
    %c0_113 = arith.constant 0 : index
    %c0_114 = arith.constant 0 : index
    %81 = vector.load %arg2[%c0_113, %c0_114] : memref<480x168xf32, #tpu.memory_space<vmem>>, vector<480x168xf32>
    %cst = arith.constant dense<0.000000e+00> : vector<256x168xf32>
    %82 = tpu.matmul %80, %81, %cst {dimension_numbers = #tpu.dot_dimension_numbers<[1], [0], [0], [1], [0, 0, 1, 1], [], []>} : vector<256x480xf32>, vector<480x168xf32>, vector<256x168xf32> -> vector<256x168xf32>
    %c0_115 = arith.constant 0 : index
    %c0_116 = arith.constant 0 : index
    %83 = vector.load %arg3[%c0_115, %c0_116] : memref<1x168xf32, #tpu.memory_space<vmem>>, vector<1x168xf32>
    %84 = vector.broadcast %83 : vector<1x168xf32> to vector<256x168xf32>
    %85 = arith.addf %82, %84 : vector<256x168xf32>
    %cst_117 = arith.constant 0.000000e+00 : f32
    %86 = vector.broadcast %cst_117 : f32 to vector<256x168xf32>
    %87 = arith.maximumf %85, %86 : vector<256x168xf32>
    %88 = vector.extract_strided_slice %87 {offsets = [0, 0], sizes = [256, 84], strides = [1, 1]} : vector<256x168xf32> to vector<256x84xf32>
    %89 = vector.extract_strided_slice %87 {offsets = [0, 84], sizes = [256, 84], strides = [1, 1]} : vector<256x168xf32> to vector<256x84xf32>
    %90 = arith.maximumf %88, %89 : vector<256x84xf32>
    %c0_118 = arith.constant 0 : index
    %c0_119 = arith.constant 0 : index
    %91 = vector.load %arg14[%c0_118, %c0_119] : memref<256x84xf32, #tpu.memory_space<vmem>>, vector<256x84xf32>
    tpu.vector_store %arg14[%c0_118, %c0_119], %90 {strides = array<i32>} : memref<256x84xf32, #tpu.memory_space<vmem>>, vector<256x84xf32>,
    %c0_120 = arith.constant 0 : index
    %c0_121 = arith.constant 0 : index
    %92 = tpu.strided_load %arg14[%c0_120, %c0_121] {strides = array<i32: 2, 1>} : memref<256x84xf32, #tpu.memory_space<vmem>>, vector<128x84xf32>
    %c1_122 = arith.constant 1 : index
    %c0_123 = arith.constant 0 : index
    %93 = tpu.strided_load %arg14[%c1_122, %c0_123] {strides = array<i32: 2, 1>} : memref<256x84xf32, #tpu.memory_space<vmem>>, vector<128x84xf32>
    %94 = arith.maximumf %92, %93 : vector<128x84xf32>
    %cst_124 = arith.constant 0.000000e+00 : f32
    %95 = vector.broadcast %cst_124 : f32 to vector<160x84xf32>
    %c0_125 = arith.constant 0 : index
    %c0_126 = arith.constant 0 : index
    %96 = vector.load %arg15[%c0_125, %c0_126] : memref<160x84xf32, #tpu.memory_space<vmem>>, vector<160x84xf32>
    tpu.vector_store %arg15[%c0_125, %c0_126], %95 {strides = array<i32>} : memref<160x84xf32, #tpu.memory_space<vmem>>, vector<160x84xf32>,
    %97 = vector.extract_strided_slice %94 {offsets = [0, 0], sizes = [14, 84], strides = [1, 1]} : vector<128x84xf32> to vector<14x84xf32>
    %c0_127 = arith.constant 0 : index
    %c0_128 = arith.constant 0 : index
    %98 = vector.load %arg15[%c0_127, %c0_128] : memref<160x84xf32, #tpu.memory_space<vmem>>, vector<14x84xf32>
    tpu.vector_store %arg15[%c0_127, %c0_128], %97 {strides = array<i32>} : memref<160x84xf32, #tpu.memory_space<vmem>>, vector<14x84xf32>,
    %99 = vector.extract_strided_slice %94 {offsets = [16, 0], sizes = [14, 84], strides = [1, 1]} : vector<128x84xf32> to vector<14x84xf32>
    %c20 = arith.constant 20 : index
    %c0_129 = arith.constant 0 : index
    %100 = vector.load %arg15[%c20, %c0_129] : memref<160x84xf32, #tpu.memory_space<vmem>>, vector<14x84xf32>
    tpu.vector_store %arg15[%c20, %c0_129], %99 {strides = array<i32>} : memref<160x84xf32, #tpu.memory_space<vmem>>, vector<14x84xf32>,
    %101 = vector.extract_strided_slice %94 {offsets = [32, 0], sizes = [14, 84], strides = [1, 1]} : vector<128x84xf32> to vector<14x84xf32>
    %c40_130 = arith.constant 40 : index
    %c0_131 = arith.constant 0 : index
    %102 = vector.load %arg15[%c40_130, %c0_131] : memref<160x84xf32, #tpu.memory_space<vmem>>, vector<14x84xf32>
    tpu.vector_store %arg15[%c40_130, %c0_131], %101 {strides = array<i32>} : memref<160x84xf32, #tpu.memory_space<vmem>>, vector<14x84xf32>,
    %103 = vector.extract_strided_slice %94 {offsets = [48, 0], sizes = [14, 84], strides = [1, 1]} : vector<128x84xf32> to vector<14x84xf32>
    %c60 = arith.constant 60 : index
    %c0_132 = arith.constant 0 : index
    %104 = vector.load %arg15[%c60, %c0_132] : memref<160x84xf32, #tpu.memory_space<vmem>>, vector<14x84xf32>
    tpu.vector_store %arg15[%c60, %c0_132], %103 {strides = array<i32>} : memref<160x84xf32, #tpu.memory_space<vmem>>, vector<14x84xf32>,
    %105 = vector.extract_strided_slice %94 {offsets = [64, 0], sizes = [14, 84], strides = [1, 1]} : vector<128x84xf32> to vector<14x84xf32>
    %c80 = arith.constant 80 : index
    %c0_133 = arith.constant 0 : index
    %106 = vector.load %arg15[%c80, %c0_133] : memref<160x84xf32, #tpu.memory_space<vmem>>, vector<14x84xf32>
    tpu.vector_store %arg15[%c80, %c0_133], %105 {strides = array<i32>} : memref<160x84xf32, #tpu.memory_space<vmem>>, vector<14x84xf32>,
    %107 = vector.extract_strided_slice %94 {offsets = [80, 0], sizes = [14, 84], strides = [1, 1]} : vector<128x84xf32> to vector<14x84xf32>
    %c100 = arith.constant 100 : index
    %c0_134 = arith.constant 0 : index
    %108 = vector.load %arg15[%c100, %c0_134] : memref<160x84xf32, #tpu.memory_space<vmem>>, vector<14x84xf32>
    tpu.vector_store %arg15[%c100, %c0_134], %107 {strides = array<i32>} : memref<160x84xf32, #tpu.memory_space<vmem>>, vector<14x84xf32>,
    %109 = vector.extract_strided_slice %94 {offsets = [96, 0], sizes = [14, 84], strides = [1, 1]} : vector<128x84xf32> to vector<14x84xf32>
    %c120 = arith.constant 120 : index
    %c0_135 = arith.constant 0 : index
    %110 = vector.load %arg15[%c120, %c0_135] : memref<160x84xf32, #tpu.memory_space<vmem>>, vector<14x84xf32>
    tpu.vector_store %arg15[%c120, %c0_135], %109 {strides = array<i32>} : memref<160x84xf32, #tpu.memory_space<vmem>>, vector<14x84xf32>,
    %111 = vector.extract_strided_slice %94 {offsets = [112, 0], sizes = [14, 84], strides = [1, 1]} : vector<128x84xf32> to vector<14x84xf32>
    %c140 = arith.constant 140 : index
    %c0_136 = arith.constant 0 : index
    %112 = vector.load %arg15[%c140, %c0_136] : memref<160x84xf32, #tpu.memory_space<vmem>>, vector<14x84xf32>
    tpu.vector_store %arg15[%c140, %c0_136], %111 {strides = array<i32>} : memref<160x84xf32, #tpu.memory_space<vmem>>, vector<14x84xf32>,
    %c0_137 = arith.constant 0 : index
    %c0_138 = arith.constant 0 : index
    %113 = vector.load %arg15[%c0_137, %c0_138] : memref<160x84xf32, #tpu.memory_space<vmem>>, vector<16x84xf32>
    %c0_139 = arith.constant 0 : index
    %c0_140 = arith.constant 0 : index
    %114 = vector.load %arg16[%c0_139, %c0_140] : memref<128x420xf32, #tpu.memory_space<vmem>>, vector<16x84xf32>
    tpu.vector_store %arg16[%c0_139, %c0_140], %113 {strides = array<i32>} : memref<128x420xf32, #tpu.memory_space<vmem>>, vector<16x84xf32>,
    %c20_141 = arith.constant 20 : index
    %c0_142 = arith.constant 0 : index
    %115 = vector.load %arg15[%c20_141, %c0_142] : memref<160x84xf32, #tpu.memory_space<vmem>>, vector<16x84xf32>
    %c16 = arith.constant 16 : index
    %c0_143 = arith.constant 0 : index
    %116 = vector.load %arg16[%c16, %c0_143] : memref<128x420xf32, #tpu.memory_space<vmem>>, vector<16x84xf32>
    tpu.vector_store %arg16[%c16, %c0_143], %115 {strides = array<i32>} : memref<128x420xf32, #tpu.memory_space<vmem>>, vector<16x84xf32>,
    %c40_144 = arith.constant 40 : index
    %c0_145 = arith.constant 0 : index
    %117 = vector.load %arg15[%c40_144, %c0_145] : memref<160x84xf32, #tpu.memory_space<vmem>>, vector<16x84xf32>
    %c32_146 = arith.constant 32 : index
    %c0_147 = arith.constant 0 : index
    %118 = vector.load %arg16[%c32_146, %c0_147] : memref<128x420xf32, #tpu.memory_space<vmem>>, vector<16x84xf32>
    tpu.vector_store %arg16[%c32_146, %c0_147], %117 {strides = array<i32>} : memref<128x420xf32, #tpu.memory_space<vmem>>, vector<16x84xf32>,
    %c60_148 = arith.constant 60 : index
    %c0_149 = arith.constant 0 : index
    %119 = vector.load %arg15[%c60_148, %c0_149] : memref<160x84xf32, #tpu.memory_space<vmem>>, vector<16x84xf32>
    %c48 = arith.constant 48 : index
    %c0_150 = arith.constant 0 : index
    %120 = vector.load %arg16[%c48, %c0_150] : memref<128x420xf32, #tpu.memory_space<vmem>>, vector<16x84xf32>
    tpu.vector_store %arg16[%c48, %c0_150], %119 {strides = array<i32>} : memref<128x420xf32, #tpu.memory_space<vmem>>, vector<16x84xf32>,
    %c80_151 = arith.constant 80 : index
    %c0_152 = arith.constant 0 : index
    %121 = vector.load %arg15[%c80_151, %c0_152] : memref<160x84xf32, #tpu.memory_space<vmem>>, vector<16x84xf32>
    %c64_153 = arith.constant 64 : index
    %c0_154 = arith.constant 0 : index
    %122 = vector.load %arg16[%c64_153, %c0_154] : memref<128x420xf32, #tpu.memory_space<vmem>>, vector<16x84xf32>
    tpu.vector_store %arg16[%c64_153, %c0_154], %121 {strides = array<i32>} : memref<128x420xf32, #tpu.memory_space<vmem>>, vector<16x84xf32>,
    %c100_155 = arith.constant 100 : index
    %c0_156 = arith.constant 0 : index
    %123 = vector.load %arg15[%c100_155, %c0_156] : memref<160x84xf32, #tpu.memory_space<vmem>>, vector<16x84xf32>
    %c80_157 = arith.constant 80 : index
    %c0_158 = arith.constant 0 : index
    %124 = vector.load %arg16[%c80_157, %c0_158] : memref<128x420xf32, #tpu.memory_space<vmem>>, vector<16x84xf32>
    tpu.vector_store %arg16[%c80_157, %c0_158], %123 {strides = array<i32>} : memref<128x420xf32, #tpu.memory_space<vmem>>, vector<16x84xf32>,
    %c120_159 = arith.constant 120 : index
    %c0_160 = arith.constant 0 : index
    %125 = vector.load %arg15[%c120_159, %c0_160] : memref<160x84xf32, #tpu.memory_space<vmem>>, vector<16x84xf32>
    %c96_161 = arith.constant 96 : index
    %c0_162 = arith.constant 0 : index
    %126 = vector.load %arg16[%c96_161, %c0_162] : memref<128x420xf32, #tpu.memory_space<vmem>>, vector<16x84xf32>
    tpu.vector_store %arg16[%c96_161, %c0_162], %125 {strides = array<i32>} : memref<128x420xf32, #tpu.memory_space<vmem>>, vector<16x84xf32>,
    %c140_163 = arith.constant 140 : index
    %c0_164 = arith.constant 0 : index
    %127 = vector.load %arg15[%c140_163, %c0_164] : memref<160x84xf32, #tpu.memory_space<vmem>>, vector<16x84xf32>
    %c112_165 = arith.constant 112 : index
    %c0_166 = arith.constant 0 : index
    %128 = vector.load %arg16[%c112_165, %c0_166] : memref<128x420xf32, #tpu.memory_space<vmem>>, vector<16x84xf32>
    tpu.vector_store %arg16[%c112_165, %c0_166], %127 {strides = array<i32>} : memref<128x420xf32, #tpu.memory_space<vmem>>, vector<16x84xf32>,
    %c1_167 = arith.constant 1 : index
    %c0_168 = arith.constant 0 : index
    %129 = vector.load %arg15[%c1_167, %c0_168] : memref<160x84xf32, #tpu.memory_space<vmem>>, vector<16x84xf32>
    %c0_169 = arith.constant 0 : index
    %c84 = arith.constant 84 : index
    %130 = vector.load %arg16[%c0_169, %c84] : memref<128x420xf32, #tpu.memory_space<vmem>>, vector<16x84xf32>
    tpu.vector_store %arg16[%c0_169, %c84], %129 {strides = array<i32>} : memref<128x420xf32, #tpu.memory_space<vmem>>, vector<16x84xf32>,
    %c21 = arith.constant 21 : index
    %c0_170 = arith.constant 0 : index
    %131 = vector.load %arg15[%c21, %c0_170] : memref<160x84xf32, #tpu.memory_space<vmem>>, vector<16x84xf32>
    %c16_171 = arith.constant 16 : index
    %c84_172 = arith.constant 84 : index
    %132 = vector.load %arg16[%c16_171, %c84_172] : memref<128x420xf32, #tpu.memory_space<vmem>>, vector<16x84xf32>
    tpu.vector_store %arg16[%c16_171, %c84_172], %131 {strides = array<i32>} : memref<128x420xf32, #tpu.memory_space<vmem>>, vector<16x84xf32>,
    %c41 = arith.constant 41 : index
    %c0_173 = arith.constant 0 : index
    %133 = vector.load %arg15[%c41, %c0_173] : memref<160x84xf32, #tpu.memory_space<vmem>>, vector<16x84xf32>
    %c32_174 = arith.constant 32 : index
    %c84_175 = arith.constant 84 : index
    %134 = vector.load %arg16[%c32_174, %c84_175] : memref<128x420xf32, #tpu.memory_space<vmem>>, vector<16x84xf32>
    tpu.vector_store %arg16[%c32_174, %c84_175], %133 {strides = array<i32>} : memref<128x420xf32, #tpu.memory_space<vmem>>, vector<16x84xf32>,
    %c61 = arith.constant 61 : index
    %c0_176 = arith.constant 0 : index
    %135 = vector.load %arg15[%c61, %c0_176] : memref<160x84xf32, #tpu.memory_space<vmem>>, vector<16x84xf32>
    %c48_177 = arith.constant 48 : index
    %c84_178 = arith.constant 84 : index
    %136 = vector.load %arg16[%c48_177, %c84_178] : memref<128x420xf32, #tpu.memory_space<vmem>>, vector<16x84xf32>
    tpu.vector_store %arg16[%c48_177, %c84_178], %135 {strides = array<i32>} : memref<128x420xf32, #tpu.memory_space<vmem>>, vector<16x84xf32>,
    %c81 = arith.constant 81 : index
    %c0_179 = arith.constant 0 : index
    %137 = vector.load %arg15[%c81, %c0_179] : memref<160x84xf32, #tpu.memory_space<vmem>>, vector<16x84xf32>
    %c64_180 = arith.constant 64 : index
    %c84_181 = arith.constant 84 : index
    %138 = vector.load %arg16[%c64_180, %c84_181] : memref<128x420xf32, #tpu.memory_space<vmem>>, vector<16x84xf32>
    tpu.vector_store %arg16[%c64_180, %c84_181], %137 {strides = array<i32>} : memref<128x420xf32, #tpu.memory_space<vmem>>, vector<16x84xf32>,
    %c101 = arith.constant 101 : index
    %c0_182 = arith.constant 0 : index
    %139 = vector.load %arg15[%c101, %c0_182] : memref<160x84xf32, #tpu.memory_space<vmem>>, vector<16x84xf32>
    %c80_183 = arith.constant 80 : index
    %c84_184 = arith.constant 84 : index
    %140 = vector.load %arg16[%c80_183, %c84_184] : memref<128x420xf32, #tpu.memory_space<vmem>>, vector<16x84xf32>
    tpu.vector_store %arg16[%c80_183, %c84_184], %139 {strides = array<i32>} : memref<128x420xf32, #tpu.memory_space<vmem>>, vector<16x84xf32>,
    %c121 = arith.constant 121 : index
    %c0_185 = arith.constant 0 : index
    %141 = vector.load %arg15[%c121, %c0_185] : memref<160x84xf32, #tpu.memory_space<vmem>>, vector<16x84xf32>
    %c96_186 = arith.constant 96 : index
    %c84_187 = arith.constant 84 : index
    %142 = vector.load %arg16[%c96_186, %c84_187] : memref<128x420xf32, #tpu.memory_space<vmem>>, vector<16x84xf32>
    tpu.vector_store %arg16[%c96_186, %c84_187], %141 {strides = array<i32>} : memref<128x420xf32, #tpu.memory_space<vmem>>, vector<16x84xf32>,
    %c141 = arith.constant 141 : index
    %c0_188 = arith.constant 0 : index
    %143 = vector.load %arg15[%c141, %c0_188] : memref<160x84xf32, #tpu.memory_space<vmem>>, vector<16x84xf32>
    %c112_189 = arith.constant 112 : index
    %c84_190 = arith.constant 84 : index
    %144 = vector.load %arg16[%c112_189, %c84_190] : memref<128x420xf32, #tpu.memory_space<vmem>>, vector<16x84xf32>
    tpu.vector_store %arg16[%c112_189, %c84_190], %143 {strides = array<i32>} : memref<128x420xf32, #tpu.memory_space<vmem>>, vector<16x84xf32>,
    %c2_191 = arith.constant 2 : index
    %c0_192 = arith.constant 0 : index
    %145 = vector.load %arg15[%c2_191, %c0_192] : memref<160x84xf32, #tpu.memory_space<vmem>>, vector<16x84xf32>
    %c0_193 = arith.constant 0 : index
    %c168 = arith.constant 168 : index
    %146 = vector.load %arg16[%c0_193, %c168] : memref<128x420xf32, #tpu.memory_space<vmem>>, vector<16x84xf32>
    tpu.vector_store %arg16[%c0_193, %c168], %145 {strides = array<i32>} : memref<128x420xf32, #tpu.memory_space<vmem>>, vector<16x84xf32>,
    %c22 = arith.constant 22 : index
    %c0_194 = arith.constant 0 : index
    %147 = vector.load %arg15[%c22, %c0_194] : memref<160x84xf32, #tpu.memory_space<vmem>>, vector<16x84xf32>
    %c16_195 = arith.constant 16 : index
    %c168_196 = arith.constant 168 : index
    %148 = vector.load %arg16[%c16_195, %c168_196] : memref<128x420xf32, #tpu.memory_space<vmem>>, vector<16x84xf32>
    tpu.vector_store %arg16[%c16_195, %c168_196], %147 {strides = array<i32>} : memref<128x420xf32, #tpu.memory_space<vmem>>, vector<16x84xf32>,
    %c42 = arith.constant 42 : index
    %c0_197 = arith.constant 0 : index
    %149 = vector.load %arg15[%c42, %c0_197] : memref<160x84xf32, #tpu.memory_space<vmem>>, vector<16x84xf32>
    %c32_198 = arith.constant 32 : index
    %c168_199 = arith.constant 168 : index
    %150 = vector.load %arg16[%c32_198, %c168_199] : memref<128x420xf32, #tpu.memory_space<vmem>>, vector<16x84xf32>
    tpu.vector_store %arg16[%c32_198, %c168_199], %149 {strides = array<i32>} : memref<128x420xf32, #tpu.memory_space<vmem>>, vector<16x84xf32>,
    %c62 = arith.constant 62 : index
    %c0_200 = arith.constant 0 : index
    %151 = vector.load %arg15[%c62, %c0_200] : memref<160x84xf32, #tpu.memory_space<vmem>>, vector<16x84xf32>
    %c48_201 = arith.constant 48 : index
    %c168_202 = arith.constant 168 : index
    %152 = vector.load %arg16[%c48_201, %c168_202] : memref<128x420xf32, #tpu.memory_space<vmem>>, vector<16x84xf32>
    tpu.vector_store %arg16[%c48_201, %c168_202], %151 {strides = array<i32>} : memref<128x420xf32, #tpu.memory_space<vmem>>, vector<16x84xf32>,
    %c82 = arith.constant 82 : index
    %c0_203 = arith.constant 0 : index
    %153 = vector.load %arg15[%c82, %c0_203] : memref<160x84xf32, #tpu.memory_space<vmem>>, vector<16x84xf32>
    %c64_204 = arith.constant 64 : index
    %c168_205 = arith.constant 168 : index
    %154 = vector.load %arg16[%c64_204, %c168_205] : memref<128x420xf32, #tpu.memory_space<vmem>>, vector<16x84xf32>
    tpu.vector_store %arg16[%c64_204, %c168_205], %153 {strides = array<i32>} : memref<128x420xf32, #tpu.memory_space<vmem>>, vector<16x84xf32>,
    %c102 = arith.constant 102 : index
    %c0_206 = arith.constant 0 : index
    %155 = vector.load %arg15[%c102, %c0_206] : memref<160x84xf32, #tpu.memory_space<vmem>>, vector<16x84xf32>
    %c80_207 = arith.constant 80 : index
    %c168_208 = arith.constant 168 : index
    %156 = vector.load %arg16[%c80_207, %c168_208] : memref<128x420xf32, #tpu.memory_space<vmem>>, vector<16x84xf32>
    tpu.vector_store %arg16[%c80_207, %c168_208], %155 {strides = array<i32>} : memref<128x420xf32, #tpu.memory_space<vmem>>, vector<16x84xf32>,
    %c122 = arith.constant 122 : index
    %c0_209 = arith.constant 0 : index
    %157 = vector.load %arg15[%c122, %c0_209] : memref<160x84xf32, #tpu.memory_space<vmem>>, vector<16x84xf32>
    %c96_210 = arith.constant 96 : index
    %c168_211 = arith.constant 168 : index
    %158 = vector.load %arg16[%c96_210, %c168_211] : memref<128x420xf32, #tpu.memory_space<vmem>>, vector<16x84xf32>
    tpu.vector_store %arg16[%c96_210, %c168_211], %157 {strides = array<i32>} : memref<128x420xf32, #tpu.memory_space<vmem>>, vector<16x84xf32>,
    %c142 = arith.constant 142 : index
    %c0_212 = arith.constant 0 : index
    %159 = vector.load %arg15[%c142, %c0_212] : memref<160x84xf32, #tpu.memory_space<vmem>>, vector<16x84xf32>
    %c112_213 = arith.constant 112 : index
    %c168_214 = arith.constant 168 : index
    %160 = vector.load %arg16[%c112_213, %c168_214] : memref<128x420xf32, #tpu.memory_space<vmem>>, vector<16x84xf32>
    tpu.vector_store %arg16[%c112_213, %c168_214], %159 {strides = array<i32>} : memref<128x420xf32, #tpu.memory_space<vmem>>, vector<16x84xf32>,
    %c3_215 = arith.constant 3 : index
    %c0_216 = arith.constant 0 : index
    %161 = vector.load %arg15[%c3_215, %c0_216] : memref<160x84xf32, #tpu.memory_space<vmem>>, vector<16x84xf32>
    %c0_217 = arith.constant 0 : index
    %c252_218 = arith.constant 252 : index
    %162 = vector.load %arg16[%c0_217, %c252_218] : memref<128x420xf32, #tpu.memory_space<vmem>>, vector<16x84xf32>
    tpu.vector_store %arg16[%c0_217, %c252_218], %161 {strides = array<i32>} : memref<128x420xf32, #tpu.memory_space<vmem>>, vector<16x84xf32>,
    %c23 = arith.constant 23 : index
    %c0_219 = arith.constant 0 : index
    %163 = vector.load %arg15[%c23, %c0_219] : memref<160x84xf32, #tpu.memory_space<vmem>>, vector<16x84xf32>
    %c16_220 = arith.constant 16 : index
    %c252_221 = arith.constant 252 : index
    %164 = vector.load %arg16[%c16_220, %c252_221] : memref<128x420xf32, #tpu.memory_space<vmem>>, vector<16x84xf32>
    tpu.vector_store %arg16[%c16_220, %c252_221], %163 {strides = array<i32>} : memref<128x420xf32, #tpu.memory_space<vmem>>, vector<16x84xf32>,
    %c43 = arith.constant 43 : index
    %c0_222 = arith.constant 0 : index
    %165 = vector.load %arg15[%c43, %c0_222] : memref<160x84xf32, #tpu.memory_space<vmem>>, vector<16x84xf32>
    %c32_223 = arith.constant 32 : index
    %c252_224 = arith.constant 252 : index
    %166 = vector.load %arg16[%c32_223, %c252_224] : memref<128x420xf32, #tpu.memory_space<vmem>>, vector<16x84xf32>
    tpu.vector_store %arg16[%c32_223, %c252_224], %165 {strides = array<i32>} : memref<128x420xf32, #tpu.memory_space<vmem>>, vector<16x84xf32>,
    %c63 = arith.constant 63 : index
    %c0_225 = arith.constant 0 : index
    %167 = vector.load %arg15[%c63, %c0_225] : memref<160x84xf32, #tpu.memory_space<vmem>>, vector<16x84xf32>
    %c48_226 = arith.constant 48 : index
    %c252_227 = arith.constant 252 : index
    %168 = vector.load %arg16[%c48_226, %c252_227] : memref<128x420xf32, #tpu.memory_space<vmem>>, vector<16x84xf32>
    tpu.vector_store %arg16[%c48_226, %c252_227], %167 {strides = array<i32>} : memref<128x420xf32, #tpu.memory_space<vmem>>, vector<16x84xf32>,
    %c83 = arith.constant 83 : index
    %c0_228 = arith.constant 0 : index
    %169 = vector.load %arg15[%c83, %c0_228] : memref<160x84xf32, #tpu.memory_space<vmem>>, vector<16x84xf32>
    %c64_229 = arith.constant 64 : index
    %c252_230 = arith.constant 252 : index
    %170 = vector.load %arg16[%c64_229, %c252_230] : memref<128x420xf32, #tpu.memory_space<vmem>>, vector<16x84xf32>
    tpu.vector_store %arg16[%c64_229, %c252_230], %169 {strides = array<i32>} : memref<128x420xf32, #tpu.memory_space<vmem>>, vector<16x84xf32>,
    %c103 = arith.constant 103 : index
    %c0_231 = arith.constant 0 : index
    %171 = vector.load %arg15[%c103, %c0_231] : memref<160x84xf32, #tpu.memory_space<vmem>>, vector<16x84xf32>
    %c80_232 = arith.constant 80 : index
    %c252_233 = arith.constant 252 : index
    %172 = vector.load %arg16[%c80_232, %c252_233] : memref<128x420xf32, #tpu.memory_space<vmem>>, vector<16x84xf32>
    tpu.vector_store %arg16[%c80_232, %c252_233], %171 {strides = array<i32>} : memref<128x420xf32, #tpu.memory_space<vmem>>, vector<16x84xf32>,
    %c123 = arith.constant 123 : index
    %c0_234 = arith.constant 0 : index
    %173 = vector.load %arg15[%c123, %c0_234] : memref<160x84xf32, #tpu.memory_space<vmem>>, vector<16x84xf32>
    %c96_235 = arith.constant 96 : index
    %c252_236 = arith.constant 252 : index
    %174 = vector.load %arg16[%c96_235, %c252_236] : memref<128x420xf32, #tpu.memory_space<vmem>>, vector<16x84xf32>
    tpu.vector_store %arg16[%c96_235, %c252_236], %173 {strides = array<i32>} : memref<128x420xf32, #tpu.memory_space<vmem>>, vector<16x84xf32>,
    %c143 = arith.constant 143 : index
    %c0_237 = arith.constant 0 : index
    %175 = vector.load %arg15[%c143, %c0_237] : memref<160x84xf32, #tpu.memory_space<vmem>>, vector<16x84xf32>
    %c112_238 = arith.constant 112 : index
    %c252_239 = arith.constant 252 : index
    %176 = vector.load %arg16[%c112_238, %c252_239] : memref<128x420xf32, #tpu.memory_space<vmem>>, vector<16x84xf32>
    tpu.vector_store %arg16[%c112_238, %c252_239], %175 {strides = array<i32>} : memref<128x420xf32, #tpu.memory_space<vmem>>, vector<16x84xf32>,
    %c4_240 = arith.constant 4 : index
    %c0_241 = arith.constant 0 : index
    %177 = vector.load %arg15[%c4_240, %c0_241] : memref<160x84xf32, #tpu.memory_space<vmem>>, vector<16x84xf32>
    %c0_242 = arith.constant 0 : index
    %c336 = arith.constant 336 : index
    %178 = vector.load %arg16[%c0_242, %c336] : memref<128x420xf32, #tpu.memory_space<vmem>>, vector<16x84xf32>
    tpu.vector_store %arg16[%c0_242, %c336], %177 {strides = array<i32>} : memref<128x420xf32, #tpu.memory_space<vmem>>, vector<16x84xf32>,
    %c24 = arith.constant 24 : index
    %c0_243 = arith.constant 0 : index
    %179 = vector.load %arg15[%c24, %c0_243] : memref<160x84xf32, #tpu.memory_space<vmem>>, vector<16x84xf32>
    %c16_244 = arith.constant 16 : index
    %c336_245 = arith.constant 336 : index
    %180 = vector.load %arg16[%c16_244, %c336_245] : memref<128x420xf32, #tpu.memory_space<vmem>>, vector<16x84xf32>
    tpu.vector_store %arg16[%c16_244, %c336_245], %179 {strides = array<i32>} : memref<128x420xf32, #tpu.memory_space<vmem>>, vector<16x84xf32>,
    %c44 = arith.constant 44 : index
    %c0_246 = arith.constant 0 : index
    %181 = vector.load %arg15[%c44, %c0_246] : memref<160x84xf32, #tpu.memory_space<vmem>>, vector<16x84xf32>
    %c32_247 = arith.constant 32 : index
    %c336_248 = arith.constant 336 : index
    %182 = vector.load %arg16[%c32_247, %c336_248] : memref<128x420xf32, #tpu.memory_space<vmem>>, vector<16x84xf32>
    tpu.vector_store %arg16[%c32_247, %c336_248], %181 {strides = array<i32>} : memref<128x420xf32, #tpu.memory_space<vmem>>, vector<16x84xf32>,
    %c64_249 = arith.constant 64 : index
    %c0_250 = arith.constant 0 : index
    %183 = vector.load %arg15[%c64_249, %c0_250] : memref<160x84xf32, #tpu.memory_space<vmem>>, vector<16x84xf32>
    %c48_251 = arith.constant 48 : index
    %c336_252 = arith.constant 336 : index
    %184 = vector.load %arg16[%c48_251, %c336_252] : memref<128x420xf32, #tpu.memory_space<vmem>>, vector<16x84xf32>
    tpu.vector_store %arg16[%c48_251, %c336_252], %183 {strides = array<i32>} : memref<128x420xf32, #tpu.memory_space<vmem>>, vector<16x84xf32>,
    %c84_253 = arith.constant 84 : index
    %c0_254 = arith.constant 0 : index
    %185 = vector.load %arg15[%c84_253, %c0_254] : memref<160x84xf32, #tpu.memory_space<vmem>>, vector<16x84xf32>
    %c64_255 = arith.constant 64 : index
    %c336_256 = arith.constant 336 : index
    %186 = vector.load %arg16[%c64_255, %c336_256] : memref<128x420xf32, #tpu.memory_space<vmem>>, vector<16x84xf32>
    tpu.vector_store %arg16[%c64_255, %c336_256], %185 {strides = array<i32>} : memref<128x420xf32, #tpu.memory_space<vmem>>, vector<16x84xf32>,
    %c104 = arith.constant 104 : index
    %c0_257 = arith.constant 0 : index
    %187 = vector.load %arg15[%c104, %c0_257] : memref<160x84xf32, #tpu.memory_space<vmem>>, vector<16x84xf32>
    %c80_258 = arith.constant 80 : index
    %c336_259 = arith.constant 336 : index
    %188 = vector.load %arg16[%c80_258, %c336_259] : memref<128x420xf32, #tpu.memory_space<vmem>>, vector<16x84xf32>
    tpu.vector_store %arg16[%c80_258, %c336_259], %187 {strides = array<i32>} : memref<128x420xf32, #tpu.memory_space<vmem>>, vector<16x84xf32>,
    %c124 = arith.constant 124 : index
    %c0_260 = arith.constant 0 : index
    %189 = vector.load %arg15[%c124, %c0_260] : memref<160x84xf32, #tpu.memory_space<vmem>>, vector<16x84xf32>
    %c96_261 = arith.constant 96 : index
    %c336_262 = arith.constant 336 : index
    %190 = vector.load %arg16[%c96_261, %c336_262] : memref<128x420xf32, #tpu.memory_space<vmem>>, vector<16x84xf32>
    tpu.vector_store %arg16[%c96_261, %c336_262], %189 {strides = array<i32>} : memref<128x420xf32, #tpu.memory_space<vmem>>, vector<16x84xf32>,
    %c144_263 = arith.constant 144 : index
    %c0_264 = arith.constant 0 : index
    %191 = vector.load %arg15[%c144_263, %c0_264] : memref<160x84xf32, #tpu.memory_space<vmem>>, vector<16x84xf32>
    %c112_265 = arith.constant 112 : index
    %c336_266 = arith.constant 336 : index
    %192 = vector.load %arg16[%c112_265, %c336_266] : memref<128x420xf32, #tpu.memory_space<vmem>>, vector<16x84xf32>
    tpu.vector_store %arg16[%c112_265, %c336_266], %191 {strides = array<i32>} : memref<128x420xf32, #tpu.memory_space<vmem>>, vector<16x84xf32>,
    %c0_267 = arith.constant 0 : index
    %c0_268 = arith.constant 0 : index
    %193 = vector.load %arg16[%c0_267, %c0_268] : memref<128x420xf32, #tpu.memory_space<vmem>>, vector<128x420xf32>
    %c0_269 = arith.constant 0 : index
    %c0_270 = arith.constant 0 : index
    %194 = vector.load %arg4[%c0_269, %c0_270] : memref<420x160xf32, #tpu.memory_space<vmem>>, vector<420x160xf32>
    %cst_271 = arith.constant dense<0.000000e+00> : vector<128x160xf32>
    %195 = tpu.matmul %193, %194, %cst_271 {dimension_numbers = #tpu.dot_dimension_numbers<[1], [0], [0], [1], [0, 0, 1, 1], [], []>} : vector<128x420xf32>, vector<420x160xf32>, vector<128x160xf32> -> vector<128x160xf32>
    %c0_272 = arith.constant 0 : index
    %c0_273 = arith.constant 0 : index
    %196 = vector.load %arg5[%c0_272, %c0_273] : memref<1x160xf32, #tpu.memory_space<vmem>>, vector<1x160xf32>
    %197 = vector.broadcast %196 : vector<1x160xf32> to vector<128x160xf32>
    %198 = arith.addf %195, %197 : vector<128x160xf32>
    %cst_274 = arith.constant 0.000000e+00 : f32
    %199 = vector.broadcast %cst_274 : f32 to vector<128x160xf32>
    %200 = arith.maximumf %198, %199 : vector<128x160xf32>
    %201 = vector.extract_strided_slice %200 {offsets = [0, 0], sizes = [128, 80], strides = [1, 1]} : vector<128x160xf32> to vector<128x80xf32>
    %202 = vector.extract_strided_slice %200 {offsets = [0, 80], sizes = [128, 80], strides = [1, 1]} : vector<128x160xf32> to vector<128x80xf32>
    %203 = arith.maximumf %201, %202 : vector<128x80xf32>
    %c0_275 = arith.constant 0 : index
    %c0_276 = arith.constant 0 : index
    %204 = vector.load %arg17[%c0_275, %c0_276] : memref<128x80xf32, #tpu.memory_space<vmem>>, vector<128x80xf32>
    tpu.vector_store %arg17[%c0_275, %c0_276], %203 {strides = array<i32>} : memref<128x80xf32, #tpu.memory_space<vmem>>, vector<128x80xf32>,
    %c0_277 = arith.constant 0 : index
    %c0_278 = arith.constant 0 : index
    %205 = tpu.strided_load %arg17[%c0_277, %c0_278] {strides = array<i32: 2, 1>} : memref<128x80xf32, #tpu.memory_space<vmem>>, vector<64x80xf32>
    %c1_279 = arith.constant 1 : index
    %c0_280 = arith.constant 0 : index
    %206 = tpu.strided_load %arg17[%c1_279, %c0_280] {strides = array<i32: 2, 1>} : memref<128x80xf32, #tpu.memory_space<vmem>>, vector<64x80xf32>
    %207 = arith.maximumf %205, %206 : vector<64x80xf32>
    %c0_281 = arith.constant 0 : index
    %c0_282 = arith.constant 0 : index
    %208 = vector.load %arg18[%c0_281, %c0_282] : memref<64x80xf32, #tpu.memory_space<vmem>>, vector<64x80xf32>
    tpu.vector_store %arg18[%c0_281, %c0_282], %207 {strides = array<i32>} : memref<64x80xf32, #tpu.memory_space<vmem>>, vector<64x80xf32>,
    %c0_283 = arith.constant 0 : index
    %c0_284 = arith.constant 0 : index
    %209 = vector.load %arg7[%c0_283, %c0_284] : memref<1x120xf32, #tpu.memory_space<vmem>>, vector<1x120xf32>
    %210 = vector.shape_cast %209 : vector<1x120xf32> to vector<1x120xf32>
    %211 = vector.broadcast %210 : vector<1x120xf32> to vector<8x120xf32>
    %c0_285 = arith.constant 0 : index
    %c0_286 = arith.constant 0 : index
    %212 = tpu.strided_load %arg18[%c0_285, %c0_286] {strides = array<i32: 8, 1>} : memref<64x80xf32, #tpu.memory_space<vmem>>, vector<8x80xf32>
    %c0_287 = arith.constant 0 : index
    %c0_288 = arith.constant 0 : index
    %c0_289 = arith.constant 0 : index
    %213 = vector.load %arg6[%c0_287, %c0_288, %c0_289] : memref<5x80x120xf32, #tpu.memory_space<vmem>>, vector<1x80x120xf32>
    %214 = vector.shape_cast %213 : vector<1x80x120xf32> to vector<80x120xf32>
    %cst_290 = arith.constant dense<0.000000e+00> : vector<8x120xf32>
    %215 = tpu.matmul %212, %214, %cst_290 {dimension_numbers = #tpu.dot_dimension_numbers<[1], [0], [0], [1], [0, 0, 1, 1], [], []>} : vector<8x80xf32>, vector<80x120xf32>, vector<8x120xf32> -> vector<8x120xf32>
    %216 = arith.addf %211, %215 : vector<8x120xf32>
    %c1_291 = arith.constant 1 : index
    %c0_292 = arith.constant 0 : index
    %217 = tpu.strided_load %arg18[%c1_291, %c0_292] {strides = array<i32: 8, 1>} : memref<64x80xf32, #tpu.memory_space<vmem>>, vector<8x80xf32>
    %c1_293 = arith.constant 1 : index
    %c0_294 = arith.constant 0 : index
    %c0_295 = arith.constant 0 : index
    %218 = vector.load %arg6[%c1_293, %c0_294, %c0_295] : memref<5x80x120xf32, #tpu.memory_space<vmem>>, vector<1x80x120xf32>
    %219 = vector.shape_cast %218 : vector<1x80x120xf32> to vector<80x120xf32>
    %cst_296 = arith.constant dense<0.000000e+00> : vector<8x120xf32>
    %220 = tpu.matmul %217, %219, %cst_296 {dimension_numbers = #tpu.dot_dimension_numbers<[1], [0], [0], [1], [0, 0, 1, 1], [], []>} : vector<8x80xf32>, vector<80x120xf32>, vector<8x120xf32> -> vector<8x120xf32>
    %221 = arith.addf %216, %220 : vector<8x120xf32>
    %c2_297 = arith.constant 2 : index
    %c0_298 = arith.constant 0 : index
    %222 = tpu.strided_load %arg18[%c2_297, %c0_298] {strides = array<i32: 8, 1>} : memref<64x80xf32, #tpu.memory_space<vmem>>, vector<8x80xf32>
    %c2_299 = arith.constant 2 : index
    %c0_300 = arith.constant 0 : index
    %c0_301 = arith.constant 0 : index
    %223 = vector.load %arg6[%c2_299, %c0_300, %c0_301] : memref<5x80x120xf32, #tpu.memory_space<vmem>>, vector<1x80x120xf32>
    %224 = vector.shape_cast %223 : vector<1x80x120xf32> to vector<80x120xf32>
    %cst_302 = arith.constant dense<0.000000e+00> : vector<8x120xf32>
    %225 = tpu.matmul %222, %224, %cst_302 {dimension_numbers = #tpu.dot_dimension_numbers<[1], [0], [0], [1], [0, 0, 1, 1], [], []>} : vector<8x80xf32>, vector<80x120xf32>, vector<8x120xf32> -> vector<8x120xf32>
    %226 = arith.addf %221, %225 : vector<8x120xf32>
    %c3_303 = arith.constant 3 : index
    %c0_304 = arith.constant 0 : index
    %227 = tpu.strided_load %arg18[%c3_303, %c0_304] {strides = array<i32: 8, 1>} : memref<64x80xf32, #tpu.memory_space<vmem>>, vector<8x80xf32>
    %c3_305 = arith.constant 3 : index
    %c0_306 = arith.constant 0 : index
    %c0_307 = arith.constant 0 : index
    %228 = vector.load %arg6[%c3_305, %c0_306, %c0_307] : memref<5x80x120xf32, #tpu.memory_space<vmem>>, vector<1x80x120xf32>
    %229 = vector.shape_cast %228 : vector<1x80x120xf32> to vector<80x120xf32>
    %cst_308 = arith.constant dense<0.000000e+00> : vector<8x120xf32>
    %230 = tpu.matmul %227, %229, %cst_308 {dimension_numbers = #tpu.dot_dimension_numbers<[1], [0], [0], [1], [0, 0, 1, 1], [], []>} : vector<8x80xf32>, vector<80x120xf32>, vector<8x120xf32> -> vector<8x120xf32>
    %231 = arith.addf %226, %230 : vector<8x120xf32>
    %c4_309 = arith.constant 4 : index
    %c0_310 = arith.constant 0 : index
    %232 = tpu.strided_load %arg18[%c4_309, %c0_310] {strides = array<i32: 8, 1>} : memref<64x80xf32, #tpu.memory_space<vmem>>, vector<8x80xf32>
    %c4_311 = arith.constant 4 : index
    %c0_312 = arith.constant 0 : index
    %c0_313 = arith.constant 0 : index
    %233 = vector.load %arg6[%c4_311, %c0_312, %c0_313] : memref<5x80x120xf32, #tpu.memory_space<vmem>>, vector<1x80x120xf32>
    %234 = vector.shape_cast %233 : vector<1x80x120xf32> to vector<80x120xf32>
    %cst_314 = arith.constant dense<0.000000e+00> : vector<8x120xf32>
    %235 = tpu.matmul %232, %234, %cst_314 {dimension_numbers = #tpu.dot_dimension_numbers<[1], [0], [0], [1], [0, 0, 1, 1], [], []>} : vector<8x80xf32>, vector<80x120xf32>, vector<8x120xf32> -> vector<8x120xf32>
    %236 = arith.addf %231, %235 : vector<8x120xf32>
    %cst_315 = arith.constant 0.000000e+00 : f32
    %237 = vector.broadcast %cst_315 : f32 to vector<8x120xf32>
    %238 = arith.maximumf %236, %237 : vector<8x120xf32>
    %c0_316 = arith.constant 0 : index
    %c0_317 = arith.constant 0 : index
    %239 = vector.load %arg8[%c0_316, %c0_317] : memref<120x84xf32, #tpu.memory_space<vmem>>, vector<120x84xf32>
    %cst_318 = arith.constant dense<0.000000e+00> : vector<8x84xf32>
    %240 = tpu.matmul %238, %239, %cst_318 {dimension_numbers = #tpu.dot_dimension_numbers<[1], [0], [0], [1], [0, 0, 1, 1], [], []>} : vector<8x120xf32>, vector<120x84xf32>, vector<8x84xf32> -> vector<8x84xf32>
    %c0_319 = arith.constant 0 : index
    %c0_320 = arith.constant 0 : index
    %241 = vector.load %arg9[%c0_319, %c0_320] : memref<1x84xf32, #tpu.memory_space<vmem>>, vector<1x84xf32>
    %242 = vector.broadcast %241 : vector<1x84xf32> to vector<8x84xf32>
    %243 = arith.addf %240, %242 : vector<8x84xf32>
    %cst_321 = arith.constant 0.000000e+00 : f32
    %244 = vector.broadcast %cst_321 : f32 to vector<8x84xf32>
    %245 = arith.maximumf %243, %244 : vector<8x84xf32>
    %c0_322 = arith.constant 0 : index
    %c0_323 = arith.constant 0 : index
    %246 = vector.load %arg10[%c0_322, %c0_323] : memref<84x10xf32, #tpu.memory_space<vmem>>, vector<84x10xf32>
    %cst_324 = arith.constant dense<0.000000e+00> : vector<8x10xf32>
    %247 = tpu.matmul %245, %246, %cst_324 {dimension_numbers = #tpu.dot_dimension_numbers<[1], [0], [0], [1], [0, 0, 1, 1], [], []>} : vector<8x84xf32>, vector<84x10xf32>, vector<8x10xf32> -> vector<8x10xf32>
    %c0_325 = arith.constant 0 : index
    %c0_326 = arith.constant 0 : index
    %248 = vector.load %arg11[%c0_325, %c0_326] : memref<1x10xf32, #tpu.memory_space<vmem>>, vector<1x10xf32>
    %249 = vector.broadcast %248 : vector<1x10xf32> to vector<8x10xf32>
    %250 = arith.addf %247, %249 : vector<8x10xf32>
    %c0_327 = arith.constant 0 : index
    %c0_328 = arith.constant 0 : index
    %251 = vector.load %arg12[%c0_327, %c0_328] : memref<8x10xf32, #tpu.memory_space<vmem>>, vector<8x10xf32>
    tpu.vector_store %arg12[%c0_327, %c0_328], %250 {strides = array<i32>} : memref<8x10xf32, #tpu.memory_space<vmem>>, vector<8x10xf32>,
    return
  }
  func.func @transform_0(%arg0: i32) -> (i32, i32) {
    %c0_i32 = arith.constant 0 : i32
    %c0_i32_0 = arith.constant 0 : i32
    return %arg0, %c0_i32 : i32, i32
  }
  func.func @transform_1(%arg0: i32) -> (i32, i32) {
    %c0_i32 = arith.constant 0 : i32
    %c0_i32_0 = arith.constant 0 : i32
    %c0_i32_1 = arith.constant 0 : i32
    return %c0_i32, %c0_i32_0 : i32, i32
  }
  func.func @transform_2(%arg0: i32) -> (i32, i32) {
    %c0_i32 = arith.constant 0 : i32
    %c0_i32_0 = arith.constant 0 : i32
    %c0_i32_1 = arith.constant 0 : i32
    return %c0_i32, %c0_i32_0 : i32, i32
  }
  func.func @transform_3(%arg0: i32) -> (i32, i32) {
    %c0_i32 = arith.constant 0 : i32
    %c0_i32_0 = arith.constant 0 : i32
    %c0_i32_1 = arith.constant 0 : i32
    return %c0_i32, %c0_i32_0 : i32, i32
  }
  func.func @transform_4(%arg0: i32) -> (i32, i32) {
    %c0_i32 = arith.constant 0 : i32
    %c0_i32_0 = arith.constant 0 : i32
    %c0_i32_1 = arith.constant 0 : i32
    return %c0_i32, %c0_i32_0 : i32, i32
  }
  func.func @transform_5(%arg0: i32) -> (i32, i32, i32) {
    %c0_i32 = arith.constant 0 : i32
    %c0_i32_0 = arith.constant 0 : i32
    %c0_i32_1 = arith.constant 0 : i32
    %c0_i32_2 = arith.constant 0 : i32
    return %c0_i32, %c0_i32_0, %c0_i32_1 : i32, i32, i32
  }
  func.func @transform_6(%arg0: i32) -> (i32, i32) {
    %c0_i32 = arith.constant 0 : i32
    %c0_i32_0 = arith.constant 0 : i32
    %c0_i32_1 = arith.constant 0 : i32
    return %c0_i32, %c0_i32_0 : i32, i32
  }
  func.func @transform_7(%arg0: i32) -> (i32, i32) {
    %c0_i32 = arith.constant 0 : i32
    %c0_i32_0 = arith.constant 0 : i32
    %c0_i32_1 = arith.constant 0 : i32
    return %c0_i32, %c0_i32_0 : i32, i32
  }
  func.func @transform_8(%arg0: i32) -> (i32, i32) {
    %c0_i32 = arith.constant 0 : i32
    %c0_i32_0 = arith.constant 0 : i32
    %c0_i32_1 = arith.constant 0 : i32
    return %c0_i32, %c0_i32_0 : i32, i32
  }
  func.func @transform_9(%arg0: i32) -> (i32, i32) {
    %c0_i32 = arith.constant 0 : i32
    %c0_i32_0 = arith.constant 0 : i32
    %c0_i32_1 = arith.constant 0 : i32
    return %c0_i32, %c0_i32_0 : i32, i32
  }
  func.func @transform_10(%arg0: i32) -> (i32, i32) {
    %c0_i32 = arith.constant 0 : i32
    %c0_i32_0 = arith.constant 0 : i32
    %c0_i32_1 = arith.constant 0 : i32
    return %c0_i32, %c0_i32_0 : i32, i32
  }
  func.func @transform_11(%arg0: i32) -> (i32, i32) {
    %c0_i32 = arith.constant 0 : i32
    %c0_i32_0 = arith.constant 0 : i32
    return %arg0, %c0_i32 : i32, i32
  }
}

</mosaic_0001>

<bundles_post_ra>
// kernel: tile.13
= control target key start
LH: loop header
LB: loop body
LE: loop exit
PB: predicated region body
PF: predicated region fallthrough
CT: control target
= control target key end

     0   :  { %s40_s0 = inlined_call_operand.vmem [shape: f32[6], index: 0, kind: input, shape index: {}]   ;;  %s41_s1 = inlined_call_operand.vmem [shape: f32[28,6], index: 1, kind: output, shape index: {}]  }
   0x1   :  { %v4_v0 = vld [vmem:[%s40_s0] ss:$0 sm:$0xff] }
   0x2   :  { %5 = vst [vmem:[%s41_s1] sm:$0xff] %v4_v0  ;;  %12 = vst [vmem:[%s41_s1 + $0x8] sm:$0xff] %v4_v0 }
   0x3   :  { %13 = vst [vmem:[%s41_s1 + $0x10] sm:$0xff] %v4_v0  ;;  %14 = vst [vmem:[%s41_s1 + $0x18] sm:$0xff] %v4_v0 }

// kernel: tile.18
= control target key start
LH: loop header
LB: loop body
LE: loop exit
PB: predicated region body
PF: predicated region fallthrough
CT: control target
= control target key end

     0   :  { %s28_s0 = inlined_call_operand.vmem [shape: f32[16], index: 0, kind: input, shape index: {}]   ;;  %s29_s1 = inlined_call_operand.vmem [shape: f32[10,16], index: 1, kind: output, shape index: {}]  }
   0x1   :  { %v4_v0 = vld [vmem:[%s28_s0] ss:$0 sm:$0xff] }
   0x2   :  { %5 = vst [vmem:[%s29_s1] sm:$0xff] %v4_v0  ;;  %8 = vst [vmem:[%s29_s1 + $0x8] sm:$0xff] %v4_v0 }

// kernel: tile.14
= control target key start
LH: loop header
LB: loop body
LE: loop exit
PB: predicated region body
PF: predicated region fallthrough
CT: control target
= control target key end

     0   :  { %vm9_vm0 = vcmask 15360   ;;  %s247_s12 = smov 126   ;;  %s248_s13 = smov 114   ;;  %vm3_vm1 = vcmask 48128   ;;  %vm13_vm2 = vcmask 31744   ;;  %vm16_vm3 = vcmask 1048560   ;;  %s377_s0 = inlined_call_operand.vmem [shape: f32[28,6], index: 0, kind: input, shape index: {}]   ;;  %s378_s1 = inlined_call_operand.vmem [shape: f32[1,168], index: 1, kind: output, shape index: {}]  }
   0x1   :  { %v191_v0 = vld [vmem:[%s377_s0 + $0x15] sm:$0x1]   ;;  %v194_v3 = vld [vmem:[%s377_s0 + $0x13] sm:$0x1]   ;;  %v193_v4 = vld [vmem:[%s377_s0 + $0x14] sm:$0x1]  }
   0x2   :  { %v192_v1 = vld [vmem:[%s377_s0 + $0x15] sm:$0x1]   ;;  %26 = vrot.lane.b32.xlu1 %v194_v3, %s248_s13  ;;  %v195_v5 = vld [vmem:[%s377_s0 + $0x12] sm:$0x1]   ;;  %s249_s18 = smov 120   ;;  %s250_s19 = smov 108  }
   0x3   :  { %v10_v2 = vsel %vm9_vm0, %v192_v1, %v191_v0  ;;  %v196_v6 = vld [vmem:[%s377_s0 + $0x11] sm:$0x1]   ;;  %v197_v7 = vld [vmem:[%s377_s0 + $0x10] sm:$0x1]   ;;  %s251_s24 = smov 102   ;;  %s252_s25 = smov 96  }
   0x4   :  { %11 = vrot.lane.b32.xlu0 %v10_v2, %s247_s12  ;;  %v198_v8 = vld [vmem:[%s377_s0 + $0xf] sm:$0x1]   ;;  %v199_v9 = vld [vmem:[%s377_s0 + $0xe] sm:$0x1]   ;;  %s253_s30 = smov 90   ;;  %s254_s2 = smov 84  }
   0x5   :  { %v2_v10 = vld [vmem:[%s377_s0] sm:$0x1]   ;;  %v200_v11 = vld [vmem:[%s377_s0 + $0xd] sm:$0x1]   ;;  %v201_v12 = vld [vmem:[%s377_s0 + $0xc] sm:$0x1]  }
   0x6   :  { %32 = vrot.lane.b32.xlu1 %v195_v5, %s250_s19  ;;  %4 = vst.msk [vmem:[#allocation0] sm:$0x1] %vm3_vm1, %v2_v10   ;;  %s255_s9 = smov 78   ;;  %s256_s10 = smov 72   ;;  %v202_v13 = vld [vmem:[%s377_s0 + $0xb] sm:$0x1]  }
   0x7   :  { %v203_v14 = vld [vmem:[%s377_s0 + $0xa] sm:$0x1]   ;;  %s257_s15 = smov 66   ;;  %s258_s16 = smov 60   ;;  %v204_v15 = vld [vmem:[%s377_s0 + $0x9] sm:$0x1]  }
   0x8   :  { %20 = vrot.lane.b32.xlu0 %v193_v4, %s249_s18  ;;  %v205_v16 = vld [vmem:[%s377_s0 + $0x8] sm:$0x1]   ;;  %s259_s21 = smov 54   ;;  %s260_s22 = smov 48   ;;  %v206_v17 = vld [vmem:[%s377_s0 + $0x7] sm:$0x1]  }
   0x9   :  { %v207_v18 = vld [vmem:[%s377_s0 + $0x6] sm:$0x1]   ;;  %s261_s27 = smov 42   ;;  %s262_s28 = smov 36   ;;  %v208_v19 = vld [vmem:[%s377_s0 + $0x1b] sm:$0x1]  }
   0xa   :  { %44 = vrot.lane.b32.xlu1 %v197_v7, %s252_s25  ;;  %v209_v20 = vld [vmem:[%s377_s0 + $0x5] sm:$0x1]   ;;  %s263_s4 = smov 34   ;;  %s264_s5 = smov 30   ;;  %v210_v21 = vld [vmem:[%s377_s0 + $0x1a] sm:$0x1]  }
   0xb   :  { %v211_v22 = vld [vmem:[%s377_s0 + $0x4] sm:$0x1]   ;;  %s266_s11 = smov 24   ;;  %v212_v23 = vld [vmem:[%s377_s0 + $0x19] sm:$0x1]   ;;  %s268_s17 = smov 18  }
   0xc   :  { %38 = vrot.lane.b32.xlu0 %v196_v6, %s251_s24  ;;  %v213_v24 = vld [vmem:[%s377_s0 + $0x3] sm:$0x1]   ;;  %v214_v25 = vld [vmem:[%s377_s0 + $0x18] sm:$0x1]   ;;  %v215_v26 = vld [vmem:[%s377_s0 + $0x2] sm:$0x1]  }
   0xd   :  { %s270_s23 = smov 12   ;;  %v216_v27 = vld [vmem:[%s377_s0 + $0x17] sm:$0x1]   ;;  %v217_v28 = vld [vmem:[%s377_s0 + $0x1] sm:$0x1]   ;;  %s272_s29 = smov 6  }
   0xe   :  { %56 = vrot.lane.b32.xlu1 %v199_v9, %s254_s2  ;;  %v218_v29 = vld [vmem:[%s377_s0 + $0x16] sm:$0x1]   ;;  %s273_s0 = smov 4   ;;  %vm22_vm4 = vcmask 1032128   ;;  %vm28_vm5 = vcmask 982928   ;;  %vm34_vm6 = vcmask 933728  }
   0xf   :  { %vm40_vm7 = vcmask 884528   ;;  %vm46_vm8 = vcmask 835328   ;;  %vm52_vm9 = vcmask 786128   ;;  %vm58_vm10 = vcmask 736928  }
  0x10   :  { %50 = vrot.lane.b32.xlu0 %v198_v8, %s253_s30  ;;  %vm64_vm11 = vcmask 687728   ;;  %vm70_vm12 = vcmask 638528   ;;  %vm76_vm13 = vcmask 589328   ;;  %vm82_vm14 = vcmask 540128  }
  0x11   :  { %vm88_vm15 = vcmask 490928   ;;  %vm94_vm0 = vcmask 441728   ;;  %vm100_vm1 = vcmask 392528  }
  0x12   :  { %68 = vrot.lane.b32.xlu1 %v201_v12, %s256_s10  ;;  %s265_s10 = smov 28  }
  0x14   :  { %62 = vrot.lane.b32.xlu0 %v200_v11, %s255_s9 }
  0x16   :  { %80 = vrot.lane.b32.xlu1 %v203_v14, %s258_s16  ;;  %s267_s16 = smov 22  }
  0x18   :  { %74 = vrot.lane.b32.xlu0 %v202_v13, %s257_s15 }
  0x1a   :  { %92 = vrot.lane.b32.xlu1 %v205_v16, %s260_s22  ;;  %s269_s22 = smov 16  }
  0x1c   :  { %86 = vrot.lane.b32.xlu0 %v204_v15, %s259_s21 }
  0x1e   :  { %104 = vrot.lane.b32.xlu1 %v207_v18, %s262_s28  ;;  %s271_s28 = smov 10  }
  0x20   :  { %98 = vrot.lane.b32.xlu0 %v206_v17, %s261_s27 }
  0x22   :  { %117 = vrot.lane.b32.xlu1 %v209_v20, %s264_s5 }
  0x24   :  { %110 = vrot.lane.b32.xlu0 %v208_v19, %s263_s4 }
  0x26   :  { %130 = vrot.lane.b32.xlu1 %v211_v22, %s266_s11 }
  0x28   :  { %123 = vrot.lane.b32.xlu0 %v210_v21, %s265_s10 }
  0x2a   :  { %143 = vrot.lane.b32.xlu1 %v213_v24, %s268_s17 }
  0x2c   :  { %136 = vrot.lane.b32.xlu0 %v212_v23, %s267_s16 }
  0x2e   :  { %156 = vrot.lane.b32.xlu1 %v215_v26, %s270_s23 }
  0x30   :  { %149 = vrot.lane.b32.xlu0 %v214_v25, %s269_s22 }
  0x32   :  { %169 = vrot.lane.b32.xlu1 %v217_v28, %s272_s29 }
  0x34   :  { %162 = vrot.lane.b32.xlu0 %v216_v27, %s271_s28 }
  0x38   :  { %175 = vrot.lane.b32.xlu0 %v218_v29, %s273_s0 }
  0x74   :  { %v27_v31 = vpop.permute.xlu1 %26  }
  0x76   :  { %v12_v30 = vpop.permute.xlu0 %11  }
  0x77   :  { %15 = vst.msk [vmem:[#allocation0 + $0x8] sm:$0x1] %vm13_vm2, %v12_v30   ;;  %vm106_vm2 = vcmask 343328  }
  0x78   :  { %17 = vst.msk [vmem:[#allocation0] sm:$0x1] %vm16_vm3, %v12_v30   ;;  %v33_v33 = vpop.permute.xlu1 %32   ;;  %vm112_vm3 = vcmask 326928  }
  0x7a   :  { %v21_v32 = vpop.permute.xlu0 %20  }
  0x7b   :  { %23 = vst.msk [vmem:[#allocation0] sm:$0x1] %vm22_vm4, %v21_v32   ;;  %vm119_vm4 = vcmask 294128  }
  0x7c   :  { %29 = vst.msk [vmem:[#allocation0] sm:$0x1] %vm28_vm5, %v27_v31   ;;  %v45_v35 = vpop.permute.xlu1 %44   ;;  %vm125_vm5 = vcmask 277728  }
  0x7d   :  { %35 = vst.msk [vmem:[#allocation0] sm:$0x1] %vm34_vm6, %v33_v33   ;;  %vm132_vm6 = vcmask 244928  }
  0x7e   :  { %v39_v34 = vpop.permute.xlu0 %38  }
  0x7f   :  { %41 = vst.msk [vmem:[#allocation0] sm:$0x1] %vm40_vm7, %v39_v34   ;;  %vm138_vm7 = vcmask 228528  }
  0x80   :  { %47 = vst.msk [vmem:[#allocation0] sm:$0x1] %vm46_vm8, %v45_v35   ;;  %v57_v37 = vpop.permute.xlu1 %56   ;;  %vm145_vm8 = vcmask 195728  }
  0x82   :  { %v51_v36 = vpop.permute.xlu0 %50  }
  0x83   :  { %53 = vst.msk [vmem:[#allocation0] sm:$0x1] %vm52_vm9, %v51_v36   ;;  %vm151_vm9 = vcmask 179328  }
  0x84   :  { %59 = vst.msk [vmem:[#allocation0] sm:$0x1] %vm58_vm10, %v57_v37   ;;  %v69_v39 = vpop.permute.xlu1 %68   ;;  %vm158_vm10 = vcmask 146528  }
  0x86   :  { %v63_v38 = vpop.permute.xlu0 %62  }
  0x87   :  { %65 = vst.msk [vmem:[#allocation0] sm:$0x1] %vm64_vm11, %v63_v38   ;;  %vm164_vm11 = vcmask 130128  }
  0x88   :  { %71 = vst.msk [vmem:[#allocation0] sm:$0x1] %vm70_vm12, %v69_v39   ;;  %v81_v41 = vpop.permute.xlu1 %80   ;;  %vm171_vm12 = vcmask 97328  }
  0x8a   :  { %v75_v40 = vpop.permute.xlu0 %74  }
  0x8b   :  { %77 = vst.msk [vmem:[#allocation0] sm:$0x1] %vm76_vm13, %v75_v40   ;;  %vm177_vm13 = vcmask 80928  }
  0x8c   :  { %83 = vst.msk [vmem:[#allocation0] sm:$0x1] %vm82_vm14, %v81_v41   ;;  %v93_v43 = vpop.permute.xlu1 %92  }
  0x8e   :  { %v87_v42 = vpop.permute.xlu0 %86  }
  0x8f   :  { %89 = vst.msk [vmem:[#allocation0] sm:$0x1] %vm88_vm15, %v87_v42  }
  0x90   :  { %95 = vst.msk [vmem:[#allocation0] sm:$0x1] %vm94_vm0, %v93_v43   ;;  %v105_v45 = vpop.permute.xlu1 %104  }
  0x92   :  { %v99_v44 = vpop.permute.xlu0 %98  }
  0x93   :  { %101 = vst.msk [vmem:[#allocation0] sm:$0x1] %vm100_vm1, %v99_v44  }
  0x94   :  { %107 = vst.msk [vmem:[#allocation0] sm:$0x1] %vm106_vm2, %v105_v45   ;;  %v118_v47 = vpop.permute.xlu1 %117  }
  0x95   :  { %120 = vst.msk [vmem:[#allocation0] sm:$0x1] %vm119_vm4, %v118_v47  }
  0x96   :  { %v111_v46 = vpop.permute.xlu0 %110  }
  0x97   :  { %114 = vst.msk [vmem:[#allocation0 + $0x8] sm:$0x1] %vm112_vm3, %v111_v46  }
  0x98   :  { %v131_v49 = vpop.permute.xlu1 %130  }
  0x99   :  { %133 = vst.msk [vmem:[#allocation0] sm:$0x1] %vm132_vm6, %v131_v49  }
  0x9a   :  { %v124_v48 = vpop.permute.xlu0 %123  }
  0x9b   :  { %127 = vst.msk [vmem:[#allocation0 + $0x8] sm:$0x1] %vm125_vm5, %v124_v48  }
  0x9c   :  { %v144_v51 = vpop.permute.xlu1 %143  }
  0x9d   :  { %146 = vst.msk [vmem:[#allocation0] sm:$0x1] %vm145_vm8, %v144_v51  }
  0x9e   :  { %v137_v50 = vpop.permute.xlu0 %136  }
  0x9f   :  { %140 = vst.msk [vmem:[#allocation0 + $0x8] sm:$0x1] %vm138_vm7, %v137_v50  }
  0xa0   :  { %v157_v53 = vpop.permute.xlu1 %156  }
  0xa1   :  { %159 = vst.msk [vmem:[#allocation0] sm:$0x1] %vm158_vm10, %v157_v53  }
  0xa2   :  { %v150_v52 = vpop.permute.xlu0 %149  }
  0xa3   :  { %153 = vst.msk [vmem:[#allocation0 + $0x8] sm:$0x1] %vm151_vm9, %v150_v52  }
  0xa4   :  { %v170_v55 = vpop.permute.xlu1 %169  }
  0xa5   :  { %172 = vst.msk [vmem:[#allocation0] sm:$0x1] %vm171_vm12, %v170_v55  }
  0xa6   :  { %v163_v54 = vpop.permute.xlu0 %162  }
  0xa7   :  { %166 = vst.msk [vmem:[#allocation0 + $0x8] sm:$0x1] %vm164_vm11, %v163_v54  }
  0xaa   :  { %v176_v56 = vpop.permute.xlu0 %175  }
  0xab   :  { %179 = vst.msk [vmem:[#allocation0 + $0x8] sm:$0x1] %vm177_vm13, %v176_v56  }
  0xac   :  { %v183_v57 = vld [vmem:[#allocation0] sm:$0x1] }
  0xad   :  { %185 = vst [vmem:[%s378_s1] sm:$0x1] %v183_v57 }
  0xb2   :  { %v187_v58 = vld [vmem:[#allocation0 + $0x8] sm:$0x1] }
  0xb3   :  { %219 = vst [vmem:[%s378_s1 + $0x1] sm:$0x1] %v187_v58 }

// kernel: tile.19
= control target key start
LH: loop header
LB: loop body
LE: loop exit
PB: predicated region body
PF: predicated region fallthrough
CT: control target
= control target key end

     0   :  { %s75_s10 = smov 112   ;;  %s76_s11 = smov 80   ;;  %vm4_vm0 = vcmask 130048   ;;  %vm10_vm1 = vcmask 1048448   ;;  %vm16_vm2 = vcmask 917248   ;;  %vm22_vm3 = vcmask 786048   ;;  %s122_s0 = inlined_call_operand.vmem [shape: f32[10,16], index: 0, kind: input, shape index: {}]   ;;  %s123_s1 = inlined_call_operand.vmem [shape: f32[1,160], index: 1, kind: output, shape index: {}]  }
   0x1   :  { %v60_v0 = vld [vmem:[%s122_s0 + $0x7] sm:$0x1]   ;;  %v62_v1 = vld [vmem:[%s122_s0 + $0x5] sm:$0x1]   ;;  %v61_v2 = vld [vmem:[%s122_s0 + $0x6] sm:$0x1]  }
   0x2   :  { %8 = vrot.lane.b32.xlu0 %v60_v0, %s75_s10  ;;  %20 = vrot.lane.b32.xlu1 %v62_v1, %s76_s11  ;;  %v63_v3 = vld [vmem:[%s122_s0 + $0x4] sm:$0x1]   ;;  %s2_s16 = smov 3  ;;  %s77_s17 = smov 96   ;;  %v64_v5 = vld [vmem:[%s122_s0 + $0x3] sm:$0x1]  }
   0x3   :  { %s78_s18 = smov 64   ;;  %v3_v4 = vld [vmem:[%s122_s0] ss:$8 sm:%s2_s16]   ;;  %v65_v6 = vld [vmem:[%s122_s0 + $0x2] sm:$0x1]   ;;  %s43_s25 = smov 3 }
   0x4   :  { %5 = vst.msk [vmem:[#allocation0] ss:$8 sm:$0x3] %vm4_vm0, %v3_v4   ;;  %s79_s26 = smov 48   ;;  %s80_s27 = smov 32   ;;  %vm28_vm4 = vcmask 654848  }
   0x5   :  { %v66_v7 = vld [vmem:[%s122_s0 + $0x1] ss:$8 sm:%s43_s25]   ;;  %s81_s0 = smov 16   ;;  %vm34_vm5 = vcmask 523648   ;;  %vm40_vm6 = vcmask 392448   ;;  %vm47_vm7 = vcmask 261248  }
   0x6   :  { %14 = vrot.lane.b32.xlu0 %v61_v2, %s77_s17  ;;  %26 = vrot.lane.b32.xlu1 %v63_v3, %s78_s18 }
   0xa   :  { %32 = vrot.lane.b32.xlu0 %v64_v5, %s79_s26  ;;  %38 = vrot.lane.b32.xlu1 %v65_v6, %s80_s27 }
   0xe   :  { %45 = vrot.lane.b32.xlu0 %v66_v7, %s81_s0 }
  0x74   :  { %v9_v8 = vpop.permute.xlu0 %8   ;;  %v21_v9 = vpop.permute.xlu1 %20  }
  0x75   :  { %11 = vst.msk [vmem:[#allocation0] sm:$0x1] %vm10_vm1, %v9_v8  }
  0x78   :  { %v15_v10 = vpop.permute.xlu0 %14   ;;  %v27_v11 = vpop.permute.xlu1 %26  }
  0x79   :  { %17 = vst.msk [vmem:[#allocation0] sm:$0x1] %vm16_vm2, %v15_v10  }
  0x7a   :  { %23 = vst.msk [vmem:[#allocation0] sm:$0x1] %vm22_vm3, %v21_v9  }
  0x7b   :  { %29 = vst.msk [vmem:[#allocation0] sm:$0x1] %vm28_vm4, %v27_v11  }
  0x7c   :  { %v33_v12 = vpop.permute.xlu0 %32   ;;  %v39_v13 = vpop.permute.xlu1 %38  }
  0x7d   :  { %35 = vst.msk [vmem:[#allocation0] sm:$0x1] %vm34_vm5, %v33_v12  }
  0x7e   :  { %41 = vst.msk [vmem:[#allocation0] sm:$0x1] %vm40_vm6, %v39_v13  }
  0x80   :  { %v46_v14 = vpop.permute.xlu0 %45  }
  0x81   :  { %48 = vst.msk [vmem:[#allocation0] ss:$8 sm:$0x3] %vm47_vm7, %v46_v14  }
  0x88   :  { %v52_v15 = vld [vmem:[#allocation0] sm:$0x1]  ;;  %v56_v16 = vld [vmem:[#allocation0 + $0x8] sm:$0x1] }
  0x89   :  { %54 = vst [vmem:[%s123_s1] sm:$0x1] %v52_v15  ;;  %67 = vst [vmem:[%s123_s1 + $0x1] sm:$0x1] %v56_v16 }

// kernel: net_forward.1
= control target key start
LH: loop header
LB: loop body
LE: loop exit
PB: predicated region body
PF: predicated region fallthrough
CT: control target
= control target key end

     0   :  { %s5007_s21 = smov 96   ;;  %s5008_s26 = smov 64   ;;  %vm42_vm0 = vcmask 785408   ;;  %vm123_vm1 = vcmask 1048320   ;;  %vm125_vm2 = vcmask 523264   ;;  %vm349_vm3 = vcmask 1048064   ;;  %s7813_s0 = inlined_call_operand.vmem [shape: f32[288,96], index: 0, kind: input, shape index: {}]   ;;  %s7814_s1 = inlined_call_operand.vmem [shape: f32[480,168], index: 1, kind: input, shape index: {}]   ;;  %s7815_s2 = inlined_call_operand.vmem [shape: f32[1,168], index: 2, kind: input, shape index: {}]   ;;  %s7816_s3 = inlined_call_operand.vmem [shape: f32[420,160], index: 3, kind: input, shape index: {}]   ;;  %s7817_s4 = inlined_call_operand.vmem [shape: f32[1,160], index: 4, kind: input, shape index: {}]   ;;  %s7818_s5 = inlined_call_operand.vmem [shape: f32[5,80,120], index: 5, kind: input, shape index: {}]   ;;  %s7819_s7 = inlined_call_operand.vmem [shape: f32[120,84], index: 7, kind: input, shape index: {}]   ;;  %s7820_s9 = inlined_call_operand.vmem [shape: f32[84,10], index: 9, kind: input, shape index: {}]   ;;  %s7821_s6 = inlined_call_operand.vmem [shape: f32[1,120], index: 6, kind: input, shape index: {}]   ;;  %s7822_s8 = inlined_call_operand.vmem [shape: f32[1,84], index: 8, kind: input, shape index: {}]   ;;  %s7823_s10 = inlined_call_operand.vmem [shape: f32[1,10], index: 10, kind: input, shape index: {}]   ;;  %s7824_s11 = inlined_call_operand.vmem [shape: f32[8,10], index: 11, kind: output, shape index: {}]  }
   0x1   :  { %v103_v0 = vld [vmem:[%s7813_s0 + $0x1] sm:$0xff]  ;;  %v104_v1 = vld [vmem:[%s7813_s0 + $0x9] sm:$0xff]  ;;  %v105_v4 = vld [vmem:[%s7813_s0 + $0x11] sm:$0xff]  ;;  %vm351_vm4 = vcmask 261120   ;;  %s5009_s27 = smov 32   ;;  %vm575_vm5 = vcmask 1047808  }
   0x2   :  { %111 = vrot.lane.b32.xlu0 %v103_v0, %s5007_s21  ;;  %113 = vrot.lane.b32.xlu1 %v104_v1, %s5007_s21  ;;  %v329_v2 = vld [vmem:[%s7813_s0 + $0x2] sm:$0xff]  ;;  %v330_v3 = vld [vmem:[%s7813_s0 + $0xa] sm:$0xff]  ;;  %vm2035_vm6 = vcmask 687104   ;;  %vm1938_vm7 = vcmask 359424   ;;  %vm2168_vm8 = vcmask 685056   ;;  %s5012_s17 = smov 40  }
   0x3   :  { %v331_v5 = vld [vmem:[%s7813_s0 + $0x12] sm:$0xff]  ;;  %v332_v7 = vld [vmem:[%s7813_s0 + $0x1a] sm:$0xff]  ;;  %v941_v8 = vld [vmem:[%s7814_s1 + $0x8] sm:$0xff]  ;;  %s5013_s18 = smov 84   ;;  %s5014_s19 = smov 124   ;;  %vm2226_vm9 = vcmask 1048224  }
   0x4   :  { %v106_v6 = vld [vmem:[%s7813_s0 + $0x19] sm:$0xff]  ;;  %v133_v10 = vld [vmem:[%s7813_s0 + $0x25] sm:$0xff]  ;;  %v942_v13 = vld [vmem:[%s7814_s1 + $0x10] sm:$0xff]  ;;  %vm2228_vm10 = vcmask 326656   ;;  %vm2340_vm11 = vcmask 1015104   ;;  %vm2437_vm12 = vcmask 1048544  }
   0x5   :  { %v943_v9 = vld [vmem:[%s7814_s1 + $0x18] sm:$0xff]  ;;  %v940_v12 = vld [vmem:[%s7814_s1] sm:$0xff]  ;;  %v945_v15 = vld [vmem:[%s7814_s1 + $0x28] sm:$0xff]  ;;  %vm2439_vm13 = vcmask 654336   ;;  %s5015_s29 = smov 80   ;;  %vm2885_vm14 = vcmask 1043456  }
   0x6   :  { %337 = vrot.lane.b32.xlu0 %v329_v2, %s5008_s26  ;;  %339 = vrot.lane.b32.xlu1 %v330_v3, %s5008_s26  ;;  %v4459_v11 = vpack.c.bf16 %v943_v9, %v941_v8  ;;  %v4461_v14 = vpack.c.bf16 %v942_v13, %v940_v12  ;;  %v947_v16 = vld [vmem:[%s7814_s1 + $0x38] sm:$0xff]  ;;  %v359_v17 = vld [vmem:[%s7813_s0 + $0x26] sm:$0xff]  ;;  %vm2551_vm15 = vcmask 1048192  }
   0x7   :  { %v4463_v18 = vpack.c.bf16 %v947_v16, %v945_v15  ;;  %v944_v19 = vld [vmem:[%s7814_s1 + $0x20] sm:$0xff]  ;;  %v946_v20 = vld [vmem:[%s7814_s1 + $0x30] sm:$0xff]  ;;  %v949_v22 = vld [vmem:[%s7814_s1 + $0x48] sm:$0xff] }
   0x8   :  { %4460 = vmatprep.subr.bf16.mxu0 %v4459_v11  ;;  %v4465_v21 = vpack.c.bf16 %v946_v20, %v944_v19  ;;  %v951_v23 = vld [vmem:[%s7814_s1 + $0x58] sm:$0xff]  ;;  %v948_v25 = vld [vmem:[%s7814_s1 + $0x40] sm:$0xff]  ;;  %v950_v26 = vld [vmem:[%s7814_s1 + $0x50] sm:$0xff] }
   0x9   :  { %4462 = vmatpush1.bf16.msra.mxu0 %v4461_v14  ;;  %v4467_v24 = vpack.c.bf16 %v951_v23, %v949_v22  ;;  %v953_v27 = vld [vmem:[%s7814_s1 + $0x68] sm:$0xff]  ;;  %v955_v30 = vld [vmem:[%s7814_s1 + $0x78] sm:$0xff]  ;;  %v4469_v31 = vpack.c.bf16 %v950_v26, %v948_v25  ;;  %v952_v33 = vld [vmem:[%s7814_s1 + $0x60] sm:$0xff] }
   0xa   :  { %115 = vrot.lane.b32.xlu0 %v105_v4, %s5007_s21  ;;  %341 = vrot.lane.b32.xlu1 %v331_v5, %s5008_s26  ;;  %v134_v28 = vld [vmem:[%s7813_s0 + $0x2d] sm:$0xff]  ;;  %v4471_v32 = vpack.c.bf16 %v955_v30, %v953_v27  ;;  %v959_v36 = vld [vmem:[%s7814_s1 + $0x98] sm:$0xff] }
   0xb   :  { %4464 = vmatprep.subr.bf16.mxu0 %v4463_v18  ;;  %v360_v29 = vld [vmem:[%s7813_s0 + $0x2e] sm:$0xff]  ;;  %v361_v38 = vld [vmem:[%s7813_s0 + $0x36] sm:$0xff]  ;;  %v956_v41 = vld [vmem:[%s7814_s1 + $0x80] sm:$0xff] }
   0xc   :  { %v954_v34 = vld [vmem:[%s7814_s1 + $0x70] sm:$0xff]  ;;  %v957_v35 = vld [vmem:[%s7814_s1 + $0x88] sm:$0xff]  ;;  %v963_v44 = vld [vmem:[%s7814_s1 + $0xb8] sm:$0xff] }
   0xd   :  { %4466 = vmatpush1.bf16.msra.mxu0 %v4465_v21  ;;  %v135_v37 = vld [vmem:[%s7813_s0 + $0x35] sm:$0xff]  ;;  %v4473_v39 = vpack.c.bf16 %v954_v34, %v952_v33  ;;  %v4475_v40 = vpack.c.bf16 %v959_v36, %v957_v35  ;;  %v961_v43 = vld [vmem:[%s7814_s1 + $0xa8] sm:$0xff]  ;;  %v136_v45 = vld [vmem:[%s7813_s0 + $0x3d] sm:$0xff] }
   0xe   :  { %117 = vrot.lane.b32.xlu0 %v106_v6, %s5007_s21  ;;  %343 = vrot.lane.b32.xlu1 %v332_v7, %s5008_s26  ;;  %v958_v42 = vld [vmem:[%s7814_s1 + $0x90] sm:$0xff]  ;;  %v362_v46 = vld [vmem:[%s7813_s0 + $0x3e] sm:$0xff]  ;;  %v4479_v48 = vpack.c.bf16 %v963_v44, %v961_v43 }
   0xf   :  { %4468 = vmatprep.subr.bf16.mxu0 %v4467_v24  ;;  %v4477_v47 = vpack.c.bf16 %v958_v42, %v956_v41  ;;  %v960_v49 = vld [vmem:[%s7814_s1 + $0xa0] sm:$0xff]  ;;  %v962_v50 = vld [vmem:[%s7814_s1 + $0xb0] sm:$0xff]  ;;  %v965_v51 = vld [vmem:[%s7814_s1 + $0xc8] sm:$0xff] }
  0x10   :  { %v967_v52 = vld [vmem:[%s7814_s1 + $0xd8] sm:$0xff]  ;;  %v161_v53 = vld [vmem:[%s7813_s0 + $0x49] sm:$0xff]  ;;  %v4481_v55 = vpack.c.bf16 %v962_v50, %v960_v49  ;;  %v964_v57 = vld [vmem:[%s7814_s1 + $0xc0] sm:$0xff] }
  0x11   :  { %4470 = vmatpush1.bf16.msra.mxu0 %v4469_v31  ;;  %v387_v54 = vld [vmem:[%s7813_s0 + $0x4a] sm:$0xff]  ;;  %v4483_v56 = vpack.c.bf16 %v967_v52, %v965_v51  ;;  %v971_v60 = vld [vmem:[%s7814_s1 + $0xf8] sm:$0xff]  ;;  %v968_v1 = vld [vmem:[%s7814_s1 + $0xe0] sm:$0xff] }
  0x12   :  { %141 = vrot.lane.b32.xlu0 %v133_v10, %s5007_s21  ;;  %367 = vrot.lane.b32.xlu1 %v359_v17, %s5008_s26  ;;  %v966_v58 = vld [vmem:[%s7814_s1 + $0xd0] sm:$0xff]  ;;  %v969_v59 = vld [vmem:[%s7814_s1 + $0xe8] sm:$0xff] }
  0x13   :  { %4472 = vmatprep.subr.bf16.mxu0 %v4471_v32  ;;  %v162_v61 = vld [vmem:[%s7813_s0 + $0x51] sm:$0xff]  ;;  %v4485_v63 = vpack.c.bf16 %v966_v58, %v964_v57  ;;  %v4487_v0 = vpack.c.bf16 %v971_v60, %v969_v59  ;;  %v973_v3 = vld [vmem:[%s7814_s1 + $0x108] sm:$0xff]  ;;  %v163_v5 = vld [vmem:[%s7813_s0 + $0x59] sm:$0xff] }
  0x14   :  { %v388_v62 = vld [vmem:[%s7813_s0 + $0x52] sm:$0xff]  ;;  %v389_v6 = vld [vmem:[%s7813_s0 + $0x5a] sm:$0xff]  ;;  %v977_v12 = vld [vmem:[%s7814_s1 + $0x128] sm:$0xff] }
  0x15   :  { %4474 = vmatpush1.bf16.msra.mxu0 %v4473_v39  ;;  %v970_v2 = vld [vmem:[%s7814_s1 + $0xf0] sm:$0xff]  ;;  %v975_v4 = vld [vmem:[%s7814_s1 + $0x118] sm:$0xff]  ;;  %v38_v8 = vld [vmem:[%s7813_s0] sm:$0xff] }
  0x16   :  { %143 = vrot.lane.b32.xlu0 %v134_v28, %s5007_s21  ;;  %369 = vrot.lane.b32.xlu1 %v360_v29, %s5008_s26  ;;  %v4489_v7 = vpack.c.bf16 %v970_v2, %v968_v1  ;;  %v4491_v9 = vpack.c.bf16 %v975_v4, %v973_v3  ;;  %v972_v10 = vld [vmem:[%s7814_s1 + $0x100] sm:$0xff]  ;;  %v974_v11 = vld [vmem:[%s7814_s1 + $0x110] sm:$0xff]  ;;  %43 = vst.msk [vmem:[#allocation2] sm:$0xff] %vm42_vm0, %v38_v8 }
  0x17   :  { %4476 = vmatprep.subr.bf16.mxu0 %v4475_v40  ;;  %v979_v13 = vld [vmem:[%s7814_s1 + $0x138] sm:$0xff]  ;;  %v164_v14 = vld [vmem:[%s7813_s0 + $0x61] sm:$0xff]  ;;  %v4493_v17 = vpack.c.bf16 %v974_v11, %v972_v10  ;;  %v978_v20 = vld [vmem:[%s7814_s1 + $0x130] sm:$0xff] }
  0x18   :  { %v390_v15 = vld [vmem:[%s7813_s0 + $0x62] sm:$0xff]  ;;  %v4495_v18 = vpack.c.bf16 %v979_v13, %v977_v12  ;;  %v983_v22 = vld [vmem:[%s7814_s1 + $0x158] sm:$0xff]  ;;  %v189_v23 = vld [vmem:[%s7813_s0 + $0x6d] sm:$0xff] }
  0x19   :  { %4478 = vmatpush1.bf16.msra.mxu0 %v4477_v47  ;;  %v39_v16 = vld [vmem:[%s7813_s0 + $0x8] sm:$0xff]  ;;  %v976_v19 = vld [vmem:[%s7814_s1 + $0x120] sm:$0xff]  ;;  %v40_v25 = vld [vmem:[%s7813_s0 + $0x10] sm:$0xff] }
  0x1a   :  { %145 = vrot.lane.b32.xlu0 %v135_v37, %s5007_s21  ;;  %371 = vrot.lane.b32.xlu1 %v361_v38, %s5008_s26  ;;  %44 = vst.msk [vmem:[#allocation2 + $0x20] sm:$0xff] %vm42_vm0, %v39_v16  ;;  %v981_v21 = vld [vmem:[%s7814_s1 + $0x148] sm:$0xff]  ;;  %v4497_v26 = vpack.c.bf16 %v978_v20, %v976_v19  ;;  %45 = vst.msk [vmem:[#allocation2 + $0x40] sm:$0xff] %vm42_vm0, %v40_v25  ;;  %v190_v27 = vld [vmem:[%s7813_s0 + $0x75] sm:$0xff] }
  0x1b   :  { %4480 = vmatprep.subr.bf16.mxu0 %v4479_v48  ;;  %v415_v24 = vld [vmem:[%s7813_s0 + $0x6e] sm:$0xff]  ;;  %v4499_v28 = vpack.c.bf16 %v983_v22, %v981_v21  ;;  %v980_v29 = vld [vmem:[%s7814_s1 + $0x140] sm:$0xff]  ;;  %v987_v32 = vld [vmem:[%s7814_s1 + $0x178] sm:$0xff] }
  0x1c   :  { %v982_v30 = vld [vmem:[%s7814_s1 + $0x150] sm:$0xff]  ;;  %v985_v31 = vld [vmem:[%s7814_s1 + $0x168] sm:$0xff]  ;;  %v41_v33 = vld [vmem:[%s7813_s0 + $0x18] sm:$0xff] }
  0x1d   :  { %4482 = vmatpush1.bf16.msra.mxu0 %v4481_v55  ;;  %v416_v34 = vld [vmem:[%s7813_s0 + $0x76] sm:$0xff]  ;;  %46 = vst.msk [vmem:[#allocation2 + $0x60] sm:$0xff] %vm42_vm0, %v41_v33  ;;  %v47_v35 = vld [vmem:[%s7813_s0 + $0x24] sm:$0xff]  ;;  %v48_v36 = vld [vmem:[%s7813_s0 + $0x2c] sm:$0xff]  ;;  %v4501_v37 = vpack.c.bf16 %v982_v30, %v980_v29  ;;  %v4503_v39 = vpack.c.bf16 %v987_v32, %v985_v31 }
  0x1e   :  { %147 = vrot.lane.b32.xlu0 %v136_v45, %s5007_s21  ;;  %373 = vrot.lane.b32.xlu1 %v362_v46, %s5008_s26  ;;  %v984_v38 = vld [vmem:[%s7814_s1 + $0x160] sm:$0xff]  ;;  %51 = vst.msk [vmem:[#allocation2 + $0x80] sm:$0xff] %vm42_vm0, %v47_v35  ;;  %52 = vst.msk [vmem:[#allocation2 + $0xa0] sm:$0xff] %vm42_vm0, %v48_v36  ;;  %v986_v40 = vld [vmem:[%s7814_s1 + $0x170] sm:$0xff] }
  0x1f   :  { %4484 = vmatprep.subr.bf16.mxu0 %v4483_v56  ;;  %v989_v41 = vld [vmem:[%s7814_s1 + $0x188] sm:$0xff]  ;;  %v49_v42 = vld [vmem:[%s7813_s0 + $0x34] sm:$0xff]  ;;  %v50_v44 = vld [vmem:[%s7813_s0 + $0x3c] sm:$0xff]  ;;  %v4505_v47 = vpack.c.bf16 %v986_v40, %v984_v38 }
  0x20   :  { %v991_v43 = vld [vmem:[%s7814_s1 + $0x198] sm:$0xff]  ;;  %53 = vst.msk [vmem:[#allocation2 + $0xc0] sm:$0xff] %vm42_vm0, %v49_v42  ;;  %54 = vst.msk [vmem:[#allocation2 + $0xe0] sm:$0xff] %vm42_vm0, %v50_v44  ;;  %v55_v48 = vld [vmem:[%s7813_s0 + $0x48] sm:$0xff] }
  0x21   :  { %4486 = vmatpush1.bf16.msra.mxu0 %v4485_v63  ;;  %v191_v45 = vld [vmem:[%s7813_s0 + $0x7d] sm:$0xff]  ;;  %v4507_v49 = vpack.c.bf16 %v991_v43, %v989_v41  ;;  %v990_v51 = vld [vmem:[%s7814_s1 + $0x190] sm:$0xff]  ;;  %59 = vst.msk [vmem:[#allocation2 + $0x100] sm:$0xff] %vm42_vm0, %v55_v48  ;;  %v192_v55 = vld [vmem:[%s7813_s0 + $0x85] sm:$0xff] }
  0x22   :  { %169 = vrot.lane.b32.xlu0 %v161_v53, %s5007_s21  ;;  %395 = vrot.lane.b32.xlu1 %v387_v54, %s5008_s26  ;;  %v417_v46 = vld [vmem:[%s7813_s0 + $0x7e] sm:$0xff]  ;;  %v56_v52 = vld [vmem:[%s7813_s0 + $0x50] sm:$0xff] }
  0x23   :  { %4488 = vmatprep.subr.bf16.mxu0 %v4487_v0  ;;  %v988_v50 = vld [vmem:[%s7814_s1 + $0x180] sm:$0xff]  ;;  %v993_v53 = vld [vmem:[%s7814_s1 + $0x1a8] sm:$0xff]  ;;  %v995_v54 = vld [vmem:[%s7814_s1 + $0x1b8] sm:$0xff]  ;;  %60 = vst.msk [vmem:[#allocation2 + $0x120] sm:$0xff] %vm42_vm0, %v56_v52 }
  0x24   :  { %v418_v56 = vld [vmem:[%s7813_s0 + $0x86] sm:$0xff]  ;;  %v57_v57 = vld [vmem:[%s7813_s0 + $0x58] sm:$0xff]  ;;  %v4509_v58 = vpack.c.bf16 %v990_v51, %v988_v50  ;;  %v4511_v60 = vpack.c.bf16 %v995_v54, %v993_v53  ;;  %v1002_v19 = vld [vmem:[%s7814_s1 + $0x1f0] sm:$0xff] }
  0x25   :  { %4490 = vmatpush1.bf16.msra.mxu0 %v4489_v7  ;;  %61 = vst.msk [vmem:[#allocation2 + $0x140] sm:$0xff] %vm42_vm0, %v57_v57  ;;  %v58_v59 = vld [vmem:[%s7813_s0 + $0x60] sm:$0xff]  ;;  %v63_v63 = vld [vmem:[%s7813_s0 + $0x6c] sm:$0xff]  ;;  %v999_v1 = vld [vmem:[%s7814_s1 + $0x1d8] sm:$0xff] }
  0x26   :  { %171 = vrot.lane.b32.xlu0 %v162_v61, %s5007_s21  ;;  %397 = vrot.lane.b32.xlu1 %v388_v62, %s5008_s26  ;;  %v992_v61 = vld [vmem:[%s7814_s1 + $0x1a0] sm:$0xff]  ;;  %v994_v62 = vld [vmem:[%s7814_s1 + $0x1b0] sm:$0xff]  ;;  %62 = vst.msk [vmem:[#allocation2 + $0x160] sm:$0xff] %vm42_vm0, %v58_v59  ;;  %67 = vst.msk [vmem:[#allocation2 + $0x180] sm:$0xff] %vm42_vm0, %v63_v63 }
  0x27   :  { %4492 = vmatprep.subr.bf16.mxu0 %v4491_v9  ;;  %v997_v0 = vld [vmem:[%s7814_s1 + $0x1c8] sm:$0xff]  ;;  %v217_v2 = vld [vmem:[%s7813_s0 + $0x91] sm:$0xff]  ;;  %v996_v8 = vld [vmem:[%s7814_s1 + $0x1c0] sm:$0xff] }
  0x28   :  { %v443_v3 = vld [vmem:[%s7813_s0 + $0x92] sm:$0xff]  ;;  %v4515_v7 = vpack.c.bf16 %v999_v1, %v997_v0  ;;  %v1001_v10 = vld [vmem:[%s7814_s1 + $0x1e8] sm:$0xff]  ;;  %v73_v21 = vld [vmem:[%s7813_s0 + $0xa0] sm:$0xff] }
  0x29   :  { %4494 = vmatpush1.bf16.msra.mxu0 %v4493_v17  ;;  %v64_v4 = vld [vmem:[%s7813_s0 + $0x74] sm:$0xff]  ;;  %v66_v12 = vld [vmem:[%s7813_s0 + $0x84] sm:$0xff]  ;;  %77 = vst.msk [vmem:[#allocation2 + $0x240] sm:$0xff] %vm42_vm0, %v73_v21  ;;  %v80_v30 = vld [vmem:[%s7813_s0 + $0xbc] sm:$0xff] }
  0x2a   :  { %173 = vrot.lane.b32.xlu0 %v163_v5, %s5007_s21  ;;  %399 = vrot.lane.b32.xlu1 %v389_v6, %s5008_s26  ;;  %v4513_v5 = vpack.c.bf16 %v994_v62, %v992_v61  ;;  %68 = vst.msk [vmem:[#allocation2 + $0x1a0] sm:$0xff] %vm42_vm0, %v64_v4  ;;  %v65_v6 = vld [vmem:[%s7813_s0 + $0x7c] sm:$0xff]  ;;  %v998_v9 = vld [vmem:[%s7814_s1 + $0x1d0] sm:$0xff]  ;;  %70 = vst.msk [vmem:[#allocation2 + $0x1e0] sm:$0xff] %vm42_vm0, %v66_v12 }
  0x2b   :  { %4496 = vmatprep.subr.bf16.mxu0 %v4495_v18  ;;  %69 = vst.msk [vmem:[#allocation2 + $0x1c0] sm:$0xff] %vm42_vm0, %v65_v6  ;;  %v1003_v11 = vld [vmem:[%s7814_s1 + $0x1f8] sm:$0xff]  ;;  %v4517_v16 = vpack.c.bf16 %v998_v9, %v996_v8  ;;  %v1000_v17 = vld [vmem:[%s7814_s1 + $0x1e0] sm:$0xff]  ;;  %v1005_v22 = vld [vmem:[%s7814_s1 + $0x208] sm:$0xff] }
  0x2c   :  { %v218_v13 = vld [vmem:[%s7813_s0 + $0x99] sm:$0xff]  ;;  %v4519_v18 = vpack.c.bf16 %v1003_v11, %v1001_v10  ;;  %v445_v25 = vld [vmem:[%s7813_s0 + $0xa2] sm:$0xff]  ;;  %v446_v32 = vld [vmem:[%s7813_s0 + $0xaa] sm:$0xff]  ;;  %84 = vst.msk [vmem:[#allocation2 + $0x2a0] sm:$0xff] %vm42_vm0, %v80_v30 }
  0x2d   :  { %4498 = vmatpush1.bf16.msra.mxu0 %v4497_v26  ;;  %v72_v20 = vld [vmem:[%s7813_s0 + $0x98] sm:$0xff]  ;;  %v4521_v26 = vpack.c.bf16 %v1002_v19, %v1000_v17  ;;  %v220_v31 = vld [vmem:[%s7813_s0 + $0xa9] sm:$0xff]  ;;  %v88_v42 = vld [vmem:[%s7813_s0 + $0xe0] sm:$0xff] }
  0x2e   :  { %175 = vrot.lane.b32.xlu0 %v164_v14, %s5007_s21  ;;  %401 = vrot.lane.b32.xlu1 %v390_v15, %s5008_s26  ;;  %v444_v14 = vld [vmem:[%s7813_s0 + $0x9a] sm:$0xff]  ;;  %v71_v15 = vld [vmem:[%s7813_s0 + $0x90] sm:$0xff]  ;;  %76 = vst.msk [vmem:[#allocation2 + $0x220] sm:$0xff] %vm42_vm0, %v72_v20  ;;  %92 = vst.msk [vmem:[#allocation2 + $0x320] sm:$0xff] %vm42_vm0, %v88_v42 }
  0x2f   :  { %4500 = vmatprep.subr.bf16.mxu0 %v4499_v28  ;;  %75 = vst.msk [vmem:[#allocation2 + $0x200] sm:$0xff] %vm42_vm0, %v71_v15  ;;  %v79_v28 = vld [vmem:[%s7813_s0 + $0xb4] sm:$0xff]  ;;  %v81_v33 = vld [vmem:[%s7813_s0 + $0xc4] sm:$0xff]  ;;  %v82_v36 = vld [vmem:[%s7813_s0 + $0xcc] sm:$0xff] }
  0x30   :  { %83 = vst.msk [vmem:[#allocation2 + $0x280] sm:$0xff] %vm42_vm0, %v79_v28  ;;  %v471_v35 = vld [vmem:[%s7813_s0 + $0xb6] sm:$0xff]  ;;  %85 = vst.msk [vmem:[#allocation2 + $0x2c0] sm:$0xff] %vm42_vm0, %v81_v33  ;;  %v472_v38 = vld [vmem:[%s7813_s0 + $0xbe] sm:$0xff] }
  0x31   :  { %4502 = vmatpush1.bf16.msra.mxu0 %v4501_v37  ;;  %v246_v37 = vld [vmem:[%s7813_s0 + $0xbd] sm:$0xff]  ;;  %86 = vst.msk [vmem:[#allocation2 + $0x2e0] sm:$0xff] %vm42_vm0, %v82_v36  ;;  %v247_v40 = vld [vmem:[%s7813_s0 + $0xc5] sm:$0xff]  ;;  %v248_v43 = vld [vmem:[%s7813_s0 + $0xcd] sm:$0xff] }
  0x32   :  { %197 = vrot.lane.b32.xlu0 %v189_v23, %s5007_s21  ;;  %423 = vrot.lane.b32.xlu1 %v415_v24, %s5008_s26  ;;  %v1007_v23 = vld [vmem:[%s7814_s1 + $0x218] sm:$0xff]  ;;  %v219_v24 = vld [vmem:[%s7813_s0 + $0xa1] sm:$0xff] }
  0x33   :  { %4504 = vmatprep.subr.bf16.mxu0 %v4503_v39  ;;  %v4523_v29 = vpack.c.bf16 %v1007_v23, %v1005_v22  ;;  %v87_v39 = vld [vmem:[%s7813_s0 + $0xd8] sm:$0xff]  ;;  %v473_v41 = vld [vmem:[%s7813_s0 + $0xc6] sm:$0xff]  ;;  %v474_v44 = vld [vmem:[%s7813_s0 + $0xce] sm:$0xff] }
  0x34   :  { %91 = vst.msk [vmem:[#allocation2 + $0x300] sm:$0xff] %vm42_vm0, %v87_v39  ;;  %v90_v48 = vld [vmem:[%s7813_s0 + $0xf0] sm:$0xff]  ;;  %v500_v50 = vld [vmem:[%s7813_s0 + $0xe2] sm:$0xff] }
  0x35   :  { %4506 = vmatpush1.bf16.msra.mxu0 %v4505_v47  ;;  %v89_v47 = vld [vmem:[%s7813_s0 + $0xe8] sm:$0xff]  ;;  %94 = vst.msk [vmem:[#allocation2 + $0x360] sm:$0xff] %vm42_vm0, %v90_v48  ;;  %v95_v53 = vld [vmem:[%s7813_s0 + $0xfc] sm:$0xff]  ;;  %v1006_v11 = vld [vmem:[%s7814_s1 + $0x210] sm:$0xff] }
  0x36   :  { %199 = vrot.lane.b32.xlu0 %v190_v27, %s5007_s21  ;;  %425 = vrot.lane.b32.xlu1 %v416_v34, %s5008_s26  ;;  %v74_v27 = vld [vmem:[%s7813_s0 + $0xa8] sm:$0xff]  ;;  %v245_v34 = vld [vmem:[%s7813_s0 + $0xb5] sm:$0xff]  ;;  %93 = vst.msk [vmem:[#allocation2 + $0x340] sm:$0xff] %vm42_vm0, %v89_v47  ;;  %99 = vst.msk [vmem:[#allocation2 + $0x380] sm:$0xff] %vm42_vm0, %v95_v53 }
  0x37   :  { %4508 = vmatprep.subr.bf16.mxu0 %v4507_v49  ;;  %78 = vst.msk [vmem:[#allocation2 + $0x260] sm:$0xff] %vm42_vm0, %v74_v27  ;;  %v274_v49 = vld [vmem:[%s7813_s0 + $0xe1] sm:$0xff]  ;;  %v275_v51 = vld [vmem:[%s7813_s0 + $0xe9] sm:$0xff]  ;;  %v304_v6 = vld [vmem:[%s7813_s0 + $0x115] sm:$0xff] }
  0x38   :  { %v501_v52 = vld [vmem:[%s7813_s0 + $0xea] sm:$0xff]  ;;  %v527_v59 = vld [vmem:[%s7813_s0 + $0xfe] sm:$0xff]  ;;  %v750_v28 = vld [vmem:[%s7813_s0 + $0x14] sm:$0xff] }
  0x39   :  { %4510 = vmatpush1.bf16.msra.mxu0 %v4509_v58  ;;  %v96_v54 = vld [vmem:[%s7813_s0 + $0x104] sm:$0xff]  ;;  %v97_v57 = vld [vmem:[%s7813_s0 + $0x10c] sm:$0xff]  ;;  %v1015_v27 = vld [vmem:[%s7814_s1 + $0x258] sm:$0xff]  ;;  %754 = vst.msk [vmem:[#allocation2 + $0x58] sm:$0xff] %vm42_vm0, %v750_v28 }
  0x3a   :  { %201 = vrot.lane.b32.xlu0 %v191_v45, %s5007_s21  ;;  %427 = vrot.lane.b32.xlu1 %v417_v46, %s5008_s26  ;;  %v273_v45 = vld [vmem:[%s7813_s0 + $0xd9] sm:$0xff]  ;;  %100 = vst.msk [vmem:[#allocation2 + $0x3a0] sm:$0xff] %vm42_vm0, %v96_v54  ;;  %101 = vst.msk [vmem:[#allocation2 + $0x3c0] sm:$0xff] %vm42_vm0, %v97_v57  ;;  %v302_v61 = vld [vmem:[%s7813_s0 + $0x105] sm:$0xff] }
  0x3b   :  { %4512 = vmatprep.subr.bf16.mxu0 %v4511_v60  ;;  %v499_v46 = vld [vmem:[%s7813_s0 + $0xda] sm:$0xff]  ;;  %v528_v62 = vld [vmem:[%s7813_s0 + $0x106] sm:$0xff]  ;;  %v1010_v19 = vld [vmem:[%s7814_s1 + $0x230] sm:$0xff] }
  0x3c   :  { %v301_v58 = vld [vmem:[%s7813_s0 + $0xfd] sm:$0xff]  ;;  %v98_v60 = vld [vmem:[%s7813_s0 + $0x114] sm:$0xff]  ;;  %v749_v12 = vld [vmem:[%s7813_s0 + $0xc] sm:$0xff] }
  0x3d   :  { %4514 = vmatpush1.bf16.msra.mxu0 %v4513_v5  ;;  %102 = vst.msk [vmem:[#allocation2 + $0x3e0] sm:$0xff] %vm42_vm0, %v98_v60  ;;  %v303_v1 = vld [vmem:[%s7813_s0 + $0x10d] sm:$0xff]  ;;  %v748_v5 = vld [vmem:[%s7813_s0 + $0x4] sm:$0xff]  ;;  %753 = vst.msk [vmem:[#allocation2 + $0x38] sm:$0xff] %vm42_vm0, %v749_v12 }
  0x3e   :  { %203 = vrot.lane.b32.xlu0 %v192_v55, %s5007_s21  ;;  %429 = vrot.lane.b32.xlu1 %v418_v56, %s5008_s26  ;;  %v276_v55 = vld [vmem:[%s7813_s0 + $0xf1] sm:$0xff]  ;;  %752 = vst.msk [vmem:[#allocation2 + $0x18] sm:$0xff] %vm42_vm0, %v748_v5  ;;  %v1004_v10 = vld [vmem:[%s7814_s1 + $0x200] sm:$0xff] }
  0x3f   :  { %4516 = vmatprep.subr.bf16.mxu0 %v4515_v7  ;;  %v502_v56 = vld [vmem:[%s7813_s0 + $0xf2] sm:$0xff]  ;;  %v555_v15 = vld [vmem:[%s7813_s0 + $0x3] sm:$0xff] }
  0x40   :  { %v530_v7 = vld [vmem:[%s7813_s0 + $0x116] sm:$0xff]  ;;  %v556_v17 = vld [vmem:[%s7813_s0 + $0xb] sm:$0xff]  ;;  %v583_v57 = vld [vmem:[%s7813_s0 + $0x3f] sm:$0xff] }
  0x41   :  { %4518 = vmatpush1.bf16.msra.mxu0 %v4517_v16  ;;  %v4525_v16 = vpack.c.bf16 %v1006_v11, %v1004_v10  ;;  %v557_v30 = vld [vmem:[%s7813_s0 + $0x13] sm:$0xff]  ;;  %v1029_v12 = vld [vmem:[%s7814_s1 + $0x2c8] sm:$0xff] }
  0x42   :  { %225 = vrot.lane.b32.xlu0 %v217_v2, %s5007_s21  ;;  %451 = vrot.lane.b32.xlu1 %v443_v3, %s5008_s26  ;;  %v529_v2 = vld [vmem:[%s7813_s0 + $0x10e] sm:$0xff]  ;;  %v1023_v54 = vld [vmem:[%s7814_s1 + $0x298] sm:$0xff] }
  0x43   :  { %4520 = vmatprep.subr.bf16.mxu0 %v4519_v18  ;;  %v1008_v18 = vld [vmem:[%s7814_s1 + $0x220] sm:$0xff]  ;;  %v1014_v36 = vld [vmem:[%s7814_s1 + $0x250] sm:$0xff] }
  0x44   :  { %v1026_v11 = vld [vmem:[%s7814_s1 + $0x2b0] sm:$0xff] }
  0x45   :  { %4522 = vmatpush1.bf16.msra.mxu0 %v4521_v26 }
  0x46   :  { %227 = vrot.lane.b32.xlu0 %v218_v13, %s5007_s21  ;;  %453 = vrot.lane.b32.xlu1 %v444_v14, %s5008_s26  ;;  %v1009_v13 = vld [vmem:[%s7814_s1 + $0x228] sm:$0xff]  ;;  %v1011_v14 = vld [vmem:[%s7814_s1 + $0x238] sm:$0xff] }
  0x47   :  { %4524 = vmatprep.subr.bf16.mxu0 %v4523_v29  ;;  %v4529_v29 = vpack.c.bf16 %v1010_v19, %v1008_v18  ;;  %v607_v19 = vld [vmem:[%s7813_s0 + $0x63] sm:$0xff] }
  0x4a   :  { %229 = vrot.lane.b32.xlu0 %v219_v24, %s5007_s21  ;;  %455 = vrot.lane.b32.xlu1 %v445_v25, %s5008_s26  ;;  %v4527_v24 = vpack.c.bf16 %v1011_v14, %v1009_v13  ;;  %v1013_v25 = vld [vmem:[%s7814_s1 + $0x248] sm:$0xff]  ;;  %v758_v13 = vld [vmem:[%s7813_s0 + $0x38] sm:$0xff] }
  0x4b   :  { %762 = vst.msk [vmem:[#allocation2 + $0xd8] sm:$0xff] %vm42_vm0, %v758_v13  ;;  %v1049_v13 = vld [vmem:[%s7814_s1 + $0x368] sm:$0xff] }
  0x4e   :  { %231 = vrot.lane.b32.xlu0 %v220_v31, %s5007_s21  ;;  %457 = vrot.lane.b32.xlu1 %v446_v32, %s5008_s26  ;;  %v558_v31 = vld [vmem:[%s7813_s0 + $0x1b] sm:$0xff] }
  0x4f   :  { %v1012_v32 = vld [vmem:[%s7814_s1 + $0x240] sm:$0xff] }
  0x50   :  { %v4533_v42 = vpack.c.bf16 %v1014_v36, %v1012_v32  ;;  %v629_v32 = vld [vmem:[%s7813_s0 + $0x77] sm:$0xff] }
  0x52   :  { %253 = vrot.lane.b32.xlu0 %v245_v34, %s5007_s21  ;;  %479 = vrot.lane.b32.xlu1 %v471_v35, %s5008_s26  ;;  %v4531_v35 = vpack.c.bf16 %v1015_v27, %v1013_v25  ;;  %v1033_v25 = vld [vmem:[%s7814_s1 + $0x2e8] sm:$0xff] }
  0x56   :  { %255 = vrot.lane.b32.xlu0 %v246_v37, %s5007_s21  ;;  %481 = vrot.lane.b32.xlu1 %v472_v38, %s5008_s26  ;;  %v1017_v37 = vld [vmem:[%s7814_s1 + $0x268] sm:$0xff]  ;;  %v751_v38 = vld [vmem:[%s7813_s0 + $0x1c] sm:$0xff] }
  0x57   :  { %755 = vst.msk [vmem:[#allocation2 + $0x78] sm:$0xff] %vm42_vm0, %v751_v38  ;;  %v1037_v38 = vld [vmem:[%s7814_s1 + $0x308] sm:$0xff] }
  0x5a   :  { %257 = vrot.lane.b32.xlu0 %v247_v40, %s5007_s21  ;;  %483 = vrot.lane.b32.xlu1 %v473_v41, %s5008_s26  ;;  %v1019_v41 = vld [vmem:[%s7814_s1 + $0x278] sm:$0xff] }
  0x5b   :  { %v4535_v48 = vpack.c.bf16 %v1019_v41, %v1017_v37  ;;  %v1034_v37 = vld [vmem:[%s7814_s1 + $0x2f0] sm:$0xff] }
  0x5e   :  { %259 = vrot.lane.b32.xlu0 %v248_v43, %s5007_s21  ;;  %485 = vrot.lane.b32.xlu1 %v474_v44, %s5008_s26  ;;  %v580_v43 = vld [vmem:[%s7813_s0 + $0x27] sm:$0xff]  ;;  %v581_v44 = vld [vmem:[%s7813_s0 + $0x2f] sm:$0xff] }
  0x62   :  { %281 = vrot.lane.b32.xlu0 %v273_v45, %s5007_s21  ;;  %507 = vrot.lane.b32.xlu1 %v499_v46, %s5008_s26  ;;  %v1016_v45 = vld [vmem:[%s7814_s1 + $0x260] sm:$0xff] }
  0x66   :  { %283 = vrot.lane.b32.xlu0 %v274_v49, %s5007_s21  ;;  %509 = vrot.lane.b32.xlu1 %v500_v50, %s5008_s26  ;;  %v1018_v49 = vld [vmem:[%s7814_s1 + $0x270] sm:$0xff]  ;;  %v1021_v50 = vld [vmem:[%s7814_s1 + $0x288] sm:$0xff] }
  0x6a   :  { %285 = vrot.lane.b32.xlu0 %v275_v51, %s5007_s21  ;;  %511 = vrot.lane.b32.xlu1 %v501_v52, %s5008_s26  ;;  %v756_v51 = vld [vmem:[%s7813_s0 + $0x28] sm:$0xff] }
  0x6b   :  { %760 = vst.msk [vmem:[#allocation2 + $0x98] sm:$0xff] %vm42_vm0, %v756_v51  ;;  %v1041_v51 = vld [vmem:[%s7814_s1 + $0x328] sm:$0xff] }
  0x6e   :  { %287 = vrot.lane.b32.xlu0 %v276_v55, %s5007_s21  ;;  %513 = vrot.lane.b32.xlu1 %v502_v56, %s5008_s26  ;;  %v4537_v55 = vpack.c.bf16 %v1018_v49, %v1016_v45  ;;  %v582_v56 = vld [vmem:[%s7813_s0 + $0x37] sm:$0xff]  ;;  %v631_v45 = vld [vmem:[%s7813_s0 + $0x87] sm:$0xff] }
  0x72   :  { %309 = vrot.lane.b32.xlu0 %v301_v58, %s5007_s21  ;;  %535 = vrot.lane.b32.xlu1 %v527_v59, %s5008_s26  ;;  %v1020_v58 = vld [vmem:[%s7814_s1 + $0x280] sm:$0xff] }
  0x74   :  { %v112_v63 = vpop.permute.xlu0 %111  ;;  %v114_v0 = vpop.permute.xlu1 %113 }
  0x75   :  { %124 = vst.msk [vmem:[#allocation2] sm:$0xff] %vm123_vm1, %v112_v63  ;;  %127 = vst.msk [vmem:[#allocation2 + $0x20] sm:$0xff] %vm123_vm1, %v114_v0 }
  0x76   :  { %126 = vst.msk [vmem:[#allocation2 + $0x8] sm:$0xff] %vm125_vm2, %v112_v63  ;;  %128 = vst.msk [vmem:[#allocation2 + $0x28] sm:$0xff] %vm125_vm2, %v114_v0  ;;  %311 = vrot.lane.b32.xlu0 %v302_v61, %s5007_s21  ;;  %537 = vrot.lane.b32.xlu1 %v528_v62, %s5008_s26  ;;  %v4539_v61 = vpack.c.bf16 %v1023_v54, %v1021_v50  ;;  %v1022_v62 = vld [vmem:[%s7814_s1 + $0x290] sm:$0xff]  ;;  %v1025_v63 = vld [vmem:[%s7814_s1 + $0x2a8] sm:$0xff] }
  0x77   :  { %v757_v0 = vld [vmem:[%s7813_s0 + $0x30] sm:$0xff]  ;;  %v4541_v5 = vpack.c.bf16 %v1022_v62, %v1020_v58 }
  0x78   :  { %v338_v3 = vpop.permute.xlu0 %337  ;;  %v340_v4 = vpop.permute.xlu1 %339  ;;  %761 = vst.msk [vmem:[#allocation2 + $0xb8] sm:$0xff] %vm42_vm0, %v757_v0  ;;  %v1038_v50 = vld [vmem:[%s7814_s1 + $0x310] sm:$0xff]  ;;  %v1045_v0 = vld [vmem:[%s7814_s1 + $0x348] sm:$0xff] }
  0x79   :  { %350 = vst.msk [vmem:[#allocation2 + $0x8] sm:$0xff] %vm349_vm3, %v338_v3  ;;  %353 = vst.msk [vmem:[#allocation2 + $0x28] sm:$0xff] %vm349_vm3, %v340_v4 }
  0x7a   :  { %352 = vst.msk [vmem:[#allocation2 + $0x10] sm:$0xff] %vm351_vm4, %v338_v3  ;;  %354 = vst.msk [vmem:[#allocation2 + $0x30] sm:$0xff] %vm351_vm4, %v340_v4  ;;  %313 = vrot.lane.b32.xlu0 %v303_v1, %s5007_s21  ;;  %539 = vrot.lane.b32.xlu1 %v529_v2, %s5008_s26  ;;  %v1027_v3 = vld [vmem:[%s7814_s1 + $0x2b8] sm:$0xff]  ;;  %v604_v4 = vld [vmem:[%s7813_s0 + $0x4b] sm:$0xff] }
  0x7b   :  { %v4543_v10 = vpack.c.bf16 %v1027_v3, %v1025_v63  ;;  %v1042_v63 = vld [vmem:[%s7814_s1 + $0x330] sm:$0xff] }
  0x7c   :  { %v116_v8 = vpop.permute.xlu0 %115  ;;  %v342_v9 = vpop.permute.xlu1 %341  ;;  %v812_v26 = vld [vmem:[#allocation2] sm:$0xff] }
  0x7d   :  { %129 = vst.msk [vmem:[#allocation2 + $0x40] sm:$0xff] %vm123_vm1, %v116_v8  ;;  %v816_v39 = vld [vmem:[#allocation2 + $0x20] sm:$0xff] }
  0x7e   :  { %130 = vst.msk [vmem:[#allocation2 + $0x48] sm:$0xff] %vm125_vm2, %v116_v8  ;;  %315 = vrot.lane.b32.xlu0 %v304_v6, %s5007_s21  ;;  %541 = vrot.lane.b32.xlu1 %v530_v7, %s5008_s26  ;;  %v605_v6 = vld [vmem:[%s7813_s0 + $0x53] sm:$0xff]  ;;  %v1024_v7 = vld [vmem:[%s7814_s1 + $0x2a0] sm:$0xff] }
  0x7f   :  { %356 = vst.msk [vmem:[#allocation2 + $0x50] sm:$0xff] %vm351_vm4, %v342_v9  ;;  %v4545_v18 = vpack.c.bf16 %v1026_v11, %v1024_v7 }
  0x80   :  { %355 = vst.msk [vmem:[#allocation2 + $0x48] sm:$0xff] %vm349_vm3, %v342_v9  ;;  %v813_v20 = vld [vmem:[#allocation2 + $0x8] sm:$0xff]  ;;  %v118_v21 = vpop.permute.xlu0 %117  ;;  %v344_v22 = vpop.permute.xlu1 %343 }
  0x81   :  { %v817_v23 = vld [vmem:[#allocation2 + $0x28] sm:$0xff]  ;;  %1232 = vmatprep.mubr.f32.mxu0 %v813_v20  ;;  %131 = vst.msk [vmem:[#allocation2 + $0x60] sm:$0xff] %vm123_vm1, %v118_v21  ;;  %v1028_v20 = vld [vmem:[%s7814_s1 + $0x2c0] sm:$0xff] }
  0x82   :  { %132 = vst.msk [vmem:[#allocation2 + $0x68] sm:$0xff] %vm125_vm2, %v118_v21  ;;  %1233 = vmatmul.mubr.f32.vlgmr.msra.gmra.mrb[0].mxu0 %v812_v26  ;;  %563 = vrot.lane.b32.xlu0 %v555_v15, %s5009_s27  ;;  %v759_v26 = vld [vmem:[%s7813_s0 + $0x40] sm:$0xff] }
  0x83   :  { %358 = vst.msk [vmem:[#allocation2 + $0x70] sm:$0xff] %vm351_vm4, %v344_v22  ;;  %4526 = vmatpush1.bf16.msra.mxu0 %v4525_v16  ;;  %1238 = vmatprep.mubr.f32.mxu0 %v817_v23  ;;  %v1031_v16 = vld [vmem:[%s7814_s1 + $0x2d8] sm:$0xff] }
  0x84   :  { %357 = vst.msk [vmem:[#allocation2 + $0x68] sm:$0xff] %vm349_vm3, %v344_v22  ;;  %v142_v33 = vpop.permute.xlu0 %141  ;;  %v368_v34 = vpop.permute.xlu1 %367  ;;  %565 = vrot.lane.b32.xlu1 %v556_v17, %s5009_s27  ;;  %4528 = vmatprep.subr.bf16.mxu0 %v4527_v24  ;;  %v820_v52 = vld [vmem:[#allocation2 + $0x40] sm:$0xff]  ;;  %v4547_v23 = vpack.c.bf16 %v1031_v16, %v1029_v12  ;;  %v1030_v24 = vld [vmem:[%s7814_s1 + $0x2d0] sm:$0xff] }
  0x85   :  { %153 = vst.msk [vmem:[#allocation2 + $0x80] sm:$0xff] %vm123_vm1, %v142_v33  ;;  %v606_v17 = vld [vmem:[%s7813_s0 + $0x5b] sm:$0xff]  ;;  %v1046_v12 = vld [vmem:[%s7814_s1 + $0x350] sm:$0xff] }
  0x86   :  { %154 = vst.msk [vmem:[#allocation2 + $0x88] sm:$0xff] %vm125_vm2, %v142_v33  ;;  %1239 = vmatmul.mubr.f32.gmra.mrb[2].mxu0 %v816_v39  ;;  %567 = vrot.lane.b32.xlu0 %v557_v30, %s5009_s27  ;;  %v628_v30 = vld [vmem:[%s7813_s0 + $0x6f] sm:$0xff]  ;;  %v1032_v33 = vld [vmem:[%s7814_s1 + $0x2e0] sm:$0xff] }
  0x87   :  { %380 = vst.msk [vmem:[#allocation2 + $0x90] sm:$0xff] %vm351_vm4, %v368_v34  ;;  %v821_v40 = vld [vmem:[#allocation2 + $0x48] sm:$0xff]  ;;  %4530 = vmatpush1.bf16.msra.mxu0 %v4529_v29  ;;  %v1035_v29 = vld [vmem:[%s7814_s1 + $0x2f8] sm:$0xff] }
  0x88   :  { %379 = vst.msk [vmem:[#allocation2 + $0x88] sm:$0xff] %vm349_vm3, %v368_v34  ;;  %1244 = vmatprep.mubr.f32.mxu0 %v821_v40  ;;  %v144_v46 = vpop.permute.xlu0 %143  ;;  %v370_v47 = vpop.permute.xlu1 %369  ;;  %569 = vrot.lane.b32.xlu1 %v558_v31, %s5009_s27  ;;  %v824_v1 = vld [vmem:[#allocation2 + $0x60] sm:$0xff]  ;;  %v4549_v31 = vpack.c.bf16 %v1030_v24, %v1028_v20  ;;  %v4551_v36 = vpack.c.bf16 %v1035_v29, %v1033_v25  ;;  %v764_v39 = vld [vmem:[%s7813_s0 + $0x4c] sm:$0xff] }
  0x89   :  { %4532 = vmatprep.subr.bf16.mxu0 %v4531_v35  ;;  %155 = vst.msk [vmem:[#allocation2 + $0xa0] sm:$0xff] %vm123_vm1, %v144_v46  ;;  %v1050_v25 = vld [vmem:[%s7814_s1 + $0x370] sm:$0xff] }
  0x8a   :  { %156 = vst.msk [vmem:[#allocation2 + $0xa8] sm:$0xff] %vm125_vm2, %v144_v46  ;;  %1245 = vmatmul.mubr.f32.gmra.mrb[4].mxu0 %v820_v52  ;;  %588 = vrot.lane.b32.xlu0 %v580_v43, %s5009_s27  ;;  %v630_v43 = vld [vmem:[%s7813_s0 + $0x7f] sm:$0xff]  ;;  %v765_v52 = vld [vmem:[%s7813_s0 + $0x54] sm:$0xff] }
  0x8b   :  { %382 = vst.msk [vmem:[#allocation2 + $0xb0] sm:$0xff] %vm351_vm4, %v370_v47  ;;  %v825_v53 = vld [vmem:[#allocation2 + $0x68] sm:$0xff]  ;;  %4534 = vmatpush1.bf16.msra.mxu0 %v4533_v42  ;;  %v1039_v42 = vld [vmem:[%s7814_s1 + $0x318] sm:$0xff]  ;;  %v1036_v46 = vld [vmem:[%s7814_s1 + $0x300] sm:$0xff] }
  0x8c   :  { %381 = vst.msk [vmem:[#allocation2 + $0xa8] sm:$0xff] %vm349_vm3, %v370_v47  ;;  %1250 = vmatprep.mubr.f32.mxu0 %v825_v53  ;;  %v146_v59 = vpop.permute.xlu0 %145  ;;  %v372_v60 = vpop.permute.xlu1 %371  ;;  %590 = vrot.lane.b32.xlu1 %v581_v44, %s5009_s27  ;;  %v828_v14 = vld [vmem:[#allocation2 + $0x80] sm:$0xff]  ;;  %v4553_v44 = vpack.c.bf16 %v1034_v37, %v1032_v33  ;;  %v4555_v49 = vpack.c.bf16 %v1039_v42, %v1037_v38  ;;  %v1054_v38 = vld [vmem:[%s7814_s1 + $0x390] sm:$0xff] }
  0x8d   :  { %4536 = vmatprep.subr.bf16.mxu0 %v4535_v48  ;;  %157 = vst.msk [vmem:[#allocation2 + $0xc0] sm:$0xff] %vm123_vm1, %v146_v59  ;;  %v4557_v58 = vpack.c.bf16 %v1038_v50, %v1036_v46  ;;  %v1058_v50 = vld [vmem:[%s7814_s1 + $0x3b0] sm:$0xff] }
  0x8e   :  { %158 = vst.msk [vmem:[#allocation2 + $0xc8] sm:$0xff] %vm125_vm2, %v146_v59  ;;  %1251 = vmatmul.mubr.f32.gmra.mrb[6].mxu0 %v824_v1  ;;  %592 = vrot.lane.b32.xlu0 %v582_v56, %s5009_s27  ;;  %v652_v56 = vld [vmem:[%s7813_s0 + $0x93] sm:$0xff]  ;;  %v1040_v59 = vld [vmem:[%s7814_s1 + $0x320] sm:$0xff] }
  0x8f   :  { %384 = vst.msk [vmem:[#allocation2 + $0xd0] sm:$0xff] %vm351_vm4, %v372_v60  ;;  %v829_v2 = vld [vmem:[#allocation2 + $0x88] sm:$0xff]  ;;  %4538 = vmatpush1.bf16.msra.mxu0 %v4537_v55  ;;  %v1043_v55 = vld [vmem:[%s7814_s1 + $0x338] sm:$0xff]  ;;  %v4561_v7 = vpack.c.bf16 %v1042_v63, %v1040_v59 }
  0x90   :  { %383 = vst.msk [vmem:[#allocation2 + $0xc8] sm:$0xff] %vm349_vm3, %v372_v60  ;;  %1256 = vmatprep.mubr.f32.mxu0 %v829_v2  ;;  %v148_v8 = vpop.permute.xlu0 %147  ;;  %v374_v9 = vpop.permute.xlu1 %373  ;;  %594 = vrot.lane.b32.xlu1 %v583_v57, %s5009_s27  ;;  %v832_v27 = vld [vmem:[#allocation2 + $0xa0] sm:$0xff]  ;;  %v4559_v62 = vpack.c.bf16 %v1043_v55, %v1041_v51  ;;  %v702_v55 = vld [vmem:[%s7813_s0 + $0xeb] sm:$0xff] }
  0x91   :  { %4540 = vmatprep.subr.bf16.mxu0 %v4539_v61  ;;  %159 = vst.msk [vmem:[#allocation2 + $0xe0] sm:$0xff] %vm123_vm1, %v148_v8  ;;  %v653_v57 = vld [vmem:[%s7813_s0 + $0x9b] sm:$0xff]  ;;  %v775_v59 = vld [vmem:[%s7813_s0 + $0x88] sm:$0xff] }
  0x92   :  { %160 = vst.msk [vmem:[#allocation2 + $0xe8] sm:$0xff] %vm125_vm2, %v148_v8  ;;  %1257 = vmatmul.mubr.f32.gmra.mrb[8].mxu0 %v828_v14  ;;  %612 = vrot.lane.b32.xlu0 %v604_v4, %s5009_s27  ;;  %v766_v1 = vld [vmem:[%s7813_s0 + $0x5c] sm:$0xff]  ;;  %v767_v14 = vld [vmem:[%s7813_s0 + $0x64] sm:$0xff] }
  0x93   :  { %386 = vst.msk [vmem:[#allocation2 + $0xf0] sm:$0xff] %vm351_vm4, %v374_v9  ;;  %v833_v15 = vld [vmem:[#allocation2 + $0xa8] sm:$0xff]  ;;  %4542 = vmatpush1.bf16.msra.mxu0 %v4541_v5  ;;  %v1047_v4 = vld [vmem:[%s7814_s1 + $0x358] sm:$0xff]  ;;  %v1044_v8 = vld [vmem:[%s7814_s1 + $0x340] sm:$0xff] }
  0x94   :  { %385 = vst.msk [vmem:[#allocation2 + $0xe8] sm:$0xff] %vm349_vm3, %v374_v9  ;;  %1262 = vmatprep.mubr.f32.mxu0 %v833_v15  ;;  %v170_v21 = vpop.permute.xlu0 %169  ;;  %v396_v22 = vpop.permute.xlu1 %395  ;;  %614 = vrot.lane.b32.xlu1 %v605_v6, %s5009_s27  ;;  %v836_v40 = vld [vmem:[#allocation2 + $0xc0] sm:$0xff]  ;;  %v655_v6 = vld [vmem:[%s7813_s0 + $0xab] sm:$0xff]  ;;  %v4563_v11 = vpack.c.bf16 %v1047_v4, %v1045_v0  ;;  %v4565_v20 = vpack.c.bf16 %v1046_v12, %v1044_v8  ;;  %v727_v12 = vld [vmem:[%s7813_s0 + $0x117] sm:$0xff] }
  0x95   :  { %4544 = vmatprep.subr.bf16.mxu0 %v4543_v10  ;;  %181 = vst.msk [vmem:[#allocation2 + $0x100] sm:$0xff] %vm123_vm1, %v170_v21  ;;  %v654_v5 = vld [vmem:[%s7813_s0 + $0xa3] sm:$0xff] }
  0x96   :  { %182 = vst.msk [vmem:[#allocation2 + $0x108] sm:$0xff] %vm125_vm2, %v170_v21  ;;  %1263 = vmatmul.mubr.f32.gmra.mrb[10].mxu0 %v832_v27  ;;  %616 = vrot.lane.b32.xlu0 %v606_v17, %s5009_s27  ;;  %v1051_v17 = vld [vmem:[%s7814_s1 + $0x378] sm:$0xff]  ;;  %v1048_v21 = vld [vmem:[%s7814_s1 + $0x360] sm:$0xff]  ;;  %v772_v27 = vld [vmem:[%s7813_s0 + $0x70] sm:$0xff] }
  0x97   :  { %408 = vst.msk [vmem:[#allocation2 + $0x110] sm:$0xff] %vm351_vm4, %v396_v22  ;;  %v837_v28 = vld [vmem:[#allocation2 + $0xc8] sm:$0xff]  ;;  %4546 = vmatpush1.bf16.msra.mxu0 %v4545_v18  ;;  %v676_v18 = vld [vmem:[%s7813_s0 + $0xb7] sm:$0xff]  ;;  %v4567_v24 = vpack.c.bf16 %v1051_v17, %v1049_v13  ;;  %v4569_v33 = vpack.c.bf16 %v1050_v25, %v1048_v21  ;;  %v774_v51 = vld [vmem:[%s7813_s0 + $0x80] sm:$0xff] }
  0x98   :  { %763 = vst.msk [vmem:[#allocation2 + $0xf8] sm:$0xff] %vm42_vm0, %v759_v26  ;;  %1268 = vmatprep.mubr.f32.mxu0 %v837_v28  ;;  %v172_v34 = vpop.permute.xlu0 %171  ;;  %v398_v35 = vpop.permute.xlu1 %397  ;;  %618 = vrot.lane.b32.xlu1 %v607_v19, %s5009_s27  ;;  %768 = vst.msk [vmem:[#allocation2 + $0x118] sm:$0xff] %vm42_vm0, %v764_v39  ;;  %v840_v53 = vld [vmem:[#allocation2 + $0xe0] sm:$0xff]  ;;  %v1053_v26 = vld [vmem:[%s7814_s1 + $0x388] sm:$0xff] }
  0x99   :  { %407 = vst.msk [vmem:[#allocation2 + $0x108] sm:$0xff] %vm349_vm3, %v396_v22  ;;  %4548 = vmatprep.subr.bf16.mxu0 %v4547_v23  ;;  %v677_v19 = vld [vmem:[%s7813_s0 + $0xbf] sm:$0xff]  ;;  %v1057_v39 = vld [vmem:[%s7814_s1 + $0x3a8] sm:$0xff] }
  0x9a   :  { %183 = vst.msk [vmem:[#allocation2 + $0x120] sm:$0xff] %vm123_vm1, %v172_v34  ;;  %1269 = vmatmul.mubr.f32.gmra.mrb[12].mxu0 %v836_v40  ;;  %636 = vrot.lane.b32.xlu0 %v628_v30, %s5009_s27  ;;  %v1055_v30 = vld [vmem:[%s7814_s1 + $0x398] sm:$0xff] }
  0x9b   :  { %184 = vst.msk [vmem:[#allocation2 + $0x128] sm:$0xff] %vm125_vm2, %v172_v34  ;;  %v841_v41 = vld [vmem:[#allocation2 + $0xe8] sm:$0xff]  ;;  %4550 = vmatpush1.bf16.msra.mxu0 %v4549_v31  ;;  %v1052_v34 = vld [vmem:[%s7814_s1 + $0x380] sm:$0xff]  ;;  %v4571_v37 = vpack.c.bf16 %v1055_v30, %v1053_v26  ;;  %v773_v40 = vld [vmem:[%s7813_s0 + $0x78] sm:$0xff] }
  0x9c   :  { %410 = vst.msk [vmem:[#allocation2 + $0x130] sm:$0xff] %vm351_vm4, %v398_v35  ;;  %1274 = vmatprep.mubr.f32.mxu0 %v841_v41  ;;  %v174_v47 = vpop.permute.xlu0 %173  ;;  %v400_v48 = vpop.permute.xlu1 %399  ;;  %638 = vrot.lane.b32.xlu1 %v629_v32, %s5009_s27  ;;  %v844_v2 = vld [vmem:[#allocation2 + $0x100] sm:$0xff]  ;;  %v679_v32 = vld [vmem:[%s7813_s0 + $0xcf] sm:$0xff]  ;;  %v788_v25 = vld [vmem:[%s7813_s0 + $0xb8] sm:$0xff] }
  0x9d   :  { %409 = vst.msk [vmem:[#allocation2 + $0x128] sm:$0xff] %vm349_vm3, %v398_v35  ;;  %4552 = vmatprep.subr.bf16.mxu0 %v4551_v36  ;;  %v678_v31 = vld [vmem:[%s7813_s0 + $0xc7] sm:$0xff]  ;;  %v724_v63 = vld [vmem:[%s7813_s0 + $0xff] sm:$0xff] }
  0x9e   :  { %185 = vst.msk [vmem:[#allocation2 + $0x140] sm:$0xff] %vm123_vm1, %v174_v47  ;;  %1275 = vmatmul.mubr.f32.gmra.mrb[14].mxu0 %v840_v53  ;;  %640 = vrot.lane.b32.xlu0 %v630_v43, %s5009_s27  ;;  %v1059_v43 = vld [vmem:[%s7814_s1 + $0x3b8] sm:$0xff]  ;;  %v789_v30 = vld [vmem:[%s7813_s0 + $0xc0] sm:$0xff] }
  0x9f   :  { %186 = vst.msk [vmem:[#allocation2 + $0x148] sm:$0xff] %vm125_vm2, %v174_v47  ;;  %4554 = vmatpush1.bf16.msra.mxu0 %v4553_v44  ;;  %v700_v44 = vld [vmem:[%s7813_s0 + $0xdb] sm:$0xff] }
  0xa0   :  { %412 = vst.msk [vmem:[#allocation2 + $0x150] sm:$0xff] %vm351_vm4, %v400_v48  ;;  %v845_v54 = vld [vmem:[#allocation2 + $0x108] sm:$0xff]  ;;  %v176_v60 = vpop.permute.xlu0 %175  ;;  %v402_v61 = vpop.permute.xlu1 %401  ;;  %642 = vrot.lane.b32.xlu1 %v631_v45, %s5009_s27  ;;  %4556 = vmatprep.subr.bf16.mxu0 %v4555_v49  ;;  %v4573_v45 = vpack.c.bf16 %v1054_v38, %v1052_v34  ;;  %v1056_v49 = vld [vmem:[%s7814_s1 + $0x3a0] sm:$0xff] }
  0xa1   :  { %769 = vst.msk [vmem:[#allocation2 + $0x138] sm:$0xff] %vm42_vm0, %v765_v52  ;;  %1280 = vmatprep.mubr.f32.mxu0 %v845_v54  ;;  %770 = vst.msk [vmem:[#allocation2 + $0x158] sm:$0xff] %vm42_vm0, %v766_v1  ;;  %v848_v15 = vld [vmem:[#allocation2 + $0x120] sm:$0xff] }
  0xa2   :  { %411 = vst.msk [vmem:[#allocation2 + $0x148] sm:$0xff] %vm349_vm3, %v400_v48  ;;  %1281 = vmatmul.mubr.f32.gmra.mrb[16].mxu0 %v844_v2  ;;  %660 = vrot.lane.b32.xlu0 %v652_v56, %s5009_s27  ;;  %v4575_v48 = vpack.c.bf16 %v1059_v43, %v1057_v39  ;;  %v701_v54 = vld [vmem:[%s7813_s0 + $0xe3] sm:$0xff]  ;;  %v4577_v56 = vpack.c.bf16 %v1058_v50, %v1056_v49  ;;  %v780_v2 = vld [vmem:[%s7813_s0 + $0x94] sm:$0xff] }
  0xa3   :  { %187 = vst.msk [vmem:[#allocation2 + $0x160] sm:$0xff] %vm123_vm1, %v176_v60  ;;  %4558 = vmatpush1.bf16.msra.mxu0 %v4557_v58  ;;  %v797_v50 = vld [vmem:[%s7813_s0 + $0xe4] sm:$0xff] }
  0xa4   :  { %188 = vst.msk [vmem:[#allocation2 + $0x168] sm:$0xff] %vm125_vm2, %v176_v60  ;;  %v849_v3 = vld [vmem:[#allocation2 + $0x128] sm:$0xff]  ;;  %v198_v9 = vpop.permute.xlu0 %197  ;;  %v424_v10 = vpop.permute.xlu1 %423  ;;  %662 = vrot.lane.b32.xlu1 %v653_v57, %s5009_s27  ;;  %4560 = vmatprep.subr.bf16.mxu0 %v4559_v62  ;;  %v703_v62 = vld [vmem:[%s7813_s0 + $0xf3] sm:$0xff] }
  0xa5   :  { %414 = vst.msk [vmem:[#allocation2 + $0x170] sm:$0xff] %vm351_vm4, %v402_v61  ;;  %1286 = vmatprep.mubr.f32.mxu0 %v849_v3  ;;  %436 = vst.msk [vmem:[#allocation2 + $0x190] sm:$0xff] %vm351_vm4, %v424_v10  ;;  %v852_v28 = vld [vmem:[#allocation2 + $0x140] sm:$0xff] }
  0xa6   :  { %413 = vst.msk [vmem:[#allocation2 + $0x168] sm:$0xff] %vm349_vm3, %v402_v61  ;;  %1287 = vmatmul.mubr.f32.gmra.mrb[18].mxu0 %v848_v15  ;;  %664 = vrot.lane.b32.xlu0 %v654_v5, %s5009_s27  ;;  %v725_v5 = vld [vmem:[%s7813_s0 + $0x107] sm:$0xff] }
  0xa7   :  { %209 = vst.msk [vmem:[#allocation2 + $0x180] sm:$0xff] %vm123_vm1, %v198_v9  ;;  %4562 = vmatpush1.bf16.msra.mxu0 %v4561_v7  ;;  %v782_v15 = vld [vmem:[%s7813_s0 + $0xa4] sm:$0xff] }
  0xa8   :  { %210 = vst.msk [vmem:[#allocation2 + $0x188] sm:$0xff] %vm125_vm2, %v198_v9  ;;  %v200_v22 = vpop.permute.xlu0 %199  ;;  %v426_v23 = vpop.permute.xlu1 %425  ;;  %666 = vrot.lane.b32.xlu1 %v655_v6, %s5009_s27  ;;  %4564 = vmatprep.subr.bf16.mxu0 %v4563_v11  ;;  %v726_v6 = vld [vmem:[%s7813_s0 + $0x10f] sm:$0xff]  ;;  %v781_v9 = vld [vmem:[%s7813_s0 + $0x9c] sm:$0xff] }
  0xa9   :  { %v853_v16 = vld [vmem:[#allocation2 + $0x148] sm:$0xff]  ;;  %771 = vst.msk [vmem:[#allocation2 + $0x178] sm:$0xff] %vm42_vm0, %v767_v14  ;;  %776 = vst.msk [vmem:[#allocation2 + $0x198] sm:$0xff] %vm42_vm0, %v772_v27 }
  0xaa   :  { %435 = vst.msk [vmem:[#allocation2 + $0x188] sm:$0xff] %vm349_vm3, %v424_v10  ;;  %1292 = vmatprep.mubr.f32.mxu0 %v853_v16  ;;  %684 = vrot.lane.b32.xlu0 %v676_v18, %s5009_s27  ;;  %v856_v41 = vld [vmem:[#allocation2 + $0x160] sm:$0xff] }
  0xab   :  { %211 = vst.msk [vmem:[#allocation2 + $0x1a0] sm:$0xff] %vm123_vm1, %v200_v22  ;;  %1293 = vmatmul.mubr.f32.gmra.mrb[20].mxu0 %v852_v28 }
  0xac   :  { %212 = vst.msk [vmem:[#allocation2 + $0x1a8] sm:$0xff] %vm125_vm2, %v200_v22  ;;  %4566 = vmatpush1.bf16.msra.mxu0 %v4565_v20  ;;  %v202_v35 = vpop.permute.xlu0 %201  ;;  %v428_v36 = vpop.permute.xlu1 %427  ;;  %686 = vrot.lane.b32.xlu1 %v677_v19, %s5009_s27  ;;  %v783_v20 = vld [vmem:[%s7813_s0 + $0xac] sm:$0xff] }
  0xad   :  { %438 = vst.msk [vmem:[#allocation2 + $0x1b0] sm:$0xff] %vm351_vm4, %v426_v23  ;;  %v857_v29 = vld [vmem:[#allocation2 + $0x168] sm:$0xff]  ;;  %4568 = vmatprep.subr.bf16.mxu0 %v4567_v24  ;;  %440 = vst.msk [vmem:[#allocation2 + $0x1d0] sm:$0xff] %vm351_vm4, %v428_v36 }
  0xae   :  { %437 = vst.msk [vmem:[#allocation2 + $0x1a8] sm:$0xff] %vm349_vm3, %v426_v23  ;;  %1298 = vmatprep.mubr.f32.mxu0 %v857_v29  ;;  %688 = vrot.lane.b32.xlu0 %v678_v31, %s5009_s27  ;;  %v860_v52 = vld [vmem:[#allocation2 + $0x180] sm:$0xff] }
  0xaf   :  { %213 = vst.msk [vmem:[#allocation2 + $0x1c0] sm:$0xff] %vm123_vm1, %v202_v35  ;;  %1299 = vmatmul.mubr.f32.gmra.mrb[22].mxu0 %v856_v41 }
  0xb0   :  { %214 = vst.msk [vmem:[#allocation2 + $0x1c8] sm:$0xff] %vm125_vm2, %v202_v35  ;;  %4570 = vmatpush1.bf16.msra.mxu0 %v4569_v33  ;;  %v204_v46 = vpop.permute.xlu0 %203  ;;  %v430_v47 = vpop.permute.xlu1 %429  ;;  %690 = vrot.lane.b32.xlu1 %v679_v32, %s5009_s27  ;;  %v790_v35 = vld [vmem:[%s7813_s0 + $0xc8] sm:$0xff] }
  0xb1   :  { %v861_v42 = vld [vmem:[#allocation2 + $0x188] sm:$0xff]  ;;  %777 = vst.msk [vmem:[#allocation2 + $0x1b8] sm:$0xff] %vm42_vm0, %v773_v40  ;;  %4572 = vmatprep.subr.bf16.mxu0 %v4571_v37  ;;  %778 = vst.msk [vmem:[#allocation2 + $0x1d8] sm:$0xff] %vm42_vm0, %v774_v51  ;;  %v791_v40 = vld [vmem:[%s7813_s0 + $0xd0] sm:$0xff] }
  0xb2   :  { %439 = vst.msk [vmem:[#allocation2 + $0x1c8] sm:$0xff] %vm349_vm3, %v428_v36  ;;  %1304 = vmatprep.mubr.f32.mxu0 %v861_v42  ;;  %708 = vrot.lane.b32.xlu0 %v700_v44, %s5009_s27  ;;  %v864_v60 = vld [vmem:[#allocation2 + $0x1a0] sm:$0xff] }
  0xb3   :  { %215 = vst.msk [vmem:[#allocation2 + $0x1e0] sm:$0xff] %vm123_vm1, %v204_v46  ;;  %1305 = vmatmul.mubr.f32.gmra.mrb[24].mxu0 %v860_v52 }
  0xb4   :  { %216 = vst.msk [vmem:[#allocation2 + $0x1e8] sm:$0xff] %vm125_vm2, %v204_v46  ;;  %4574 = vmatpush1.bf16.msra.mxu0 %v4573_v45  ;;  %v226_v57 = vpop.permute.xlu0 %225  ;;  %v452_v58 = vpop.permute.xlu1 %451  ;;  %710 = vrot.lane.b32.xlu1 %v701_v54, %s5009_s27  ;;  %v796_v45 = vld [vmem:[%s7813_s0 + $0xdc] sm:$0xff] }
  0xb5   :  { %442 = vst.msk [vmem:[#allocation2 + $0x1f0] sm:$0xff] %vm351_vm4, %v430_v47  ;;  %v865_v53 = vld [vmem:[#allocation2 + $0x1a8] sm:$0xff]  ;;  %4576 = vmatprep.subr.bf16.mxu0 %v4575_v48  ;;  %464 = vst.msk [vmem:[#allocation2 + $0x210] sm:$0xff] %vm351_vm4, %v452_v58 }
  0xb6   :  { %441 = vst.msk [vmem:[#allocation2 + $0x1e8] sm:$0xff] %vm349_vm3, %v430_v47  ;;  %1310 = vmatprep.mubr.f32.mxu0 %v865_v53  ;;  %712 = vrot.lane.b32.xlu0 %v702_v55, %s5009_s27  ;;  %v868_v3 = vld [vmem:[#allocation2 + $0x1c0] sm:$0xff]  ;;  %v798_v55 = vld [vmem:[%s7813_s0 + $0xec] sm:$0xff] }
  0xb7   :  { %237 = vst.msk [vmem:[#allocation2 + $0x200] sm:$0xff] %vm123_vm1, %v226_v57  ;;  %1311 = vmatmul.mubr.f32.gmra.mrb[26].mxu0 %v864_v60  ;;  %v799_v60 = vld [vmem:[%s7813_s0 + $0xf4] sm:$0xff] }
  0xb8   :  { %238 = vst.msk [vmem:[#allocation2 + $0x208] sm:$0xff] %vm125_vm2, %v226_v57  ;;  %4578 = vmatpush1.bf16.msra.mxu0 %v4577_v56  ;;  %v228_v0 = vpop.permute.xlu0 %227  ;;  %v454_v1 = vpop.permute.xlu1 %453  ;;  %714 = vrot.lane.b32.xlu1 %v703_v62, %s5009_s27 }
  0xb9   :  { %v869_v61 = vld [vmem:[#allocation2 + $0x1c8] sm:$0xff]  ;;  %779 = vst.msk [vmem:[#allocation2 + $0x1f8] sm:$0xff] %vm42_vm0, %v775_v59  ;;  %784 = vst.msk [vmem:[#allocation2 + $0x218] sm:$0xff] %vm42_vm0, %v780_v2 }
  0xba   :  { %463 = vst.msk [vmem:[#allocation2 + $0x208] sm:$0xff] %vm349_vm3, %v452_v58  ;;  %1316 = vmatprep.mubr.f32.mxu0 %v869_v61  ;;  %732 = vrot.lane.b32.xlu0 %v724_v63, %s5009_s27  ;;  %v872_v10 = vld [vmem:[#allocation2 + $0x1e0] sm:$0xff] }
  0xbb   :  { %239 = vst.msk [vmem:[#allocation2 + $0x220] sm:$0xff] %vm123_vm1, %v228_v0  ;;  %1317 = vmatmul.mubr.f32.gmra.mrb[28].mxu0 %v868_v3 }
  0xbc   :  { %240 = vst.msk [vmem:[#allocation2 + $0x228] sm:$0xff] %vm125_vm2, %v228_v0  ;;  %v230_v7 = vpop.permute.xlu0 %229  ;;  %v456_v8 = vpop.permute.xlu1 %455  ;;  %734 = vrot.lane.b32.xlu1 %v725_v5, %s5009_s27 }
  0xbd   :  { %466 = vst.msk [vmem:[#allocation2 + $0x230] sm:$0xff] %vm351_vm4, %v454_v1  ;;  %v873_v4 = vld [vmem:[#allocation2 + $0x1e8] sm:$0xff]  ;;  %468 = vst.msk [vmem:[#allocation2 + $0x250] sm:$0xff] %vm351_vm4, %v456_v8 }
  0xbe   :  { %465 = vst.msk [vmem:[#allocation2 + $0x228] sm:$0xff] %vm349_vm3, %v454_v1  ;;  %1322 = vmatprep.mubr.f32.mxu0 %v873_v4  ;;  %736 = vrot.lane.b32.xlu0 %v726_v6, %s5009_s27  ;;  %v876_v16 = vld [vmem:[#allocation2 + $0x200] sm:$0xff]  ;;  %v805_v6 = vld [vmem:[%s7813_s0 + $0x108] sm:$0xff] }
  0xbf   :  { %241 = vst.msk [vmem:[#allocation2 + $0x240] sm:$0xff] %vm123_vm1, %v230_v7  ;;  %1323 = vmatmul.mubr.f32.gmra.mrb[30].mxu0 %v872_v10  ;;  %v804_v1 = vld [vmem:[%s7813_s0 + $0x100] sm:$0xff] }
  0xc0   :  { %242 = vst.msk [vmem:[#allocation2 + $0x248] sm:$0xff] %vm125_vm2, %v230_v7  ;;  %v232_v13 = vpop.permute.xlu0 %231  ;;  %v458_v14 = vpop.permute.xlu1 %457  ;;  %738 = vrot.lane.b32.xlu1 %v727_v12, %s5009_s27 }
  0xc1   :  { %v877_v11 = vld [vmem:[#allocation2 + $0x208] sm:$0xff]  ;;  %785 = vst.msk [vmem:[#allocation2 + $0x238] sm:$0xff] %vm42_vm0, %v781_v9  ;;  %786 = vst.msk [vmem:[#allocation2 + $0x258] sm:$0xff] %vm42_vm0, %v782_v15  ;;  %v807_v15 = vld [vmem:[%s7813_s0 + $0x118] sm:$0xff] }
  0xc2   :  { %467 = vst.msk [vmem:[#allocation2 + $0x248] sm:$0xff] %vm349_vm3, %v456_v8  ;;  %1328 = vmatprep.mubr.f32.mxu0 %v877_v11  ;;  %v880_v21 = vld [vmem:[#allocation2 + $0x220] sm:$0xff]  ;;  %v806_v11 = vld [vmem:[%s7813_s0 + $0x110] sm:$0xff] }
  0xc3   :  { %243 = vst.msk [vmem:[#allocation2 + $0x260] sm:$0xff] %vm123_vm1, %v232_v13  ;;  %1329 = vmatmul.mubr.f32.gmra.mrb[32].mxu0 %v876_v16 }
  0xc4   :  { %244 = vst.msk [vmem:[#allocation2 + $0x268] sm:$0xff] %vm125_vm2, %v232_v13  ;;  %v254_v18 = vpop.permute.xlu0 %253  ;;  %v480_v19 = vpop.permute.xlu1 %479 }
  0xc5   :  { %470 = vst.msk [vmem:[#allocation2 + $0x270] sm:$0xff] %vm351_vm4, %v458_v14  ;;  %v881_v17 = vld [vmem:[#allocation2 + $0x228] sm:$0xff]  ;;  %492 = vst.msk [vmem:[#allocation2 + $0x290] sm:$0xff] %vm351_vm4, %v480_v19 }
  0xc6   :  { %469 = vst.msk [vmem:[#allocation2 + $0x268] sm:$0xff] %vm349_vm3, %v458_v14  ;;  %1334 = vmatprep.mubr.f32.mxu0 %v881_v17  ;;  %v884_v26 = vld [vmem:[#allocation2 + $0x240] sm:$0xff] }
  0xc7   :  { %265 = vst.msk [vmem:[#allocation2 + $0x280] sm:$0xff] %vm123_vm1, %v254_v18  ;;  %1335 = vmatmul.mubr.f32.gmra.mrb[34].mxu0 %v880_v21 }
  0xc8   :  { %266 = vst.msk [vmem:[#allocation2 + $0x288] sm:$0xff] %vm125_vm2, %v254_v18  ;;  %v256_v23 = vpop.permute.xlu0 %255  ;;  %v482_v24 = vpop.permute.xlu1 %481 }
  0xc9   :  { %v885_v22 = vld [vmem:[#allocation2 + $0x248] sm:$0xff]  ;;  %787 = vst.msk [vmem:[#allocation2 + $0x278] sm:$0xff] %vm42_vm0, %v783_v20  ;;  %792 = vst.msk [vmem:[#allocation2 + $0x298] sm:$0xff] %vm42_vm0, %v788_v25 }
  0xca   :  { %491 = vst.msk [vmem:[#allocation2 + $0x288] sm:$0xff] %vm349_vm3, %v480_v19  ;;  %1340 = vmatprep.mubr.f32.mxu0 %v885_v22  ;;  %v888_v31 = vld [vmem:[#allocation2 + $0x260] sm:$0xff] }
  0xcb   :  { %267 = vst.msk [vmem:[#allocation2 + $0x2a0] sm:$0xff] %vm123_vm1, %v256_v23  ;;  %1341 = vmatmul.mubr.f32.gmra.mrb[36].mxu0 %v884_v26 }
  0xcc   :  { %268 = vst.msk [vmem:[#allocation2 + $0x2a8] sm:$0xff] %vm125_vm2, %v256_v23  ;;  %v258_v28 = vpop.permute.xlu0 %257  ;;  %v484_v29 = vpop.permute.xlu1 %483  ;;  %v815_v23 = vld [vmem:[#allocation2 + $0x18] sm:$0xff] }
  0xcd   :  { %494 = vst.msk [vmem:[#allocation2 + $0x2b0] sm:$0xff] %vm351_vm4, %v482_v24  ;;  %v889_v27 = vld [vmem:[#allocation2 + $0x268] sm:$0xff]  ;;  %496 = vst.msk [vmem:[#allocation2 + $0x2d0] sm:$0xff] %vm351_vm4, %v484_v29 }
  0xce   :  { %493 = vst.msk [vmem:[#allocation2 + $0x2a8] sm:$0xff] %vm349_vm3, %v482_v24  ;;  %1346 = vmatprep.mubr.f32.mxu0 %v889_v27  ;;  %v892_v36 = vld [vmem:[#allocation2 + $0x280] sm:$0xff] }
  0xcf   :  { %269 = vst.msk [vmem:[#allocation2 + $0x2c0] sm:$0xff] %vm123_vm1, %v258_v28  ;;  %1347 = vmatmul.mubr.f32.gmra.mrb[38].mxu0 %v888_v31 }
  0xd0   :  { %270 = vst.msk [vmem:[#allocation2 + $0x2c8] sm:$0xff] %vm125_vm2, %v258_v28  ;;  %v260_v33 = vpop.permute.xlu0 %259  ;;  %v486_v34 = vpop.permute.xlu1 %485  ;;  %v819_v28 = vld [vmem:[#allocation2 + $0x38] sm:$0xff] }
  0xd1   :  { %v893_v32 = vld [vmem:[#allocation2 + $0x288] sm:$0xff]  ;;  %793 = vst.msk [vmem:[#allocation2 + $0x2b8] sm:$0xff] %vm42_vm0, %v789_v30  ;;  %794 = vst.msk [vmem:[#allocation2 + $0x2d8] sm:$0xff] %vm42_vm0, %v790_v35 }
  0xd2   :  { %495 = vst.msk [vmem:[#allocation2 + $0x2c8] sm:$0xff] %vm349_vm3, %v484_v29  ;;  %1352 = vmatprep.mubr.f32.mxu0 %v893_v32  ;;  %v896_v41 = vld [vmem:[#allocation2 + $0x2a0] sm:$0xff]  ;;  %v823_v32 = vld [vmem:[#allocation2 + $0x58] sm:$0xff] }
  0xd3   :  { %271 = vst.msk [vmem:[#allocation2 + $0x2e0] sm:$0xff] %vm123_vm1, %v260_v33  ;;  %1353 = vmatmul.mubr.f32.gmra.mrb[40].mxu0 %v892_v36  ;;  %v827_v36 = vld [vmem:[#allocation2 + $0x78] sm:$0xff] }
  0xd4   :  { %272 = vst.msk [vmem:[#allocation2 + $0x2e8] sm:$0xff] %vm125_vm2, %v260_v33  ;;  %v282_v38 = vpop.permute.xlu0 %281  ;;  %v508_v39 = vpop.permute.xlu1 %507 }
  0xd5   :  { %498 = vst.msk [vmem:[#allocation2 + $0x2f0] sm:$0xff] %vm351_vm4, %v486_v34  ;;  %v897_v37 = vld [vmem:[#allocation2 + $0x2a8] sm:$0xff]  ;;  %520 = vst.msk [vmem:[#allocation2 + $0x310] sm:$0xff] %vm351_vm4, %v508_v39 }
  0xd6   :  { %497 = vst.msk [vmem:[#allocation2 + $0x2e8] sm:$0xff] %vm349_vm3, %v486_v34  ;;  %1358 = vmatprep.mubr.f32.mxu0 %v897_v37  ;;  %v900_v46 = vld [vmem:[#allocation2 + $0x2c0] sm:$0xff] }
  0xd7   :  { %293 = vst.msk [vmem:[#allocation2 + $0x300] sm:$0xff] %vm123_vm1, %v282_v38  ;;  %1359 = vmatmul.mubr.f32.gmra.mrb[42].mxu0 %v896_v41 }
  0xd8   :  { %294 = vst.msk [vmem:[#allocation2 + $0x308] sm:$0xff] %vm125_vm2, %v282_v38  ;;  %v284_v43 = vpop.permute.xlu0 %283  ;;  %v510_v44 = vpop.permute.xlu1 %509 }
  0xd9   :  { %v901_v42 = vld [vmem:[#allocation2 + $0x2c8] sm:$0xff]  ;;  %795 = vst.msk [vmem:[#allocation2 + $0x2f8] sm:$0xff] %vm42_vm0, %v791_v40  ;;  %800 = vst.msk [vmem:[#allocation2 + $0x318] sm:$0xff] %vm42_vm0, %v796_v45  ;;  %v831_v40 = vld [vmem:[#allocation2 + $0x98] sm:$0xff] }
  0xda   :  { %519 = vst.msk [vmem:[#allocation2 + $0x308] sm:$0xff] %vm349_vm3, %v508_v39  ;;  %1364 = vmatprep.mubr.f32.mxu0 %v901_v42  ;;  %v904_v51 = vld [vmem:[#allocation2 + $0x2e0] sm:$0xff] }
  0xdb   :  { %295 = vst.msk [vmem:[#allocation2 + $0x320] sm:$0xff] %vm123_vm1, %v284_v43  ;;  %1365 = vmatmul.mubr.f32.gmra.mrb[44].mxu0 %v900_v46 }
  0xdc   :  { %296 = vst.msk [vmem:[#allocation2 + $0x328] sm:$0xff] %vm125_vm2, %v284_v43  ;;  %v286_v48 = vpop.permute.xlu0 %285  ;;  %v512_v49 = vpop.permute.xlu1 %511 }
  0xdd   :  { %522 = vst.msk [vmem:[#allocation2 + $0x330] sm:$0xff] %vm351_vm4, %v510_v44  ;;  %v905_v47 = vld [vmem:[#allocation2 + $0x2e8] sm:$0xff]  ;;  %524 = vst.msk [vmem:[#allocation2 + $0x350] sm:$0xff] %vm351_vm4, %v512_v49 }
  0xde   :  { %521 = vst.msk [vmem:[#allocation2 + $0x328] sm:$0xff] %vm349_vm3, %v510_v44  ;;  %1370 = vmatprep.mubr.f32.mxu0 %v905_v47  ;;  %v908_v56 = vld [vmem:[#allocation2 + $0x300] sm:$0xff]  ;;  %v835_v44 = vld [vmem:[#allocation2 + $0xb8] sm:$0xff] }
  0xdf   :  { %297 = vst.msk [vmem:[#allocation2 + $0x340] sm:$0xff] %vm123_vm1, %v286_v48  ;;  %1371 = vmatmul.mubr.f32.gmra.mrb[46].mxu0 %v904_v51 }
  0xe0   :  { %298 = vst.msk [vmem:[#allocation2 + $0x348] sm:$0xff] %vm125_vm2, %v286_v48  ;;  %v288_v53 = vpop.permute.xlu0 %287  ;;  %v514_v54 = vpop.permute.xlu1 %513  ;;  %v839_v48 = vld [vmem:[#allocation2 + $0xd8] sm:$0xff] }
  0xe1   :  { %v909_v52 = vld [vmem:[#allocation2 + $0x308] sm:$0xff]  ;;  %801 = vst.msk [vmem:[#allocation2 + $0x338] sm:$0xff] %vm42_vm0, %v797_v50  ;;  %802 = vst.msk [vmem:[#allocation2 + $0x358] sm:$0xff] %vm42_vm0, %v798_v55 }
  0xe2   :  { %523 = vst.msk [vmem:[#allocation2 + $0x348] sm:$0xff] %vm349_vm3, %v512_v49  ;;  %1376 = vmatprep.mubr.f32.mxu0 %v909_v52  ;;  %v912_v61 = vld [vmem:[#allocation2 + $0x320] sm:$0xff]  ;;  %v843_v52 = vld [vmem:[#allocation2 + $0xf8] sm:$0xff] }
  0xe3   :  { %299 = vst.msk [vmem:[#allocation2 + $0x360] sm:$0xff] %vm123_vm1, %v288_v53  ;;  %1377 = vmatmul.mubr.f32.gmra.mrb[48].mxu0 %v908_v56  ;;  %v847_v56 = vld [vmem:[#allocation2 + $0x118] sm:$0xff] }
  0xe4   :  { %300 = vst.msk [vmem:[#allocation2 + $0x368] sm:$0xff] %vm125_vm2, %v288_v53  ;;  %v310_v58 = vpop.permute.xlu0 %309  ;;  %v536_v59 = vpop.permute.xlu1 %535 }
  0xe5   :  { %526 = vst.msk [vmem:[#allocation2 + $0x370] sm:$0xff] %vm351_vm4, %v514_v54  ;;  %v913_v57 = vld [vmem:[#allocation2 + $0x328] sm:$0xff]  ;;  %548 = vst.msk [vmem:[#allocation2 + $0x390] sm:$0xff] %vm351_vm4, %v536_v59 }
  0xe6   :  { %525 = vst.msk [vmem:[#allocation2 + $0x368] sm:$0xff] %vm349_vm3, %v514_v54  ;;  %1382 = vmatprep.mubr.f32.mxu0 %v913_v57  ;;  %v916_v2 = vld [vmem:[#allocation2 + $0x340] sm:$0xff] }
  0xe7   :  { %321 = vst.msk [vmem:[#allocation2 + $0x380] sm:$0xff] %vm123_vm1, %v310_v58  ;;  %1383 = vmatmul.mubr.f32.gmra.mrb[50].mxu0 %v912_v61 }
  0xe8   :  { %322 = vst.msk [vmem:[#allocation2 + $0x388] sm:$0xff] %vm125_vm2, %v310_v58  ;;  %v312_v63 = vpop.permute.xlu0 %311  ;;  %v538_v0 = vpop.permute.xlu1 %537 }
  0xe9   :  { %v917_v62 = vld [vmem:[#allocation2 + $0x348] sm:$0xff]  ;;  %803 = vst.msk [vmem:[#allocation2 + $0x378] sm:$0xff] %vm42_vm0, %v799_v60  ;;  %808 = vst.msk [vmem:[#allocation2 + $0x398] sm:$0xff] %vm42_vm0, %v804_v1  ;;  %v851_v60 = vld [vmem:[#allocation2 + $0x138] sm:$0xff] }
  0xea   :  { %547 = vst.msk [vmem:[#allocation2 + $0x388] sm:$0xff] %vm349_vm3, %v536_v59  ;;  %1388 = vmatprep.mubr.f32.mxu0 %v917_v62  ;;  %v920_v7 = vld [vmem:[#allocation2 + $0x360] sm:$0xff] }
  0xeb   :  { %323 = vst.msk [vmem:[#allocation2 + $0x3a0] sm:$0xff] %vm123_vm1, %v312_v63  ;;  %1389 = vmatmul.mubr.f32.gmra.mrb[52].mxu0 %v916_v2 }
  0xec   :  { %324 = vst.msk [vmem:[#allocation2 + $0x3a8] sm:$0xff] %vm125_vm2, %v312_v63  ;;  %v314_v4 = vpop.permute.xlu0 %313  ;;  %v540_v5 = vpop.permute.xlu1 %539 }
  0xed   :  { %550 = vst.msk [vmem:[#allocation2 + $0x3b0] sm:$0xff] %vm351_vm4, %v538_v0  ;;  %v921_v3 = vld [vmem:[#allocation2 + $0x368] sm:$0xff]  ;;  %552 = vst.msk [vmem:[#allocation2 + $0x3d0] sm:$0xff] %vm351_vm4, %v540_v5 }
  0xee   :  { %549 = vst.msk [vmem:[#allocation2 + $0x3a8] sm:$0xff] %vm349_vm3, %v538_v0  ;;  %1394 = vmatprep.mubr.f32.mxu0 %v921_v3  ;;  %v924_v12 = vld [vmem:[#allocation2 + $0x380] sm:$0xff]  ;;  %v855_v0 = vld [vmem:[#allocation2 + $0x158] sm:$0xff] }
  0xef   :  { %325 = vst.msk [vmem:[#allocation2 + $0x3c0] sm:$0xff] %vm123_vm1, %v314_v4  ;;  %1395 = vmatmul.mubr.f32.gmra.mrb[54].mxu0 %v920_v7 }
  0xf0   :  { %326 = vst.msk [vmem:[#allocation2 + $0x3c8] sm:$0xff] %vm125_vm2, %v314_v4  ;;  %v316_v9 = vpop.permute.xlu0 %315  ;;  %v542_v10 = vpop.permute.xlu1 %541  ;;  %v859_v4 = vld [vmem:[#allocation2 + $0x178] sm:$0xff] }
  0xf1   :  { %v925_v8 = vld [vmem:[#allocation2 + $0x388] sm:$0xff]  ;;  %809 = vst.msk [vmem:[#allocation2 + $0x3b8] sm:$0xff] %vm42_vm0, %v805_v6  ;;  %810 = vst.msk [vmem:[#allocation2 + $0x3d8] sm:$0xff] %vm42_vm0, %v806_v11 }
  0xf2   :  { %551 = vst.msk [vmem:[#allocation2 + $0x3c8] sm:$0xff] %vm349_vm3, %v540_v5  ;;  %1400 = vmatprep.mubr.f32.mxu0 %v925_v8  ;;  %v928_v16 = vld [vmem:[#allocation2 + $0x3a0] sm:$0xff]  ;;  %v863_v8 = vld [vmem:[#allocation2 + $0x198] sm:$0xff] }
  0xf3   :  { %327 = vst.msk [vmem:[#allocation2 + $0x3e0] sm:$0xff] %vm123_vm1, %v316_v9  ;;  %1401 = vmatmul.mubr.f32.gmra.mrb[56].mxu0 %v924_v12  ;;  %v867_v12 = vld [vmem:[#allocation2 + $0x1b8] sm:$0xff]  ;;  %vm5018_vm1 = vmmov 0  }
  0xf4   :  { %328 = vst.msk [vmem:[#allocation2 + $0x3e8] sm:$0xff] %vm125_vm2, %v316_v9  ;;  %v564_v14 = vpop.permute.xlu0 %563  ;;  %vm3342_vm2 = vcmask 392192  }
  0xf5   :  { %554 = vst.msk [vmem:[#allocation2 + $0x3f0] sm:$0xff] %vm351_vm4, %v542_v10  ;;  %v929_v13 = vld [vmem:[#allocation2 + $0x3a8] sm:$0xff]  ;;  %vm4096_vm4 = vcmask 80896  }
  0xf6   :  { %553 = vst.msk [vmem:[#allocation2 + $0x3e8] sm:$0xff] %vm349_vm3, %v542_v10  ;;  %1406 = vmatprep.mubr.f32.mxu0 %v929_v13  ;;  %v566_v18 = vpop.permute.xlu1 %565  ;;  %v932_v20 = vld [vmem:[#allocation2 + $0x3c0] sm:$0xff]  ;;  %vm3927_vm3 = vcmask 982016  }
  0xf7   :  { %576 = vst.msk [vmem:[#allocation2 + $0x10] sm:$0xff] %vm575_vm5, %v564_v14  ;;  %1407 = vmatmul.mubr.f32.gmra.mrb[58].mxu0 %v928_v16  ;;  %577 = vst.msk [vmem:[#allocation2 + $0x30] sm:$0xff] %vm575_vm5, %v566_v18  ;;  %v871_v16 = vld [vmem:[#allocation2 + $0x1d8] sm:$0xff] }
  0xf8   :  { %811 = vst.msk [vmem:[#allocation2 + $0x3f8] sm:$0xff] %vm42_vm0, %v807_v15  ;;  %v568_v19 = vpop.permute.xlu0 %567  ;;  %v875_v18 = vld [vmem:[#allocation2 + $0x1f8] sm:$0xff] }
  0xf9   :  { %v933_v17 = vld [vmem:[#allocation2 + $0x3c8] sm:$0xff]  ;;  %578 = vst.msk [vmem:[#allocation2 + $0x50] sm:$0xff] %vm575_vm5, %v568_v19 }
  0xfa   :  { %1412 = vmatprep.mubr.f32.mxu0 %v933_v17  ;;  %v570_v22 = vpop.permute.xlu1 %569  ;;  %v936_v25 = vld [vmem:[#allocation2 + $0x3e0] sm:$0xff] }
  0xfb   :  { %1413 = vmatmul.mubr.f32.gmra.mrb[60].mxu0 %v932_v20  ;;  %579 = vst.msk [vmem:[#allocation2 + $0x70] sm:$0xff] %vm575_vm5, %v570_v22  ;;  %v879_v20 = vld [vmem:[#allocation2 + $0x218] sm:$0xff] }
  0xfc   :  { %v589_v24 = vpop.permute.xlu0 %588  ;;  %v883_v22 = vld [vmem:[#allocation2 + $0x238] sm:$0xff] }
  0xfd   :  { %v937_v21 = vld [vmem:[#allocation2 + $0x3e8] sm:$0xff]  ;;  %600 = vst.msk [vmem:[#allocation2 + $0x90] sm:$0xff] %vm575_vm5, %v589_v24  ;;  %v887_v24 = vld [vmem:[#allocation2 + $0x258] sm:$0xff] }
  0xfe   :  { %1418 = vmatprep.mubr.f32.mxu0 %v937_v21  ;;  %v591_v26 = vpop.permute.xlu1 %590  ;;  %v814_v27 = vld [vmem:[#allocation2 + $0x10] sm:$0xff] }
  0xff   :  { %1419 = vmatmul.mubr.f32.gmra.mrb[62].mxu0 %v936_v25  ;;  %601 = vst.msk [vmem:[#allocation2 + $0xb0] sm:$0xff] %vm575_vm5, %v591_v26  ;;  %v818_v31 = vld [vmem:[#allocation2 + $0x30] sm:$0xff]  ;;  %v891_v26 = vld [vmem:[#allocation2 + $0x278] sm:$0xff] }
 0x100   :  { %4102 = vmatprep.mubr.msk.f32.mxu0 %vm42_vm0, %v815_v23  ;;  %v593_v29 = vpop.permute.xlu0 %592  ;;  %v822_v35 = vld [vmem:[#allocation2 + $0x50] sm:$0xff] }
 0x101   :  { %602 = vst.msk [vmem:[#allocation2 + $0xd0] sm:$0xff] %vm575_vm5, %v593_v29 }
 0x102   :  { %v595_v30 = vpop.permute.xlu1 %594  ;;  %v826_v39 = vld [vmem:[#allocation2 + $0x70] sm:$0xff] }
 0x103   :  { %1490 = vmatmul.mubr.f32.vlgmr.msra.gmra.mrb[0].mxu0 %v814_v27  ;;  %603 = vst.msk [vmem:[#allocation2 + $0xf0] sm:$0xff] %vm575_vm5, %v595_v30  ;;  %v899_v30 = vld [vmem:[#allocation2 + $0x2b8] sm:$0xff] }
 0x104   :  { %4103 = vmatprep.mubr.msk.f32.mxu0 %vm42_vm0, %v819_v28  ;;  %v613_v33 = vpop.permute.xlu0 %612  ;;  %v830_v43 = vld [vmem:[#allocation2 + $0x90] sm:$0xff]  ;;  %v895_v28 = vld [vmem:[#allocation2 + $0x298] sm:$0xff] }
 0x105   :  { %624 = vst.msk [vmem:[#allocation2 + $0x110] sm:$0xff] %vm575_vm5, %v613_v33 }
 0x106   :  { %v615_v34 = vpop.permute.xlu1 %614  ;;  %v834_v47 = vld [vmem:[#allocation2 + $0xb0] sm:$0xff] }
 0x107   :  { %1496 = vmatmul.mubr.f32.gmra.mrb[2].mxu0 %v818_v31  ;;  %625 = vst.msk [vmem:[#allocation2 + $0x130] sm:$0xff] %vm575_vm5, %v615_v34  ;;  %v907_v34 = vld [vmem:[#allocation2 + $0x2f8] sm:$0xff] }
 0x108   :  { %4104 = vmatprep.mubr.msk.f32.mxu0 %vm42_vm0, %v823_v32  ;;  %v617_v37 = vpop.permute.xlu0 %616  ;;  %v838_v51 = vld [vmem:[#allocation2 + $0xd0] sm:$0xff]  ;;  %v903_v32 = vld [vmem:[#allocation2 + $0x2d8] sm:$0xff] }
 0x109   :  { %626 = vst.msk [vmem:[#allocation2 + $0x150] sm:$0xff] %vm575_vm5, %v617_v37 }
 0x10a   :  { %v619_v38 = vpop.permute.xlu1 %618  ;;  %v842_v55 = vld [vmem:[#allocation2 + $0xf0] sm:$0xff] }
 0x10b   :  { %1502 = vmatmul.mubr.f32.gmra.mrb[4].mxu0 %v822_v35  ;;  %627 = vst.msk [vmem:[#allocation2 + $0x170] sm:$0xff] %vm575_vm5, %v619_v38  ;;  %v915_v38 = vld [vmem:[#allocation2 + $0x338] sm:$0xff] }
 0x10c   :  { %4105 = vmatprep.mubr.msk.f32.mxu0 %vm42_vm0, %v827_v36  ;;  %v637_v41 = vpop.permute.xlu0 %636  ;;  %v846_v59 = vld [vmem:[#allocation2 + $0x110] sm:$0xff]  ;;  %v911_v36 = vld [vmem:[#allocation2 + $0x318] sm:$0xff] }
 0x10d   :  { %648 = vst.msk [vmem:[#allocation2 + $0x190] sm:$0xff] %vm575_vm5, %v637_v41 }
 0x10e   :  { %v639_v42 = vpop.permute.xlu1 %638  ;;  %v850_v63 = vld [vmem:[#allocation2 + $0x130] sm:$0xff] }
 0x10f   :  { %1508 = vmatmul.mubr.f32.gmra.mrb[6].mxu0 %v826_v39  ;;  %649 = vst.msk [vmem:[#allocation2 + $0x1b0] sm:$0xff] %vm575_vm5, %v639_v42  ;;  %v923_v42 = vld [vmem:[#allocation2 + $0x378] sm:$0xff] }
 0x110   :  { %4106 = vmatprep.mubr.msk.f32.mxu0 %vm42_vm0, %v831_v40  ;;  %v641_v45 = vpop.permute.xlu0 %640  ;;  %v854_v3 = vld [vmem:[#allocation2 + $0x150] sm:$0xff]  ;;  %v919_v40 = vld [vmem:[#allocation2 + $0x358] sm:$0xff] }
 0x111   :  { %650 = vst.msk [vmem:[#allocation2 + $0x1d0] sm:$0xff] %vm575_vm5, %v641_v45 }
 0x112   :  { %v643_v46 = vpop.permute.xlu1 %642  ;;  %v858_v7 = vld [vmem:[#allocation2 + $0x170] sm:$0xff] }
 0x113   :  { %1514 = vmatmul.mubr.f32.gmra.mrb[8].mxu0 %v830_v43  ;;  %651 = vst.msk [vmem:[#allocation2 + $0x1f0] sm:$0xff] %vm575_vm5, %v643_v46  ;;  %v931_v46 = vld [vmem:[#allocation2 + $0x3b8] sm:$0xff] }
 0x114   :  { %4107 = vmatprep.mubr.msk.f32.mxu0 %vm42_vm0, %v835_v44  ;;  %v661_v49 = vpop.permute.xlu0 %660  ;;  %v862_v11 = vld [vmem:[#allocation2 + $0x190] sm:$0xff]  ;;  %v927_v44 = vld [vmem:[#allocation2 + $0x398] sm:$0xff] }
 0x115   :  { %672 = vst.msk [vmem:[#allocation2 + $0x210] sm:$0xff] %vm575_vm5, %v661_v49 }
 0x116   :  { %v663_v50 = vpop.permute.xlu1 %662  ;;  %v866_v15 = vld [vmem:[#allocation2 + $0x1b0] sm:$0xff] }
 0x117   :  { %1520 = vmatmul.mubr.f32.gmra.mrb[10].mxu0 %v834_v47  ;;  %673 = vst.msk [vmem:[#allocation2 + $0x230] sm:$0xff] %vm575_vm5, %v663_v50  ;;  %v939_v50 = vld [vmem:[#allocation2 + $0x3f8] sm:$0xff] }
 0x118   :  { %4108 = vmatprep.mubr.msk.f32.mxu0 %vm42_vm0, %v839_v48  ;;  %v665_v53 = vpop.permute.xlu0 %664  ;;  %v870_v17 = vld [vmem:[#allocation2 + $0x1d0] sm:$0xff]  ;;  %v935_v48 = vld [vmem:[#allocation2 + $0x3d8] sm:$0xff] }
 0x119   :  { %674 = vst.msk [vmem:[#allocation2 + $0x250] sm:$0xff] %vm575_vm5, %v665_v53 }
 0x11a   :  { %v667_v54 = vpop.permute.xlu1 %666  ;;  %v874_v19 = vld [vmem:[#allocation2 + $0x1f0] sm:$0xff] }
 0x11b   :  { %1526 = vmatmul.mubr.f32.gmra.mrb[12].mxu0 %v838_v51  ;;  %675 = vst.msk [vmem:[#allocation2 + $0x270] sm:$0xff] %vm575_vm5, %v667_v54 }
 0x11c   :  { %4109 = vmatprep.mubr.msk.f32.mxu0 %vm42_vm0, %v843_v52  ;;  %v685_v57 = vpop.permute.xlu0 %684  ;;  %v878_v21 = vld [vmem:[#allocation2 + $0x210] sm:$0xff]  ;;  %v1062_v52 = vlaneseq }
 0x11d   :  { %696 = vst.msk [vmem:[#allocation2 + $0x290] sm:$0xff] %vm575_vm5, %v685_v57 }
 0x11e   :  { %v687_v58 = vpop.permute.xlu1 %686  ;;  %v882_v23 = vld [vmem:[#allocation2 + $0x230] sm:$0xff]  ;;  %v6271_v53 = vshrl.u32 %v1062_v52, 7 }
 0x11f   :  { %1532 = vmatmul.mubr.f32.gmra.mrb[14].mxu0 %v842_v55  ;;  %697 = vst.msk [vmem:[#allocation2 + $0x2b0] sm:$0xff] %vm575_vm5, %v687_v58  ;;  %v1060_v55 = vld [vmem:[%s7815_s2] sm:$0x3]  ;;  %s5010_s2 = smov 44  }
 0x120   :  { %4110 = vmatprep.mubr.msk.f32.mxu0 %vm42_vm0, %v847_v56  ;;  %v689_v61 = vpop.permute.xlu0 %688  ;;  %v886_v25 = vld [vmem:[#allocation2 + $0x250] sm:$0xff]  ;;  %v7828_v54 = vsub.s32 0, %v6271_v53  ;;  %v7827_v56 = vsub.s32 1, %v6271_v53 }
 0x121   :  { %698 = vst.msk [vmem:[#allocation2 + $0x2d0] sm:$0xff] %vm575_vm5, %v689_v61 }
 0x122   :  { %v691_v62 = vpop.permute.xlu1 %690  ;;  %v890_v27 = vld [vmem:[#allocation2 + $0x270] sm:$0xff]  ;;  %v6280_v57 = vrot.slane %v1060_v55, %v7828_v54  ;;  %v6284_v58 = vrot.slane %v1060_v55, %v7827_v56 }
 0x123   :  { %1538 = vmatmul.mubr.f32.gmra.mrb[16].mxu0 %v846_v59  ;;  %699 = vst.msk [vmem:[#allocation2 + $0x2f0] sm:$0xff] %vm575_vm5, %v691_v62 }
 0x124   :  { %4111 = vmatprep.mubr.msk.f32.mxu0 %vm42_vm0, %v851_v60  ;;  %v709_v1 = vpop.permute.xlu0 %708  ;;  %v894_v29 = vld [vmem:[#allocation2 + $0x290] sm:$0xff] }
 0x125   :  { %720 = vst.msk [vmem:[#allocation2 + $0x310] sm:$0xff] %vm575_vm5, %v709_v1 }
 0x126   :  { %v711_v2 = vpop.permute.xlu1 %710  ;;  %v898_v31 = vld [vmem:[#allocation2 + $0x2b0] sm:$0xff] }
 0x127   :  { %1544 = vmatmul.mubr.f32.gmra.mrb[18].mxu0 %v850_v63  ;;  %721 = vst.msk [vmem:[#allocation2 + $0x330] sm:$0xff] %vm575_vm5, %v711_v2 }
 0x128   :  { %4112 = vmatprep.mubr.msk.f32.mxu0 %vm42_vm0, %v855_v0  ;;  %v713_v5 = vpop.permute.xlu0 %712  ;;  %v902_v33 = vld [vmem:[#allocation2 + $0x2d0] sm:$0xff] }
 0x129   :  { %722 = vst.msk [vmem:[#allocation2 + $0x350] sm:$0xff] %vm575_vm5, %v713_v5 }
 0x12a   :  { %v715_v6 = vpop.permute.xlu1 %714  ;;  %v906_v35 = vld [vmem:[#allocation2 + $0x2f0] sm:$0xff] }
 0x12b   :  { %1550 = vmatmul.mubr.f32.gmra.mrb[20].mxu0 %v854_v3  ;;  %723 = vst.msk [vmem:[#allocation2 + $0x370] sm:$0xff] %vm575_vm5, %v715_v6 }
 0x12c   :  { %4113 = vmatprep.mubr.msk.f32.mxu0 %vm42_vm0, %v859_v4  ;;  %v733_v9 = vpop.permute.xlu0 %732  ;;  %v910_v37 = vld [vmem:[#allocation2 + $0x310] sm:$0xff] }
 0x12d   :  { %744 = vst.msk [vmem:[#allocation2 + $0x390] sm:$0xff] %vm575_vm5, %v733_v9 }
 0x12e   :  { %v735_v10 = vpop.permute.xlu1 %734  ;;  %v914_v39 = vld [vmem:[#allocation2 + $0x330] sm:$0xff] }
 0x12f   :  { %1556 = vmatmul.mubr.f32.gmra.mrb[22].mxu0 %v858_v7  ;;  %745 = vst.msk [vmem:[#allocation2 + $0x3b0] sm:$0xff] %vm575_vm5, %v735_v10  ;;  %v7825_v10 = vmov 0.0  }
 0x130   :  { %4114 = vmatprep.mubr.msk.f32.mxu0 %vm42_vm0, %v863_v8  ;;  %v737_v13 = vpop.permute.xlu0 %736  ;;  %v918_v41 = vld [vmem:[#allocation2 + $0x350] sm:$0xff]  ;;  %2147 = vst.msk [vmem:[#allocation4] sm:$0xff] %vm2035_vm6, %v7825_v10  ;;  %2148 = vst.msk [vmem:[#allocation4 + $0x8] sm:$0xff] %vm2035_vm6, %v7825_v10 }
 0x131   :  { %746 = vst.msk [vmem:[#allocation2 + $0x3d0] sm:$0xff] %vm575_vm5, %v737_v13 }
 0x132   :  { %v739_v14 = vpop.permute.xlu1 %738  ;;  %v922_v43 = vld [vmem:[#allocation2 + $0x370] sm:$0xff]  ;;  %2149 = vst.msk [vmem:[#allocation4 + $0x10] sm:$0xff] %vm2035_vm6, %v7825_v10  ;;  %2150 = vst.msk [vmem:[#allocation4 + $0x18] sm:$0xff] %vm2035_vm6, %v7825_v10 }
 0x133   :  { %1562 = vmatmul.mubr.f32.gmra.mrb[24].mxu0 %v862_v11  ;;  %747 = vst.msk [vmem:[#allocation2 + $0x3f0] sm:$0xff] %vm575_vm5, %v739_v14 }
 0x134   :  { %4115 = vmatprep.mubr.msk.f32.mxu0 %vm42_vm0, %v867_v12  ;;  %v926_v45 = vld [vmem:[#allocation2 + $0x390] sm:$0xff]  ;;  %2151 = vst.msk [vmem:[#allocation4 + $0x20] sm:$0xff] %vm2035_vm6, %v7825_v10  ;;  %2152 = vst.msk [vmem:[#allocation4 + $0x28] sm:$0xff] %vm2035_vm6, %v7825_v10 }
 0x135   :  { %2153 = vst.msk [vmem:[#allocation4 + $0x30] sm:$0xff] %vm2035_vm6, %v7825_v10  ;;  %2154 = vst.msk [vmem:[#allocation4 + $0x38] sm:$0xff] %vm2035_vm6, %v7825_v10 }
 0x136   :  { %v930_v47 = vld [vmem:[#allocation2 + $0x3b0] sm:$0xff]  ;;  %2155 = vst.msk [vmem:[#allocation4 + $0x40] sm:$0xff] %vm2035_vm6, %v7825_v10  ;;  %2156 = vst.msk [vmem:[#allocation4 + $0x48] sm:$0xff] %vm2035_vm6, %v7825_v10 }
 0x137   :  { %1568 = vmatmul.mubr.f32.gmra.mrb[26].mxu0 %v866_v15  ;;  %2157 = vst.msk [vmem:[#allocation4 + $0x50] sm:$0xff] %vm2035_vm6, %v7825_v10  ;;  %2158 = vst.msk [vmem:[#allocation4 + $0x58] sm:$0xff] %vm2035_vm6, %v7825_v10 }
 0x138   :  { %4116 = vmatprep.mubr.msk.f32.mxu0 %vm42_vm0, %v871_v16  ;;  %v934_v49 = vld [vmem:[#allocation2 + $0x3d0] sm:$0xff]  ;;  %2159 = vst.msk [vmem:[#allocation4 + $0x60] sm:$0xff] %vm2035_vm6, %v7825_v10  ;;  %2160 = vst.msk [vmem:[#allocation4 + $0x68] sm:$0xff] %vm2035_vm6, %v7825_v10 }
 0x139   :  { %2161 = vst.msk [vmem:[#allocation4 + $0x70] sm:$0xff] %vm2035_vm6, %v7825_v10  ;;  %2162 = vst.msk [vmem:[#allocation4 + $0x78] sm:$0xff] %vm2035_vm6, %v7825_v10 }
 0x13a   :  { %v938_v51 = vld [vmem:[#allocation2 + $0x3f0] sm:$0xff]  ;;  %2163 = vst.msk [vmem:[#allocation4 + $0x80] sm:$0xff] %vm2035_vm6, %v7825_v10  ;;  %2164 = vst.msk [vmem:[#allocation4 + $0x88] sm:$0xff] %vm2035_vm6, %v7825_v10 }
 0x13b   :  { %1574 = vmatmul.mubr.f32.gmra.mrb[28].mxu0 %v870_v17  ;;  %2165 = vst.msk [vmem:[#allocation4 + $0x90] sm:$0xff] %vm2035_vm6, %v7825_v10  ;;  %2166 = vst.msk [vmem:[#allocation4 + $0x98] sm:$0xff] %vm2035_vm6, %v7825_v10 }
 0x13c   :  { %4117 = vmatprep.mubr.msk.f32.mxu0 %vm42_vm0, %v875_v18 }
 0x13f   :  { %1580 = vmatmul.mubr.f32.gmra.mrb[30].mxu0 %v874_v19 }
 0x140   :  { %4118 = vmatprep.mubr.msk.f32.mxu0 %vm42_vm0, %v879_v20 }
 0x143   :  { %1586 = vmatmul.mubr.f32.gmra.mrb[32].mxu0 %v878_v21 }
 0x144   :  { %4119 = vmatprep.mubr.msk.f32.mxu0 %vm42_vm0, %v883_v22 }
 0x147   :  { %1592 = vmatmul.mubr.f32.gmra.mrb[34].mxu0 %v882_v23 }
 0x148   :  { %4120 = vmatprep.mubr.msk.f32.mxu0 %vm42_vm0, %v887_v24 }
 0x14b   :  { %1598 = vmatmul.mubr.f32.gmra.mrb[36].mxu0 %v886_v25 }
 0x14c   :  { %4121 = vmatprep.mubr.msk.f32.mxu0 %vm42_vm0, %v891_v26 }
 0x14f   :  { %1604 = vmatmul.mubr.f32.gmra.mrb[38].mxu0 %v890_v27 }
 0x150   :  { %4122 = vmatprep.mubr.msk.f32.mxu0 %vm42_vm0, %v895_v28 }
 0x153   :  { %1610 = vmatmul.mubr.f32.gmra.mrb[40].mxu0 %v894_v29 }
 0x154   :  { %4123 = vmatprep.mubr.msk.f32.mxu0 %vm42_vm0, %v899_v30 }
 0x157   :  { %1616 = vmatmul.mubr.f32.gmra.mrb[42].mxu0 %v898_v31 }
 0x158   :  { %4124 = vmatprep.mubr.msk.f32.mxu0 %vm42_vm0, %v903_v32 }
 0x15b   :  { %1622 = vmatmul.mubr.f32.gmra.mrb[44].mxu0 %v902_v33 }
 0x15c   :  { %4125 = vmatprep.mubr.msk.f32.mxu0 %vm42_vm0, %v907_v34 }
 0x15f   :  { %1628 = vmatmul.mubr.f32.gmra.mrb[46].mxu0 %v906_v35 }
 0x160   :  { %4126 = vmatprep.mubr.msk.f32.mxu0 %vm42_vm0, %v911_v36 }
 0x163   :  { %1634 = vmatmul.mubr.f32.gmra.mrb[48].mxu0 %v910_v37 }
 0x164   :  { %4127 = vmatprep.mubr.msk.f32.mxu0 %vm42_vm0, %v915_v38 }
 0x167   :  { %1640 = vmatmul.mubr.f32.gmra.mrb[50].mxu0 %v914_v39 }
 0x168   :  { %4128 = vmatprep.mubr.msk.f32.mxu0 %vm42_vm0, %v919_v40 }
 0x16b   :  { %1646 = vmatmul.mubr.f32.gmra.mrb[52].mxu0 %v918_v41 }
 0x16c   :  { %4129 = vmatprep.mubr.msk.f32.mxu0 %vm42_vm0, %v923_v42 }
 0x16f   :  { %1652 = vmatmul.mubr.f32.gmra.mrb[54].mxu0 %v922_v43 }
 0x170   :  { %4130 = vmatprep.mubr.msk.f32.mxu0 %vm42_vm0, %v927_v44 }
 0x173   :  { %1658 = vmatmul.mubr.f32.gmra.mrb[56].mxu0 %v926_v45 }
 0x174   :  { %4131 = vmatprep.mubr.msk.f32.mxu0 %vm42_vm0, %v931_v46 }
 0x177   :  { %1664 = vmatmul.mubr.f32.gmra.mrb[58].mxu0 %v930_v47 }
 0x178   :  { %4132 = vmatprep.mubr.msk.f32.mxu0 %vm42_vm0, %v935_v48 }
 0x17b   :  { %1670 = vmatmul.mubr.f32.gmra.mrb[60].mxu0 %v934_v49 }
 0x17c   :  { %4133 = vmatprep.mubr.msk.f32.mxu0 %vm42_vm0, %v939_v50  ;;  %vm2553_vm0 = vcmask 293888  }
 0x17f   :  { %1676 = vmatmul.mubr.f32.gmra.mrb[62].mxu0 %v938_v51 }
 0x1d6   :  { %v1491_v59 = vpop.f32.mrb[0].mxu0 }
 0x1d7   :  { %v6287_v60 = vadd.f32 %v1491_v59, %v6280_v57  ;;  %v1493_v61 = vpop.f32.mrb[1].mxu0 }
 0x1d8   :  { %v4795_v62 = vadd.f32 %v1493_v61, %v6284_v58 }
 0x1d9   :  { %v1682_v63 = vmax.f32 %v6287_v60, 0.0  ;;  %v2756_v60 = vld [vmem:[%s7816_s3 + $0x128] sm:$0xff] }
 0x1da   :  { %v1683_v0 = vmax.f32 %v4795_v62, 0.0  ;;  %v1497_v1 = vpop.f32.mrb[2].mxu0 }
 0x1db   :  { %v6292_v2 = vadd.f32 %v1497_v1, %v6280_v57  ;;  %v1499_v3 = vpop.f32.mrb[3].mxu0  ;;  %1810 = vrot.lane.b32.xlu0 %v1682_v63, %s5010_s2 }
 0x1dc   :  { %v4797_v4 = vadd.f32 %v1499_v3, %v6284_v58  ;;  %1812 = vrot.lane.b32.xlu1 %v1683_v0, %s5010_s2 }
 0x1dd   :  { %v1684_v5 = vmax.f32 %v6292_v2, 0.0 }
 0x1de   :  { %v1685_v6 = vmax.f32 %v4797_v4, 0.0  ;;  %v1503_v7 = vpop.f32.mrb[4].mxu0 }
 0x1df   :  { %v6301_v8 = vadd.f32 %v1503_v7, %v6280_v57  ;;  %v1505_v9 = vpop.f32.mrb[5].mxu0  ;;  %1814 = vrot.lane.b32.xlu0 %v1684_v5, %s5010_s2 }
 0x1e0   :  { %v4799_v11 = vadd.f32 %v1505_v9, %v6284_v58  ;;  %1816 = vrot.lane.b32.xlu1 %v1685_v6, %s5010_s2 }
 0x1e1   :  { %v1686_v12 = vmax.f32 %v6301_v8, 0.0  ;;  %v2765_v8 = vld [vmem:[%s7816_s3 + $0x170] sm:$0xff] }
 0x1e2   :  { %v1687_v13 = vmax.f32 %v4799_v11, 0.0  ;;  %v1509_v14 = vpop.f32.mrb[6].mxu0 }
 0x1e3   :  { %v6350_v15 = vadd.f32 %v1509_v14, %v6280_v57  ;;  %v1511_v16 = vpop.f32.mrb[7].mxu0  ;;  %1818 = vrot.lane.b32.xlu0 %v1686_v12, %s5010_s2 }
 0x1e4   :  { %v4801_v17 = vadd.f32 %v1511_v16, %v6284_v58  ;;  %1820 = vrot.lane.b32.xlu1 %v1687_v13, %s5010_s2 }
 0x1e5   :  { %v1688_v18 = vmax.f32 %v6350_v15, 0.0  ;;  %v2769_v15 = vld [vmem:[%s7816_s3 + $0x190] sm:$0xff] }
 0x1e6   :  { %v1689_v19 = vmax.f32 %v4801_v17, 0.0  ;;  %v1515_v20 = vpop.f32.mrb[8].mxu0 }
 0x1e7   :  { %v6359_v21 = vadd.f32 %v1515_v20, %v6280_v57  ;;  %v1517_v22 = vpop.f32.mrb[9].mxu0  ;;  %1822 = vrot.lane.b32.xlu0 %v1688_v18, %s5010_s2 }
 0x1e8   :  { %v4803_v23 = vadd.f32 %v1517_v22, %v6284_v58  ;;  %1824 = vrot.lane.b32.xlu1 %v1689_v19, %s5010_s2 }
 0x1e9   :  { %v1690_v24 = vmax.f32 %v6359_v21, 0.0 }
 0x1ea   :  { %v1691_v25 = vmax.f32 %v4803_v23, 0.0  ;;  %v1521_v26 = vpop.f32.mrb[10].mxu0 }
 0x1eb   :  { %v6368_v27 = vadd.f32 %v1521_v26, %v6280_v57  ;;  %v1523_v28 = vpop.f32.mrb[11].mxu0  ;;  %1826 = vrot.lane.b32.xlu0 %v1690_v24, %s5010_s2 }
 0x1ec   :  { %v4805_v29 = vadd.f32 %v1523_v28, %v6284_v58  ;;  %1828 = vrot.lane.b32.xlu1 %v1691_v25, %s5010_s2 }
 0x1ed   :  { %v1692_v30 = vmax.f32 %v6368_v27, 0.0  ;;  %v2778_v27 = vld [vmem:[%s7816_s3 + $0x1d8] sm:$0xff] }
 0x1ee   :  { %v1693_v31 = vmax.f32 %v4805_v29, 0.0  ;;  %v1527_v32 = vpop.f32.mrb[12].mxu0 }
 0x1ef   :  { %v6377_v33 = vadd.f32 %v1527_v32, %v6280_v57  ;;  %v1529_v34 = vpop.f32.mrb[13].mxu0  ;;  %1830 = vrot.lane.b32.xlu0 %v1692_v30, %s5010_s2 }
 0x1f0   :  { %v4807_v35 = vadd.f32 %v1529_v34, %v6284_v58  ;;  %1832 = vrot.lane.b32.xlu1 %v1693_v31, %s5010_s2 }
 0x1f1   :  { %v1694_v36 = vmax.f32 %v6377_v33, 0.0 }
 0x1f2   :  { %v1695_v37 = vmax.f32 %v4807_v35, 0.0  ;;  %v1533_v38 = vpop.f32.mrb[14].mxu0 }
 0x1f3   :  { %v6386_v39 = vadd.f32 %v1533_v38, %v6280_v57  ;;  %v1535_v40 = vpop.f32.mrb[15].mxu0  ;;  %1834 = vrot.lane.b32.xlu0 %v1694_v36, %s5010_s2 }
 0x1f4   :  { %v4809_v41 = vadd.f32 %v1535_v40, %v6284_v58  ;;  %1836 = vrot.lane.b32.xlu1 %v1695_v37, %s5010_s2 }
 0x1f5   :  { %v1696_v42 = vmax.f32 %v6386_v39, 0.0 }
 0x1f6   :  { %v1697_v43 = vmax.f32 %v4809_v41, 0.0  ;;  %v1539_v44 = vpop.f32.mrb[16].mxu0 }
 0x1f7   :  { %v6395_v45 = vadd.f32 %v1539_v44, %v6280_v57  ;;  %v1541_v46 = vpop.f32.mrb[17].mxu0  ;;  %1838 = vrot.lane.b32.xlu0 %v1696_v42, %s5010_s2 }
 0x1f8   :  { %v4811_v47 = vadd.f32 %v1541_v46, %v6284_v58  ;;  %1840 = vrot.lane.b32.xlu1 %v1697_v43, %s5010_s2 }
 0x1f9   :  { %v1698_v48 = vmax.f32 %v6395_v45, 0.0 }
 0x1fa   :  { %v1699_v49 = vmax.f32 %v4811_v47, 0.0  ;;  %v1545_v50 = vpop.f32.mrb[18].mxu0 }
 0x1fb   :  { %v6404_v51 = vadd.f32 %v1545_v50, %v6280_v57  ;;  %v1547_v52 = vpop.f32.mrb[19].mxu0  ;;  %1842 = vrot.lane.b32.xlu0 %v1698_v48, %s5010_s2 }
 0x1fc   :  { %v4813_v55 = vadd.f32 %v1547_v52, %v6284_v58  ;;  %1844 = vrot.lane.b32.xlu1 %v1699_v49, %s5010_s2 }
 0x1fd   :  { %v1700_v59 = vmax.f32 %v6404_v51, 0.0 }
 0x1fe   :  { %v1701_v61 = vmax.f32 %v4813_v55, 0.0  ;;  %v1551_v62 = vpop.f32.mrb[20].mxu0 }
 0x1ff   :  { %v6413_v0 = vadd.f32 %v1551_v62, %v6280_v57  ;;  %v1553_v1 = vpop.f32.mrb[21].mxu0  ;;  %1846 = vrot.lane.b32.xlu0 %v1700_v59, %s5010_s2 }
 0x200   :  { %v4815_v3 = vadd.f32 %v1553_v1, %v6284_v58  ;;  %1848 = vrot.lane.b32.xlu1 %v1701_v61, %s5010_s2 }
 0x201   :  { %v1702_v4 = vmax.f32 %v6413_v0, 0.0 }
 0x202   :  { %v1703_v6 = vmax.f32 %v4815_v3, 0.0  ;;  %v1557_v7 = vpop.f32.mrb[22].mxu0 }
 0x203   :  { %v6422_v9 = vadd.f32 %v1557_v7, %v6280_v57  ;;  %v1559_v11 = vpop.f32.mrb[23].mxu0  ;;  %1850 = vrot.lane.b32.xlu0 %v1702_v4, %s5010_s2 }
 0x204   :  { %v4817_v13 = vadd.f32 %v1559_v11, %v6284_v58  ;;  %1852 = vrot.lane.b32.xlu1 %v1703_v6, %s5010_s2 }
 0x205   :  { %v1704_v14 = vmax.f32 %v6422_v9, 0.0 }
 0x206   :  { %v1705_v16 = vmax.f32 %v4817_v13, 0.0  ;;  %v1563_v17 = vpop.f32.mrb[24].mxu0 }
 0x207   :  { %v6431_v19 = vadd.f32 %v1563_v17, %v6280_v57  ;;  %v1565_v20 = vpop.f32.mrb[25].mxu0  ;;  %1854 = vrot.lane.b32.xlu0 %v1704_v14, %s5010_s2 }
 0x208   :  { %v4819_v22 = vadd.f32 %v1565_v20, %v6284_v58  ;;  %1856 = vrot.lane.b32.xlu1 %v1705_v16, %s5010_s2 }
 0x209   :  { %v1706_v23 = vmax.f32 %v6431_v19, 0.0 }
 0x20a   :  { %v1707_v25 = vmax.f32 %v4819_v22, 0.0  ;;  %v1569_v26 = vpop.f32.mrb[26].mxu0 }
 0x20b   :  { %v6440_v28 = vadd.f32 %v1569_v26, %v6280_v57  ;;  %v1571_v29 = vpop.f32.mrb[27].mxu0  ;;  %1858 = vrot.lane.b32.xlu0 %v1706_v23, %s5010_s2 }
 0x20c   :  { %v4821_v31 = vadd.f32 %v1571_v29, %v6284_v58  ;;  %1860 = vrot.lane.b32.xlu1 %v1707_v25, %s5010_s2 }
 0x20d   :  { %v1708_v32 = vmax.f32 %v6440_v28, 0.0 }
 0x20e   :  { %v1709_v34 = vmax.f32 %v4821_v31, 0.0  ;;  %v1575_v35 = vpop.f32.mrb[28].mxu0 }
 0x20f   :  { %v6449_v37 = vadd.f32 %v1575_v35, %v6280_v57  ;;  %v1577_v38 = vpop.f32.mrb[29].mxu0  ;;  %1862 = vrot.lane.b32.xlu0 %v1708_v32, %s5010_s2 }
 0x210   :  { %v4823_v40 = vadd.f32 %v1577_v38, %v6284_v58  ;;  %1864 = vrot.lane.b32.xlu1 %v1709_v34, %s5010_s2 }
 0x211   :  { %v1710_v41 = vmax.f32 %v6449_v37, 0.0 }
 0x212   :  { %v1711_v43 = vmax.f32 %v4823_v40, 0.0  ;;  %v1581_v44 = vpop.f32.mrb[30].mxu0 }
 0x213   :  { %v6458_v46 = vadd.f32 %v1581_v44, %v6280_v57  ;;  %v1583_v47 = vpop.f32.mrb[31].mxu0  ;;  %1866 = vrot.lane.b32.xlu0 %v1710_v41, %s5010_s2 }
 0x214   :  { %v4825_v49 = vadd.f32 %v1583_v47, %v6284_v58  ;;  %1868 = vrot.lane.b32.xlu1 %v1711_v43, %s5010_s2 }
 0x215   :  { %v1712_v50 = vmax.f32 %v6458_v46, 0.0 }
 0x216   :  { %v1713_v52 = vmax.f32 %v4825_v49, 0.0  ;;  %v1587_v55 = vpop.f32.mrb[32].mxu0 }
 0x217   :  { %v6467_v61 = vadd.f32 %v1587_v55, %v6280_v57  ;;  %v1589_v62 = vpop.f32.mrb[33].mxu0  ;;  %1870 = vrot.lane.b32.xlu0 %v1712_v50, %s5010_s2 }
 0x218   :  { %v4827_v1 = vadd.f32 %v1589_v62, %v6284_v58  ;;  %1872 = vrot.lane.b32.xlu1 %v1713_v52, %s5010_s2 }
 0x219   :  { %v7842_v3 = vmax.f32 %v6467_v61, 0.0 }
 0x21a   :  { %v1715_v6 = vmax.f32 %v4827_v1, 0.0  ;;  %v1593_v7 = vpop.f32.mrb[34].mxu0 }
 0x21b   :  { %v6476_v11 = vadd.f32 %v1593_v7, %v6280_v57  ;;  %v1595_v13 = vpop.f32.mrb[35].mxu0  ;;  %1874 = vrot.lane.b32.xlu0 %v7842_v3, %s5010_s2 }
 0x21c   :  { %v4829_v16 = vadd.f32 %v1595_v13, %v6284_v58  ;;  %1876 = vrot.lane.b32.xlu1 %v1715_v6, %s5010_s2 }
 0x21d   :  { %v7840_v17 = vmax.f32 %v6476_v11, 0.0 }
 0x21e   :  { %v1717_v20 = vmax.f32 %v4829_v16, 0.0  ;;  %v1599_v22 = vpop.f32.mrb[36].mxu0 }
 0x21f   :  { %v6485_v25 = vadd.f32 %v1599_v22, %v6280_v57  ;;  %v1601_v26 = vpop.f32.mrb[37].mxu0  ;;  %1878 = vrot.lane.b32.xlu0 %v7840_v17, %s5010_s2 }
 0x220   :  { %v4831_v29 = vadd.f32 %v1601_v26, %v6284_v58  ;;  %1880 = vrot.lane.b32.xlu1 %v1717_v20, %s5010_s2 }
 0x221   :  { %v7839_v31 = vmax.f32 %v6485_v25, 0.0 }
 0x222   :  { %v1719_v34 = vmax.f32 %v4831_v29, 0.0  ;;  %v1605_v35 = vpop.f32.mrb[38].mxu0 }
 0x223   :  { %v6494_v38 = vadd.f32 %v1605_v35, %v6280_v57  ;;  %v1607_v40 = vpop.f32.mrb[39].mxu0  ;;  %1882 = vrot.lane.b32.xlu0 %v7839_v31, %s5010_s2  ;;  %v2722_v35 = vld [vmem:[%s7816_s3 + $0x18] sm:$0xff]  ;;  %v2752_v31 = vld [vmem:[%s7816_s3 + $0x108] sm:$0xff] }
 0x224   :  { %v4833_v43 = vadd.f32 %v1607_v40, %v6284_v58  ;;  %1884 = vrot.lane.b32.xlu1 %v1719_v34, %s5010_s2  ;;  %v2720_v34 = vld [vmem:[%s7816_s3 + $0x8] sm:$0xff] }
 0x225   :  { %v7836_v44 = vmax.f32 %v6494_v38, 0.0 }
 0x226   :  { %v1721_v47 = vmax.f32 %v4833_v43, 0.0  ;;  %v1611_v49 = vpop.f32.mrb[40].mxu0 }
 0x227   :  { %v6503_v52 = vadd.f32 %v1611_v49, %v6280_v57  ;;  %v1613_v55 = vpop.f32.mrb[41].mxu0  ;;  %1886 = vrot.lane.b32.xlu0 %v7836_v44, %s5010_s2  ;;  %v2719_v49 = vld [vmem:[%s7816_s3] sm:$0xff] }
 0x228   :  { %v4835_v62 = vadd.f32 %v1613_v55, %v6284_v58  ;;  %1888 = vrot.lane.b32.xlu1 %v1721_v47, %s5010_s2  ;;  %v4579_v47 = vpack.c.bf16 %v2722_v35, %v2720_v34  ;;  %v2721_v55 = vld [vmem:[%s7816_s3 + $0x10] sm:$0xff]  ;;  %v2726_v34 = vld [vmem:[%s7816_s3 + $0x38] sm:$0xff] }
 0x229   :  { %v7834_v1 = vmax.f32 %v6503_v52, 0.0 }
 0x22a   :  { %v1723_v6 = vmax.f32 %v4835_v62, 0.0  ;;  %v1617_v7 = vpop.f32.mrb[42].mxu0  ;;  %4580 = vmatprep.subr.bf16.mxu1 %v4579_v47  ;;  %v2723_v47 = vld [vmem:[%s7816_s3 + $0x20] sm:$0xff] }
 0x22b   :  { %v6512_v13 = vadd.f32 %v1617_v7, %v6280_v57  ;;  %v1619_v16 = vpop.f32.mrb[43].mxu0  ;;  %1890 = vrot.lane.b32.xlu0 %v7834_v1, %s5010_s2 }
 0x22c   :  { %v4837_v20 = vadd.f32 %v1619_v16, %v6284_v58  ;;  %1892 = vrot.lane.b32.xlu1 %v1723_v6, %s5010_s2  ;;  %v4581_v6 = vpack.c.bf16 %v2721_v55, %v2719_v49  ;;  %v2725_v49 = vld [vmem:[%s7816_s3 + $0x30] sm:$0xff] }
 0x22d   :  { %v7832_v22 = vmax.f32 %v6512_v13, 0.0 }
 0x22e   :  { %v1725_v26 = vmax.f32 %v4837_v20, 0.0  ;;  %v1623_v29 = vpop.f32.mrb[44].mxu0  ;;  %4582 = vmatpush1.bf16.msra.mxu1 %v4581_v6 }
 0x22f   :  { %v6527_v40 = vadd.f32 %v1623_v29, %v6280_v57  ;;  %v1625_v43 = vpop.f32.mrb[45].mxu0  ;;  %1894 = vrot.lane.b32.xlu0 %v7832_v22, %s5010_s2  ;;  %v2724_v29 = vld [vmem:[%s7816_s3 + $0x28] sm:$0xff] }
 0x230   :  { %v4839_v62 = vadd.f32 %v1625_v43, %v6284_v58  ;;  %1896 = vrot.lane.b32.xlu1 %v1725_v26, %s5010_s2  ;;  %v4583_v26 = vpack.c.bf16 %v2726_v34, %v2724_v29  ;;  %v2728_v29 = vld [vmem:[%s7816_s3 + $0x48] sm:$0xff]  ;;  %v2730_v34 = vld [vmem:[%s7816_s3 + $0x58] sm:$0xff] }
 0x231   :  { %v7830_v7 = vmax.f32 %v6527_v40, 0.0 }
 0x232   :  { %v1727_v16 = vmax.f32 %v4839_v62, 0.0  ;;  %v1629_v20 = vpop.f32.mrb[46].mxu0  ;;  %v4585_v62 = vpack.c.bf16 %v2725_v49, %v2723_v47  ;;  %4584 = vmatprep.subr.bf16.mxu1 %v4583_v26  ;;  %v2727_v26 = vld [vmem:[%s7816_s3 + $0x40] sm:$0xff]  ;;  %v2729_v47 = vld [vmem:[%s7816_s3 + $0x50] sm:$0xff] }
 0x233   :  { %v6548_v35 = vadd.f32 %v1629_v20, %v6280_v57  ;;  %v1631_v43 = vpop.f32.mrb[47].mxu0  ;;  %1898 = vrot.lane.b32.xlu0 %v7830_v7, %s5010_s2 }
 0x234   :  { %v4841_v55 = vadd.f32 %v1631_v43, %v6284_v58  ;;  %1900 = vrot.lane.b32.xlu1 %v1727_v16, %s5010_s2  ;;  %4586 = vmatpush1.bf16.msra.mxu1 %v4585_v62  ;;  %v4587_v16 = vpack.c.bf16 %v2730_v34, %v2728_v29  ;;  %v2732_v29 = vld [vmem:[%s7816_s3 + $0x68] sm:$0xff]  ;;  %v2734_v34 = vld [vmem:[%s7816_s3 + $0x78] sm:$0xff] }
 0x235   :  { %v7829_v6 = vmax.f32 %v6548_v35, 0.0 }
 0x236   :  { %v1729_v20 = vmax.f32 %v4841_v55, 0.0  ;;  %v1635_v10 = vpop.f32.mrb[48].mxu0  ;;  %4588 = vmatprep.subr.bf16.mxu1 %v4587_v16  ;;  %v2731_v16 = vld [vmem:[%s7816_s3 + $0x60] sm:$0xff] }
 0x237   :  { %v6569_v56 = vadd.f32 %v1635_v10, %v6280_v57  ;;  %v1637_v43 = vpop.f32.mrb[49].mxu0  ;;  %1902 = vrot.lane.b32.xlu0 %v7829_v6, %s5010_s2  ;;  %v4589_v10 = vpack.c.bf16 %v2729_v47, %v2727_v26  ;;  %v2733_v26 = vld [vmem:[%s7816_s3 + $0x70] sm:$0xff] }
 0x238   :  { %v4843_v49 = vadd.f32 %v1637_v43, %v6284_v58  ;;  %1904 = vrot.lane.b32.xlu1 %v1729_v20, %s5010_s2  ;;  %v4591_v20 = vpack.c.bf16 %v2734_v34, %v2732_v29  ;;  %v2736_v29 = vld [vmem:[%s7816_s3 + $0x88] sm:$0xff]  ;;  %v2738_v34 = vld [vmem:[%s7816_s3 + $0x98] sm:$0xff] }
 0x239   :  { %v7831_v55 = vmax.f32 %v6569_v56, 0.0  ;;  %4590 = vmatpush1.bf16.msra.mxu1 %v4589_v10 }
 0x23a   :  { %v1731_v62 = vmax.f32 %v4843_v49, 0.0  ;;  %v1641_v54 = vpop.f32.mrb[50].mxu0  ;;  %4592 = vmatprep.subr.bf16.mxu1 %v4591_v20  ;;  %v2735_v20 = vld [vmem:[%s7816_s3 + $0x80] sm:$0xff] }
 0x23b   :  { %v6590_v6 = vadd.f32 %v1641_v54, %v6280_v57  ;;  %v1643_v43 = vpop.f32.mrb[51].mxu0  ;;  %1906 = vrot.lane.b32.xlu0 %v7831_v55, %s5010_s2  ;;  %v4593_v54 = vpack.c.bf16 %v2733_v26, %v2731_v16  ;;  %v2737_v16 = vld [vmem:[%s7816_s3 + $0x90] sm:$0xff] }
 0x23c   :  { %v4845_v47 = vadd.f32 %v1643_v43, %v6284_v58  ;;  %1908 = vrot.lane.b32.xlu1 %v1731_v62, %s5010_s2  ;;  %v4595_v62 = vpack.c.bf16 %v2738_v34, %v2736_v29  ;;  %v2740_v29 = vld [vmem:[%s7816_s3 + $0xa8] sm:$0xff]  ;;  %v2742_v34 = vld [vmem:[%s7816_s3 + $0xb8] sm:$0xff] }
 0x23d   :  { %v7833_v49 = vmax.f32 %v6590_v6, 0.0  ;;  %4594 = vmatpush1.bf16.msra.mxu1 %v4593_v54 }
 0x23e   :  { %v1733_v10 = vmax.f32 %v4845_v47, 0.0  ;;  %v1647_v7 = vpop.f32.mrb[52].mxu0  ;;  %4596 = vmatprep.subr.bf16.mxu1 %v4595_v62  ;;  %v2739_v62 = vld [vmem:[%s7816_s3 + $0xa0] sm:$0xff] }
 0x23f   :  { %v6611_v55 = vadd.f32 %v1647_v7, %v6280_v57  ;;  %v1649_v43 = vpop.f32.mrb[53].mxu0  ;;  %1910 = vrot.lane.b32.xlu0 %v7833_v49, %s5010_s2  ;;  %v4597_v7 = vpack.c.bf16 %v2737_v16, %v2735_v20  ;;  %v2741_v20 = vld [vmem:[%s7816_s3 + $0xb0] sm:$0xff] }
 0x240   :  { %v4847_v26 = vadd.f32 %v1649_v43, %v6284_v58  ;;  %1912 = vrot.lane.b32.xlu1 %v1733_v10, %s5010_s2  ;;  %v4599_v10 = vpack.c.bf16 %v2742_v34, %v2740_v29  ;;  %v2744_v29 = vld [vmem:[%s7816_s3 + $0xc8] sm:$0xff]  ;;  %v2746_v34 = vld [vmem:[%s7816_s3 + $0xd8] sm:$0xff] }
 0x241   :  { %v7835_v47 = vmax.f32 %v6611_v55, 0.0  ;;  %4598 = vmatpush1.bf16.msra.mxu1 %v4597_v7 }
 0x242   :  { %v1735_v54 = vmax.f32 %v4847_v26, 0.0  ;;  %v1653_v22 = vpop.f32.mrb[54].mxu0  ;;  %4600 = vmatprep.subr.bf16.mxu1 %v4599_v10  ;;  %v2743_v10 = vld [vmem:[%s7816_s3 + $0xc0] sm:$0xff] }
 0x243   :  { %v6632_v49 = vadd.f32 %v1653_v22, %v6280_v57  ;;  %v1655_v43 = vpop.f32.mrb[55].mxu0  ;;  %1914 = vrot.lane.b32.xlu0 %v7835_v47, %s5010_s2  ;;  %v4601_v22 = vpack.c.bf16 %v2741_v20, %v2739_v62  ;;  %v2745_v62 = vld [vmem:[%s7816_s3 + $0xd0] sm:$0xff] }
 0x244   :  { %v4849_v16 = vadd.f32 %v1655_v43, %v6284_v58  ;;  %1916 = vrot.lane.b32.xlu1 %v1735_v54, %s5010_s2  ;;  %v4603_v54 = vpack.c.bf16 %v2746_v34, %v2744_v29  ;;  %v2748_v29 = vld [vmem:[%s7816_s3 + $0xe8] sm:$0xff]  ;;  %v2750_v34 = vld [vmem:[%s7816_s3 + $0xf8] sm:$0xff] }
 0x245   :  { %v7837_v26 = vmax.f32 %v6632_v49, 0.0  ;;  %4602 = vmatpush1.bf16.msra.mxu1 %v4601_v22 }
 0x246   :  { %v1737_v7 = vmax.f32 %v4849_v16, 0.0  ;;  %v1659_v1 = vpop.f32.mrb[56].mxu0  ;;  %4604 = vmatprep.subr.bf16.mxu1 %v4603_v54  ;;  %v2747_v54 = vld [vmem:[%s7816_s3 + $0xe0] sm:$0xff] }
 0x247   :  { %v6653_v47 = vadd.f32 %v1659_v1, %v6280_v57  ;;  %v1661_v43 = vpop.f32.mrb[57].mxu0  ;;  %1918 = vrot.lane.b32.xlu0 %v7837_v26, %s5010_s2  ;;  %v4605_v1 = vpack.c.bf16 %v2745_v62, %v2743_v10  ;;  %v2749_v10 = vld [vmem:[%s7816_s3 + $0xf0] sm:$0xff] }
 0x248   :  { %v4851_v20 = vadd.f32 %v1661_v43, %v6284_v58  ;;  %1920 = vrot.lane.b32.xlu1 %v1737_v7, %s5010_s2  ;;  %v4607_v7 = vpack.c.bf16 %v2750_v34, %v2748_v29 }
 0x249   :  { %v7838_v16 = vmax.f32 %v6653_v47, 0.0  ;;  %4606 = vmatpush1.bf16.msra.mxu1 %v4605_v1 }
 0x24a   :  { %v1739_v22 = vmax.f32 %v4851_v20, 0.0  ;;  %v1665_v44 = vpop.f32.mrb[58].mxu0  ;;  %4608 = vmatprep.subr.bf16.mxu1 %v4607_v7 }
 0x24b   :  { %v6674_v26 = vadd.f32 %v1665_v44, %v6280_v57  ;;  %v1667_v43 = vpop.f32.mrb[59].mxu0  ;;  %1922 = vrot.lane.b32.xlu0 %v7838_v16, %s5010_s2  ;;  %v4609_v44 = vpack.c.bf16 %v2749_v10, %v2747_v54 }
 0x24c   :  { %v4853_v62 = vadd.f32 %v1667_v43, %v6284_v58  ;;  %1924 = vrot.lane.b32.xlu1 %v1739_v22, %s5010_s2  ;;  %v2754_v43 = vld [vmem:[%s7816_s3 + $0x118] sm:$0xff] }
 0x24d   :  { %v7841_v20 = vmax.f32 %v6674_v26, 0.0  ;;  %v1811_v1 = vpop.permute.xlu0 %1810  ;;  %4610 = vmatpush1.bf16.msra.mxu1 %v4609_v44  ;;  %v4611_v7 = vpack.c.bf16 %v2754_v43, %v2752_v31  ;;  %v2753_v44 = vld [vmem:[%s7816_s3 + $0x110] sm:$0xff] }
 0x24e   :  { %v1741_v16 = vmax.f32 %v4853_v62, 0.0  ;;  %v1671_v29 = vpop.f32.mrb[60].mxu0  ;;  %v1813_v34 = vpop.permute.xlu1 %1812  ;;  %v2751_v62 = vld [vmem:[%s7816_s3 + $0x100] sm:$0xff] }
 0x24f   :  { %v6695_v22 = vadd.f32 %v1671_v29, %v6280_v57  ;;  %v1939_v54 = vsel %vm1938_vm7, %v1811_v1, %v1813_v34  ;;  %v1673_v10 = vpop.f32.mrb[61].mxu0  ;;  %1926 = vrot.lane.b32.xlu0 %v7841_v20, %s5010_s2  ;;  %v4613_v1 = vpack.c.bf16 %v2753_v44, %v2751_v62  ;;  %4612 = vmatprep.subr.bf16.mxu1 %v4611_v7  ;;  %v2755_v7 = vld [vmem:[%s7816_s3 + $0x120] sm:$0xff]  ;;  %v2757_v62 = vld [vmem:[%s7816_s3 + $0x130] sm:$0xff] }
 0x250   :  { %v2003_v29 = vmax.f32 %v1682_v63, %v1939_v54  ;;  %v4855_v17 = vadd.f32 %v1673_v10, %v6284_v58  ;;  %1928 = vrot.lane.b32.xlu1 %v1741_v16, %s5010_s2  ;;  %v2758_v63 = vld [vmem:[%s7816_s3 + $0x138] sm:$0xff] }
 0x251   :  { %v1742_v34 = vmax.f32 %v6695_v22, 0.0  ;;  %v1815_v20 = vpop.permute.xlu0 %1814  ;;  %4614 = vmatpush1.bf16.msra.mxu1 %v4613_v1 }
 0x252   :  { %2036 = vst.msk [vmem:[#allocation3] sm:$0xff] %vm2035_vm6, %v2003_v29  ;;  %v1743_v31 = vmax.f32 %v4855_v17, 0.0  ;;  %v1677_v43 = vpop.f32.mrb[62].mxu0  ;;  %v1817_v3 = vpop.permute.xlu1 %1816  ;;  %v4615_v17 = vpack.c.bf16 %v2758_v63, %v2756_v60  ;;  %v2760_v60 = vld [vmem:[%s7816_s3 + $0x148] sm:$0xff]  ;;  %v2761_v63 = vld [vmem:[%s7816_s3 + $0x150] sm:$0xff] }
 0x253   :  { %v6720_v16 = vadd.f32 %v1677_v43, %v6280_v57  ;;  %v1940_v54 = vsel %vm1938_vm7, %v1815_v20, %v1817_v3  ;;  %v1679_v10 = vpop.f32.mrb[63].mxu0  ;;  %1930 = vrot.lane.b32.xlu0 %v1742_v34, %s5010_s2  ;;  %v4617_v3 = vpack.c.bf16 %v2757_v62, %v2755_v7  ;;  %v2766_v7 = vld [vmem:[%s7816_s3 + $0x178] sm:$0xff]  ;;  %v2763_v62 = vld [vmem:[%s7816_s3 + $0x160] sm:$0xff] }
 0x254   :  { %v2004_v57 = vmax.f32 %v1684_v5, %v1940_v54  ;;  %v4857_v44 = vadd.f32 %v1679_v10, %v6284_v58  ;;  %1932 = vrot.lane.b32.xlu1 %v1743_v31, %s5010_s2  ;;  %4616 = vmatprep.subr.bf16.mxu1 %v4615_v17  ;;  %v2762_v58 = vld [vmem:[%s7816_s3 + $0x158] sm:$0xff]  ;;  %v2759_v31 = vld [vmem:[%s7816_s3 + $0x140] sm:$0xff]  ;;  %v2764_v17 = vld [vmem:[%s7816_s3 + $0x168] sm:$0xff] }
 0x255   :  { %v1744_v20 = vmax.f32 %v6720_v16, 0.0  ;;  %v1819_v29 = vpop.permute.xlu0 %1818  ;;  %4618 = vmatpush1.bf16.msra.mxu1 %v4617_v3  ;;  %v4619_v5 = vpack.c.bf16 %v2762_v58, %v2760_v60  ;;  %v4621_v10 = vpack.c.bf16 %v2761_v63, %v2759_v31  ;;  %v2770_v3 = vld [vmem:[%s7816_s3 + $0x198] sm:$0xff] }
 0x256   :  { %2037 = vst.msk [vmem:[#allocation3 + $0x8] sm:$0xff] %vm2035_vm6, %v2004_v57  ;;  %v1745_v1 = vmax.f32 %v4857_v44, 0.0  ;;  %v1821_v43 = vpop.permute.xlu1 %1820  ;;  %v4623_v44 = vpack.c.bf16 %v2766_v7, %v2764_v17 }
 0x257   :  { %v1941_v2 = vsel %vm1938_vm7, %v1819_v29, %v1821_v43  ;;  %1934 = vrot.lane.b32.xlu0 %v1744_v20, %s5010_s2  ;;  %4620 = vmatprep.subr.bf16.mxu1 %v4619_v5 }
 0x258   :  { %v2005_v54 = vmax.f32 %v1686_v12, %v1941_v2  ;;  %1936 = vrot.lane.b32.xlu1 %v1745_v1, %s5010_s2  ;;  %v2768_v12 = vld [vmem:[%s7816_s3 + $0x188] sm:$0xff]  ;;  %v4625_v1 = vpack.c.bf16 %v2765_v8, %v2763_v62  ;;  %v2774_v8 = vld [vmem:[%s7816_s3 + $0x1b8] sm:$0xff] }
 0x259   :  { %v1823_v57 = vpop.permute.xlu0 %1822  ;;  %4622 = vmatpush1.bf16.msra.mxu1 %v4621_v10  ;;  %v4627_v60 = vpack.c.bf16 %v2770_v3, %v2768_v12  ;;  %v2767_v10 = vld [vmem:[%s7816_s3 + $0x180] sm:$0xff]  ;;  %v2773_v3 = vld [vmem:[%s7816_s3 + $0x1b0] sm:$0xff] }
 0x25a   :  { %2038 = vst.msk [vmem:[#allocation3 + $0x10] sm:$0xff] %vm2035_vm6, %v2005_v54  ;;  %v1825_v29 = vpop.permute.xlu1 %1824  ;;  %4624 = vmatprep.subr.bf16.mxu1 %v4623_v44  ;;  %v4629_v7 = vpack.c.bf16 %v2769_v15, %v2767_v10  ;;  %v2772_v44 = vld [vmem:[%s7816_s3 + $0x1a8] sm:$0xff]  ;;  %v2775_v10 = vld [vmem:[%s7816_s3 + $0x1c0] sm:$0xff]  ;;  %v2777_v15 = vld [vmem:[%s7816_s3 + $0x1d0] sm:$0xff] }
 0x25b   :  { %v1942_v43 = vsel %vm1938_vm7, %v1823_v57, %v1825_v29  ;;  %v4631_v21 = vpack.c.bf16 %v2774_v8, %v2772_v44 }
 0x25c   :  { %v2006_v58 = vmax.f32 %v1688_v18, %v1942_v43 }
 0x25d   :  { %v2068_v2 = vld [vmem:[#allocation3] ss:$2 sm:$0xff]  ;;  %v2100_v5 = vld [vmem:[#allocation3 + $0x1] ss:$2 sm:$0xff]  ;;  %v1827_v31 = vpop.permute.xlu0 %1826  ;;  %4626 = vmatpush1.bf16.msra.mxu1 %v4625_v1 }
 0x25e   :  { %v2131_v63 = vmax.f32 %v2068_v2, %v2100_v5  ;;  %2039 = vst.msk [vmem:[#allocation3 + $0x18] sm:$0xff] %vm2035_vm6, %v2006_v58  ;;  %v1829_v17 = vpop.permute.xlu1 %1828  ;;  %4628 = vmatprep.subr.bf16.mxu1 %v4627_v60 }
 0x25f   :  { %v1943_v54 = vsel %vm1938_vm7, %v1827_v31, %v1829_v17  ;;  %v2776_v17 = vld [vmem:[%s7816_s3 + $0x1c8] sm:$0xff] }
 0x260   :  { %v2007_v18 = vmax.f32 %v1690_v24, %v1943_v54  ;;  %2167 = vst.msk [vmem:[#allocation4] sm:$0xff] %vm2035_vm6, %v2131_v63  ;;  %v2771_v24 = vld [vmem:[%s7816_s3 + $0x1a0] sm:$0xff]  ;;  %v4635_v54 = vpack.c.bf16 %v2778_v27, %v2776_v17 }
 0x261   :  { %v1831_v62 = vpop.permute.xlu0 %1830  ;;  %4630 = vmatpush1.bf16.msra.mxu1 %v4629_v7  ;;  %v4633_v1 = vpack.c.bf16 %v2773_v3, %v2771_v24  ;;  %v4637_v7 = vpack.c.bf16 %v2777_v15, %v2775_v10 }
 0x262   :  { %2040 = vst.msk [vmem:[#allocation3 + $0x20] sm:$0xff] %vm2035_vm6, %v2007_v18  ;;  %v1833_v57 = vpop.permute.xlu1 %1832  ;;  %4632 = vmatprep.subr.bf16.mxu1 %v4631_v21  ;;  %v2781_v21 = vld [vmem:[%s7816_s3 + $0x1f0] sm:$0xff] }
 0x263   :  { %v1944_v12 = vsel %vm1938_vm7, %v1831_v62, %v1833_v57  ;;  %v2782_v57 = vld [vmem:[%s7816_s3 + $0x1f8] sm:$0xff] }
 0x264   :  { %v2008_v29 = vmax.f32 %v1692_v30, %v1944_v12  ;;  %v2779_v12 = vld [vmem:[%s7816_s3 + $0x1e0] sm:$0xff] }
 0x265   :  { %v2070_v43 = vld [vmem:[#allocation3 + $0x10] ss:$2 sm:$0xff]  ;;  %v2102_v60 = vld [vmem:[#allocation3 + $0x11] ss:$2 sm:$0xff]  ;;  %v1835_v58 = vpop.permute.xlu0 %1834  ;;  %4634 = vmatpush1.bf16.msra.mxu1 %v4633_v1  ;;  %v4641_v1 = vpack.c.bf16 %v2781_v21, %v2779_v12 }
 0x266   :  { %v2132_v2 = vmax.f32 %v2070_v43, %v2102_v60  ;;  %2041 = vst.msk [vmem:[#allocation3 + $0x28] sm:$0xff] %vm2035_vm6, %v2008_v29  ;;  %v1837_v5 = vpop.permute.xlu1 %1836  ;;  %4636 = vmatprep.subr.bf16.mxu1 %v4635_v54 }
 0x267   :  { %v1945_v31 = vsel %vm1938_vm7, %v1835_v58, %v1837_v5  ;;  %v2184_v63 = vld [vmem:[#allocation4] sm:$0xff] }
 0x268   :  { %v2009_v30 = vmax.f32 %v1694_v36, %v1945_v31  ;;  %2169 = vst.msk [vmem:[#allocation4 + $0x8] sm:$0x3f] %vm2168_vm8, %v2132_v2  ;;  %v2780_v36 = vld [vmem:[%s7816_s3 + $0x1e8] sm:$0xff] }
 0x269   :  { %2186 = vst.msk [vmem:[#allocation5] sm:$0xff] %vm2035_vm6, %v2184_v63  ;;  %v1839_v18 = vpop.permute.xlu0 %1838  ;;  %4638 = vmatpush1.bf16.msra.mxu1 %v4637_v7  ;;  %v4639_v8 = vpack.c.bf16 %v2782_v57, %v2780_v36 }
 0x26a   :  { %2042 = vst.msk [vmem:[#allocation3 + $0x30] sm:$0xff] %vm2035_vm6, %v2009_v30  ;;  %v1841_v62 = vpop.permute.xlu1 %1840 }
 0x26b   :  { %v1946_v33 = vsel %vm1938_vm7, %v1839_v18, %v1841_v62  ;;  %4640 = vmatprep.subr.bf16.mxu1 %v4639_v8 }
 0x26c   :  { %v2010_v44 = vmax.f32 %v1696_v42, %v1946_v33 }
 0x26d   :  { %v2072_v24 = vld [vmem:[#allocation3 + $0x20] ss:$2 sm:$0xff]  ;;  %v2104_v3 = vld [vmem:[#allocation3 + $0x21] ss:$2 sm:$0xff]  ;;  %v1843_v29 = vpop.permute.xlu0 %1842  ;;  %4642 = vmatpush1.bf16.msra.mxu1 %v4641_v1 }
 0x26e   :  { %v2133_v43 = vmax.f32 %v2072_v24, %v2104_v3  ;;  %2043 = vst.msk [vmem:[#allocation3 + $0x38] sm:$0xff] %vm2035_vm6, %v2010_v44  ;;  %v1845_v60 = vpop.permute.xlu1 %1844 }
 0x26f   :  { %v1947_v39 = vsel %vm1938_vm7, %v1843_v29, %v1845_v60  ;;  %v2330_v42 = vld [vmem:[#allocation4 + $0x2] sm:$0xff]  ;;  %v2428_v62 = vld [vmem:[#allocation4 + $0xb] sm:$0xff] }
 0x270   :  { %v2216_v58 = vld [vmem:[#allocation4 + $0x1] sm:$0xff]  ;;  %v2011_v2 = vmax.f32 %v1698_v48, %v1947_v39  ;;  %2334 = vrot.lane.b32.xlu1 %v2330_v42, %s5012_s17  ;;  %2170 = vst.msk [vmem:[#allocation4 + $0x14] sm:$0xff] %vm2035_vm6, %v2133_v43  ;;  %v2217_v27 = vld [vmem:[#allocation4 + $0x9] sm:$0xff] }
 0x271   :  { %2220 = vrot.lane.b32.xlu0 %v2216_v58, %s5013_s18  ;;  %v1847_v5 = vpop.permute.xlu0 %1846  ;;  %v2185_v31 = vld [vmem:[#allocation4 + $0x8] sm:$0xff] }
 0x272   :  { %2044 = vst.msk [vmem:[#allocation3 + $0x40] sm:$0xff] %vm2035_vm6, %v2011_v2  ;;  %v1849_v63 = vpop.permute.xlu1 %1848  ;;  %2187 = vst.msk [vmem:[#allocation5 + $0x20] sm:$0xff] %vm2035_vm6, %v2185_v31  ;;  %v2427_v45 = vld [vmem:[#allocation4 + $0x3] sm:$0xff] }
 0x273   :  { %v1948_v17 = vsel %vm1938_vm7, %v1847_v5, %v1849_v63  ;;  %v2331_v33 = vld [vmem:[#allocation4 + $0xa] sm:$0xff] }
 0x274   :  { %v2012_v48 = vmax.f32 %v1700_v59, %v1948_v17  ;;  %2222 = vrot.lane.b32.xlu1 %v2217_v27, %s5013_s18 }
 0x275   :  { %2431 = vrot.lane.b32.xlu0 %v2427_v45, %s5014_s19  ;;  %v2074_v30 = vld [vmem:[#allocation3 + $0x30] ss:$2 sm:$0xff]  ;;  %v2106_v54 = vld [vmem:[#allocation3 + $0x31] ss:$2 sm:$0xff]  ;;  %v1851_v10 = vpop.permute.xlu0 %1850 }
 0x276   :  { %v2134_v15 = vmax.f32 %v2074_v30, %v2106_v54  ;;  %2045 = vst.msk [vmem:[#allocation3 + $0x48] sm:$0xff] %vm2035_vm6, %v2012_v48  ;;  %v1853_v18 = vpop.permute.xlu1 %1852 }
 0x277   :  { %v1949_v7 = vsel %vm1938_vm7, %v1851_v10, %v1853_v18  ;;  %v2188_v36 = vld [vmem:[#allocation4 + $0x14] sm:$0xff] }
 0x278   :  { %2171 = vst.msk [vmem:[#allocation4 + $0x1c] sm:$0x3f] %vm2168_vm8, %v2134_v15  ;;  %v2013_v51 = vmax.f32 %v1702_v4, %v1949_v7  ;;  %2433 = vrot.lane.b32.xlu1 %v2428_v62, %s5014_s19 }
 0x279   :  { %2336 = vrot.lane.b32.xlu0 %v2331_v33, %s5012_s17  ;;  %2190 = vst.msk [vmem:[#allocation5 + $0x40] sm:$0xff] %vm2035_vm6, %v2188_v36  ;;  %v1855_v59 = vpop.permute.xlu0 %1854 }
 0x27a   :  { %2046 = vst.msk [vmem:[#allocation3 + $0x50] sm:$0xff] %vm2035_vm6, %v2013_v51  ;;  %v1857_v57 = vpop.permute.xlu1 %1856  ;;  %v7843_v51 = vmax.f32 %v6467_v61, 0.0 }
 0x27b   :  { %v1950_v44 = vsel %vm1938_vm7, %v1855_v59, %v1857_v57 }
 0x27c   :  { %v2014_v8 = vmax.f32 %v1704_v14, %v1950_v44 }
 0x27d   :  { %v2076_v12 = vld [vmem:[#allocation3 + $0x40] ss:$2 sm:$0xff]  ;;  %v2108_v21 = vld [vmem:[#allocation3 + $0x41] ss:$2 sm:$0xff]  ;;  %v1859_v24 = vpop.permute.xlu0 %1858 }
 0x27e   :  { %v2135_v0 = vmax.f32 %v2076_v12, %v2108_v21  ;;  %2047 = vst.msk [vmem:[#allocation3 + $0x58] sm:$0xff] %vm2035_vm6, %v2014_v8  ;;  %v1861_v4 = vpop.permute.xlu1 %1860  ;;  %v7844_v21 = vmax.f32 %v6476_v11, 0.0  ;;  %v7845_v11 = vmax.f32 %v6485_v25, 0.0 }
 0x27f   :  { %v1951_v3 = vsel %vm1938_vm7, %v1859_v24, %v1861_v4  ;;  %v2343_v29 = vld [vmem:[#allocation4 + $0x16] sm:$0xff]  ;;  %v2444_v27 = vld [vmem:[#allocation4 + $0x1f] sm:$0xff] }
 0x280   :  { %v2232_v1 = vld [vmem:[#allocation4 + $0x15] sm:$0xff]  ;;  %2172 = vst.msk [vmem:[#allocation4 + $0x28] sm:$0xff] %vm2035_vm6, %v2135_v0  ;;  %v2015_v43 = vmax.f32 %v1706_v23, %v1951_v3  ;;  %2347 = vrot.lane.b32.xlu1 %v2343_v29, %s5012_s17  ;;  %v2233_v42 = vld [vmem:[#allocation4 + $0x1d] sm:$0xff] }
 0x281   :  { %2236 = vrot.lane.b32.xlu0 %v2232_v1, %s5013_s18  ;;  %v1863_v9 = vpop.permute.xlu0 %1862  ;;  %v2189_v14 = vld [vmem:[#allocation4 + $0x1c] sm:$0xff] }
 0x282   :  { %2048 = vst.msk [vmem:[#allocation3 + $0x60] sm:$0xff] %vm2035_vm6, %v2015_v43  ;;  %v1865_v60 = vpop.permute.xlu1 %1864  ;;  %2191 = vst.msk [vmem:[#allocation5 + $0x60] sm:$0xff] %vm2035_vm6, %v2189_v14  ;;  %v2443_v58 = vld [vmem:[#allocation4 + $0x17] sm:$0xff] }
 0x283   :  { %v1952_v39 = vsel %vm1938_vm7, %v1863_v9, %v1865_v60  ;;  %v2344_v45 = vld [vmem:[#allocation4 + $0x1e] sm:$0xff] }
 0x284   :  { %v2016_v2 = vmax.f32 %v1708_v32, %v1952_v39  ;;  %2238 = vrot.lane.b32.xlu1 %v2233_v42, %s5013_s18 }
 0x285   :  { %2447 = vrot.lane.b32.xlu0 %v2443_v58, %s5014_s19  ;;  %v2078_v19 = vld [vmem:[#allocation3 + $0x50] ss:$2 sm:$0xff]  ;;  %v2110_v23 = vld [vmem:[#allocation3 + $0x51] ss:$2 sm:$0xff]  ;;  %v1867_v5 = vpop.permute.xlu0 %1866 }
 0x286   :  { %v2136_v31 = vmax.f32 %v2078_v19, %v2110_v23  ;;  %2049 = vst.msk [vmem:[#allocation3 + $0x68] sm:$0xff] %vm2035_vm6, %v2016_v2  ;;  %v1869_v63 = vpop.permute.xlu1 %1868  ;;  %v7846_v2 = vmax.f32 %v6494_v38, 0.0 }
 0x287   :  { %v1953_v17 = vsel %vm1938_vm7, %v1867_v5, %v1869_v63  ;;  %v2192_v48 = vld [vmem:[#allocation4 + $0x28] sm:$0xff] }
 0x288   :  { %2173 = vst.msk [vmem:[#allocation4 + $0x30] sm:$0x3f] %vm2168_vm8, %v2136_v31  ;;  %v2017_v28 = vmax.f32 %v1710_v41, %v1953_v17  ;;  %2449 = vrot.lane.b32.xlu1 %v2444_v27, %s5014_s19 }
 0x289   :  { %2349 = vrot.lane.b32.xlu0 %v2344_v45, %s5012_s17  ;;  %2194 = vst.msk [vmem:[#allocation5 + $0x80] sm:$0xff] %vm2035_vm6, %v2192_v48  ;;  %v1871_v32 = vpop.permute.xlu0 %1870  ;;  %v7847_v48 = vmax.f32 %v6503_v52, 0.0 }
 0x28a   :  { %2050 = vst.msk [vmem:[#allocation3 + $0x70] sm:$0xff] %vm2035_vm6, %v2017_v28  ;;  %v1873_v30 = vpop.permute.xlu1 %1872 }
 0x28b   :  { %v1954_v54 = vsel %vm1938_vm7, %v1871_v32, %v1873_v30 }
 0x28c   :  { %v2018_v10 = vmax.f32 %v1712_v50, %v1954_v54 }
 0x28d   :  { %v2080_v15 = vld [vmem:[#allocation3 + $0x60] ss:$2 sm:$0xff]  ;;  %v2112_v18 = vld [vmem:[#allocation3 + $0x61] ss:$2 sm:$0xff]  ;;  %v1875_v7 = vpop.permute.xlu0 %1874 }
 0x28e   :  { %v2137_v37 = vmax.f32 %v2080_v15, %v2112_v18  ;;  %2051 = vst.msk [vmem:[#allocation3 + $0x78] sm:$0xff] %vm2035_vm6, %v2018_v10  ;;  %v1877_v41 = vpop.permute.xlu1 %1876  ;;  %v7848_v18 = vmax.f32 %v6512_v13, 0.0  ;;  %v2784_v13 = vld [vmem:[%s7816_s3 + $0x208] sm:$0xff] }
 0x28f   :  { %v1955_v62 = vsel %vm1938_vm7, %v1875_v7, %v1877_v41  ;;  %v2355_v33 = vld [vmem:[#allocation4 + $0x2a] sm:$0xff]  ;;  %v2458_v43 = vld [vmem:[#allocation4 + $0x33] sm:$0xff] }
 0x290   :  { %v2246_v36 = vld [vmem:[#allocation4 + $0x29] sm:$0xff]  ;;  %2174 = vst.msk [vmem:[#allocation4 + $0x3c] sm:$0xff] %vm2035_vm6, %v2137_v37  ;;  %v2019_v59 = vmax.f32 %v7843_v51, %v1955_v62  ;;  %2359 = vrot.lane.b32.xlu1 %v2355_v33, %s5012_s17  ;;  %v2247_v8 = vld [vmem:[#allocation4 + $0x31] sm:$0xff] }
 0x291   :  { %2250 = vrot.lane.b32.xlu0 %v2246_v36, %s5013_s18  ;;  %v1879_v46 = vpop.permute.xlu0 %1878  ;;  %v2193_v50 = vld [vmem:[#allocation4 + $0x30] sm:$0xff] }
 0x292   :  { %2052 = vst.msk [vmem:[#allocation3 + $0x80] sm:$0xff] %vm2035_vm6, %v2019_v59  ;;  %v1881_v57 = vpop.permute.xlu1 %1880  ;;  %2195 = vst.msk [vmem:[#allocation5 + $0xa0] sm:$0xff] %vm2035_vm6, %v2193_v50  ;;  %v2457_v12 = vld [vmem:[#allocation4 + $0x2b] sm:$0xff]  ;;  %v2786_v50 = vld [vmem:[%s7816_s3 + $0x218] sm:$0xff] }
 0x293   :  { %v1956_v44 = vsel %vm1938_vm7, %v1879_v46, %v1881_v57  ;;  %v2356_v9 = vld [vmem:[#allocation4 + $0x32] sm:$0xff]  ;;  %v7849_v57 = vmax.f32 %v6527_v40, 0.0 }
 0x294   :  { %v2020_v24 = vmax.f32 %v7844_v21, %v1956_v44  ;;  %2252 = vrot.lane.b32.xlu1 %v2247_v8, %s5013_s18  ;;  %v4643_v8 = vpack.c.bf16 %v2786_v50, %v2784_v13 }
 0x295   :  { %2461 = vrot.lane.b32.xlu0 %v2457_v12, %s5014_s19  ;;  %v2082_v61 = vld [vmem:[#allocation3 + $0x70] ss:$2 sm:$0xff]  ;;  %v2114_v0 = vld [vmem:[#allocation3 + $0x71] ss:$2 sm:$0xff]  ;;  %v1883_v4 = vpop.permute.xlu0 %1882 }
 0x296   :  { %v2138_v3 = vmax.f32 %v2082_v61, %v2114_v0  ;;  %2053 = vst.msk [vmem:[#allocation3 + $0x88] sm:$0xff] %vm2035_vm6, %v2020_v24  ;;  %v1885_v29 = vpop.permute.xlu1 %1884  ;;  %4644 = vmatprep.subr.bf16.mxu1 %v4643_v8  ;;  %v7850_v61 = vmax.f32 %v6548_v35, 0.0 }
 0x297   :  { %v1957_v1 = vsel %vm1938_vm7, %v1883_v4, %v1885_v29  ;;  %v2196_v14 = vld [vmem:[#allocation4 + $0x3c] sm:$0xff] }
 0x298   :  { %2175 = vst.msk [vmem:[#allocation4 + $0x44] sm:$0x3f] %vm2168_vm8, %v2138_v3  ;;  %v2021_v60 = vmax.f32 %v7845_v11, %v1957_v1  ;;  %2463 = vrot.lane.b32.xlu1 %v2458_v43, %s5014_s19  ;;  %v7851_v11 = vmax.f32 %v6569_v56, 0.0 }
 0x299   :  { %2361 = vrot.lane.b32.xlu0 %v2356_v9, %s5012_s17  ;;  %2198 = vst.msk [vmem:[#allocation5 + $0xc0] sm:$0xff] %vm2035_vm6, %v2196_v14  ;;  %v1887_v39 = vpop.permute.xlu0 %1886 }
 0x29a   :  { %2054 = vst.msk [vmem:[#allocation3 + $0x90] sm:$0xff] %vm2035_vm6, %v2021_v60  ;;  %v1889_v42 = vpop.permute.xlu1 %1888 }
 0x29b   :  { %v1958_v58 = vsel %vm1938_vm7, %v1887_v39, %v1889_v42 }
 0x29c   :  { %v2022_v19 = vmax.f32 %v7846_v2, %v1958_v58 }
 0x29d   :  { %v2084_v23 = vld [vmem:[#allocation3 + $0x80] ss:$2 sm:$0xff]  ;;  %v2116_v5 = vld [vmem:[#allocation3 + $0x81] ss:$2 sm:$0xff]  ;;  %v1891_v31 = vpop.permute.xlu0 %1890 }
 0x29e   :  { %v2139_v25 = vmax.f32 %v2084_v23, %v2116_v5  ;;  %2055 = vst.msk [vmem:[#allocation3 + $0x98] sm:$0xff] %vm2035_vm6, %v2022_v19  ;;  %v1893_v63 = vpop.permute.xlu1 %1892  ;;  %v7852_v23 = vmax.f32 %v6590_v6, 0.0  ;;  %v7853_v6 = vmax.f32 %v6611_v55, 0.0 }
 0x29f   :  { %v1959_v17 = vsel %vm1938_vm7, %v1891_v31, %v1893_v63  ;;  %v2367_v27 = vld [vmem:[#allocation4 + $0x3e] sm:$0xff]  ;;  %v2472_v36 = vld [vmem:[#allocation4 + $0x47] sm:$0xff] }
 0x2a0   :  { %v2260_v45 = vld [vmem:[#allocation4 + $0x3d] sm:$0xff]  ;;  %2176 = vst.msk [vmem:[#allocation4 + $0x50] sm:$0xff] %vm2035_vm6, %v2139_v25  ;;  %v2023_v28 = vmax.f32 %v7847_v48, %v1959_v17  ;;  %2371 = vrot.lane.b32.xlu1 %v2367_v27, %s5012_s17  ;;  %v2261_v10 = vld [vmem:[#allocation4 + $0x45] sm:$0xff] }
 0x2a1   :  { %2264 = vrot.lane.b32.xlu0 %v2260_v45, %s5013_s18  ;;  %v1895_v38 = vpop.permute.xlu0 %1894  ;;  %v2197_v32 = vld [vmem:[#allocation4 + $0x44] sm:$0xff] }
 0x2a2   :  { %2056 = vst.msk [vmem:[#allocation3 + $0xa0] sm:$0xff] %vm2035_vm6, %v2023_v28  ;;  %v1897_v30 = vpop.permute.xlu1 %1896  ;;  %2199 = vst.msk [vmem:[#allocation5 + $0xe0] sm:$0xff] %vm2035_vm6, %v2197_v32  ;;  %v2471_v15 = vld [vmem:[#allocation4 + $0x3f] sm:$0xff] }
 0x2a3   :  { %v1960_v54 = vsel %vm1938_vm7, %v1895_v38, %v1897_v30  ;;  %v2368_v51 = vld [vmem:[#allocation4 + $0x46] sm:$0xff] }
 0x2a4   :  { %v2024_v7 = vmax.f32 %v7848_v18, %v1960_v54  ;;  %2266 = vrot.lane.b32.xlu1 %v2261_v10, %s5013_s18  ;;  %v7854_v10 = vmax.f32 %v6632_v49, 0.0 }
 0x2a5   :  { %2475 = vrot.lane.b32.xlu0 %v2471_v15, %s5014_s19  ;;  %v2086_v52 = vld [vmem:[#allocation3 + $0x90] ss:$2 sm:$0xff]  ;;  %v2118_v37 = vld [vmem:[#allocation3 + $0x91] ss:$2 sm:$0xff]  ;;  %v1899_v41 = vpop.permute.xlu0 %1898 }
 0x2a6   :  { %v2140_v62 = vmax.f32 %v2086_v52, %v2118_v37  ;;  %2057 = vst.msk [vmem:[#allocation3 + $0xa8] sm:$0xff] %vm2035_vm6, %v2024_v7  ;;  %v1901_v33 = vpop.permute.xlu1 %1900 }
 0x2a7   :  { %v1961_v59 = vsel %vm1938_vm7, %v1899_v41, %v1901_v33  ;;  %v2200_v46 = vld [vmem:[#allocation4 + $0x50] sm:$0xff] }
 0x2a8   :  { %2177 = vst.msk [vmem:[#allocation4 + $0x58] sm:$0x3f] %vm2168_vm8, %v2140_v62  ;;  %v2025_v44 = vmax.f32 %v7849_v57, %v1961_v59  ;;  %2477 = vrot.lane.b32.xlu1 %v2472_v36, %s5014_s19  ;;  %v7855_v36 = vmax.f32 %v6653_v47, 0.0 }
 0x2a9   :  { %2373 = vrot.lane.b32.xlu0 %v2368_v51, %s5012_s17  ;;  %2202 = vst.msk [vmem:[#allocation5 + $0x100] sm:$0xff] %vm2035_vm6, %v2200_v46  ;;  %v1903_v12 = vpop.permute.xlu0 %1902 }
 0x2aa   :  { %2058 = vst.msk [vmem:[#allocation3 + $0xb0] sm:$0xff] %vm2035_vm6, %v2025_v44  ;;  %v1905_v21 = vpop.permute.xlu1 %1904  ;;  %v7856_v44 = vmax.f32 %v6674_v26, 0.0 }
 0x2ab   :  { %v1962_v24 = vsel %vm1938_vm7, %v1903_v12, %v1905_v21 }
 0x2ac   :  { %v2026_v0 = vmax.f32 %v7850_v61, %v1962_v24 }
 0x2ad   :  { %v2088_v4 = vld [vmem:[#allocation3 + $0xa0] ss:$2 sm:$0xff]  ;;  %v2120_v40 = vld [vmem:[#allocation3 + $0xa1] ss:$2 sm:$0xff]  ;;  %v1907_v3 = vpop.permute.xlu0 %1906 }
 0x2ae   :  { %v2141_v29 = vmax.f32 %v2088_v4, %v2120_v40  ;;  %2059 = vst.msk [vmem:[#allocation3 + $0xb8] sm:$0xff] %vm2035_vm6, %v2026_v0  ;;  %v1909_v1 = vpop.permute.xlu1 %1908 }
 0x2af   :  { %v1963_v43 = vsel %vm1938_vm7, %v1907_v3, %v1909_v1  ;;  %v2379_v9 = vld [vmem:[#allocation4 + $0x52] sm:$0xff]  ;;  %v2486_v45 = vld [vmem:[#allocation4 + $0x5b] sm:$0xff] }
 0x2b0   :  { %v2274_v14 = vld [vmem:[#allocation4 + $0x51] sm:$0xff]  ;;  %2178 = vst.msk [vmem:[#allocation4 + $0x64] sm:$0xff] %vm2035_vm6, %v2141_v29  ;;  %v2027_v60 = vmax.f32 %v7851_v11, %v1963_v43  ;;  %2383 = vrot.lane.b32.xlu1 %v2379_v9, %s5012_s17  ;;  %v2275_v2 = vld [vmem:[#allocation4 + $0x59] sm:$0xff] }
 0x2b1   :  { %2278 = vrot.lane.b32.xlu0 %v2274_v14, %s5013_s18  ;;  %v1911_v35 = vpop.permute.xlu0 %1910  ;;  %v2201_v39 = vld [vmem:[#allocation4 + $0x58] sm:$0xff] }
 0x2b2   :  { %2060 = vst.msk [vmem:[#allocation3 + $0xc0] sm:$0xff] %vm2035_vm6, %v2027_v60  ;;  %v1913_v42 = vpop.permute.xlu1 %1912  ;;  %2203 = vst.msk [vmem:[#allocation5 + $0x120] sm:$0xff] %vm2035_vm6, %v2201_v39  ;;  %v2485_v19 = vld [vmem:[#allocation4 + $0x53] sm:$0xff] }
 0x2b3   :  { %v1964_v58 = vsel %vm1938_vm7, %v1911_v35, %v1913_v42  ;;  %v2380_v48 = vld [vmem:[#allocation4 + $0x5a] sm:$0xff] }
 0x2b4   :  { %v2028_v5 = vmax.f32 %v7852_v23, %v1964_v58  ;;  %2280 = vrot.lane.b32.xlu1 %v2275_v2, %s5013_s18 }
 0x2b5   :  { %2489 = vrot.lane.b32.xlu0 %v2485_v19, %s5014_s19  ;;  %v2090_v56 = vld [vmem:[#allocation3 + $0xb0] ss:$2 sm:$0xff]  ;;  %v2122_v31 = vld [vmem:[#allocation3 + $0xb1] ss:$2 sm:$0xff]  ;;  %v1915_v25 = vpop.permute.xlu0 %1914 }
 0x2b6   :  { %v2142_v63 = vmax.f32 %v2090_v56, %v2122_v31  ;;  %2061 = vst.msk [vmem:[#allocation3 + $0xc8] sm:$0xff] %vm2035_vm6, %v2028_v5  ;;  %v1917_v17 = vpop.permute.xlu1 %1916 }
 0x2b7   :  { %v1965_v27 = vsel %vm1938_vm7, %v1915_v25, %v1917_v17  ;;  %v2204_v28 = vld [vmem:[#allocation4 + $0x64] sm:$0xff] }
 0x2b8   :  { %2179 = vst.msk [vmem:[#allocation4 + $0x6c] sm:$0x3f] %vm2168_vm8, %v2142_v63  ;;  %v2029_v38 = vmax.f32 %v7853_v6, %v1965_v27  ;;  %2491 = vrot.lane.b32.xlu1 %v2486_v45, %s5014_s19 }
 0x2b9   :  { %2385 = vrot.lane.b32.xlu0 %v2380_v48, %s5012_s17  ;;  %2206 = vst.msk [vmem:[#allocation5 + $0x140] sm:$0xff] %vm2035_vm6, %v2204_v28  ;;  %v1919_v32 = vpop.permute.xlu0 %1918 }
 0x2ba   :  { %2062 = vst.msk [vmem:[#allocation3 + $0xd0] sm:$0xff] %vm2035_vm6, %v2029_v38  ;;  %v1921_v30 = vpop.permute.xlu1 %1920 }
 0x2bb   :  { %v1966_v54 = vsel %vm1938_vm7, %v1919_v32, %v1921_v30  ;;  %v2542_v30 = vld [vmem:[#allocation4 + $0xc] sm:$0xff] }
 0x2bc   :  { %v2030_v15 = vmax.f32 %v7854_v10, %v1966_v54  ;;  %v2541_v54 = vld [vmem:[#allocation4 + $0x4] sm:$0xff] }
 0x2bd   :  { %v2092_v18 = vld [vmem:[#allocation3 + $0xc0] ss:$2 sm:$0xff]  ;;  %v2124_v7 = vld [vmem:[#allocation3 + $0xc1] ss:$2 sm:$0xff]  ;;  %v1923_v52 = vpop.permute.xlu0 %1922 }
 0x2be   :  { %v2143_v55 = vmax.f32 %v2092_v18, %v2124_v7  ;;  %2063 = vst.msk [vmem:[#allocation3 + $0xd8] sm:$0xff] %vm2035_vm6, %v2030_v15  ;;  %v1925_v37 = vpop.permute.xlu1 %1924  ;;  %v2783_v10 = vld [vmem:[%s7816_s3 + $0x200] sm:$0xff]  ;;  %v2785_v15 = vld [vmem:[%s7816_s3 + $0x210] sm:$0xff]  ;;  %v2788_v18 = vld [vmem:[%s7816_s3 + $0x228] sm:$0xff] }
 0x2bf   :  { %v1967_v41 = vsel %vm1938_vm7, %v1923_v52, %v1925_v37  ;;  %v2391_v62 = vld [vmem:[#allocation4 + $0x66] sm:$0xff]  ;;  %v2500_v4 = vld [vmem:[#allocation4 + $0x6f] sm:$0xff]  ;;  %v2790_v7 = vld [vmem:[%s7816_s3 + $0x238] sm:$0xff] }
 0x2c0   :  { %v2288_v33 = vld [vmem:[#allocation4 + $0x65] sm:$0xff]  ;;  %2180 = vst.msk [vmem:[#allocation4 + $0x78] sm:$0xff] %vm2035_vm6, %v2143_v55  ;;  %v2031_v51 = vmax.f32 %v7855_v36, %v1967_v41  ;;  %2395 = vrot.lane.b32.xlu1 %v2391_v62, %s5012_s17  ;;  %v2289_v50 = vld [vmem:[#allocation4 + $0x6d] sm:$0xff]  ;;  %v4645_v55 = vpack.c.bf16 %v2785_v15, %v2783_v10  ;;  %v2557_v41 = vld [vmem:[#allocation4 + $0x18] sm:$0xff]  ;;  %v4647_v62 = vpack.c.bf16 %v2790_v7, %v2788_v18 }
 0x2c1   :  { %2292 = vrot.lane.b32.xlu0 %v2288_v33, %s5013_s18  ;;  %v1927_v49 = vpop.permute.xlu0 %1926  ;;  %v2205_v59 = vld [vmem:[#allocation4 + $0x6c] sm:$0xff]  ;;  %v2558_v37 = vld [vmem:[#allocation4 + $0x20] sm:$0xff] }
 0x2c2   :  { %2064 = vst.msk [vmem:[#allocation3 + $0xe0] sm:$0xff] %vm2035_vm6, %v2031_v51  ;;  %v1929_v46 = vpop.permute.xlu1 %1928  ;;  %2207 = vst.msk [vmem:[#allocation5 + $0x160] sm:$0xff] %vm2035_vm6, %v2205_v59  ;;  %v2499_v57 = vld [vmem:[#allocation4 + $0x67] sm:$0xff]  ;;  %v2789_v51 = vld [vmem:[%s7816_s3 + $0x230] sm:$0xff] }
 0x2c3   :  { %v1968_v13 = vsel %vm1938_vm7, %v1927_v49, %v1929_v46  ;;  %v2392_v40 = vld [vmem:[#allocation4 + $0x6e] sm:$0xff]  ;;  %v2787_v36 = vld [vmem:[%s7816_s3 + $0x220] sm:$0xff] }
 0x2c4   :  { %v2032_v8 = vmax.f32 %v7856_v44, %v1968_v13  ;;  %2294 = vrot.lane.b32.xlu1 %v2289_v50, %s5013_s18  ;;  %v2792_v46 = vld [vmem:[%s7816_s3 + $0x248] sm:$0xff]  ;;  %v2794_v13 = vld [vmem:[%s7816_s3 + $0x258] sm:$0xff]  ;;  %v2809_v10 = vld [vmem:[%s7816_s3 + $0x2d0] sm:$0xff] }
 0x2c5   :  { %2503 = vrot.lane.b32.xlu0 %v2499_v57, %s5014_s19  ;;  %v2094_v47 = vld [vmem:[#allocation3 + $0xd0] ss:$2 sm:$0xff]  ;;  %v2126_v12 = vld [vmem:[#allocation3 + $0xd1] ss:$2 sm:$0xff]  ;;  %v1931_v21 = vpop.permute.xlu0 %1930  ;;  %v2812_v7 = vld [vmem:[%s7816_s3 + $0x2e8] sm:$0xff] }
 0x2c6   :  { %v2144_v24 = vmax.f32 %v2094_v47, %v2126_v12  ;;  %2065 = vst.msk [vmem:[#allocation3 + $0xe8] sm:$0xff] %vm2035_vm6, %v2032_v8  ;;  %v1933_v61 = vpop.permute.xlu1 %1932  ;;  %v2572_v50 = vld [vmem:[#allocation4 + $0x34] sm:$0xff]  ;;  %v2571_v57 = vld [vmem:[#allocation4 + $0x2c] sm:$0xff]  ;;  %v4649_v8 = vpack.c.bf16 %v2789_v51, %v2787_v36  ;;  %v2791_v47 = vld [vmem:[%s7816_s3 + $0x240] sm:$0xff] }
 0x2c7   :  { %v1969_v0 = vsel %vm1938_vm7, %v1931_v21, %v1933_v61  ;;  %v2208_v3 = vld [vmem:[#allocation4 + $0x78] sm:$0xff]  ;;  %v2793_v12 = vld [vmem:[%s7816_s3 + $0x250] sm:$0xff]  ;;  %v2811_v51 = vld [vmem:[%s7816_s3 + $0x2e0] sm:$0xff] }
 0x2c8   :  { %2181 = vst.msk [vmem:[#allocation4 + $0x80] sm:$0x3f] %vm2168_vm8, %v2144_v24  ;;  %v2033_v26 = vmax.f32 %v1742_v34, %v1969_v0  ;;  %2505 = vrot.lane.b32.xlu1 %v2500_v4, %s5014_s19  ;;  %v4651_v24 = vpack.c.bf16 %v2794_v13, %v2792_v46  ;;  %v2796_v4 = vld [vmem:[%s7816_s3 + $0x268] sm:$0xff]  ;;  %v2818_v46 = vld [vmem:[%s7816_s3 + $0x318] sm:$0xff] }
 0x2c9   :  { %2397 = vrot.lane.b32.xlu0 %v2392_v40, %s5012_s17  ;;  %2210 = vst.msk [vmem:[#allocation5 + $0x180] sm:$0xff] %vm2035_vm6, %v2208_v3  ;;  %v1935_v29 = vpop.permute.xlu0 %1934  ;;  %v2798_v40 = vld [vmem:[%s7816_s3 + $0x278] sm:$0xff]  ;;  %v2586_v3 = vld [vmem:[#allocation4 + $0x48] sm:$0xff] }
 0x2ca   :  { %2066 = vst.msk [vmem:[#allocation3 + $0xf0] sm:$0xff] %vm2035_vm6, %v2033_v26  ;;  %v1937_v1 = vpop.permute.xlu1 %1936  ;;  %v2585_v26 = vld [vmem:[#allocation4 + $0x40] sm:$0xff] }
 0x2cb   :  { %v1970_v43 = vsel %vm1938_vm7, %v1935_v29, %v1937_v1  ;;  %v4653_v29 = vpack.c.bf16 %v2793_v12, %v2791_v47  ;;  %v2795_v1 = vld [vmem:[%s7816_s3 + $0x260] sm:$0xff]  ;;  %v2817_v47 = vld [vmem:[%s7816_s3 + $0x310] sm:$0xff]  ;;  %v2820_v12 = vld [vmem:[%s7816_s3 + $0x328] sm:$0xff] }
 0x2cc   :  { %v2034_v9 = vmax.f32 %v1744_v20, %v1970_v43  ;;  %v2797_v43 = vld [vmem:[%s7816_s3 + $0x270] sm:$0xff] }
 0x2cd   :  { %v2096_v14 = vld [vmem:[#allocation3 + $0xe0] ss:$2 sm:$0xff]  ;;  %v2128_v11 = vld [vmem:[#allocation3 + $0xe1] ss:$2 sm:$0xff] }
 0x2ce   :  { %v2145_v60 = vmax.f32 %v2096_v14, %v2128_v11  ;;  %2067 = vst.msk [vmem:[#allocation3 + $0xf8] sm:$0xff] %vm2035_vm6, %v2034_v9  ;;  %v4655_v9 = vpack.c.bf16 %v2798_v40, %v2796_v4  ;;  %v2819_v40 = vld [vmem:[%s7816_s3 + $0x320] sm:$0xff] }
 0x2cf   :  { %v2403_v22 = vld [vmem:[#allocation4 + $0x7a] sm:$0xff]  ;;  %v2514_v2 = vld [vmem:[#allocation4 + $0x83] sm:$0xff] }
 0x2d0   :  { %v2302_v34 = vld [vmem:[#allocation4 + $0x79] sm:$0xff]  ;;  %2182 = vst.msk [vmem:[#allocation4 + $0x8c] sm:$0xff] %vm2035_vm6, %v2145_v60  ;;  %2407 = vrot.lane.b32.xlu1 %v2403_v22, %s5012_s17  ;;  %v2303_v39 = vld [vmem:[#allocation4 + $0x81] sm:$0xff] }
 0x2d1   :  { %2306 = vrot.lane.b32.xlu0 %v2302_v34, %s5013_s18  ;;  %v2209_v35 = vld [vmem:[#allocation4 + $0x80] sm:$0xff]  ;;  %v2800_v60 = vld [vmem:[%s7816_s3 + $0x288] sm:$0xff]  ;;  %v2802_v22 = vld [vmem:[%s7816_s3 + $0x298] sm:$0xff] }
 0x2d2   :  { %2211 = vst.msk [vmem:[#allocation5 + $0x1a0] sm:$0xff] %vm2035_vm6, %v2209_v35  ;;  %v2513_v42 = vld [vmem:[#allocation4 + $0x7b] sm:$0xff] }
 0x2d3   :  { %v2404_v19 = vld [vmem:[#allocation4 + $0x82] sm:$0xff]  ;;  %v2599_v35 = vld [vmem:[#allocation4 + $0x54] sm:$0xff] }
 0x2d4   :  { %2308 = vrot.lane.b32.xlu1 %v2303_v39, %s5013_s18  ;;  %v2600_v34 = vld [vmem:[#allocation4 + $0x5c] sm:$0xff]  ;;  %v4657_v39 = vpack.c.bf16 %v2797_v43, %v2795_v1 }
 0x2d5   :  { %2517 = vrot.lane.b32.xlu0 %v2513_v42, %s5014_s19  ;;  %v2098_v16 = vld [vmem:[#allocation3 + $0xf0] ss:$2 sm:$0xff]  ;;  %v2130_v20 = vld [vmem:[#allocation3 + $0xf1] ss:$2 sm:$0xff]  ;;  %v2799_v42 = vld [vmem:[%s7816_s3 + $0x280] sm:$0xff] }
 0x2d6   :  { %v2146_v58 = vmax.f32 %v2098_v16, %v2130_v20  ;;  %v2801_v16 = vld [vmem:[%s7816_s3 + $0x290] sm:$0xff]  ;;  %v4659_v20 = vpack.c.bf16 %v2802_v22, %v2800_v60  ;;  %v2823_v22 = vld [vmem:[%s7816_s3 + $0x340] sm:$0xf] }
 0x2d7   :  { %v2212_v23 = vld [vmem:[#allocation4 + $0x8c] sm:$0xff] }
 0x2d8   :  { %2183 = vst.msk [vmem:[#allocation4 + $0x94] sm:$0x3f] %vm2168_vm8, %v2146_v58  ;;  %2519 = vrot.lane.b32.xlu1 %v2514_v2, %s5014_s19  ;;  %v2804_v2 = vld [vmem:[%s7816_s3 + $0x2a8] sm:$0xff] }
 0x2d9   :  { %2409 = vrot.lane.b32.xlu0 %v2404_v19, %s5012_s17  ;;  %2214 = vst.msk [vmem:[#allocation5 + $0x1c0] sm:$0xff] %vm2035_vm6, %v2212_v23  ;;  %v2806_v19 = vld [vmem:[%s7816_s3 + $0x2b8] sm:$0xff]  ;;  %v2614_v23 = vld [vmem:[#allocation4 + $0x70] sm:$0xff] }
 0x2df   :  { %v2415_v5 = vld [vmem:[#allocation4 + $0x8e] sm:$0xff]  ;;  %v2528_v28 = vld [vmem:[#allocation4 + $0x97] sm:$0xff] }
 0x2e0   :  { %v2316_v56 = vld [vmem:[#allocation4 + $0x8d] sm:$0xff]  ;;  %2419 = vrot.lane.b32.xlu1 %v2415_v5, %s5012_s17  ;;  %v2317_v17 = vld [vmem:[#allocation4 + $0x95] sm:$0xff] }
 0x2e1   :  { %2320 = vrot.lane.b32.xlu0 %v2316_v56, %s5013_s18  ;;  %v2213_v31 = vld [vmem:[#allocation4 + $0x94] sm:$0xff]  ;;  %v2613_v5 = vld [vmem:[#allocation4 + $0x68] sm:$0xff]  ;;  %v4661_v56 = vpack.c.bf16 %v2801_v16, %v2799_v42 }
 0x2e2   :  { %v2335_v25 = vpop.permute.xlu1 %2334  ;;  %2215 = vst.msk [vmem:[#allocation5 + $0x1e0] sm:$0xff] %vm2035_vm6, %v2213_v31  ;;  %v2527_v27 = vld [vmem:[#allocation4 + $0x8f] sm:$0xff] }
 0x2e3   :  { %v2221_v63 = vpop.permute.xlu0 %2220  ;;  %v2416_v6 = vld [vmem:[#allocation4 + $0x96] sm:$0xff] }
 0x2e4   :  { %2227 = vst.msk [vmem:[#allocation5] sm:$0xff] %vm2226_vm9, %v2221_v63  ;;  %2322 = vrot.lane.b32.xlu1 %v2317_v17, %s5013_s18  ;;  %v4663_v17 = vpack.c.bf16 %v2806_v19, %v2804_v2 }
 0x2e5   :  { %2229 = vst.msk [vmem:[#allocation5 + $0x8] sm:$0xff] %vm2228_vm10, %v2221_v63  ;;  %2531 = vrot.lane.b32.xlu0 %v2527_v27, %s5014_s19  ;;  %v2805_v63 = vld [vmem:[%s7816_s3 + $0x2b0] sm:$0xff] }
 0x2e6   :  { %2341 = vst.msk [vmem:[#allocation5 + $0x8] sm:$0xff] %vm2340_vm11, %v2335_v25  ;;  %v2223_v45 = vpop.permute.xlu1 %2222  ;;  %v2803_v25 = vld [vmem:[%s7816_s3 + $0x2a0] sm:$0xff] }
 0x2e7   :  { %v2432_v48 = vpop.permute.xlu0 %2431  ;;  %2230 = vst.msk [vmem:[#allocation5 + $0x20] sm:$0xff] %vm2226_vm9, %v2223_v45 }
 0x2e8   :  { %2231 = vst.msk [vmem:[#allocation5 + $0x28] sm:$0xff] %vm2228_vm10, %v2223_v45  ;;  %2533 = vrot.lane.b32.xlu1 %v2528_v28, %s5014_s19  ;;  %v2810_v28 = vld [vmem:[%s7816_s3 + $0x2d8] sm:$0xff] }
 0x2e9   :  { %2438 = vst.msk [vmem:[#allocation5 + $0x8] sm:$0xff] %vm2437_vm12, %v2432_v48  ;;  %2421 = vrot.lane.b32.xlu0 %v2416_v6, %s5012_s17  ;;  %v2628_v6 = vld [vmem:[#allocation4 + $0x84] sm:$0xff] }
 0x2ea   :  { %2440 = vst.msk [vmem:[#allocation5 + $0x10] sm:$0xff] %vm2439_vm13, %v2432_v48  ;;  %v2434_v38 = vpop.permute.xlu1 %2433  ;;  %v2808_v48 = vld [vmem:[%s7816_s3 + $0x2c8] sm:$0xff] }
 0x2eb   :  { %v2337_v32 = vpop.permute.xlu0 %2336  ;;  %2442 = vst.msk [vmem:[#allocation5 + $0x30] sm:$0xff] %vm2439_vm13, %v2434_v38  ;;  %v2655_v33 = vld [vmem:[#allocation5] sm:$0xff]  ;;  %v4667_v18 = vpack.c.bf16 %v2810_v28, %v2808_v48 }
 0x2ec   :  { %2342 = vst.msk [vmem:[#allocation5 + $0x28] sm:$0xff] %vm2340_vm11, %v2337_v32  ;;  %2547 = vrot.lane.b32.xlu1 %v2542_v30, %s5015_s29  ;;  %v4665_v30 = vpack.c.bf16 %v2805_v63, %v2803_v25 }
 0x2ed   :  { %2441 = vst.msk [vmem:[#allocation5 + $0x28] sm:$0xff] %vm2437_vm12, %v2434_v38  ;;  %2545 = vrot.lane.b32.xlu0 %v2541_v54, %s5015_s29  ;;  %v2627_v38 = vld [vmem:[#allocation4 + $0x7c] sm:$0xff] }
 0x2ee   :  { %v2659_v21 = vld [vmem:[#allocation5 + $0x20] sm:$0xff] }
 0x2ef   :  { %v2807_v54 = vld [vmem:[%s7816_s3 + $0x2c0] sm:$0xff] }
 0x2f0   :  { %v2656_v52 = vld [vmem:[#allocation5 + $0x8] sm:$0xff]  ;;  %2563 = vrot.lane.b32.xlu1 %v2558_v37, %s5015_s29 }
 0x2f1   :  { %2956 = vmatprep.mubr.f32.mxu1 %v2656_v52  ;;  %2561 = vrot.lane.b32.xlu0 %v2557_v41, %s5015_s29  ;;  %v2814_v52 = vld [vmem:[%s7816_s3 + $0x2f8] sm:$0xff] }
 0x2f2   :  { %2957 = vmatmul.mubr.f32.vlgmr.msra.gmra.mrb[0].mxu1 %v2655_v33  ;;  %v2348_v49 = vpop.permute.xlu1 %2347  ;;  %v2642_v41 = vld [vmem:[#allocation4 + $0x98] sm:$0xff]  ;;  %v4669_v33 = vpack.c.bf16 %v2809_v10, %v2807_v54  ;;  %v4671_v36 = vpack.c.bf16 %v2814_v52, %v2812_v7 }
 0x2f3   :  { %v2237_v59 = vpop.permute.xlu0 %2236  ;;  %4646 = vmatpush1.bf16.msra.mxu1 %v4645_v55 }
 0x2f4   :  { %2242 = vst.msk [vmem:[#allocation5 + $0x40] sm:$0xff] %vm2226_vm9, %v2237_v59  ;;  %v2660_v44 = vld [vmem:[#allocation5 + $0x28] sm:$0xff]  ;;  %4648 = vmatprep.subr.bf16.mxu1 %v4647_v62  ;;  %2577 = vrot.lane.b32.xlu1 %v2572_v50, %s5015_s29  ;;  %v2641_v62 = vld [vmem:[#allocation4 + $0x90] sm:$0xff] }
 0x2f5   :  { %2243 = vst.msk [vmem:[#allocation5 + $0x48] sm:$0xff] %vm2228_vm10, %v2237_v59  ;;  %2575 = vrot.lane.b32.xlu0 %v2571_v57, %s5015_s29  ;;  %2962 = vmatprep.mubr.f32.mxu1 %v2660_v44  ;;  %v2816_v59 = vld [vmem:[%s7816_s3 + $0x308] sm:$0xff] }
 0x2f6   :  { %2353 = vst.msk [vmem:[#allocation5 + $0x48] sm:$0xff] %vm2340_vm11, %v2348_v49  ;;  %2963 = vmatmul.mubr.f32.gmra.mrb[2].mxu1 %v2659_v21  ;;  %v2239_v61 = vpop.permute.xlu1 %2238  ;;  %v2813_v49 = vld [vmem:[%s7816_s3 + $0x2f0] sm:$0xff]  ;;  %v4675_v44 = vpack.c.bf16 %v2818_v46, %v2816_v59  ;;  %v2822_v21 = vld [vmem:[%s7816_s3 + $0x338] sm:$0xff] }
 0x2f7   :  { %v2448_v0 = vpop.permute.xlu0 %2447  ;;  %2244 = vst.msk [vmem:[#allocation5 + $0x60] sm:$0xff] %vm2226_vm9, %v2239_v61  ;;  %4650 = vmatpush1.bf16.msra.mxu1 %v4649_v8  ;;  %v4673_v57 = vpack.c.bf16 %v2813_v49, %v2811_v51  ;;  %v2815_v8 = vld [vmem:[%s7816_s3 + $0x300] sm:$0xff]  ;;  %v4679_v4 = vpack.c.bf16 %v2822_v21, %v2820_v12 }
 0x2f8   :  { %2245 = vst.msk [vmem:[#allocation5 + $0x68] sm:$0xff] %vm2228_vm10, %v2239_v61  ;;  %2591 = vrot.lane.b32.xlu1 %v2586_v3, %s5015_s29  ;;  %4652 = vmatprep.subr.bf16.mxu1 %v4651_v24  ;;  %v2821_v3 = vld [vmem:[%s7816_s3 + $0x330] sm:$0xff] }
 0x2f9   :  { %2453 = vst.msk [vmem:[#allocation5 + $0x48] sm:$0xff] %vm2437_vm12, %v2448_v0  ;;  %2589 = vrot.lane.b32.xlu0 %v2585_v26, %s5015_s29  ;;  %v4681_v43 = vpack.c.bf16 %v2821_v3, %v2819_v40 }
 0x2fa   :  { %2454 = vst.msk [vmem:[#allocation5 + $0x50] sm:$0xff] %vm2439_vm13, %v2448_v0  ;;  %v2450_v14 = vpop.permute.xlu1 %2449  ;;  %v4677_v0 = vpack.c.bf16 %v2817_v47, %v2815_v8 }
 0x2fb   :  { %v2350_v11 = vpop.permute.xlu0 %2349  ;;  %2456 = vst.msk [vmem:[#allocation5 + $0x70] sm:$0xff] %vm2439_vm13, %v2450_v14  ;;  %4654 = vmatpush1.bf16.msra.mxu1 %v4653_v29  ;;  %v2663_v31 = vld [vmem:[#allocation5 + $0x40] sm:$0xff] }
 0x2fc   :  { %2354 = vst.msk [vmem:[#allocation5 + $0x68] sm:$0xff] %vm2340_vm11, %v2350_v11  ;;  %2605 = vrot.lane.b32.xlu1 %v2600_v34, %s5015_s29  ;;  %4656 = vmatprep.subr.bf16.mxu1 %v4655_v9 }
 0x2fd   :  { %2455 = vst.msk [vmem:[#allocation5 + $0x68] sm:$0xff] %vm2437_vm12, %v2450_v14  ;;  %2603 = vrot.lane.b32.xlu0 %v2599_v35, %s5015_s29  ;;  %v2824_v14 = vld [vmem:[%s7816_s3 + $0x348] sm:$0xf] }
 0x2fe   :  { %v2667_v15 = vld [vmem:[#allocation5 + $0x60] sm:$0xff] }
 0x2ff   :  { %4658 = vmatpush1.bf16.msra.mxu1 %v4657_v39 }
 0x300   :  { %v2664_v58 = vld [vmem:[#allocation5 + $0x48] sm:$0xff]  ;;  %2619 = vrot.lane.b32.xlu1 %v2614_v23, %s5015_s29  ;;  %4660 = vmatprep.subr.bf16.mxu1 %v4659_v20 }
 0x301   :  { %2968 = vmatprep.mubr.f32.mxu1 %v2664_v58  ;;  %2617 = vrot.lane.b32.xlu0 %v2613_v5, %s5015_s29 }
 0x302   :  { %2969 = vmatmul.mubr.f32.gmra.mrb[4].mxu1 %v2663_v31  ;;  %v2360_v27 = vpop.permute.xlu1 %2359 }
 0x303   :  { %v2251_v45 = vpop.permute.xlu0 %2250  ;;  %4662 = vmatpush1.bf16.msra.mxu1 %v4661_v56 }
 0x304   :  { %2256 = vst.msk [vmem:[#allocation5 + $0x80] sm:$0xff] %vm2226_vm9, %v2251_v45  ;;  %v2668_v32 = vld [vmem:[#allocation5 + $0x68] sm:$0xff]  ;;  %2633 = vrot.lane.b32.xlu1 %v2628_v6, %s5015_s29  ;;  %4664 = vmatprep.subr.bf16.mxu1 %v4663_v17 }
 0x305   :  { %2257 = vst.msk [vmem:[#allocation5 + $0x88] sm:$0xff] %vm2228_vm10, %v2251_v45  ;;  %2631 = vrot.lane.b32.xlu0 %v2627_v38, %s5015_s29  ;;  %2974 = vmatprep.mubr.f32.mxu1 %v2668_v32 }
 0x306   :  { %2365 = vst.msk [vmem:[#allocation5 + $0x88] sm:$0xff] %vm2340_vm11, %v2360_v27  ;;  %2975 = vmatmul.mubr.f32.gmra.mrb[6].mxu1 %v2667_v15  ;;  %v2253_v55 = vpop.permute.xlu1 %2252 }
 0x307   :  { %v2462_v37 = vpop.permute.xlu0 %2461  ;;  %2258 = vst.msk [vmem:[#allocation5 + $0xa0] sm:$0xff] %vm2226_vm9, %v2253_v55  ;;  %4666 = vmatpush1.bf16.msra.mxu1 %v4665_v30 }
 0x308   :  { %2259 = vst.msk [vmem:[#allocation5 + $0xa8] sm:$0xff] %vm2228_vm10, %v2253_v55  ;;  %2647 = vrot.lane.b32.xlu1 %v2642_v41, %s5015_s29  ;;  %4668 = vmatprep.subr.bf16.mxu1 %v4667_v18 }
 0x309   :  { %2467 = vst.msk [vmem:[#allocation5 + $0x88] sm:$0xff] %vm2437_vm12, %v2462_v37  ;;  %2645 = vrot.lane.b32.xlu0 %v2641_v62, %s5015_s29 }
 0x30a   :  { %2468 = vst.msk [vmem:[#allocation5 + $0x90] sm:$0xff] %vm2439_vm13, %v2462_v37  ;;  %v2464_v13 = vpop.permute.xlu1 %2463 }
 0x30b   :  { %v2362_v50 = vpop.permute.xlu0 %2361  ;;  %2470 = vst.msk [vmem:[#allocation5 + $0xb0] sm:$0xff] %vm2439_vm13, %v2464_v13  ;;  %4670 = vmatpush1.bf16.msra.mxu1 %v4669_v33  ;;  %v2671_v61 = vld [vmem:[#allocation5 + $0x80] sm:$0xff] }
 0x30c   :  { %2366 = vst.msk [vmem:[#allocation5 + $0xa8] sm:$0xff] %vm2340_vm11, %v2362_v50  ;;  %4672 = vmatprep.subr.bf16.mxu1 %v4671_v36 }
 0x30d   :  { %2469 = vst.msk [vmem:[#allocation5 + $0xa8] sm:$0xff] %vm2437_vm12, %v2464_v13 }
 0x30e   :  { %v2675_v9 = vld [vmem:[#allocation5 + $0xa0] sm:$0xff] }
 0x30f   :  { %4674 = vmatpush1.bf16.msra.mxu1 %v4673_v57 }
 0x310   :  { %v2672_v24 = vld [vmem:[#allocation5 + $0x88] sm:$0xff]  ;;  %4676 = vmatprep.subr.bf16.mxu1 %v4675_v44 }
 0x311   :  { %2980 = vmatprep.mubr.f32.mxu1 %v2672_v24 }
 0x312   :  { %2981 = vmatmul.mubr.f32.gmra.mrb[8].mxu1 %v2671_v61  ;;  %v2372_v26 = vpop.permute.xlu1 %2371 }
 0x313   :  { %v2265_v29 = vpop.permute.xlu0 %2264  ;;  %4678 = vmatpush1.bf16.msra.mxu1 %v4677_v0 }
 0x314   :  { %2270 = vst.msk [vmem:[#allocation5 + $0xc0] sm:$0xff] %vm2226_vm9, %v2265_v29  ;;  %v2676_v1 = vld [vmem:[#allocation5 + $0xa8] sm:$0xff]  ;;  %4680 = vmatprep.subr.bf16.mxu1 %v4679_v4 }
 0x315   :  { %2271 = vst.msk [vmem:[#allocation5 + $0xc8] sm:$0xff] %vm2228_vm10, %v2265_v29  ;;  %2986 = vmatprep.mubr.f32.mxu1 %v2676_v1 }
 0x316   :  { %2377 = vst.msk [vmem:[#allocation5 + $0xc8] sm:$0xff] %vm2340_vm11, %v2372_v26  ;;  %2987 = vmatmul.mubr.f32.gmra.mrb[10].mxu1 %v2675_v9  ;;  %v2267_v11 = vpop.permute.xlu1 %2266 }
 0x317   :  { %v2476_v60 = vpop.permute.xlu0 %2475  ;;  %2272 = vst.msk [vmem:[#allocation5 + $0xe0] sm:$0xff] %vm2226_vm9, %v2267_v11  ;;  %4682 = vmatpush1.bf16.msra.mxu1 %v4681_v43 }
 0x318   :  { %2273 = vst.msk [vmem:[#allocation5 + $0xe8] sm:$0xff] %vm2228_vm10, %v2267_v11  ;;  %4134 = vmatprep.subr.msk.mxu1 %vm2885_vm14, %v2824_v14 }
 0x319   :  { %2481 = vst.msk [vmem:[#allocation5 + $0xc8] sm:$0xff] %vm2437_vm12, %v2476_v60 }
 0x31a   :  { %2482 = vst.msk [vmem:[#allocation5 + $0xd0] sm:$0xff] %vm2439_vm13, %v2476_v60  ;;  %v2478_v34 = vpop.permute.xlu1 %2477 }
 0x31b   :  { %v2374_v35 = vpop.permute.xlu0 %2373  ;;  %2484 = vst.msk [vmem:[#allocation5 + $0xf0] sm:$0xff] %vm2439_vm13, %v2478_v34  ;;  %4135 = vmatpush1.msk.msra.mxu1 %vm2885_vm14, %v2823_v22  ;;  %v2679_v42 = vld [vmem:[#allocation5 + $0xc0] sm:$0xff] }
 0x31c   :  { %2378 = vst.msk [vmem:[#allocation5 + $0xe8] sm:$0xff] %vm2340_vm11, %v2374_v35 }
 0x31d   :  { %2483 = vst.msk [vmem:[#allocation5 + $0xe8] sm:$0xff] %vm2437_vm12, %v2478_v34 }
 0x31e   :  { %v2683_v2 = vld [vmem:[#allocation5 + $0xe0] sm:$0xff] }
 0x320   :  { %v2680_v39 = vld [vmem:[#allocation5 + $0xc8] sm:$0xff] }
 0x321   :  { %2992 = vmatprep.mubr.f32.mxu1 %v2680_v39 }
 0x322   :  { %2993 = vmatmul.mubr.f32.gmra.mrb[12].mxu1 %v2679_v42  ;;  %v2384_v16 = vpop.permute.xlu1 %2383 }
 0x323   :  { %v2279_v20 = vpop.permute.xlu0 %2278 }
 0x324   :  { %2284 = vst.msk [vmem:[#allocation5 + $0x100] sm:$0xff] %vm2226_vm9, %v2279_v20  ;;  %v2684_v58 = vld [vmem:[#allocation5 + $0xe8] sm:$0xff] }
 0x325   :  { %2285 = vst.msk [vmem:[#allocation5 + $0x108] sm:$0xff] %vm2228_vm10, %v2279_v20  ;;  %2998 = vmatprep.mubr.f32.mxu1 %v2684_v58 }
 0x326   :  { %2389 = vst.msk [vmem:[#allocation5 + $0x108] sm:$0xff] %vm2340_vm11, %v2384_v16  ;;  %2999 = vmatmul.mubr.f32.gmra.mrb[14].mxu1 %v2683_v2  ;;  %v2281_v19 = vpop.permute.xlu1 %2280 }
 0x327   :  { %v2490_v23 = vpop.permute.xlu0 %2489  ;;  %2286 = vst.msk [vmem:[#allocation5 + $0x120] sm:$0xff] %vm2226_vm9, %v2281_v19 }
 0x328   :  { %2287 = vst.msk [vmem:[#allocation5 + $0x128] sm:$0xff] %vm2228_vm10, %v2281_v19 }
 0x329   :  { %2495 = vst.msk [vmem:[#allocation5 + $0x108] sm:$0xff] %vm2437_vm12, %v2490_v23 }
 0x32a   :  { %2496 = vst.msk [vmem:[#allocation5 + $0x110] sm:$0xff] %vm2439_vm13, %v2490_v23  ;;  %v2492_v5 = vpop.permute.xlu1 %2491 }
 0x32b   :  { %v2386_v56 = vpop.permute.xlu0 %2385  ;;  %2498 = vst.msk [vmem:[#allocation5 + $0x130] sm:$0xff] %vm2439_vm13, %v2492_v5  ;;  %v2687_v25 = vld [vmem:[#allocation5 + $0x100] sm:$0xff] }
 0x32c   :  { %2390 = vst.msk [vmem:[#allocation5 + $0x128] sm:$0xff] %vm2340_vm11, %v2386_v56 }
 0x32d   :  { %2497 = vst.msk [vmem:[#allocation5 + $0x128] sm:$0xff] %vm2437_vm12, %v2492_v5 }
 0x32e   :  { %v2691_v45 = vld [vmem:[#allocation5 + $0x120] sm:$0xff] }
 0x330   :  { %v2688_v31 = vld [vmem:[#allocation5 + $0x108] sm:$0xff] }
 0x331   :  { %3004 = vmatprep.mubr.f32.mxu1 %v2688_v31 }
 0x332   :  { %3005 = vmatmul.mubr.f32.gmra.mrb[16].mxu1 %v2687_v25  ;;  %v2396_v63 = vpop.permute.xlu1 %2395 }
 0x333   :  { %v2293_v17 = vpop.permute.xlu0 %2292 }
 0x334   :  { %2298 = vst.msk [vmem:[#allocation5 + $0x140] sm:$0xff] %vm2226_vm9, %v2293_v17  ;;  %v2692_v27 = vld [vmem:[#allocation5 + $0x128] sm:$0xff] }
 0x335   :  { %2299 = vst.msk [vmem:[#allocation5 + $0x148] sm:$0xff] %vm2228_vm10, %v2293_v17  ;;  %3010 = vmatprep.mubr.f32.mxu1 %v2692_v27 }
 0x336   :  { %2401 = vst.msk [vmem:[#allocation5 + $0x148] sm:$0xff] %vm2340_vm11, %v2396_v63  ;;  %3011 = vmatmul.mubr.f32.gmra.mrb[18].mxu1 %v2691_v45  ;;  %v2295_v48 = vpop.permute.xlu1 %2294 }
 0x337   :  { %v2504_v28 = vpop.permute.xlu0 %2503  ;;  %2300 = vst.msk [vmem:[#allocation5 + $0x160] sm:$0xff] %vm2226_vm9, %v2295_v48 }
 0x338   :  { %2301 = vst.msk [vmem:[#allocation5 + $0x168] sm:$0xff] %vm2228_vm10, %v2295_v48 }
 0x339   :  { %2509 = vst.msk [vmem:[#allocation5 + $0x148] sm:$0xff] %vm2437_vm12, %v2504_v28 }
 0x33a   :  { %2510 = vst.msk [vmem:[#allocation5 + $0x150] sm:$0xff] %vm2439_vm13, %v2504_v28  ;;  %v2506_v6 = vpop.permute.xlu1 %2505 }
 0x33b   :  { %v2398_v38 = vpop.permute.xlu0 %2397  ;;  %2512 = vst.msk [vmem:[#allocation5 + $0x170] sm:$0xff] %vm2439_vm13, %v2506_v6  ;;  %v2695_v30 = vld [vmem:[#allocation5 + $0x140] sm:$0xff] }
 0x33c   :  { %2402 = vst.msk [vmem:[#allocation5 + $0x168] sm:$0xff] %vm2340_vm11, %v2398_v38 }
 0x33d   :  { %2511 = vst.msk [vmem:[#allocation5 + $0x168] sm:$0xff] %vm2437_vm12, %v2506_v6 }
 0x33e   :  { %v2699_v18 = vld [vmem:[#allocation5 + $0x160] sm:$0xff] }
 0x340   :  { %v2696_v32 = vld [vmem:[#allocation5 + $0x148] sm:$0xff] }
 0x341   :  { %3016 = vmatprep.mubr.f32.mxu1 %v2696_v32 }
 0x342   :  { %3017 = vmatmul.mubr.f32.gmra.mrb[20].mxu1 %v2695_v30  ;;  %v2408_v54 = vpop.permute.xlu1 %2407 }
 0x343   :  { %v2307_v10 = vpop.permute.xlu0 %2306 }
 0x344   :  { %2312 = vst.msk [vmem:[#allocation5 + $0x180] sm:$0xff] %vm2226_vm9, %v2307_v10  ;;  %v2700_v15 = vld [vmem:[#allocation5 + $0x168] sm:$0xff] }
 0x345   :  { %2313 = vst.msk [vmem:[#allocation5 + $0x188] sm:$0xff] %vm2228_vm10, %v2307_v10  ;;  %3022 = vmatprep.mubr.f32.mxu1 %v2700_v15 }
 0x346   :  { %2413 = vst.msk [vmem:[#allocation5 + $0x188] sm:$0xff] %vm2340_vm11, %v2408_v54  ;;  %3023 = vmatmul.mubr.f32.gmra.mrb[22].mxu1 %v2699_v18  ;;  %v2309_v7 = vpop.permute.xlu1 %2308 }
 0x347   :  { %v2518_v52 = vpop.permute.xlu0 %2517  ;;  %2314 = vst.msk [vmem:[#allocation5 + $0x1a0] sm:$0xff] %vm2226_vm9, %v2309_v7 }
 0x348   :  { %2315 = vst.msk [vmem:[#allocation5 + $0x1a8] sm:$0xff] %vm2228_vm10, %v2309_v7 }
 0x349   :  { %2523 = vst.msk [vmem:[#allocation5 + $0x188] sm:$0xff] %vm2437_vm12, %v2518_v52 }
 0x34a   :  { %2524 = vst.msk [vmem:[#allocation5 + $0x190] sm:$0xff] %vm2439_vm13, %v2518_v52  ;;  %v2520_v55 = vpop.permute.xlu1 %2519 }
 0x34b   :  { %v2410_v37 = vpop.permute.xlu0 %2409  ;;  %2526 = vst.msk [vmem:[#allocation5 + $0x1b0] sm:$0xff] %vm2439_vm13, %v2520_v55  ;;  %v2703_v62 = vld [vmem:[#allocation5 + $0x180] sm:$0xff] }
 0x34c   :  { %2414 = vst.msk [vmem:[#allocation5 + $0x1a8] sm:$0xff] %vm2340_vm11, %v2410_v37  ;;  %v2825_v37 = vld [vmem:[%s7817_s4] sm:$0x3]  ;;  %s5016_s4 = smov 48  }
 0x34d   :  { %2525 = vst.msk [vmem:[#allocation5 + $0x1a8] sm:$0xff] %vm2437_vm12, %v2520_v55 }
 0x34e   :  { %v2707_v49 = vld [vmem:[#allocation5 + $0x1a0] sm:$0xff] }
 0x350   :  { %v2704_v41 = vld [vmem:[#allocation5 + $0x188] sm:$0xff] }
 0x351   :  { %3028 = vmatprep.mubr.f32.mxu1 %v2704_v41  ;;  %v7857_v41 = vsub.s32 0, %v6271_v53 }
 0x352   :  { %3029 = vmatmul.mubr.f32.gmra.mrb[24].mxu1 %v2703_v62  ;;  %v2420_v33 = vpop.permute.xlu1 %2419 }
 0x353   :  { %v2321_v36 = vpop.permute.xlu0 %2320  ;;  %v7291_v62 = vrot.slane %v2825_v37, %v7857_v41 }
 0x354   :  { %2326 = vst.msk [vmem:[#allocation5 + $0x1c0] sm:$0xff] %vm2226_vm9, %v2321_v36  ;;  %v2708_v51 = vld [vmem:[#allocation5 + $0x1a8] sm:$0xff] }
 0x355   :  { %2327 = vst.msk [vmem:[#allocation5 + $0x1c8] sm:$0xff] %vm2228_vm10, %v2321_v36  ;;  %3034 = vmatprep.mubr.f32.mxu1 %v2708_v51 }
 0x356   :  { %2425 = vst.msk [vmem:[#allocation5 + $0x1c8] sm:$0xff] %vm2340_vm11, %v2420_v33  ;;  %3035 = vmatmul.mubr.f32.gmra.mrb[26].mxu1 %v2707_v49  ;;  %v2323_v59 = vpop.permute.xlu1 %2322  ;;  %v7858_v33 = vsub.s32 1, %v6271_v53 }
 0x357   :  { %v2532_v46 = vpop.permute.xlu0 %2531  ;;  %2328 = vst.msk [vmem:[#allocation5 + $0x1e0] sm:$0xff] %vm2226_vm9, %v2323_v59 }
 0x358   :  { %2329 = vst.msk [vmem:[#allocation5 + $0x1e8] sm:$0xff] %vm2228_vm10, %v2323_v59  ;;  %v7295_v36 = vrot.slane %v2825_v37, %v7858_v33 }
 0x359   :  { %2537 = vst.msk [vmem:[#allocation5 + $0x1c8] sm:$0xff] %vm2437_vm12, %v2532_v46 }
 0x35a   :  { %2538 = vst.msk [vmem:[#allocation5 + $0x1d0] sm:$0xff] %vm2439_vm13, %v2532_v46  ;;  %v2534_v13 = vpop.permute.xlu1 %2533 }
 0x35b   :  { %v2422_v50 = vpop.permute.xlu0 %2421  ;;  %2540 = vst.msk [vmem:[#allocation5 + $0x1f0] sm:$0xff] %vm2439_vm13, %v2534_v13  ;;  %v2711_v47 = vld [vmem:[#allocation5 + $0x1c0] sm:$0xff] }
 0x35c   :  { %2426 = vst.msk [vmem:[#allocation5 + $0x1e8] sm:$0xff] %vm2340_vm11, %v2422_v50 }
 0x35d   :  { %2539 = vst.msk [vmem:[#allocation5 + $0x1e8] sm:$0xff] %vm2437_vm12, %v2534_v13 }
 0x35e   :  { %v2548_v57 = vpop.permute.xlu1 %2547  ;;  %v2715_v61 = vld [vmem:[#allocation5 + $0x1e0] sm:$0xff] }
 0x35f   :  { %v2546_v44 = vpop.permute.xlu0 %2545  ;;  %2555 = vst.msk [vmem:[#allocation5 + $0x30] sm:$0xff] %vm2551_vm15, %v2548_v57 }
 0x360   :  { %v2712_v8 = vld [vmem:[#allocation5 + $0x1c8] sm:$0xff]  ;;  %2556 = vst.msk [vmem:[#allocation5 + $0x38] sm:$0xff] %vm2553_vm0, %v2548_v57  ;;  %2554 = vst.msk [vmem:[#allocation5 + $0x18] sm:$0xff] %vm2553_vm0, %v2546_v44 }
 0x361   :  { %2552 = vst.msk [vmem:[#allocation5 + $0x10] sm:$0xff] %vm2551_vm15, %v2546_v44  ;;  %3040 = vmatprep.mubr.f32.mxu1 %v2712_v8 }
 0x362   :  { %3041 = vmatmul.mubr.f32.gmra.mrb[28].mxu1 %v2711_v47  ;;  %v2564_v12 = vpop.permute.xlu1 %2563 }
 0x363   :  { %v2562_v21 = vpop.permute.xlu0 %2561  ;;  %2569 = vst.msk [vmem:[#allocation5 + $0x70] sm:$0xff] %vm2551_vm15, %v2564_v12 }
 0x364   :  { %2570 = vst.msk [vmem:[#allocation5 + $0x78] sm:$0xff] %vm2553_vm0, %v2564_v12  ;;  %2568 = vst.msk [vmem:[#allocation5 + $0x58] sm:$0xff] %vm2553_vm0, %v2562_v21  ;;  %v2716_v24 = vld [vmem:[#allocation5 + $0x1e8] sm:$0xff] }
 0x365   :  { %2567 = vst.msk [vmem:[#allocation5 + $0x50] sm:$0xff] %vm2551_vm15, %v2562_v21  ;;  %3046 = vmatprep.mubr.f32.mxu1 %v2716_v24 }
 0x366   :  { %3047 = vmatmul.mubr.f32.gmra.mrb[30].mxu1 %v2715_v61  ;;  %v2578_v0 = vpop.permute.xlu1 %2577  ;;  %v2661_v43 = vld [vmem:[#allocation5 + $0x30] sm:$0xff] }
 0x367   :  { %v2576_v4 = vpop.permute.xlu0 %2575  ;;  %v2658_v40 = vld [vmem:[#allocation5 + $0x18] sm:$0xff]  ;;  %2583 = vst.msk [vmem:[#allocation5 + $0xb0] sm:$0xff] %vm2551_vm15, %v2578_v0 }
 0x368   :  { %2584 = vst.msk [vmem:[#allocation5 + $0xb8] sm:$0xff] %vm2553_vm0, %v2578_v0  ;;  %2582 = vst.msk [vmem:[#allocation5 + $0x98] sm:$0xff] %vm2553_vm0, %v2576_v4  ;;  %4136 = vmatprep.mubr.msk.f32.mxu1 %vm2553_vm0, %v2658_v40  ;;  %v2657_v3 = vld [vmem:[#allocation5 + $0x10] sm:$0xff]  ;;  %v2662_v26 = vld [vmem:[#allocation5 + $0x38] sm:$0xff] }
 0x369   :  { %2581 = vst.msk [vmem:[#allocation5 + $0x90] sm:$0xff] %vm2551_vm15, %v2576_v4 }
 0x36a   :  { %3118 = vmatmul.mubr.f32.vlgmr.msra.gmra.mrb[0].mxu1 %v2657_v3  ;;  %v2592_v29 = vpop.permute.xlu1 %2591  ;;  %v2669_v39 = vld [vmem:[#allocation5 + $0x70] sm:$0xff] }
 0x36b   :  { %4137 = vmatprep.mubr.msk.f32.mxu1 %vm2553_vm0, %v2662_v26  ;;  %v2590_v1 = vpop.permute.xlu0 %2589  ;;  %2597 = vst.msk [vmem:[#allocation5 + $0xf0] sm:$0xff] %vm2551_vm15, %v2592_v29  ;;  %v2666_v9 = vld [vmem:[#allocation5 + $0x58] sm:$0xff] }
 0x36c   :  { %2598 = vst.msk [vmem:[#allocation5 + $0xf8] sm:$0xff] %vm2553_vm0, %v2592_v29  ;;  %2596 = vst.msk [vmem:[#allocation5 + $0xd8] sm:$0xff] %vm2553_vm0, %v2590_v1  ;;  %v2665_v60 = vld [vmem:[#allocation5 + $0x50] sm:$0xff]  ;;  %v2670_v22 = vld [vmem:[#allocation5 + $0x78] sm:$0xff] }
 0x36d   :  { %2595 = vst.msk [vmem:[#allocation5 + $0xd0] sm:$0xff] %vm2551_vm15, %v2590_v1 }
 0x36e   :  { %3124 = vmatmul.mubr.f32.gmra.mrb[2].mxu1 %v2661_v43  ;;  %v2606_v14 = vpop.permute.xlu1 %2605  ;;  %v2677_v5 = vld [vmem:[#allocation5 + $0xb0] sm:$0xff] }
 0x36f   :  { %4138 = vmatprep.mubr.msk.f32.mxu1 %vm2553_vm0, %v2666_v9  ;;  %v2604_v11 = vpop.permute.xlu0 %2603  ;;  %2611 = vst.msk [vmem:[#allocation5 + $0x130] sm:$0xff] %vm2551_vm15, %v2606_v14  ;;  %v2674_v42 = vld [vmem:[#allocation5 + $0x98] sm:$0xff] }
 0x370   :  { %2612 = vst.msk [vmem:[#allocation5 + $0x138] sm:$0xff] %vm2553_vm0, %v2606_v14  ;;  %2610 = vst.msk [vmem:[#allocation5 + $0x118] sm:$0xff] %vm2553_vm0, %v2604_v11  ;;  %v2673_v58 = vld [vmem:[#allocation5 + $0x90] sm:$0xff]  ;;  %v2678_v2 = vld [vmem:[#allocation5 + $0xb8] sm:$0xff] }
 0x371   :  { %2609 = vst.msk [vmem:[#allocation5 + $0x110] sm:$0xff] %vm2551_vm15, %v2604_v11 }
 0x372   :  { %3130 = vmatmul.mubr.f32.gmra.mrb[4].mxu1 %v2665_v60  ;;  %v2620_v34 = vpop.permute.xlu1 %2619  ;;  %v2685_v63 = vld [vmem:[#allocation5 + $0xf0] sm:$0xff] }
 0x373   :  { %4139 = vmatprep.mubr.msk.f32.mxu1 %vm2553_vm0, %v2670_v22  ;;  %v2618_v35 = vpop.permute.xlu0 %2617  ;;  %2625 = vst.msk [vmem:[#allocation5 + $0x170] sm:$0xff] %vm2551_vm15, %v2620_v34  ;;  %v2682_v56 = vld [vmem:[#allocation5 + $0xd8] sm:$0xff] }
 0x374   :  { %2626 = vst.msk [vmem:[#allocation5 + $0x178] sm:$0xff] %vm2553_vm0, %v2620_v34  ;;  %2624 = vst.msk [vmem:[#allocation5 + $0x158] sm:$0xff] %vm2553_vm0, %v2618_v35  ;;  %v2681_v31 = vld [vmem:[#allocation5 + $0xd0] sm:$0xff]  ;;  %v2686_v25 = vld [vmem:[#allocation5 + $0xf8] sm:$0xff] }
 0x375   :  { %2623 = vst.msk [vmem:[#allocation5 + $0x150] sm:$0xff] %vm2551_vm15, %v2618_v35  ;;  %v5017_v35 = vmov 0.0|0.0  }
 0x376   :  { %3136 = vmatmul.mubr.f32.gmra.mrb[6].mxu1 %v2669_v39  ;;  %v2634_v16 = vpop.permute.xlu1 %2633  ;;  %v2693_v48 = vld [vmem:[#allocation5 + $0x130] sm:$0xff]  ;;  %4683 = vmatprep.subr.bf16.mxu1 %v5017_v35  ;;  %v3464_v39 = vld [vmem:[%s7818_s5] sm:$0xff] }
 0x377   :  { %4140 = vmatprep.mubr.msk.f32.mxu1 %vm2553_vm0, %v2674_v42  ;;  %v2632_v20 = vpop.permute.xlu0 %2631  ;;  %2639 = vst.msk [vmem:[#allocation5 + $0x1b0] sm:$0xff] %vm2551_vm15, %v2634_v16  ;;  %v2690_v17 = vld [vmem:[#allocation5 + $0x118] sm:$0xff]  ;;  %v3465_v42 = vld [vmem:[%s7818_s5 + $0x8] sm:$0xff]  ;;  %4779 = vmatprep.subr.bf16.mxu0 %v5017_v35 }
 0x378   :  { %2640 = vst.msk [vmem:[#allocation5 + $0x1b8] sm:$0xff] %vm2553_vm0, %v2634_v16  ;;  %2638 = vst.msk [vmem:[#allocation5 + $0x198] sm:$0xff] %vm2553_vm0, %v2632_v20  ;;  %v2689_v27 = vld [vmem:[#allocation5 + $0x110] sm:$0xff]  ;;  %v2694_v45 = vld [vmem:[#allocation5 + $0x138] sm:$0xff] }
 0x379   :  { %2637 = vst.msk [vmem:[#allocation5 + $0x190] sm:$0xff] %vm2551_vm15, %v2632_v20 }
 0x37a   :  { %3142 = vmatmul.mubr.f32.gmra.mrb[8].mxu1 %v2673_v58  ;;  %v2648_v19 = vpop.permute.xlu1 %2647  ;;  %v2701_v32 = vld [vmem:[#allocation5 + $0x170] sm:$0xff]  ;;  %v4684_v58 = vpack.c.bf16 %v3465_v42, %v3464_v39 }
 0x37b   :  { %4141 = vmatprep.mubr.msk.f32.mxu1 %vm2553_vm0, %v2678_v2  ;;  %v2646_v23 = vpop.permute.xlu0 %2645  ;;  %2653 = vst.msk [vmem:[#allocation5 + $0x1f0] sm:$0xff] %vm2551_vm15, %v2648_v19  ;;  %v2698_v28 = vld [vmem:[#allocation5 + $0x158] sm:$0xff] }
 0x37c   :  { %2654 = vst.msk [vmem:[#allocation5 + $0x1f8] sm:$0xff] %vm2553_vm0, %v2648_v19  ;;  %2652 = vst.msk [vmem:[#allocation5 + $0x1d8] sm:$0xff] %vm2553_vm0, %v2646_v23  ;;  %v2697_v6 = vld [vmem:[#allocation5 + $0x150] sm:$0xff]  ;;  %v2702_v38 = vld [vmem:[#allocation5 + $0x178] sm:$0xff]  ;;  %4685 = vmatpush3.bf16.msra.mxu1 %v4684_v58 }
 0x37d   :  { %2651 = vst.msk [vmem:[#allocation5 + $0x1d0] sm:$0xff] %vm2551_vm15, %v2646_v23  ;;  %4686 = vmatprep.subr.bf16.mxu1 %v5017_v35 }
 0x37e   :  { %3148 = vmatmul.mubr.f32.gmra.mrb[10].mxu1 %v2677_v5  ;;  %v2709_v15 = vld [vmem:[#allocation5 + $0x1b0] sm:$0xff] }
 0x37f   :  { %4142 = vmatprep.mubr.msk.f32.mxu1 %vm2553_vm0, %v2682_v56  ;;  %v2706_v30 = vld [vmem:[#allocation5 + $0x198] sm:$0xff] }
 0x380   :  { %v2705_v54 = vld [vmem:[#allocation5 + $0x190] sm:$0xff]  ;;  %v2710_v10 = vld [vmem:[#allocation5 + $0x1b8] sm:$0xff] }
 0x382   :  { %3154 = vmatmul.mubr.f32.gmra.mrb[12].mxu1 %v2681_v31  ;;  %v2717_v55 = vld [vmem:[#allocation5 + $0x1f0] sm:$0xff] }
 0x383   :  { %4143 = vmatprep.mubr.msk.f32.mxu1 %vm2553_vm0, %v2686_v25  ;;  %v2714_v18 = vld [vmem:[#allocation5 + $0x1d8] sm:$0xff] }
 0x384   :  { %v2713_v7 = vld [vmem:[#allocation5 + $0x1d0] sm:$0xff]  ;;  %v2718_v52 = vld [vmem:[#allocation5 + $0x1f8] sm:$0xff] }
 0x386   :  { %3160 = vmatmul.mubr.f32.gmra.mrb[14].mxu1 %v2685_v63 }
 0x387   :  { %4144 = vmatprep.mubr.msk.f32.mxu1 %vm2553_vm0, %v2690_v17 }
 0x38a   :  { %3166 = vmatmul.mubr.f32.gmra.mrb[16].mxu1 %v2689_v27 }
 0x38b   :  { %4145 = vmatprep.mubr.msk.f32.mxu1 %vm2553_vm0, %v2694_v45 }
 0x38e   :  { %3172 = vmatmul.mubr.f32.gmra.mrb[18].mxu1 %v2693_v48 }
 0x38f   :  { %4146 = vmatprep.mubr.msk.f32.mxu1 %vm2553_vm0, %v2698_v28 }
 0x392   :  { %3178 = vmatmul.mubr.f32.gmra.mrb[20].mxu1 %v2697_v6 }
 0x393   :  { %4147 = vmatprep.mubr.msk.f32.mxu1 %vm2553_vm0, %v2702_v38 }
 0x396   :  { %3184 = vmatmul.mubr.f32.gmra.mrb[22].mxu1 %v2701_v32 }
 0x397   :  { %4148 = vmatprep.mubr.msk.f32.mxu1 %vm2553_vm0, %v2706_v30 }
 0x39a   :  { %3190 = vmatmul.mubr.f32.gmra.mrb[24].mxu1 %v2705_v54 }
 0x39b   :  { %4149 = vmatprep.mubr.msk.f32.mxu1 %vm2553_vm0, %v2710_v10 }
 0x39e   :  { %3196 = vmatmul.mubr.f32.gmra.mrb[26].mxu1 %v2709_v15 }
 0x39f   :  { %4150 = vmatprep.mubr.msk.f32.mxu1 %vm2553_vm0, %v2714_v18 }
 0x3a2   :  { %3202 = vmatmul.mubr.f32.gmra.mrb[28].mxu1 %v2713_v7  ;;  %v3466_v7 = vld [vmem:[%s7818_s5 + $0x10] sm:$0xff] }
 0x3a3   :  { %4151 = vmatprep.mubr.msk.f32.mxu1 %vm2553_vm0, %v2718_v52  ;;  %v3467_v52 = vld [vmem:[%s7818_s5 + $0x18] sm:$0xff] }
 0x3a4   :  { %v4687_v37 = vpack.c.bf16 %v3467_v52, %v3466_v7 }
 0x3a6   :  { %3208 = vmatmul.mubr.f32.gmra.mrb[30].mxu1 %v2717_v55 }
 0x3a7   :  { %4688 = vmatpush3.bf16.msra.mxu1 %v4687_v37 }
 0x3a8   :  { %4689 = vmatprep.subr.bf16.mxu1 %v5017_v35 }
 0x43d   :  { %v3119_v51 = vpop.f32.mrb[0].mxu1 }
 0x43e   :  { %v7298_v49 = vadd.f32 %v3119_v51, %v7291_v62  ;;  %v3121_v59 = vpop.f32.mrb[1].mxu1 }
 0x43f   :  { %v4859_v46 = vadd.f32 %v3121_v59, %v7295_v36 }
 0x440   :  { %v3214_v13 = vmax.f32 %v7298_v49, 0.0 }
 0x441   :  { %v3215_v50 = vmax.f32 %v4859_v46, 0.0  ;;  %v3125_v57 = vpop.f32.mrb[2].mxu1 }
 0x442   :  { %v7303_v44 = vadd.f32 %v3125_v57, %v7291_v62  ;;  %v3127_v8 = vpop.f32.mrb[3].mxu1  ;;  %3278 = vrot.lane.b32.xlu0 %v3214_v13, %s5016_s4 }
 0x443   :  { %v4861_v53 = vadd.f32 %v3127_v8, %v7295_v36  ;;  %3280 = vrot.lane.b32.xlu1 %v3215_v50, %s5016_s4 }
 0x444   :  { %v3216_v47 = vmax.f32 %v7303_v44, 0.0 }
 0x445   :  { %v3217_v12 = vmax.f32 %v4861_v53, 0.0  ;;  %v3131_v21 = vpop.f32.mrb[4].mxu1 }
 0x446   :  { %v7312_v24 = vadd.f32 %v3131_v21, %v7291_v62  ;;  %3282 = vrot.lane.b32.xlu0 %v3216_v47, %s5016_s4  ;;  %v3133_v61 = vpop.f32.mrb[5].mxu1 }
 0x447   :  { %v4863_v0 = vadd.f32 %v3133_v61, %v7295_v36  ;;  %3284 = vrot.lane.b32.xlu1 %v3217_v12, %s5016_s4 }
 0x448   :  { %v3218_v4 = vmax.f32 %v7312_v24, 0.0 }
 0x449   :  { %v3219_v40 = vmax.f32 %v4863_v0, 0.0  ;;  %v3137_v3 = vpop.f32.mrb[6].mxu1 }
 0x44a   :  { %v7321_v26 = vadd.f32 %v3137_v3, %v7291_v62  ;;  %v3139_v29 = vpop.f32.mrb[7].mxu1  ;;  %3286 = vrot.lane.b32.xlu0 %v3218_v4, %s5016_s4 }
 0x44b   :  { %v4865_v1 = vadd.f32 %v3139_v29, %v7295_v36  ;;  %3288 = vrot.lane.b32.xlu1 %v3219_v40, %s5016_s4 }
 0x44c   :  { %v3220_v43 = vmax.f32 %v7321_v26, 0.0 }
 0x44d   :  { %v3221_v9 = vmax.f32 %v4865_v1, 0.0  ;;  %v3143_v14 = vpop.f32.mrb[8].mxu1 }
 0x44e   :  { %v7330_v11 = vadd.f32 %v3143_v14, %v7291_v62  ;;  %3290 = vrot.lane.b32.xlu0 %v3220_v43, %s5016_s4  ;;  %v3145_v60 = vpop.f32.mrb[9].mxu1 }
 0x44f   :  { %v4867_v22 = vadd.f32 %v3145_v60, %v7295_v36  ;;  %3292 = vrot.lane.b32.xlu1 %v3221_v9, %s5016_s4 }
 0x450   :  { %v3222_v34 = vmax.f32 %v7330_v11, 0.0 }
 0x451   :  { %v3223_v16 = vmax.f32 %v4867_v22, 0.0  ;;  %v3149_v20 = vpop.f32.mrb[10].mxu1 }
 0x452   :  { %v7347_v2 = vadd.f32 %v3149_v20, %v7291_v62  ;;  %v3151_v19 = vpop.f32.mrb[11].mxu1  ;;  %3294 = vrot.lane.b32.xlu0 %v3222_v34, %s5016_s4  ;;  %v3469_v20 = vld [vmem:[%s7818_s5 + $0x28] sm:$0xff] }
 0x453   :  { %v4869_v23 = vadd.f32 %v3151_v19, %v7295_v36  ;;  %3296 = vrot.lane.b32.xlu1 %v3223_v16, %s5016_s4  ;;  %v3468_v16 = vld [vmem:[%s7818_s5 + $0x20] sm:$0xff] }
 0x454   :  { %v3224_v5 = vmax.f32 %v7347_v2, 0.0  ;;  %v4690_v19 = vpack.c.bf16 %v3469_v20, %v3468_v16 }
 0x455   :  { %v3225_v56 = vmax.f32 %v4869_v23, 0.0  ;;  %v3155_v31 = vpop.f32.mrb[12].mxu1 }
 0x456   :  { %v7357_v25 = vadd.f32 %v3155_v31, %v7291_v62  ;;  %3298 = vrot.lane.b32.xlu0 %v3224_v5, %s5016_s4  ;;  %v3157_v63 = vpop.f32.mrb[13].mxu1  ;;  %4691 = vmatpush3.bf16.msra.mxu1 %v4690_v19 }
 0x457   :  { %v4871_v17 = vadd.f32 %v3157_v63, %v7295_v36  ;;  %3300 = vrot.lane.b32.xlu1 %v3225_v56, %s5016_s4  ;;  %4692 = vmatprep.subr.bf16.mxu1 %v5017_v35 }
 0x458   :  { %v3226_v27 = vmax.f32 %v7357_v25, 0.0 }
 0x459   :  { %v3227_v45 = vmax.f32 %v4871_v17, 0.0  ;;  %v3161_v48 = vpop.f32.mrb[14].mxu1 }
 0x45a   :  { %v7366_v28 = vadd.f32 %v3161_v48, %v7291_v62  ;;  %v3163_v6 = vpop.f32.mrb[15].mxu1  ;;  %3302 = vrot.lane.b32.xlu0 %v3226_v27, %s5016_s4 }
 0x45b   :  { %v4873_v38 = vadd.f32 %v3163_v6, %v7295_v36  ;;  %3304 = vrot.lane.b32.xlu1 %v3227_v45, %s5016_s4 }
 0x45c   :  { %v3228_v32 = vmax.f32 %v7366_v28, 0.0 }
 0x45d   :  { %v3229_v30 = vmax.f32 %v4873_v38, 0.0  ;;  %v3167_v54 = vpop.f32.mrb[16].mxu1 }
 0x45e   :  { %v7375_v10 = vadd.f32 %v3167_v54, %v7291_v62  ;;  %3306 = vrot.lane.b32.xlu0 %v3228_v32, %s5016_s4  ;;  %v3169_v15 = vpop.f32.mrb[17].mxu1 }
 0x45f   :  { %v4875_v18 = vadd.f32 %v3169_v15, %v7295_v36  ;;  %3308 = vrot.lane.b32.xlu1 %v3229_v30, %s5016_s4  ;;  %v3470_v15 = vld [vmem:[%s7818_s5 + $0x30] sm:$0xff] }
 0x460   :  { %v3230_v55 = vmax.f32 %v7375_v10, 0.0 }
 0x461   :  { %v3231_v41 = vmax.f32 %v4875_v18, 0.0  ;;  %v3173_v33 = vpop.f32.mrb[18].mxu1  ;;  %v3471_v18 = vld [vmem:[%s7818_s5 + $0x38] sm:$0xff] }
 0x462   :  { %v7390_v51 = vadd.f32 %v3173_v33, %v7291_v62  ;;  %v3175_v59 = vpop.f32.mrb[19].mxu1  ;;  %3310 = vrot.lane.b32.xlu0 %v3230_v55, %s5016_s4  ;;  %v4693_v52 = vpack.c.bf16 %v3471_v18, %v3470_v15 }
 0x463   :  { %v4877_v46 = vadd.f32 %v3175_v59, %v7295_v36  ;;  %3312 = vrot.lane.b32.xlu1 %v3231_v41, %s5016_s4 }
 0x464   :  { %v3232_v50 = vmax.f32 %v7390_v51, 0.0  ;;  %4694 = vmatpush3.bf16.msra.mxu1 %v4693_v52 }
 0x465   :  { %v3233_v57 = vmax.f32 %v4877_v46, 0.0  ;;  %v3179_v8 = vpop.f32.mrb[20].mxu1  ;;  %4695 = vmatprep.subr.bf16.mxu1 %v5017_v35 }
 0x466   :  { %v7400_v53 = vadd.f32 %v3179_v8, %v7291_v62  ;;  %3314 = vrot.lane.b32.xlu0 %v3232_v50, %s5016_s4  ;;  %v3181_v12 = vpop.f32.mrb[21].mxu1 }
 0x467   :  { %v4879_v21 = vadd.f32 %v3181_v12, %v7295_v36  ;;  %3316 = vrot.lane.b32.xlu1 %v3233_v57, %s5016_s4 }
 0x468   :  { %v3234_v61 = vmax.f32 %v7400_v53, 0.0 }
 0x469   :  { %v3235_v0 = vmax.f32 %v4879_v21, 0.0  ;;  %v3185_v40 = vpop.f32.mrb[22].mxu1  ;;  %v7859_v21 = vmov 0.0  }
 0x46a   :  { %v7409_v3 = vadd.f32 %v3185_v40, %v7291_v62  ;;  %v3187_v29 = vpop.f32.mrb[23].mxu1  ;;  %3318 = vrot.lane.b32.xlu0 %v3234_v61, %s5016_s4  ;;  %4306 = vmatprep.mubr.msk.f32.mxu1 %vm5018_vm1, %v7859_v21 }
 0x46b   :  { %v4881_v1 = vadd.f32 %v3187_v29, %v7295_v36  ;;  %3320 = vrot.lane.b32.xlu1 %v3235_v0, %s5016_s4  ;;  %4456 = vmatprep.mubr.msk.f32.mxu0 %vm5018_vm1, %v7859_v21 }
 0x46c   :  { %v3236_v9 = vmax.f32 %v7409_v3, 0.0 }
 0x46d   :  { %v3237_v14 = vmax.f32 %v4881_v1, 0.0  ;;  %v3191_v60 = vpop.f32.mrb[24].mxu1 }
 0x46e   :  { %v7418_v22 = vadd.f32 %v3191_v60, %v7291_v62  ;;  %3322 = vrot.lane.b32.xlu0 %v3236_v9, %s5016_s4  ;;  %v3193_v39 = vpop.f32.mrb[25].mxu1 }
 0x46f   :  { %v4883_v42 = vadd.f32 %v3193_v39, %v7295_v36  ;;  %3324 = vrot.lane.b32.xlu1 %v3237_v14, %s5016_s4 }
 0x470   :  { %v3238_v58 = vmax.f32 %v7418_v22, 0.0 }
 0x471   :  { %v3239_v23 = vmax.f32 %v4883_v42, 0.0  ;;  %v3197_v56 = vpop.f32.mrb[26].mxu1 }
 0x472   :  { %v7433_v31 = vadd.f32 %v3197_v56, %v7291_v62  ;;  %v3199_v63 = vpop.f32.mrb[27].mxu1  ;;  %3326 = vrot.lane.b32.xlu0 %v3238_v58, %s5016_s4 }
 0x473   :  { %v4885_v17 = vadd.f32 %v3199_v63, %v7295_v36  ;;  %3328 = vrot.lane.b32.xlu1 %v3239_v23, %s5016_s4 }
 0x474   :  { %v3240_v45 = vmax.f32 %v7433_v31, 0.0 }
 0x475   :  { %v3241_v48 = vmax.f32 %v4885_v17, 0.0  ;;  %v3203_v6 = vpop.f32.mrb[28].mxu1 }
 0x476   :  { %v7443_v38 = vadd.f32 %v3203_v6, %v7291_v62  ;;  %3330 = vrot.lane.b32.xlu0 %v3240_v45, %s5016_s4  ;;  %v3205_v30 = vpop.f32.mrb[29].mxu1 }
 0x477   :  { %v4887_v54 = vadd.f32 %v3205_v30, %v7295_v36  ;;  %3332 = vrot.lane.b32.xlu1 %v3241_v48, %s5016_s4 }
 0x478   :  { %v3242_v7 = vmax.f32 %v7443_v38, 0.0 }
 0x479   :  { %v3243_v37 = vmax.f32 %v4887_v54, 0.0  ;;  %v3209_v41 = vpop.f32.mrb[30].mxu1 }
 0x47a   :  { %v7458_v33 = vadd.f32 %v3209_v41, %v7291_v62  ;;  %v3211_v59 = vpop.f32.mrb[31].mxu1  ;;  %3334 = vrot.lane.b32.xlu0 %v3242_v7, %s5016_s4  ;;  %v3472_v62 = vld [vmem:[%s7818_s5 + $0x40] sm:$0xff] }
 0x47b   :  { %v4889_v46 = vadd.f32 %v3211_v59, %v7295_v36  ;;  %3336 = vrot.lane.b32.xlu1 %v3243_v37, %s5016_s4  ;;  %v3473_v36 = vld [vmem:[%s7818_s5 + $0x48] sm:$0xff] }
 0x47c   :  { %v3244_v57 = vmax.f32 %v7458_v33, 0.0  ;;  %v4696_v12 = vpack.c.bf16 %v3473_v36, %v3472_v62  ;;  %v4155_v33 = vld [vmem:[%s7818_s5 + $0x58] sm:$0xff] }
 0x47d   :  { %v3245_v8 = vmax.f32 %v4889_v46, 0.0 }
 0x47e   :  { %3338 = vrot.lane.b32.xlu0 %v3244_v57, %s5016_s4  ;;  %4697 = vmatpush3.bf16.msra.mxu1 %v4696_v12 }
 0x47f   :  { %3340 = vrot.lane.b32.xlu1 %v3245_v8, %s5016_s4  ;;  %4698 = vmatprep.subr.bf16.mxu1 %v5017_v35 }
 0x4b4   :  { %v3279_v0 = vpop.permute.xlu0 %3278 }
 0x4b5   :  { %v3281_v40 = vpop.permute.xlu1 %3280 }
 0x4b6   :  { %v3343_v29 = vsel %vm3342_vm2, %v3279_v0, %v3281_v40 }
 0x4b7   :  { %v3375_v1 = vmax.f32 %v3214_v13, %v3343_v29 }
 0x4b8   :  { %v3283_v14 = vpop.permute.xlu0 %3282 }
 0x4b9   :  { %3391 = vst.msk [vmem:[#allocation6] sm:$0xff] %vm2439_vm13, %v3375_v1  ;;  %v3285_v60 = vpop.permute.xlu1 %3284 }
 0x4ba   :  { %v3344_v39 = vsel %vm3342_vm2, %v3283_v14, %v3285_v60 }
 0x4bb   :  { %v3376_v42 = vmax.f32 %v3216_v47, %v3344_v39 }
 0x4bc   :  { %v3287_v16 = vpop.permute.xlu0 %3286 }
 0x4bd   :  { %3392 = vst.msk [vmem:[#allocation6 + $0x8] sm:$0xff] %vm2439_vm13, %v3376_v42  ;;  %v3289_v20 = vpop.permute.xlu1 %3288 }
 0x4be   :  { %v3345_v19 = vsel %vm3342_vm2, %v3287_v16, %v3289_v20 }
 0x4bf   :  { %v3377_v23 = vmax.f32 %v3218_v4, %v3345_v19 }
 0x4c0   :  { %v3291_v49 = vpop.permute.xlu0 %3290 }
 0x4c1   :  { %3393 = vst.msk [vmem:[#allocation6 + $0x10] sm:$0xff] %vm2439_vm13, %v3377_v23  ;;  %v3293_v13 = vpop.permute.xlu1 %3292 }
 0x4c2   :  { %v3346_v56 = vsel %vm3342_vm2, %v3291_v49, %v3293_v13 }
 0x4c3   :  { %v3378_v63 = vmax.f32 %v3220_v43, %v3346_v56 }
 0x4c4   :  { %v3407_v44 = vld [vmem:[#allocation6] ss:$2 sm:$0xff]  ;;  %v3423_v47 = vld [vmem:[#allocation6 + $0x1] ss:$2 sm:$0xff]  ;;  %v3295_v17 = vpop.permute.xlu0 %3294 }
 0x4c5   :  { %v3438_v48 = vmax.f32 %v3407_v44, %v3423_v47  ;;  %3394 = vst.msk [vmem:[#allocation6 + $0x18] sm:$0xff] %vm2439_vm13, %v3378_v63  ;;  %v3297_v6 = vpop.permute.xlu1 %3296 }
 0x4c6   :  { %v3347_v30 = vsel %vm3342_vm2, %v3295_v17, %v3297_v6 }
 0x4c7   :  { %3446 = vst.msk [vmem:[#allocation7] sm:$0xff] %vm2439_vm13, %v3438_v48  ;;  %v3379_v24 = vmax.f32 %v3222_v34, %v3347_v30 }
 0x4c8   :  { %v3299_v4 = vpop.permute.xlu0 %3298 }
 0x4c9   :  { %3395 = vst.msk [vmem:[#allocation6 + $0x20] sm:$0xff] %vm2439_vm13, %v3379_v24  ;;  %v3301_v54 = vpop.permute.xlu1 %3300 }
 0x4ca   :  { %v3348_v26 = vsel %vm3342_vm2, %v3299_v4, %v3301_v54 }
 0x4cb   :  { %v3380_v43 = vmax.f32 %v3224_v5, %v3348_v26 }
 0x4cc   :  { %v3409_v15 = vld [vmem:[#allocation6 + $0x10] ss:$2 sm:$0xff]  ;;  %v3425_v18 = vld [vmem:[#allocation6 + $0x11] ss:$2 sm:$0xff]  ;;  %v3303_v52 = vpop.permute.xlu0 %3302 }
 0x4cd   :  { %v3439_v37 = vmax.f32 %v3409_v15, %v3425_v18  ;;  %3396 = vst.msk [vmem:[#allocation6 + $0x28] sm:$0xff] %vm2439_vm13, %v3380_v43  ;;  %v3305_v41 = vpop.permute.xlu1 %3304 }
 0x4ce   :  { %v3349_v59 = vsel %vm3342_vm2, %v3303_v52, %v3305_v41 }
 0x4cf   :  { %3447 = vst.msk [vmem:[#allocation7 + $0x8] sm:$0xff] %vm2439_vm13, %v3439_v37  ;;  %v3381_v11 = vmax.f32 %v3226_v27, %v3349_v59  ;;  %v4156_v59 = vld [vmem:[%s7818_s5 + $0x60] sm:$0xff] }
 0x4d0   :  { %v3307_v34 = vpop.permute.xlu0 %3306 }
 0x4d1   :  { %3397 = vst.msk [vmem:[#allocation6 + $0x30] sm:$0xff] %vm2439_vm13, %v3381_v11  ;;  %v3309_v46 = vpop.permute.xlu1 %3308  ;;  %v4157_v11 = vld [vmem:[%s7818_s5 + $0x68] sm:$0xff] }
 0x4d2   :  { %v3350_v2 = vsel %vm3342_vm2, %v3307_v34, %v3309_v46  ;;  %v4702_v34 = vpack.c.bf16 %v4157_v11, %v4156_v59  ;;  %v4158_v46 = vld [vmem:[%s7818_s5 + $0x70] sm:$0xff]  ;;  %v4195_v11 = vld [vmem:[%s7818_s5 + $0x180] sm:$0xff] }
 0x4d3   :  { %v3382_v5 = vmax.f32 %v3228_v32, %v3350_v2  ;;  %v4159_v2 = vld [vmem:[%s7818_s5 + $0x78] sm:$0xff] }
 0x4d4   :  { %v3411_v8 = vld [vmem:[#allocation6 + $0x20] ss:$2 sm:$0xff]  ;;  %v3427_v62 = vld [vmem:[#allocation6 + $0x21] ss:$2 sm:$0xff]  ;;  %v3311_v36 = vpop.permute.xlu0 %3310 }
 0x4d5   :  { %v3440_v12 = vmax.f32 %v3411_v8, %v3427_v62  ;;  %3398 = vst.msk [vmem:[#allocation6 + $0x38] sm:$0xff] %vm2439_vm13, %v3382_v5  ;;  %v3313_v0 = vpop.permute.xlu1 %3312  ;;  %v4705_v5 = vpack.c.bf16 %v4159_v2, %v4158_v46  ;;  %v4160_v8 = vld [vmem:[%s7818_s5 + $0x80] sm:$0xff]  ;;  %v4161_v62 = vld [vmem:[%s7818_s5 + $0x88] sm:$0xff] }
 0x4d6   :  { %v3351_v40 = vsel %vm3342_vm2, %v3311_v36, %v3313_v0  ;;  %v4708_v36 = vpack.c.bf16 %v4161_v62, %v4160_v8  ;;  %v4163_v0 = vld [vmem:[%s7818_s5 + $0x98] sm:$0xff]  ;;  %v3905_v2 = vld [vmem:[%s7819_s7] sm:$0xff] }
 0x4d7   :  { %3448 = vst.msk [vmem:[#allocation7 + $0x10] sm:$0xff] %vm2439_vm13, %v3440_v12  ;;  %v3383_v25 = vmax.f32 %v3230_v55, %v3351_v40  ;;  %v4162_v12 = vld [vmem:[%s7818_s5 + $0x90] sm:$0xff] }
 0x4d8   :  { %v3315_v27 = vpop.permute.xlu0 %3314  ;;  %v4711_v40 = vpack.c.bf16 %v4163_v0, %v4162_v12  ;;  %v3907_v0 = vld [vmem:[%s7819_s7 + $0x10] sm:$0xff] }
 0x4d9   :  { %3399 = vst.msk [vmem:[#allocation6 + $0x40] sm:$0xff] %vm2439_vm13, %v3383_v25  ;;  %v3317_v29 = vpop.permute.xlu1 %3316  ;;  %v4165_v25 = vld [vmem:[%s7818_s5 + $0xa0] sm:$0xff] }
 0x4da   :  { %v3352_v28 = vsel %vm3342_vm2, %v3315_v27, %v3317_v29  ;;  %v4166_v27 = vld [vmem:[%s7818_s5 + $0xa8] sm:$0xff] }
 0x4db   :  { %v3384_v32 = vmax.f32 %v3232_v50, %v3352_v28 }
 0x4dc   :  { %v3413_v1 = vld [vmem:[#allocation6 + $0x30] ss:$2 sm:$0xff]  ;;  %v3429_v14 = vld [vmem:[#allocation6 + $0x31] ss:$2 sm:$0xff]  ;;  %v3319_v60 = vpop.permute.xlu0 %3318 }
 0x4dd   :  { %v3441_v39 = vmax.f32 %v3413_v1, %v3429_v14  ;;  %3400 = vst.msk [vmem:[#allocation6 + $0x48] sm:$0xff] %vm2439_vm13, %v3384_v32  ;;  %v3321_v42 = vpop.permute.xlu1 %3320  ;;  %v4714_v32 = vpack.c.bf16 %v4166_v27, %v4165_v25  ;;  %v4167_v14 = vld [vmem:[%s7818_s5 + $0xb0] sm:$0xff]  ;;  %v3909_v27 = vld [vmem:[%s7819_s7 + $0x20] sm:$0xff] }
 0x4de   :  { %v3353_v16 = vsel %vm3342_vm2, %v3319_v60, %v3321_v42  ;;  %v4168_v60 = vld [vmem:[%s7818_s5 + $0xb8] sm:$0xff]  ;;  %v4169_v42 = vld [vmem:[%s7818_s5 + $0xc0] sm:$0xff] }
 0x4df   :  { %3449 = vst.msk [vmem:[#allocation7 + $0x18] sm:$0xff] %vm2439_vm13, %v3441_v39  ;;  %v3385_v10 = vmax.f32 %v3234_v61, %v3353_v16  ;;  %v4717_v39 = vpack.c.bf16 %v4168_v60, %v4167_v14  ;;  %v4170_v16 = vld [vmem:[%s7818_s5 + $0xc8] sm:$0xff]  ;;  %v3913_v60 = vld [vmem:[%s7819_s7 + $0x40] sm:$0xff] }
 0x4e0   :  { %v3323_v55 = vpop.permute.xlu0 %3322 }
 0x4e1   :  { %3401 = vst.msk [vmem:[#allocation6 + $0x50] sm:$0xff] %vm2439_vm13, %v3385_v10  ;;  %v3325_v20 = vpop.permute.xlu1 %3324  ;;  %v4720_v10 = vpack.c.bf16 %v4170_v16, %v4169_v42  ;;  %v3915_v16 = vld [vmem:[%s7819_s7 + $0x50] sm:$0xff] }
 0x4e2   :  { %v3354_v51 = vsel %vm3342_vm2, %v3323_v55, %v3325_v20  ;;  %v4171_v55 = vld [vmem:[%s7818_s5 + $0xd0] sm:$0xff]  ;;  %v4172_v20 = vld [vmem:[%s7818_s5 + $0xd8] sm:$0xff] }
 0x4e3   :  { %v3386_v50 = vmax.f32 %v3236_v9, %v3354_v51  ;;  %v4723_v51 = vpack.c.bf16 %v4172_v20, %v4171_v55  ;;  %v3917_v20 = vld [vmem:[%s7819_s7 + $0x60] sm:$0xff] }
 0x4e4   :  { %v3415_v19 = vld [vmem:[#allocation6 + $0x40] ss:$2 sm:$0xff]  ;;  %v3431_v23 = vld [vmem:[#allocation6 + $0x41] ss:$2 sm:$0xff]  ;;  %v3327_v49 = vpop.permute.xlu0 %3326 }
 0x4e5   :  { %v3442_v13 = vmax.f32 %v3415_v19, %v3431_v23  ;;  %3402 = vst.msk [vmem:[#allocation6 + $0x58] sm:$0xff] %vm2439_vm13, %v3386_v50  ;;  %v3329_v56 = vpop.permute.xlu1 %3328  ;;  %v4173_v50 = vld [vmem:[%s7818_s5 + $0xe0] sm:$0xff]  ;;  %v4174_v19 = vld [vmem:[%s7818_s5 + $0xe8] sm:$0xff] }
 0x4e6   :  { %v3355_v63 = vsel %vm3342_vm2, %v3327_v49, %v3329_v56  ;;  %v3549_v28 = vld [vmem:[#allocation7 + $0x1] ss:$8 sm:$0xf]  ;;  %v4726_v23 = vpack.c.bf16 %v4174_v19, %v4173_v50  ;;  %v3816_v62 = vld [vmem:[#allocation7 + $0x4] ss:$8 sm:$0xf] }
 0x4e7   :  { %3450 = vst.msk [vmem:[#allocation7 + $0x20] sm:$0xff] %vm2439_vm13, %v3442_v13  ;;  %v3387_v53 = vmax.f32 %v3238_v58, %v3355_v63  ;;  %v4176_v49 = vld [vmem:[%s7818_s5 + $0xf0] sm:$0xff]  ;;  %v4177_v13 = vld [vmem:[%s7818_s5 + $0xf8] sm:$0xff] }
 0x4e8   :  { %v3331_v61 = vpop.permute.xlu0 %3330  ;;  %v3638_v63 = vld [vmem:[#allocation7 + $0x2] ss:$8 sm:$0xf] }
 0x4e9   :  { %3403 = vst.msk [vmem:[#allocation6 + $0x60] sm:$0xff] %vm2439_vm13, %v3387_v53  ;;  %v3333_v44 = vpop.permute.xlu1 %3332  ;;  %v4729_v53 = vpack.c.bf16 %v4177_v13, %v4176_v49  ;;  %v3919_v19 = vld [vmem:[%s7819_s7 + $0x70] sm:$0xff]  ;;  %v4003_v49 = vld [vmem:[%s7820_s9 + $0x8] sm:$0xff] }
 0x4ea   :  { %v3356_v3 = vsel %vm3342_vm2, %v3331_v61, %v3333_v44  ;;  %v4178_v44 = vld [vmem:[%s7818_s5 + $0x100] sm:$0xff]  ;;  %v4004_v13 = vld [vmem:[%s7820_s9 + $0x10] sm:$0xff] }
 0x4eb   :  { %v3388_v9 = vmax.f32 %v3240_v45, %v3356_v3  ;;  %v4179_v3 = vld [vmem:[%s7818_s5 + $0x108] sm:$0xff] }
 0x4ec   :  { %v3417_v47 = vld [vmem:[#allocation6 + $0x50] ss:$2 sm:$0xff]  ;;  %v3433_v17 = vld [vmem:[#allocation6 + $0x51] ss:$2 sm:$0xff]  ;;  %v3335_v48 = vpop.permute.xlu0 %3334 }
 0x4ed   :  { %v3443_v6 = vmax.f32 %v3417_v47, %v3433_v17  ;;  %3404 = vst.msk [vmem:[#allocation6 + $0x68] sm:$0xff] %vm2439_vm13, %v3388_v9  ;;  %v3337_v30 = vpop.permute.xlu1 %3336  ;;  %v4732_v9 = vpack.c.bf16 %v4179_v3, %v4178_v44  ;;  %v4180_v47 = vld [vmem:[%s7818_s5 + $0x110] sm:$0xff]  ;;  %v4181_v17 = vld [vmem:[%s7818_s5 + $0x118] sm:$0xff]  ;;  %v4007_v44 = vld [vmem:[%s7820_s9 + $0x28] sm:$0xff] }
 0x4ee   :  { %v3357_v24 = vsel %vm3342_vm2, %v3335_v48, %v3337_v30  ;;  %v4735_v48 = vpack.c.bf16 %v4181_v17, %v4180_v47  ;;  %v4183_v30 = vld [vmem:[%s7818_s5 + $0x128] sm:$0xff]  ;;  %v4009_v47 = vld [vmem:[%s7820_s9 + $0x38] sm:$0xff] }
 0x4ef   :  { %3451 = vst.msk [vmem:[#allocation7 + $0x28] sm:$0xff] %vm2439_vm13, %v3443_v6  ;;  %v3389_v22 = vmax.f32 %v3242_v7, %v3357_v24  ;;  %v4154_v7 = vld [vmem:[%s7818_s5 + $0x50] sm:$0xff]  ;;  %v4182_v6 = vld [vmem:[%s7818_s5 + $0x120] sm:$0xff] }
 0x4f0   :  { %v3339_v58 = vpop.permute.xlu0 %3338  ;;  %v4699_v37 = vpack.c.bf16 %v4155_v33, %v4154_v7  ;;  %v4738_v24 = vpack.c.bf16 %v4183_v30, %v4182_v6  ;;  %v4191_v33 = vld [vmem:[%s7818_s5 + $0x160] sm:$0xff]  ;;  %v4011_v6 = vld [vmem:[%s7820_s9 + $0x48] sm:$0xff] }
 0x4f1   :  { %3405 = vst.msk [vmem:[#allocation6 + $0x70] sm:$0xff] %vm2439_vm13, %v3389_v22  ;;  %v3341_v4 = vpop.permute.xlu1 %3340  ;;  %v4184_v22 = vld [vmem:[%s7818_s5 + $0x130] sm:$0xff] }
 0x4f2   :  { %v3358_v31 = vsel %vm3342_vm2, %v3339_v58, %v3341_v4  ;;  %v4185_v58 = vld [vmem:[%s7818_s5 + $0x138] sm:$0xff] }
 0x4f3   :  { %v3390_v45 = vmax.f32 %v3244_v57, %v3358_v31  ;;  %v3461_v57 = vld [vmem:[#allocation7] ss:$8 sm:$0xf]  ;;  %v4741_v4 = vpack.c.bf16 %v4185_v58, %v4184_v22 }
 0x4f4   :  { %v3419_v54 = vld [vmem:[#allocation6 + $0x60] ss:$2 sm:$0xff]  ;;  %v3435_v26 = vld [vmem:[#allocation6 + $0x61] ss:$2 sm:$0xff] }
 0x4f5   :  { %v3444_v43 = vmax.f32 %v3419_v54, %v3435_v26  ;;  %3406 = vst.msk [vmem:[#allocation6 + $0x78] sm:$0xff] %vm2439_vm13, %v3390_v45  ;;  %v4187_v31 = vld [vmem:[%s7818_s5 + $0x140] sm:$0xff]  ;;  %v4188_v45 = vld [vmem:[%s7818_s5 + $0x148] sm:$0xff] }
 0x4f6   :  { %v3727_v26 = vld [vmem:[#allocation7 + $0x3] ss:$8 sm:$0xf]  ;;  %v4152_v22 = vld [vmem:[%s7821_s6] ss:$0 sm:$0xff] }
 0x4f7   :  { %3452 = vst.msk [vmem:[#allocation7 + $0x30] sm:$0xff] %vm2439_vm13, %v3444_v43  ;;  %v4744_v43 = vpack.c.bf16 %v4188_v45, %v4187_v31 }
 0x4fc   :  { %v3421_v15 = vld [vmem:[#allocation6 + $0x70] ss:$2 sm:$0xff]  ;;  %v3437_v18 = vld [vmem:[#allocation6 + $0x71] ss:$2 sm:$0xff] }
 0x4fd   :  { %v3445_v38 = vmax.f32 %v3421_v15, %v3437_v18  ;;  %v4189_v18 = vld [vmem:[%s7818_s5 + $0x150] sm:$0xff] }
 0x4ff   :  { %3453 = vst.msk [vmem:[#allocation7 + $0x38] sm:$0xff] %vm2439_vm13, %v3445_v38  ;;  %v4190_v38 = vld [vmem:[%s7818_s5 + $0x158] sm:$0xff] }
 0x500   :  { %v4747_v7 = vpack.c.bf16 %v4190_v38, %v4189_v18 }
 0x506   :  { %v3462_v52 = vld [vmem:[#allocation7] ss:$8 sm:$0xf0]  ;;  %v3550_v29 = vld [vmem:[#allocation7 + $0x1] ss:$8 sm:$0xf0] }
 0x507   :  { %v3463_v41 = vor.u32 %v3462_v52, %v3461_v57  ;;  %v3551_v1 = vor.u32 %v3550_v29, %v3549_v28  ;;  %v3639_v56 = vld [vmem:[#allocation7 + $0x2] ss:$8 sm:$0xf0]  ;;  %v3728_v54 = vld [vmem:[#allocation7 + $0x3] ss:$8 sm:$0xf0] }
 0x508   :  { %v3640_v61 = vor.u32 %v3639_v56, %v3638_v63  ;;  %v3729_v15 = vor.u32 %v3728_v54, %v3727_v26  ;;  %v4192_v57 = vld [vmem:[%s7818_s5 + $0x168] sm:$0xff]  ;;  %v4005_v63 = vld [vmem:[%s7820_s9 + $0x18] sm:$0xff] }
 0x509   :  { %4307 = vmatmul.mubr.msk.f32.vlgmr.msra.gmra.mrb[32].mxu1 %vm2439_vm13, %v3463_v41  ;;  %v4750_v52 = vpack.c.bf16 %v4192_v57, %v4191_v33  ;;  %v4194_v41 = vld [vmem:[%s7818_s5 + $0x178] sm:$0xff]  ;;  %v3910_v29 = vld [vmem:[%s7819_s7 + $0x28] sm:$0xff] }
 0x50a   :  { %4700 = vmatpush3.bf16.msra.mxu1 %v4699_v37  ;;  %4329 = vmatprep.mubr.msk.f32.mxu1 %vm5018_vm1, %v7859_v21  ;;  %v4193_v37 = vld [vmem:[%s7818_s5 + $0x170] sm:$0xff]  ;;  %v4765_v28 = vpack.c.bf16 %v3910_v29, %v3909_v27 }
 0x50b   :  { %4701 = vmatprep.subr.bf16.mxu1 %v5017_v35  ;;  %v4753_v59 = vpack.c.bf16 %v4194_v41, %v4193_v37  ;;  %v3817_v8 = vld [vmem:[#allocation7 + $0x4] ss:$8 sm:$0xf0] }
 0x50c   :  { %v3818_v12 = vor.u32 %v3817_v8, %v3816_v62 }
 0x50e   :  { %4703 = vmatpush3.bf16.msra.mxu1 %v4702_v34  ;;  %v4196_v34 = vld [vmem:[%s7818_s5 + $0x188] sm:$0xff] }
 0x50f   :  { %4704 = vmatprep.subr.bf16.mxu1 %v5017_v35  ;;  %v4756_v46 = vpack.c.bf16 %v4196_v34, %v4195_v11 }
 0x512   :  { %4706 = vmatpush3.bf16.msra.mxu1 %v4705_v5  ;;  %v3906_v5 = vld [vmem:[%s7819_s7 + $0x8] sm:$0xff] }
 0x513   :  { %4707 = vmatprep.subr.bf16.mxu1 %v5017_v35 }
 0x516   :  { %4709 = vmatpush3.bf16.msra.mxu1 %v4708_v36  ;;  %v4759_v36 = vpack.c.bf16 %v3906_v5, %v3905_v2 }
 0x517   :  { %4710 = vmatprep.subr.bf16.mxu1 %v5017_v35 }
 0x51a   :  { %4712 = vmatpush3.bf16.msra.mxu1 %v4711_v40  ;;  %v3908_v40 = vld [vmem:[%s7819_s7 + $0x18] sm:$0xff] }
 0x51b   :  { %4713 = vmatprep.subr.bf16.mxu1 %v5017_v35  ;;  %v4762_v25 = vpack.c.bf16 %v3908_v40, %v3907_v0 }
 0x51d   :  { %4330 = vmatmul.mubr.msk.f32.vlgmr.msra.gmra.mrb[32].mxu1 %vm2439_vm13, %v3551_v1  ;;  %v3912_v1 = vld [vmem:[%s7819_s7 + $0x38] sm:$0xff] }
 0x51e   :  { %4715 = vmatpush3.bf16.msra.mxu1 %v4714_v32  ;;  %4352 = vmatprep.mubr.msk.f32.mxu1 %vm5018_vm1, %v7859_v21  ;;  %v3911_v32 = vld [vmem:[%s7819_s7 + $0x30] sm:$0xff] }
 0x51f   :  { %4716 = vmatprep.subr.bf16.mxu1 %v5017_v35  ;;  %v4768_v14 = vpack.c.bf16 %v3912_v1, %v3911_v32 }
 0x522   :  { %4718 = vmatpush3.bf16.msra.mxu1 %v4717_v39  ;;  %v3914_v39 = vld [vmem:[%s7819_s7 + $0x48] sm:$0xff] }
 0x523   :  { %4719 = vmatprep.subr.bf16.mxu1 %v5017_v35  ;;  %v4771_v42 = vpack.c.bf16 %v3914_v39, %v3913_v60 }
 0x526   :  { %4721 = vmatpush3.bf16.msra.mxu1 %v4720_v10  ;;  %v3916_v10 = vld [vmem:[%s7819_s7 + $0x58] sm:$0xff] }
 0x527   :  { %4722 = vmatprep.subr.bf16.mxu1 %v5017_v35  ;;  %v4774_v55 = vpack.c.bf16 %v3916_v10, %v3915_v16 }
 0x52a   :  { %4724 = vmatpush3.bf16.msra.mxu1 %v4723_v51  ;;  %v3918_v51 = vld [vmem:[%s7819_s7 + $0x68] sm:$0xff] }
 0x52b   :  { %4725 = vmatprep.subr.bf16.mxu1 %v5017_v35  ;;  %v4777_v50 = vpack.c.bf16 %v3918_v51, %v3917_v20 }
 0x52e   :  { %4727 = vmatpush3.bf16.msra.mxu1 %v4726_v23  ;;  %v4002_v23 = vld [vmem:[%s7820_s9] sm:$0xff] }
 0x52f   :  { %4728 = vmatprep.subr.bf16.mxu1 %v5017_v35  ;;  %v4780_v56 = vpack.c.bf16 %v4003_v49, %v4002_v23 }
 0x531   :  { %4353 = vmatmul.mubr.msk.f32.vlgmr.msra.gmra.mrb[32].mxu1 %vm2439_vm13, %v3640_v61  ;;  %4781 = vmatpush3.bf16.msra.mxu0 %v4780_v56  ;;  %v4006_v61 = vld [vmem:[%s7820_s9 + $0x20] sm:$0xff] }
 0x532   :  { %4730 = vmatpush3.bf16.msra.mxu1 %v4729_v53  ;;  %4375 = vmatprep.mubr.msk.f32.mxu1 %vm5018_vm1, %v7859_v21  ;;  %v4783_v53 = vpack.c.bf16 %v4005_v63, %v4004_v13  ;;  %v4786_v3 = vpack.c.bf16 %v4007_v44, %v4006_v61 }
 0x533   :  { %4731 = vmatprep.subr.bf16.mxu1 %v5017_v35  ;;  %4782 = vmatprep.subr.bf16.mxu0 %v5017_v35 }
 0x535   :  { %4784 = vmatpush3.bf16.msra.mxu0 %v4783_v53 }
 0x536   :  { %4733 = vmatpush3.bf16.msra.mxu1 %v4732_v9  ;;  %4785 = vmatprep.subr.bf16.mxu0 %v5017_v35  ;;  %v4008_v9 = vld [vmem:[%s7820_s9 + $0x30] sm:$0xff] }
 0x537   :  { %4734 = vmatprep.subr.bf16.mxu1 %v5017_v35  ;;  %v4789_v17 = vpack.c.bf16 %v4009_v47, %v4008_v9 }
 0x539   :  { %4787 = vmatpush3.bf16.msra.mxu0 %v4786_v3 }
 0x53a   :  { %4736 = vmatpush3.bf16.msra.mxu1 %v4735_v48  ;;  %4788 = vmatprep.subr.bf16.mxu0 %v5017_v35  ;;  %v4010_v48 = vld [vmem:[%s7820_s9 + $0x40] sm:$0xff] }
 0x53b   :  { %4737 = vmatprep.subr.bf16.mxu1 %v5017_v35  ;;  %v4792_v30 = vpack.c.bf16 %v4011_v6, %v4010_v48 }
 0x53d   :  { %4790 = vmatpush3.bf16.msra.mxu0 %v4789_v17 }
 0x53e   :  { %4739 = vmatpush3.bf16.msra.mxu1 %v4738_v24  ;;  %4791 = vmatprep.subr.bf16.mxu0 %v5017_v35  ;;  %v4012_v24 = vld [vmem:[%s7820_s9 + $0x50] sm:$0xf] }
 0x53f   :  { %4740 = vmatprep.subr.bf16.mxu1 %v5017_v35 }
 0x541   :  { %4793 = vmatpush3.bf16.msra.mxu0 %v4792_v30 }
 0x542   :  { %4742 = vmatpush3.bf16.msra.mxu1 %v4741_v4  ;;  %4454 = vmatprep.subr.mxu0 %v7859_v21 }
 0x543   :  { %4743 = vmatprep.subr.bf16.mxu1 %v5017_v35 }
 0x545   :  { %4376 = vmatmul.mubr.msk.f32.vlgmr.msra.gmra.mrb[32].mxu1 %vm2439_vm13, %v3729_v15  ;;  %4455 = vmatpush3.msk.msra.mxu0 %vm2885_vm14, %v4012_v24  ;;  %v4200_v15 = vld [vmem:[%s7823_s10] ss:$0 sm:$0xff] }
 0x546   :  { %4745 = vmatpush3.bf16.msra.mxu1 %v4744_v43  ;;  %4398 = vmatprep.mubr.msk.f32.mxu1 %vm5018_vm1, %v7859_v21 }
 0x547   :  { %4746 = vmatprep.subr.bf16.mxu1 %v5017_v35 }
 0x54a   :  { %4748 = vmatpush3.bf16.msra.mxu1 %v4747_v7 }
 0x54b   :  { %4749 = vmatprep.subr.bf16.mxu1 %v5017_v35 }
 0x54e   :  { %4751 = vmatpush3.bf16.msra.mxu1 %v4750_v52 }
 0x54f   :  { %4752 = vmatprep.subr.bf16.mxu1 %v5017_v35 }
 0x552   :  { %4754 = vmatpush3.bf16.msra.mxu1 %v4753_v59 }
 0x553   :  { %4755 = vmatprep.subr.bf16.mxu1 %v5017_v35 }
 0x556   :  { %4757 = vmatpush3.bf16.msra.mxu1 %v4756_v46 }
 0x557   :  { %4758 = vmatprep.subr.bf16.mxu1 %v5017_v35 }
 0x559   :  { %4399 = vmatmul.mubr.msk.f32.vlgmr.msra.gmra.mrb[32].mxu1 %vm2439_vm13, %v3818_v12 }
 0x55a   :  { %4760 = vmatpush3.bf16.msra.mxu1 %v4759_v36  ;;  %4431 = vmatprep.mubr.msk.f32.mxu1 %vm5018_vm1, %v7859_v21 }
 0x55b   :  { %4761 = vmatprep.subr.bf16.mxu1 %v5017_v35 }
 0x55e   :  { %4763 = vmatpush3.bf16.msra.mxu1 %v4762_v25 }
 0x55f   :  { %4764 = vmatprep.subr.bf16.mxu1 %v5017_v35 }
 0x562   :  { %4766 = vmatpush3.bf16.msra.mxu1 %v4765_v28 }
 0x563   :  { %4767 = vmatprep.subr.bf16.mxu1 %v5017_v35 }
 0x566   :  { %4769 = vmatpush3.bf16.msra.mxu1 %v4768_v14 }
 0x567   :  { %4770 = vmatprep.subr.bf16.mxu1 %v5017_v35 }
 0x56a   :  { %4772 = vmatpush3.bf16.msra.mxu1 %v4771_v42 }
 0x56b   :  { %4773 = vmatprep.subr.bf16.mxu1 %v5017_v35 }
 0x56e   :  { %4775 = vmatpush3.bf16.msra.mxu1 %v4774_v55 }
 0x56f   :  { %4776 = vmatprep.subr.bf16.mxu1 %v5017_v35  ;;  %v4198_v35 = vld [vmem:[%s7822_s8] ss:$0 sm:$0xff] }
 0x572   :  { %4778 = vmatpush3.bf16.msra.mxu1 %v4777_v50 }
 0x573   :  { %4429 = vmatprep.subr.mxu1 %v7859_v21 }
 0x576   :  { %4430 = vmatpush3.msra.mxu1 %v3919_v19 }
 0x62c   :  { %v3899_v58 = vpop.f32.mrb[32].mxu1 }
 0x62d   :  { %v4890_v4 = vadd.f32 %v4152_v22, %v3899_v58  ;;  %v4400_v31 = vpop.f32.mrb[33].mxu1 }
 0x62f   :  { %v3904_v45 = vmax.f32 %v4890_v4, 0.0 }
 0x631   :  { %4432 = vmatmul.mubr.msk.f32.vlgmr.msra.gmra.mrb[34].mxu1 %vm3927_vm3, %v3904_v45 }
 0x704   :  { %v3997_v21 = vpop.f32.mrb[34].mxu1 }
 0x705   :  { %v3998_v54 = vadd.f32 %v4198_v35, %v3997_v21  ;;  %v4433_v26 = vpop.f32.mrb[35].mxu1 }
 0x707   :  { %v4001_v43 = vmax.f32 %v3998_v54, 0.0 }
 0x709   :  { %4457 = vmatmul.mubr.msk.f32.vlgmr.msra.gmra.mrb[64].mxu0 %vm2035_vm6, %v4001_v43 }
 0x7dc   :  { %v4092_v18 = vpop.f32.mrb[64].mxu0 }
 0x7dd   :  { %v4093_v38 = vadd.f32 %v4200_v15, %v4092_v18  ;;  %v4458_v7 = vpop.f32.mrb[65].mxu0 }
 0x7df   :  { %4097 = vst.msk [vmem:[%s7824_s11] sm:$0xff] %vm4096_vm4, %v4093_v38 }

</bundles_post_ra>
